<compile_context>
chip_gen: v6e
topology: v6e:2x2x1
jax: 0.10.0
libtpu: 0.0.40
codegen_flags: <defaults>
</compile_context>

<pallas_src>
import functools

import numpy as np
import jax
import jax.numpy as jnp
from jax.experimental import pallas as pl
from jax.experimental.pallas import tpu as pltpu


# Raw-pixel value that maps to 0.0 under the folded normalization (x/255 - 0.5).
PAD_RAW = 127.5


# ------------------------------- kernel ------------------------------------ #
def _fill_pad(ref, c, val):
    """Fill the SAME-padding regions of a (bt, H+2, (W+2)*C) padded scratch.

    Row lane layout: [pixel 0..W-1 (W*C lanes) | left-pad | right-pad (2*C lanes)].
    Rows 0 and H+1 are the top/bottom pad rows.  Refilled every grid step:
    scratch is per-TensorCore and uninitialized, so a one-time init gated on
    program_id==0 would be wrong when the "parallel" batch axis is split
    across megacore TensorCores.  Cost: a few tiny vector stores per step.
    (Skipping the side-lane fill via zeroed banded-weight pad rows was
    considered but rejected: uninitialized VMEM could hold NaN/Inf and
    NaN * 0 = NaN would poison the MXU accumulation.)
    """
    bt, hp, wc = ref.shape
    row = jnp.full((bt, 1, wc), val, ref.dtype)
    ref[:, 0:1, :] = row                       # top pad row
    ref[:, hp - 1:hp, :] = row                 # bottom pad row
    ref[:, :, wc - 2 * c:wc] = jnp.full((bt, hp, 2 * c), val, ref.dtype)


def _encoder_kernel(x_ref, w1_ref, b1_ref, w2_ref, b2_ref, o_ref,
                    xp1_ref, xp2_ref, *, bt, h, w, cin, c1):
    """conv3x3(SAME)+ReLU -> conv3x3(SAME)+ReLU on bt samples.

    x_ref : (bt, H, W*Cin)  raw 0..255 pixels in bf16 (normalize folded into w1/b1)
    w*_ref: (3, (W+2)*Cin_l, W*Cout_l) banded bf16 weight matrices
    b*_ref: (1, W*Cout_l) f32 biases replicated per output column
    o_ref : (bt*H, W*C2) lane-dense output
    xp*_ref: (bt, H+2, (W+2)*C) bf16 padded-activation scratch.
    """
    rows = bt * h

    # SAME-padding borders (see _fill_pad docstring for why this is per-step).
    _fill_pad(xp1_ref, cin, PAD_RAW)   # raw 127.5 == 0 after folded normalize
    _fill_pad(xp2_ref, c1, 0.0)

    # conv1 input interior: raw bf16 pixels, lane-offset-0 store.
    xp1_ref[:, 1:h + 1, 0:w * cin] = x_ref[...]

    def conv3x3_relu(xp_ref, wb_ref, b_ref):
        # One (rows, (W+2)*C) x ((W+2)*C, W*Cout) bf16 matmul per kernel row:
        # the 3-tap window along W is folded into the banded weight matrix, so
        # every output column is produced at once with large, lane-dense K/N.
        # Scratch is already bf16, so the operand feeds the MXU without any
        # per-dy cast pass.
        k = xp_ref.shape[2]
        acc = None
        for dy in range(3):
            a = xp_ref[:, dy:dy + h, :].reshape(rows, k)
            p = jnp.dot(a, wb_ref[dy], preferred_element_type=jnp.float32)
            acc = p if acc is None else acc + p
        # Bias added once after the matmuls; ReLU in f32 on the VPU.
        return jnp.maximum(acc + b_ref[...], 0.0)

    h1 = conv3x3_relu(xp1_ref, w1_ref, b1_ref)                # (bt*H, W*C1) f32
    # Single f32->bf16 cast here (instead of 3x at read time).
    xp2_ref[:, 1:h + 1, 0:w * c1] = h1.reshape(bt, h, w * c1).astype(xp2_ref.dtype)
    h2 = conv3x3_relu(xp2_ref, w2_ref, b2_ref)                # (bt*H, W*C2) f32

    # Lane-dense, fully aligned output store (last dim W*C2 % 128 == 0).
    o_ref[...] = h2.astype(o_ref.dtype)


# ------------------------------ wrapper ------------------------------------ #
def _banded_weights(w_hwio, width):
    """HWIO (3,3,Cin,Cout) -> (3, (width+2)*Cin, width*Cout) banded matrices.

    mats[dy] maps a flattened padded row (layout [pixels | left-pad | right-pad])
    to all `width` output columns at once:  out_row(dy) = padded_row(dy) @ mats[dy].
    """
    kh, kw, cin, cout = w_hwio.shape
    assert (kh, kw) == (3, 3), "encoder approximation uses 3x3 convs"
    pos = jnp.arange(width + 2)
    # pixel index held at each storage position (-1 = left pad, width = right pad)
    pix = jnp.where(pos == width, -1, jnp.where(pos == width + 1, width, pos))
    wo = jnp.arange(width)
    tap = pix[None, :] - wo[:, None] + 1          # (wo, pos) -> kernel tap dx
    valid = (tap >= 0) & (tap < kw)
    tap_c = jnp.clip(tap, 0, kw - 1)
    mats = []
    for dy in range(kh):
        t = jnp.where(valid[:, :, None, None], w_hwio[dy, tap_c], 0.0)  # (wo,pos,ci,co)
        mats.append(t.transpose(1, 2, 0, 3).reshape((width + 2) * cin, width * cout))
    return jnp.stack(mats, axis=0)


def _prepare_params(w1, b1, w2, b2, width):
    c1 = w1.shape[3]
    c2 = w2.shape[3]
    # Fold normalize(x) = x/255 - 0.5 into the (affine) first conv:
    #   conv(x/255 - 0.5, w1) + b1 == conv(x_raw, w1/255) + b1 - 127.5*sum_k(w1/255)
    # with SAME padding done in raw space using 127.5 (== normalized 0).
    # Quantize the normalized weights to bf16 FIRST and derive the folded bias
    # from the quantized values, so the 127.5-pad / bias cancellation at image
    # borders is exact (127.5 and the bf16 weights are both exact in bf16, and
    # their products are exact in the f32 accumulator).
    w1f = w1.astype(jnp.float32)
    w1q = (w1f / 255.0).astype(jnp.bfloat16).astype(jnp.float32)
    b1_folded = (b1.reshape(1, c1).astype(jnp.float32)
                 - PAD_RAW * jnp.sum(w1q, axis=(0, 1, 2))[None, :])
    # bf16 MXU operands; accumulation stays f32 inside the kernel.
    w1b = _banded_weights(w1q, width).astype(jnp.bfloat16)            # exact cast
    w2b = _banded_weights(w2.astype(jnp.float32), width).astype(jnp.bfloat16)
    b1r = jnp.tile(b1_folded, (1, width))                             # (1, W*C1)
    b2r = jnp.tile(b2.reshape(1, c2).astype(jnp.float32), (1, width))  # (1, W*C2)
    return w1b, b1r, w2b, b2r


def _pick_block_batch(batch):
    """Batch tile bt; M = bt*H rows per MXU pass.

    Never fall back to bt=1 (worst of both worlds): small batches run as one
    grid step (B=2 -> bt=2), large batches use bt=16 (M=256, fills the
    v6e/v7x 256-tall MXU) or bt=8 (M=128, matches v5e); if neither divides,
    the wrapper pads the batch instead of shrinking bt.
    """
    if batch <= 0:
        return 1
    if batch <= 16:
        return batch
    for bt in (16, 8):
        if batch % bt == 0:
            return bt
    return 8   # wrapper pads batch up to a multiple of 8


def encoder_pallas(x_nhwc, w1, b1, w2, b2, *, block_batch=None,
                   out_dtype=jnp.float32):
    """Batched encoder net: grid over batch chunks == torch.split/cat loop."""
    batch, height, width, cin = x_nhwc.shape
    c1 = w1.shape[3]
    c2 = w2.shape[3]

    w1b, b1r, w2b, b2r = _prepare_params(w1, b1, w2, b2, width)

    bt = block_batch if block_batch is not None else _pick_block_batch(batch)
    pad_b = (-batch) % bt
    if pad_b:
        # Pad the batch (raw zeros -> normalized -0.5; results are discarded)
        # rather than shrinking bt to 1.
        x_nhwc = jnp.concatenate(
            [x_nhwc, jnp.zeros((pad_b,) + x_nhwc.shape[1:], x_nhwc.dtype)], axis=0)
    bp = batch + pad_b

    # Rows stored flat along lanes: (B, H, W*Cin).  Ship bf16 to the kernel:
    # the MXU operand is bf16 anyway, so results are bit-identical and the
    # input DMA is halved vs f32.
    x_rows = x_nhwc.reshape(bp, height, width * cin).astype(jnp.bfloat16)

    kernel = functools.partial(_encoder_kernel, bt=bt, h=height, w=width,
                               cin=cin, c1=c1)
    out = pl.pallas_call(
        kernel,
        out_shape=jax.ShapeDtypeStruct((bp * height, width * c2), out_dtype),
        grid_spec=pltpu.PrefetchScalarGridSpec(
            num_scalar_prefetch=0,
            grid=(bp // bt,),
            in_specs=[
                pl.BlockSpec((bt, height, width * cin), lambda i: (i, 0, 0)),
                pl.BlockSpec(w1b.shape, lambda i: (0, 0, 0)),
                pl.BlockSpec(b1r.shape, lambda i: (0, 0)),
                pl.BlockSpec(w2b.shape, lambda i: (0, 0, 0)),
                pl.BlockSpec(b2r.shape, lambda i: (0, 0)),
            ],
            out_specs=pl.BlockSpec((bt * height, width * c2), lambda i: (i, 0)),
            scratch_shapes=[
                # bf16 padded-activation scratch (half the VMEM + half the vld
                # bytes vs f32; values were cast to bf16 before the dot anyway).
                pltpu.VMEM((bt, height + 2, (width + 2) * cin), jnp.bfloat16),
                pltpu.VMEM((bt, height + 2, (width + 2) * c1), jnp.bfloat16),
            ],
        ),
        compiler_params=pltpu.CompilerParams(
            dimension_semantics=("parallel",),
            vmem_limit_bytes=64 * 1024 * 1024),
    )(x_rows, w1b, b1r, w2b, b2r)
    out = out[: batch * height]
    return out.reshape(batch, height, width, c2)


def encoder_forward(input_img, w1, b1, w2, b2):
    """Mirrors Encoder.forward. 4-D input is NCHW (PyTorch); 3-D input is HWC."""
    if input_img.ndim == 3:
        # resize_input_img: zero-pad the RAW image to a square, add batch dim.
        # (normalize runs afterwards in the original; the folded conv1 maps the
        #  raw zero pad to -0.5 exactly as torch does.)
        hh, ww, _ = input_img.shape
        m = max(hh, ww)
        ph, pw = (m - hh) // 2, (m - ww) // 2
        x = jnp.pad(input_img, ((ph, m - hh - ph), (pw, m - ww - pw), (0, 0)))
        x_nhwc = x[None].astype(jnp.float32)
    elif input_img.ndim == 4:
        x_nhwc = jnp.transpose(input_img, (0, 2, 3, 1)).astype(jnp.float32)
    else:
        raise ValueError("expected 3-D (HWC) or 4-D (NCHW) input")
    return encoder_pallas(x_nhwc, w1, b1, w2, b2)


def get_feature_vector(h):
    return h.reshape(h.shape[0], -1)


# ------------------------- deterministic param init ------------------------- #
def xavier_uniform(key, shape, fan_in, fan_out):
    limit = float(np.sqrt(6.0 / (fan_in + fan_out)))
    return jax.random.uniform(key, shape, jnp.float32, -limit, limit)


# ----------------------------- plain-JAX reference -------------------------- #
def reference_forward(x_nchw, w1, b1, w2, b2):
    dn = ("NHWC", "HWIO", "NHWC")
    x = jnp.transpose(x_nchw, (0, 2, 3, 1)).astype(jnp.float32) / 255.0 - 0.5
    h1 = jax.nn.relu(
        jax.lax.conv_general_dilated(x, w1, (1, 1), "SAME", dimension_numbers=dn)
        + b1.reshape(1, 1, 1, -1))
    h2 = jax.nn.relu(
        jax.lax.conv_general_dilated(h1, w2, (1, 1), "SAME", dimension_numbers=dn)
        + b2.reshape(1, 1, 1, -1))
    return h2


if __name__ == "__main__":
    key = jax.random.PRNGKey(0)
    k_x, k_w1, k_b1, k_w2, k_b2 = jax.random.split(key, 5)

    # Small shapes consistent with the module: input_shape = (H, W, C) = (16, 16, 4)
    B, C, H, W = 2, 4, 16, 16
    C1, C2 = 32, 64

    # Raw image-like input in [0, 255], NCHW like PyTorch.
    x = jax.random.uniform(k_x, (B, C, H, W), jnp.float32, 0.0, 255.0)

    # Xavier-uniform conv weights (utils.init_xavier_weights analogue), HWIO layout.
    w1 = xavier_uniform(k_w1, (3, 3, C, C1), fan_in=C * 9, fan_out=C1 * 9)
    b1 = (0.01 * jax.random.normal(k_b1, (1, C1))).astype(jnp.float32)
    w2 = xavier_uniform(k_w2, (3, 3, C1, C2), fan_in=C1 * 9, fan_out=C2 * 9)
    b2 = (0.01 * jax.random.normal(k_b2, (1, C2))).astype(jnp.float32)

    out = encoder_forward(x, w1, b1, w2, b2)
    out = jax.block_until_ready(out)

    ref = reference_forward(x, w1, b1, w2, b2)
    assert out.shape == (B, H, W, C2), out.shape
    # bf16 MXU operands (f32 accumulation) => looser tolerance than pure f32.
    np.testing.assert_allclose(np.asarray(out), np.asarray(ref), rtol=5e-2, atol=2e-2)
    assert float(jnp.mean(jnp.abs(out - ref))) < 5e-3

    print("KERNEL_OK")
</pallas_src>

<mosaic_0001>
module attributes {stable_mosaic.version = 11 : i64} {
  func.func @_encoder_kernel(%arg0: i32, %arg1: memref<2x16x64xbf16, #tpu.memory_space<vmem>>, %arg2: memref<3x72x512xbf16, #tpu.memory_space<vmem>>, %arg3: memref<1x512xf32, #tpu.memory_space<vmem>>, %arg4: memref<3x576x1024xbf16, #tpu.memory_space<vmem>>, %arg5: memref<1x1024xf32, #tpu.memory_space<vmem>>, %arg6: memref<32x1024xf32, #tpu.memory_space<vmem>>, %arg7: memref<2x18x72xbf16, #tpu.memory_space<vmem>>, %arg8: memref<2x18x576xbf16, #tpu.memory_space<vmem>>) attributes {dimension_semantics = [#tpu.dimension_semantics<parallel>], iteration_bounds = array<i64: 1>, scalar_prefetch = 0 : i64, scratch_operands = 2 : i64, tpu.core_type = #tpu.core_type<tc>, window_params = [{transform_indices = @transform_0, window_bounds = array<i64: 2, 16, 64>}, {pipeline_mode = #tpu.pipeline_mode<synchronous>, transform_indices = @transform_1, window_bounds = array<i64: 3, 72, 512>}, {pipeline_mode = #tpu.pipeline_mode<synchronous>, transform_indices = @transform_2, window_bounds = array<i64: 1, 512>}, {pipeline_mode = #tpu.pipeline_mode<synchronous>, transform_indices = @transform_3, window_bounds = array<i64: 3, 576, 1024>}, {pipeline_mode = #tpu.pipeline_mode<synchronous>, transform_indices = @transform_4, window_bounds = array<i64: 1, 1024>}, {transform_indices = @transform_5, window_bounds = array<i64: 32, 1024>}]} {
    %cst = arith.constant 1.275000e+02 : bf16
    %0 = vector.broadcast %cst : bf16 to vector<2x1x72xbf16>
    %c0 = arith.constant 0 : index
    %c0_0 = arith.constant 0 : index
    %c0_1 = arith.constant 0 : index
    %1 = vector.load %arg7[%c0, %c0_0, %c0_1] : memref<2x18x72xbf16, #tpu.memory_space<vmem>>, vector<2x1x72xbf16>
    tpu.vector_store %arg7[%c0, %c0_0, %c0_1], %0 {strides = array<i32>} : memref<2x18x72xbf16, #tpu.memory_space<vmem>>, vector<2x1x72xbf16>,
    %c0_2 = arith.constant 0 : index
    %c17 = arith.constant 17 : index
    %c0_3 = arith.constant 0 : index
    %2 = vector.load %arg7[%c0_2, %c17, %c0_3] : memref<2x18x72xbf16, #tpu.memory_space<vmem>>, vector<2x1x72xbf16>
    tpu.vector_store %arg7[%c0_2, %c17, %c0_3], %0 {strides = array<i32>} : memref<2x18x72xbf16, #tpu.memory_space<vmem>>, vector<2x1x72xbf16>,
    %cst_4 = arith.constant 1.275000e+02 : bf16
    %3 = vector.broadcast %cst_4 : bf16 to vector<2x18x8xbf16>
    %c0_5 = arith.constant 0 : index
    %c0_6 = arith.constant 0 : index
    %c64 = arith.constant 64 : index
    %4 = vector.load %arg7[%c0_5, %c0_6, %c64] : memref<2x18x72xbf16, #tpu.memory_space<vmem>>, vector<2x18x8xbf16>
    tpu.vector_store %arg7[%c0_5, %c0_6, %c64], %3 {strides = array<i32>} : memref<2x18x72xbf16, #tpu.memory_space<vmem>>, vector<2x18x8xbf16>,
    %cst_7 = arith.constant 0.000000e+00 : bf16
    %5 = vector.broadcast %cst_7 : bf16 to vector<2x1x576xbf16>
    %c0_8 = arith.constant 0 : index
    %c0_9 = arith.constant 0 : index
    %c0_10 = arith.constant 0 : index
    %6 = vector.load %arg8[%c0_8, %c0_9, %c0_10] : memref<2x18x576xbf16, #tpu.memory_space<vmem>>, vector<2x1x576xbf16>
    tpu.vector_store %arg8[%c0_8, %c0_9, %c0_10], %5 {strides = array<i32>} : memref<2x18x576xbf16, #tpu.memory_space<vmem>>, vector<2x1x576xbf16>,
    %c0_11 = arith.constant 0 : index
    %c17_12 = arith.constant 17 : index
    %c0_13 = arith.constant 0 : index
    %7 = vector.load %arg8[%c0_11, %c17_12, %c0_13] : memref<2x18x576xbf16, #tpu.memory_space<vmem>>, vector<2x1x576xbf16>
    tpu.vector_store %arg8[%c0_11, %c17_12, %c0_13], %5 {strides = array<i32>} : memref<2x18x576xbf16, #tpu.memory_space<vmem>>, vector<2x1x576xbf16>,
    %cst_14 = arith.constant 0.000000e+00 : bf16
    %8 = vector.broadcast %cst_14 : bf16 to vector<2x18x64xbf16>
    %c0_15 = arith.constant 0 : index
    %c0_16 = arith.constant 0 : index
    %c512 = arith.constant 512 : index
    %9 = vector.load %arg8[%c0_15, %c0_16, %c512] : memref<2x18x576xbf16, #tpu.memory_space<vmem>>, vector<2x18x64xbf16>
    tpu.vector_store %arg8[%c0_15, %c0_16, %c512], %8 {strides = array<i32>} : memref<2x18x576xbf16, #tpu.memory_space<vmem>>, vector<2x18x64xbf16>,
    %c0_17 = arith.constant 0 : index
    %c0_18 = arith.constant 0 : index
    %c0_19 = arith.constant 0 : index
    %10 = vector.load %arg1[%c0_17, %c0_18, %c0_19] : memref<2x16x64xbf16, #tpu.memory_space<vmem>>, vector<2x16x64xbf16>
    %c0_20 = arith.constant 0 : index
    %c1 = arith.constant 1 : index
    %c0_21 = arith.constant 0 : index
    %11 = vector.load %arg7[%c0_20, %c1, %c0_21] : memref<2x18x72xbf16, #tpu.memory_space<vmem>>, vector<2x16x64xbf16>
    tpu.vector_store %arg7[%c0_20, %c1, %c0_21], %10 {strides = array<i32>} : memref<2x18x72xbf16, #tpu.memory_space<vmem>>, vector<2x16x64xbf16>,
    %c0_22 = arith.constant 0 : index
    %c0_23 = arith.constant 0 : index
    %c0_24 = arith.constant 0 : index
    %12 = vector.load %arg7[%c0_22, %c0_23, %c0_24] : memref<2x18x72xbf16, #tpu.memory_space<vmem>>, vector<2x16x72xbf16>
    %13 = vector.shape_cast %12 : vector<2x16x72xbf16> to vector<32x72xbf16>
    %c0_25 = arith.constant 0 : index
    %c0_26 = arith.constant 0 : index
    %c0_27 = arith.constant 0 : index
    %14 = vector.load %arg2[%c0_25, %c0_26, %c0_27] : memref<3x72x512xbf16, #tpu.memory_space<vmem>>, vector<1x72x512xbf16>
    %15 = vector.shape_cast %14 : vector<1x72x512xbf16> to vector<72x512xbf16>
    %cst_28 = arith.constant dense<0.000000e+00> : vector<32x512xf32>
    %16 = tpu.matmul %13, %15, %cst_28 {dimension_numbers = #tpu.dot_dimension_numbers<[1], [0], [0], [1], [0, 0, 1, 1], [], []>} : vector<32x72xbf16>, vector<72x512xbf16>, vector<32x512xf32> -> vector<32x512xf32>
    %c0_29 = arith.constant 0 : index
    %c1_30 = arith.constant 1 : index
    %c0_31 = arith.constant 0 : index
    %17 = vector.load %arg7[%c0_29, %c1_30, %c0_31] : memref<2x18x72xbf16, #tpu.memory_space<vmem>>, vector<2x16x72xbf16>
    %18 = vector.shape_cast %17 : vector<2x16x72xbf16> to vector<32x72xbf16>
    %c1_32 = arith.constant 1 : index
    %c0_33 = arith.constant 0 : index
    %c0_34 = arith.constant 0 : index
    %19 = vector.load %arg2[%c1_32, %c0_33, %c0_34] : memref<3x72x512xbf16, #tpu.memory_space<vmem>>, vector<1x72x512xbf16>
    %20 = vector.shape_cast %19 : vector<1x72x512xbf16> to vector<72x512xbf16>
    %cst_35 = arith.constant dense<0.000000e+00> : vector<32x512xf32>
    %21 = tpu.matmul %18, %20, %cst_35 {dimension_numbers = #tpu.dot_dimension_numbers<[1], [0], [0], [1], [0, 0, 1, 1], [], []>} : vector<32x72xbf16>, vector<72x512xbf16>, vector<32x512xf32> -> vector<32x512xf32>
    %22 = arith.addf %16, %21 : vector<32x512xf32>
    %c0_36 = arith.constant 0 : index
    %c2 = arith.constant 2 : index
    %c0_37 = arith.constant 0 : index
    %23 = vector.load %arg7[%c0_36, %c2, %c0_37] : memref<2x18x72xbf16, #tpu.memory_space<vmem>>, vector<2x16x72xbf16>
    %24 = vector.shape_cast %23 : vector<2x16x72xbf16> to vector<32x72xbf16>
    %c2_38 = arith.constant 2 : index
    %c0_39 = arith.constant 0 : index
    %c0_40 = arith.constant 0 : index
    %25 = vector.load %arg2[%c2_38, %c0_39, %c0_40] : memref<3x72x512xbf16, #tpu.memory_space<vmem>>, vector<1x72x512xbf16>
    %26 = vector.shape_cast %25 : vector<1x72x512xbf16> to vector<72x512xbf16>
    %cst_41 = arith.constant dense<0.000000e+00> : vector<32x512xf32>
    %27 = tpu.matmul %24, %26, %cst_41 {dimension_numbers = #tpu.dot_dimension_numbers<[1], [0], [0], [1], [0, 0, 1, 1], [], []>} : vector<32x72xbf16>, vector<72x512xbf16>, vector<32x512xf32> -> vector<32x512xf32>
    %28 = arith.addf %22, %27 : vector<32x512xf32>
    %c0_42 = arith.constant 0 : index
    %c0_43 = arith.constant 0 : index
    %29 = vector.load %arg3[%c0_42, %c0_43] : memref<1x512xf32, #tpu.memory_space<vmem>>, vector<1x512xf32>
    %30 = vector.broadcast %29 : vector<1x512xf32> to vector<32x512xf32>
    %31 = arith.addf %28, %30 : vector<32x512xf32>
    %cst_44 = arith.constant 0.000000e+00 : f32
    %32 = vector.broadcast %cst_44 : f32 to vector<32x512xf32>
    %33 = arith.maximumf %31, %32 : vector<32x512xf32>
    %34 = vector.shape_cast %33 : vector<32x512xf32> to vector<2x16x512xf32>
    %35 = arith.truncf %34 : vector<2x16x512xf32> to vector<2x16x512xbf16>
    %c0_45 = arith.constant 0 : index
    %c1_46 = arith.constant 1 : index
    %c0_47 = arith.constant 0 : index
    %36 = vector.load %arg8[%c0_45, %c1_46, %c0_47] : memref<2x18x576xbf16, #tpu.memory_space<vmem>>, vector<2x16x512xbf16>
    tpu.vector_store %arg8[%c0_45, %c1_46, %c0_47], %35 {strides = array<i32>} : memref<2x18x576xbf16, #tpu.memory_space<vmem>>, vector<2x16x512xbf16>,
    %c0_48 = arith.constant 0 : index
    %c0_49 = arith.constant 0 : index
    %c0_50 = arith.constant 0 : index
    %37 = vector.load %arg8[%c0_48, %c0_49, %c0_50] : memref<2x18x576xbf16, #tpu.memory_space<vmem>>, vector<2x16x576xbf16>
    %38 = vector.shape_cast %37 : vector<2x16x576xbf16> to vector<32x576xbf16>
    %c0_51 = arith.constant 0 : index
    %c0_52 = arith.constant 0 : index
    %c0_53 = arith.constant 0 : index
    %39 = vector.load %arg4[%c0_51, %c0_52, %c0_53] : memref<3x576x1024xbf16, #tpu.memory_space<vmem>>, vector<1x576x1024xbf16>
    %40 = vector.shape_cast %39 : vector<1x576x1024xbf16> to vector<576x1024xbf16>
    %cst_54 = arith.constant dense<0.000000e+00> : vector<32x1024xf32>
    %41 = tpu.matmul %38, %40, %cst_54 {dimension_numbers = #tpu.dot_dimension_numbers<[1], [0], [0], [1], [0, 0, 1, 1], [], []>} : vector<32x576xbf16>, vector<576x1024xbf16>, vector<32x1024xf32> -> vector<32x1024xf32>
    %c0_55 = arith.constant 0 : index
    %c1_56 = arith.constant 1 : index
    %c0_57 = arith.constant 0 : index
    %42 = vector.load %arg8[%c0_55, %c1_56, %c0_57] : memref<2x18x576xbf16, #tpu.memory_space<vmem>>, vector<2x16x576xbf16>
    %43 = vector.shape_cast %42 : vector<2x16x576xbf16> to vector<32x576xbf16>
    %c1_58 = arith.constant 1 : index
    %c0_59 = arith.constant 0 : index
    %c0_60 = arith.constant 0 : index
    %44 = vector.load %arg4[%c1_58, %c0_59, %c0_60] : memref<3x576x1024xbf16, #tpu.memory_space<vmem>>, vector<1x576x1024xbf16>
    %45 = vector.shape_cast %44 : vector<1x576x1024xbf16> to vector<576x1024xbf16>
    %cst_61 = arith.constant dense<0.000000e+00> : vector<32x1024xf32>
    %46 = tpu.matmul %43, %45, %cst_61 {dimension_numbers = #tpu.dot_dimension_numbers<[1], [0], [0], [1], [0, 0, 1, 1], [], []>} : vector<32x576xbf16>, vector<576x1024xbf16>, vector<32x1024xf32> -> vector<32x1024xf32>
    %47 = arith.addf %41, %46 : vector<32x1024xf32>
    %c0_62 = arith.constant 0 : index
    %c2_63 = arith.constant 2 : index
    %c0_64 = arith.constant 0 : index
    %48 = vector.load %arg8[%c0_62, %c2_63, %c0_64] : memref<2x18x576xbf16, #tpu.memory_space<vmem>>, vector<2x16x576xbf16>
    %49 = vector.shape_cast %48 : vector<2x16x576xbf16> to vector<32x576xbf16>
    %c2_65 = arith.constant 2 : index
    %c0_66 = arith.constant 0 : index
    %c0_67 = arith.constant 0 : index
    %50 = vector.load %arg4[%c2_65, %c0_66, %c0_67] : memref<3x576x1024xbf16, #tpu.memory_space<vmem>>, vector<1x576x1024xbf16>
    %51 = vector.shape_cast %50 : vector<1x576x1024xbf16> to vector<576x1024xbf16>
    %cst_68 = arith.constant dense<0.000000e+00> : vector<32x1024xf32>
    %52 = tpu.matmul %49, %51, %cst_68 {dimension_numbers = #tpu.dot_dimension_numbers<[1], [0], [0], [1], [0, 0, 1, 1], [], []>} : vector<32x576xbf16>, vector<576x1024xbf16>, vector<32x1024xf32> -> vector<32x1024xf32>
    %53 = arith.addf %47, %52 : vector<32x1024xf32>
    %c0_69 = arith.constant 0 : index
    %c0_70 = arith.constant 0 : index
    %54 = vector.load %arg5[%c0_69, %c0_70] : memref<1x1024xf32, #tpu.memory_space<vmem>>, vector<1x1024xf32>
    %55 = vector.broadcast %54 : vector<1x1024xf32> to vector<32x1024xf32>
    %56 = arith.addf %53, %55 : vector<32x1024xf32>
    %cst_71 = arith.constant 0.000000e+00 : f32
    %57 = vector.broadcast %cst_71 : f32 to vector<32x1024xf32>
    %58 = arith.maximumf %56, %57 : vector<32x1024xf32>
    %c0_72 = arith.constant 0 : index
    %c0_73 = arith.constant 0 : index
    %59 = vector.load %arg6[%c0_72, %c0_73] : memref<32x1024xf32, #tpu.memory_space<vmem>>, vector<32x1024xf32>
    tpu.vector_store %arg6[%c0_72, %c0_73], %58 {strides = array<i32>} : memref<32x1024xf32, #tpu.memory_space<vmem>>, vector<32x1024xf32>,
    return
  }
  func.func @transform_0(%arg0: i32) -> (i32, i32, i32) {
    %c0_i32 = arith.constant 0 : i32
    %c0_i32_0 = arith.constant 0 : i32
    %c0_i32_1 = arith.constant 0 : i32
    return %arg0, %c0_i32, %c0_i32_0 : i32, i32, i32
  }
  func.func @transform_1(%arg0: i32) -> (i32, i32, i32) {
    %c0_i32 = arith.constant 0 : i32
    %c0_i32_0 = arith.constant 0 : i32
    %c0_i32_1 = arith.constant 0 : i32
    %c0_i32_2 = arith.constant 0 : i32
    return %c0_i32, %c0_i32_0, %c0_i32_1 : i32, i32, i32
  }
  func.func @transform_2(%arg0: i32) -> (i32, i32) {
    %c0_i32 = arith.constant 0 : i32
    %c0_i32_0 = arith.constant 0 : i32
    %c0_i32_1 = arith.constant 0 : i32
    return %c0_i32, %c0_i32_0 : i32, i32
  }
  func.func @transform_3(%arg0: i32) -> (i32, i32, i32) {
    %c0_i32 = arith.constant 0 : i32
    %c0_i32_0 = arith.constant 0 : i32
    %c0_i32_1 = arith.constant 0 : i32
    %c0_i32_2 = arith.constant 0 : i32
    return %c0_i32, %c0_i32_0, %c0_i32_1 : i32, i32, i32
  }
  func.func @transform_4(%arg0: i32) -> (i32, i32) {
    %c0_i32 = arith.constant 0 : i32
    %c0_i32_0 = arith.constant 0 : i32
    %c0_i32_1 = arith.constant 0 : i32
    return %c0_i32, %c0_i32_0 : i32, i32
  }
  func.func @transform_5(%arg0: i32) -> (i32, i32) {
    %c0_i32 = arith.constant 0 : i32
    %c0_i32_0 = arith.constant 0 : i32
    return %arg0, %c0_i32 : i32, i32
  }
}

</mosaic_0001>

<bundles_post_ra>
// kernel: tpu_custom_call.1
= control target key start
LH: loop header
LB: loop body
LE: loop exit
PB: predicated region body
PF: predicated region fallthrough
CT: control target
= control target key end

     0   :  { %10 = vsyncpa [#allocation5], 0  ;;  %s11456_s0 = inlined_call_operand.hbm [shape: bf16[2,16,64], index: 0, kind: input, shape index: {}]   ;;  %s11457_s1 = inlined_call_operand.hbm [shape: bf16[3,72,512], index: 1, kind: input, shape index: {}]   ;;  %s11458_s2 = inlined_call_operand.hbm [shape: f32[1,512], index: 2, kind: input, shape index: {}]   ;;  %s11459_s3 = inlined_call_operand.hbm [shape: bf16[3,576,1024], index: 3, kind: input, shape index: {}]   ;;  %s11460_s4 = inlined_call_operand.hbm [shape: f32[1,1024], index: 4, kind: input, shape index: {}]   ;;  %s11461_s5 = inlined_call_operand.hbm [shape: f32[32,1024], index: 5, kind: output, shape index: {}]  }
   0x1   :  { %11 = vsyncpa [#allocation8], 0 }
   0x2   :  { %12 = vsyncpa [#allocation11], 0 }
   0x3   :  { %13 = vsyncpa [#allocation6], 0  ;;  %s10167_s18 = smov [#allocation7]  }
   0x4   :  { %s31_s19 = sshll.u32 %s10167_s18, 4  ;;  %s32_s19 = int_to_ptr.vmem [resolvable:$true] %s31_s19 }
   0x5   :  { %s10047_s20 = scalar_lea.vmem %s32_s19, 6912  ;;  %p10052_p1 = scmp.lt.s32.totalorder %s32_s19, %s32_s19 }
   0x6   :  { %p10048_p0 = scmp.ne.s32.totalorder %s32_s19, %s10047_s20  ;;  %p10053_p2 = scmp.lt.s32.totalorder %s10047_s20, %s10047_s20 }
   0x8   :  { %p10054_p3 = por %p10053_p2, %p10052_p1 }
   0xa   :  { %p10055_p4 = pnand %p10054_p3, %p10048_p0 }
   0xc   :  { %10058 = shalt.err (!%p10055_p4)
}
   0xd   :  { %s10168_s21 = smov 256   ;;  %s10169_s22 = smov 16  }
   0xe   :  { %37 = dma.hbm_to_vmem [thread:$0]  %s11457_s1, 6912, %s32_s19, [#allocation8], %s10168_s21, %s10168_s21, %s10169_s22  }
   0xf   :  { %s10170_s25 = smov [#allocation10]  }
  0x10   :  { %s53_s26 = sshll.u32 %s10170_s25, 4  ;;  %s54_s26 = int_to_ptr.vmem [resolvable:$true] %s53_s26 }
  0x11   :  { %s10067_s27 = scalar_lea.vmem %s54_s26, 110592  ;;  %p10072_p6 = scmp.lt.s32.totalorder %s54_s26, %s54_s26 }
  0x12   :  { %p10068_p5 = scmp.ne.s32.totalorder %s54_s26, %s10067_s27  ;;  %p10073_p7 = scmp.lt.s32.totalorder %s10067_s27, %s10067_s27 }
  0x14   :  { %p10074_p8 = por %p10073_p7, %p10072_p6 }
  0x16   :  { %p10075_p9 = pnand %p10074_p8, %p10068_p5 }
  0x18   :  { %10078 = shalt.err (!%p10075_p9)
}
  0x19   :  { %s10171_s28 = smov 512   ;;  %s10172_s29 = smov 32  }
  0x1a   :  { %59 = dma.hbm_to_vmem [thread:$0]  %s11459_s3, 110592, %s54_s26, [#allocation11], %s10171_s28, %s10171_s28, %s10172_s29  }
  0x1b   :  { %s10173_s7 = smov [#allocation4]  }
  0x1c   :  { %s19_s8 = sshll.u32 %s10173_s7, 4  ;;  %s20_s8 = int_to_ptr.vmem [resolvable:$true] %s19_s8 }
  0x1d   :  { %s10087_s1 = scalar_lea.vmem %s20_s8, 256  ;;  %p10092_p11 = scmp.lt.s32.totalorder %s20_s8, %s20_s8 }
  0x1e   :  { %p10088_p10 = scmp.ne.s32.totalorder %s20_s8, %s10087_s1  ;;  %p10093_p12 = scmp.lt.s32.totalorder %s10087_s1, %s10087_s1 }
  0x20   :  { %p10094_p13 = por %p10093_p12, %p10092_p11 }
  0x22   :  { %p10095_p0 = pnand %p10094_p13, %p10088_p10 }
  0x24   :  { %10098 = shalt.err (!%p10095_p0)
}
  0x25   :  { %s10174_s9 = smov 64   ;;  %s10175_s10 = smov 4  }
  0x26   :  { %25 = dma.hbm_to_vmem [thread:$0]  %s11456_s0, 256, %s20_s8, [#allocation5], %s10174_s9, %s10174_s9, %s10175_s10  }
  0x27   :  { %s10176_s13 = smov [#allocation9]   ;;  %s10177_s14 = smov [#allocation12]  }
  0x28   :  { %s44_s3 = sshll.u32 %s10176_s13, 4  ;;  %s66_s15 = sshll.u32 %s10177_s14, 4  ;;  %s45_s3 = int_to_ptr.vmem [resolvable:$true] %s44_s3  ;;  %s67_s15 = int_to_ptr.vmem [resolvable:$true] %s66_s15 }
  0x29   :  { %s10107_s16 = scalar_lea.vmem %s45_s3, 64  ;;  %p10112_p2 = scmp.lt.s32.totalorder %s45_s3, %s45_s3 }
  0x2a   :  { %p10108_p1 = scmp.ne.s32.totalorder %s45_s3, %s10107_s16  ;;  %p10113_p3 = scmp.lt.s32.totalorder %s10107_s16, %s10107_s16 }
  0x2c   :  { %p10114_p4 = por %p10113_p3, %p10112_p2 }
  0x2e   :  { %p10115_p5 = pnand %p10114_p4, %p10108_p1 }
  0x30   :  { %10118 = shalt.err (!%p10115_p5)
}
  0x31   :  { %47 = dma.hbm_to_vmem [thread:$0]  %s11458_s2, 64, %s45_s3, [#allocation8]  }
  0x32   :  { %s10127_s19 = scalar_lea.vmem %s67_s15, 128  ;;  %p10132_p7 = scmp.lt.s32.totalorder %s67_s15, %s67_s15 }
  0x33   :  { %p10128_p6 = scmp.ne.s32.totalorder %s67_s15, %s10127_s19  ;;  %p10133_p8 = scmp.lt.s32.totalorder %s10127_s19, %s10127_s19 }
  0x35   :  { %p10134_p9 = por %p10133_p8, %p10132_p7 }
  0x37   :  { %p10135_p10 = pnand %p10134_p9, %p10128_p6 }
  0x39   :  { %10138 = shalt.err (!%p10135_p10)
}
  0x3a   :  { %69 = dma.hbm_to_vmem [thread:$0]  %s11460_s4, 128, %s67_s15, [#allocation11]  }
  0x3b   :  { %10159 = dma.done.wait [#allocation5], 256  }
  0x3c   :  { %10160 = vsyncadd [#allocation5], 4294967040 }
  0x3d   :  { %10161 = dma.done.wait [#allocation8], 6976  }
  0x3e   :  { %10162 = vsyncadd [#allocation8], 4294960320 }
  0x3f   :  { %10163 = dma.done.wait [#allocation11], 110720  }
  0x40   :  { %10164 = vsyncadd [#allocation11], 4294856576  ;;  %v11462_v0 = vmov 0   ;;  %vm104_vm0 = vcmask 585216   ;;  %v10179_v1 = vmov 1124025087  }
  0x41   :  { %473 = vmatprep.mubr.bf16.mxu0 %v11462_v0  ;;  %526 = vmatprep.mubr.bf16.mxu1 %v11462_v0  ;;  %106 = vst.msk [vmem:[#allocation2 + $0x4] sm:$0xf] %vm104_vm0, %v10179_v1  ;;  %vm161_vm1 = vcmask 519168   ;;  %110 = vst.msk [vmem:[#allocation2 + $0x10] sm:$0xf] %vm104_vm0, %v10179_v1  ;;  %v323_v2 = vld [vmem:[#allocation7 + $0x110] sm:$0xff] }
  0x42   :  { %163 = vst.msk [vmem:[#allocation3 + $0x24] sm:$0xf] %vm161_vm1, %v11462_v0  ;;  %167 = vst.msk [vmem:[#allocation3 + $0x60] sm:$0xf] %vm161_vm1, %v11462_v0  ;;  %vm428_vm2 = vcmask 1043456   ;;  %v324_v3 = vld [vmem:[#allocation7 + $0x118] sm:$0xff]  ;;  %v8925_v4 = vcombine.high %v323_v2, %v323_v2  ;;  %v8924_v6 = vcombine.low %v323_v2, %v323_v2 }
  0x43   :  { %vm88_vm3 = vsmask.f32 256  ;;  %v8927_v5 = vcombine.high %v324_v3, %v324_v3  ;;  %v8926_v7 = vcombine.low %v324_v3, %v324_v3  ;;  %v9951_v8 = vld [vmem:[#allocation7 + $0xf4] ss:$16 sps:$4 sm:$0xff]   ;;  %v9953_v9 = vld [vmem:[#allocation7 + $0xfc] ss:$16 sps:$4 sm:$0xff]  }
  0x44   :  { %vm87_vm4 = vcmask 581632   ;;  %vm96_vm5 = vsmask.f32 7938  ;;  %8928 = vmatprep.subr.msk.bf16.mxu0 %vm428_vm2, %v8925_v4  ;;  %v430_v10 = vsel %vm428_vm2, %v8924_v6, 0  ;;  %v9955_v12 = vld [vmem:[#allocation7 + $0xf0] ss:$16 sps:$4 sm:$0xff]  }
  0x45   :  { %8931 = vmatprep.subr.msk.bf16.mxu1 %vm428_vm2, %v8927_v5  ;;  %v436_v11 = vsel %vm428_vm2, %v8926_v7, 0  ;;  %448 = vmatpush1.bf16.msra.mxu0 %v430_v10  ;;  %v9956_v13 = vld [vmem:[#allocation7 + $0xf8] ss:$16 sps:$4 sm:$0xff]   ;;  %v9957_v14 = vld [vmem:[#allocation7 + $0xd4] ss:$16 sps:$4 sm:$0xff]   ;;  %vm10245_vm6 = vmand %vm87_vm4, %vm88_vm3  ;;  %vm124_vm8 = vcmask 516096  }
  0x46   :  { %501 = vmatpush1.bf16.msra.mxu1 %v436_v11  ;;  %449 = vmatprep.subr.bf16.mxu0 %v9951_v8  ;;  %v9959_v15 = vld [vmem:[#allocation7 + $0xdc] ss:$16 sps:$4 sm:$0xff]   ;;  %vm10251_vm7 = vmand %vm87_vm4, %vm96_vm5  ;;  %v9961_v18 = vld [vmem:[#allocation7 + $0xd0] ss:$16 sps:$4 sm:$0xff]   ;;  %vm107_vm9 = vcmask 582144   ;;  %vm421_vm4 = vcmask 588800  }
  0x47   :  { %502 = vmatprep.subr.bf16.mxu1 %v9953_v9  ;;  %v9962_v19 = vld [vmem:[#allocation7 + $0xd8] ss:$16 sps:$4 sm:$0xff]   ;;  %v9963_v20 = vld [vmem:[#allocation7 + $0xb4] ss:$16 sps:$4 sm:$0xff]   ;;  %v9965_v21 = vld [vmem:[#allocation7 + $0xbc] ss:$16 sps:$4 sm:$0xff]  }
  0x48   :  { %v9967_v22 = vld [vmem:[#allocation7 + $0xb0] ss:$16 sps:$4 sm:$0xff]   ;;  %vm10257_vm10 = vmand %vm124_vm8, %vm88_vm3  ;;  %vm173_vm11 = vsmask.f32 4368  ;;  %v9968_v24 = vld [vmem:[#allocation7 + $0xb8] ss:$16 sps:$4 sm:$0xff]  }
  0x49   :  { %450 = vmatpush1.bf16.msra.mxu0 %v9955_v12  ;;  %v9969_v25 = vld [vmem:[#allocation7 + $0x94] ss:$16 sps:$4 sm:$0xff]   ;;  %v9971_v26 = vld [vmem:[#allocation7 + $0x9c] ss:$16 sps:$4 sm:$0xff]   ;;  %v90_v28 = vld [vmem:[#allocation2] sm:$0x1] }
  0x4a   :  { %503 = vmatpush1.bf16.msra.mxu1 %v9956_v13  ;;  %451 = vmatprep.subr.bf16.mxu0 %v9957_v14  ;;  %v10261_v27 = vld [vmem:[#allocation7 + $0x80] sm:$0xff]  ;;  %v98_v29 = vld [vmem:[#allocation2 + $0x8] sm:$0x1]  ;;  %v91_v31 = vsel %vm10245_vm6, 1124025087, %v90_v28  ;;  %vm10283_vm12 = vmor %vm88_vm3, %vm173_vm11  ;;  %vm112_vm11 = vcmask 1040384  }
  0x4b   :  { %504 = vmatprep.subr.bf16.mxu1 %v9959_v15  ;;  %v126_v30 = vld [vmem:[#allocation3 + $0x10] sm:$0x1]  ;;  %v99_v32 = vsel %vm10251_vm7, 1124025087, %v98_v29  ;;  %92 = vst [vmem:[#allocation2] sm:$0x1] %v91_v31  ;;  %v8953_v43 = vcombine.high %v10261_v27, %v10261_v27  ;;  %vm10289_vm13 = vmand %vm161_vm1, %vm96_vm5 }
  0x4c   :  { %v127_v33 = vsel %vm10257_vm10, 0, %v126_v30  ;;  %v10269_v34 = vld [vmem:[#allocation7 + $0x88] sm:$0xff]  ;;  %100 = vst [vmem:[#allocation2 + $0x8] sm:$0x1] %v99_v32  ;;  %v169_v35 = vld [vmem:[#allocation4] sm:$0xf] }
  0x4d   :  { %452 = vmatpush1.bf16.msra.mxu0 %v9961_v18  ;;  %128 = vst [vmem:[#allocation3 + $0x10] sm:$0x1] %v127_v33  ;;  %v170_v36 = vld [vmem:[#allocation4 + $0x4] sm:$0xf]  ;;  %105 = vst.msk [vmem:[#allocation2] sm:$0xf] %vm104_vm0, %v10179_v1  ;;  %v8955_v44 = vcombine.high %v10269_v34, %v10269_v34  ;;  %v8952_v33 = vcombine.low %v10261_v27, %v10261_v27 }
  0x4e   :  { %505 = vmatpush1.bf16.msra.mxu1 %v9962_v19  ;;  %453 = vmatprep.subr.bf16.mxu0 %v9963_v20  ;;  %108 = vst.msk [vmem:[#allocation2 + $0x8] sm:$0x1] %vm107_vm9, %v10179_v1  ;;  %v176_v37 = vshrl.u32 %v169_v35, 16  ;;  %v179_v38 = vshll.u32 %v169_v35, 16  ;;  %v184_v39 = vshrl.u32 %v170_v36, 16  ;;  %v187_v40 = vshll.u32 %v170_v36, 16 }
  0x4f   :  { %506 = vmatprep.subr.bf16.mxu1 %v9965_v21  ;;  %162 = vst.msk [vmem:[#allocation3 + $0x10] sm:$0xf] %vm161_vm1, %v11462_v0  ;;  %v9973_v41 = vld [vmem:[#allocation7 + $0x90] ss:$16 sps:$4 sm:$0xff]   ;;  %v9974_v42 = vld [vmem:[#allocation7 + $0x98] ss:$16 sps:$4 sm:$0xff]   ;;  %v8954_v35 = vcombine.low %v10269_v34, %v10269_v34 }
  0x50   :  { %v178_v45 = vrot.slane %v176_v37, 7  ;;  %v186_v46 = vrot.slane %v184_v39, 7  ;;  %v93_v53 = vld [vmem:[#allocation2 + $0xc] sm:$0x1]  ;;  %v101_v56 = vld [vmem:[#allocation2 + $0x14] sm:$0x1] }
  0x51   :  { %454 = vmatpush1.bf16.msra.mxu0 %v9967_v22  ;;  %v94_v55 = vsel %vm10245_vm6, 1124025087, %v93_v53  ;;  %v171_v57 = vld [vmem:[#allocation4 + $0x8] sm:$0xf]  ;;  %v102_v60 = vsel %vm10251_vm7, 1124025087, %v101_v56 }
  0x52   :  { %507 = vmatpush1.bf16.msra.mxu1 %v9968_v24  ;;  %455 = vmatprep.subr.bf16.mxu0 %v9969_v25  ;;  %v181_v48 = vor.u32 %v179_v38, %v178_v45  ;;  %v182_v49 = vrot.slane %v178_v45, 4  ;;  %v189_v50 = vor.u32 %v187_v40, %v186_v46  ;;  %v191_v51 = vrot.slane %v186_v46, 4  ;;  %95 = vst [vmem:[#allocation2 + $0xc] sm:$0x1] %v94_v55  ;;  %v172_v63 = vld [vmem:[#allocation4 + $0xc] sm:$0xf] }
  0x53   :  { %508 = vmatprep.subr.bf16.mxu1 %v9971_v26  ;;  %103 = vst [vmem:[#allocation2 + $0x14] sm:$0x1] %v102_v60  ;;  %109 = vst.msk [vmem:[#allocation2 + $0xc] sm:$0xf] %vm104_vm0, %v10179_v1  ;;  %v193_v2 = vshrl.u32 %v171_v57, 16  ;;  %v196_v3 = vshll.u32 %v171_v57, 16 }
  0x54   :  { %v190_v54 = vsel %vm10283_vm12, %v182_v49, %v189_v50  ;;  %v217_v58 = vld [vmem:[#allocation2] sm:$0xf]  ;;  %111 = vst.msk [vmem:[#allocation2 + $0x14] sm:$0x1] %vm107_vm9, %v10179_v1  ;;  %v201_v4 = vshrl.u32 %v172_v63, 16  ;;  %v204_v5 = vshll.u32 %v172_v63, 16 }
  0x55   :  { %456 = vmatpush1.bf16.msra.mxu0 %v9973_v41  ;;  %220 = vst.msk [vmem:[#allocation2 + $0x4] sm:$0xf] %vm161_vm1, %v190_v54  ;;  %v221_v59 = vld [vmem:[#allocation2 + $0x8] sm:$0x1]  ;;  %v218_v61 = vsel %vm10289_vm13, %v181_v48, %v217_v58  ;;  %v195_v6 = vrot.slane %v193_v2, 7  ;;  %v654_v41 = vsel %vm428_vm2, %v8952_v33, 0 }
  0x56   :  { %509 = vmatpush1.bf16.msra.mxu1 %v9974_v42  ;;  %8956 = vmatprep.subr.msk.bf16.mxu0 %vm428_vm2, %v8953_v43  ;;  %v222_v62 = vsel %vm10257_vm10, %v191_v51, %v221_v59  ;;  %219 = vst [vmem:[#allocation2] sm:$0xf] %v218_v61  ;;  %v203_v7 = vrot.slane %v201_v4, 7  ;;  %vm255_vm14 = vsmask.f32 3328  ;;  %v660_v42 = vsel %vm428_vm2, %v8954_v35, 0 }
  0x57   :  { %8959 = vmatprep.subr.msk.bf16.mxu1 %vm428_vm2, %v8955_v44  ;;  %223 = vst [vmem:[#allocation2 + $0x8] sm:$0x1] %v222_v62  ;;  %v198_v8 = vor.u32 %v196_v3, %v195_v6  ;;  %v199_v9 = vrot.slane %v195_v6, 4  ;;  %vm256_vm15 = vsmask.f32 7440  ;;  %vm777_vm6 = vcmask 1042432  }
  0x58   :  { %v206_v10 = vor.u32 %v204_v5, %v203_v7  ;;  %v208_v12 = vrot.slane %v203_v7, 4  ;;  %vm10330_vm0 = vmor %vm255_vm14, %vm256_vm15  ;;  %v9979_v45 = vld [vmem:[#allocation7 + $0x64] ss:$16 sps:$4 sm:$0xff]   ;;  %v9982_v50 = vld [vmem:[#allocation7 + $0x6c] ss:$16 sps:$4 sm:$0xff]   ;;  %vm778_vm7 = vcmask 1046532  }
  0x59   :  { %v9977_v57 = vld [vmem:[#allocation7 + $0x60] ss:$16 sps:$4 sm:$0xff]   ;;  %v9980_v59 = vld [vmem:[#allocation7 + $0x68] ss:$16 sps:$4 sm:$0xff]   ;;  %v9985_v62 = vld [vmem:[#allocation7 + $0x44] ss:$16 sps:$4 sm:$0xff]  }
  0x5a   :  { %v207_v15 = vsel %vm10283_vm12, %v199_v9, %v206_v10  ;;  %v224_v1 = vld [vmem:[#allocation2 + $0xc] sm:$0xf]  ;;  %v9983_v5 = vld [vmem:[#allocation7 + $0x40] ss:$16 sps:$4 sm:$0xff]   ;;  %v9986_v6 = vld [vmem:[#allocation7 + $0x48] ss:$16 sps:$4 sm:$0xff]  }
  0x5b   :  { %v225_v18 = vsel %vm10289_vm13, %v198_v8, %v224_v1  ;;  %227 = vst.msk [vmem:[#allocation2 + $0x10] sm:$0xf] %vm161_vm1, %v207_v15  ;;  %v228_v19 = vld [vmem:[#allocation2 + $0x14] sm:$0x1]  ;;  %v9988_v63 = vld [vmem:[#allocation7 + $0x4c] ss:$16 sps:$4 sm:$0xff]   ;;  %vm10384_vm9 = vmor %vm777_vm6, %vm778_vm7 }
  0x5c   :  { %v10310_v11 = vld [vmem:[#allocation2 + $0x4] sm:$0xf]  ;;  %226 = vst [vmem:[#allocation2 + $0xc] sm:$0xf] %v225_v18  ;;  %v229_v26 = vsel %vm10257_vm10, %v208_v12, %v228_v19  ;;  %v9994_v10 = vld [vmem:[#allocation7 + $0x2c] ss:$16 sps:$4 sm:$0xff]   ;;  %vm113_vm15 = vmand %vm112_vm11, %vm88_vm3 }
  0x5d   :  { %v268_v13 = vshll.u32 %v10310_v11, 16  ;;  %v272_v14 = vshrl.u32 %v10310_v11, 16  ;;  %v10316_v16 = vld [vmem:[#allocation2] sm:$0xf]  ;;  %230 = vst [vmem:[#allocation2 + $0x14] sm:$0x1] %v229_v26  ;;  %vm138_vm3 = vmand %vm112_vm11, %vm96_vm5 }
  0x5e   :  { %v10318_v17 = vld [vmem:[#allocation2 + $0x8] sm:$0x1]  ;;  %v259_v20 = vshrl.u32 %v10316_v16, 16  ;;  %v262_v21 = vshll.u32 %v10316_v16, 16  ;;  %v9991_v9 = vld [vmem:[#allocation7 + $0x24] ss:$16 sps:$4 sm:$0xff]   ;;  %v8934_v26 = vcombine.low %v10316_v16, %v10310_v11  ;;  %vm148_vm11 = vmand %vm124_vm8, %vm96_vm5 }
  0x5f   :  { %v270_v22 = vrot.slane %v268_v13, 5  ;;  %v274_v24 = vrot.slane %v272_v14, 4  ;;  %v278_v25 = vshll.u32 %v10318_v17, 16  ;;  %v9989_v12 = vld [vmem:[#allocation7 + $0x20] ss:$16 sps:$4 sm:$0xff]   ;;  %v812_v18 = vld [vmem:[#allocation7 + $0x1a8] sm:$0xff] }
  0x60   :  { %v261_v28 = vrot.slane %v259_v20, 4  ;;  %v264_v29 = vrot.slane %v262_v21, 5  ;;  %v9992_v13 = vld [vmem:[#allocation7 + $0x28] ss:$16 sps:$4 sm:$0xff]   ;;  %v9997_v14 = vld [vmem:[#allocation7 + $0x4] ss:$16 sps:$4 sm:$0xff]  }
  0x61   :  { %v275_v30 = vor.u32 %v274_v24, %v270_v22  ;;  %v280_v32 = vrot.slane %v278_v25, 5  ;;  %v10000_v15 = vld [vmem:[#allocation7 + $0xc] ss:$16 sps:$4 sm:$0xff]   ;;  %v811_v1 = vld [vmem:[#allocation7 + $0x1a0] sm:$0xff]  ;;  %v9998_v20 = vld [vmem:[#allocation7 + $0x8] ss:$16 sps:$4 sm:$0xff]   ;;  %v8984_v25 = vcombine.low %v812_v18, %v812_v18 }
  0x62   :  { %v265_v36 = vor.u32 %v264_v29, %v261_v28  ;;  %v10340_v40 = vld [vmem:[#allocation2 + $0x10] sm:$0xf]  ;;  %v8983_v21 = vcombine.high %v811_v1, %v811_v1  ;;  %v8982_v24 = vcombine.low %v811_v1, %v811_v1  ;;  %v10008_v16 = vld [vmem:[#allocation7 + $0x188] ss:$16 sps:$4 sm:$0xff]   ;;  %v10014_v35 = vld [vmem:[#allocation7 + $0x164] ss:$16 sps:$4 sm:$0xff]  }
  0x63   :  { %v276_v37 = vrot.slane %v275_v30, 4  ;;  %v10344_v43 = vld [vmem:[#allocation2 + $0xc] sm:$0xf]  ;;  %v292_v27 = vshll.u32 %v10340_v40, 16  ;;  %v296_v44 = vshrl.u32 %v10340_v40, 16  ;;  %v922_v29 = vsel %vm428_vm2, %v8984_v25, 0 }
  0x64   :  { %v266_v38 = vrot.slane %v265_v36, 4  ;;  %v283_v46 = vshrl.u32 %v10344_v43, 16  ;;  %v286_v48 = vshll.u32 %v10344_v43, 16  ;;  %v10352_v51 = vld [vmem:[#allocation2 + $0x14] sm:$0x1]  ;;  %v916_v28 = vsel %vm428_vm2, %v8982_v24, 0 }
  0x65   :  { %v281_v39 = vsel %vm10330_vm0, %v276_v37, %v280_v32  ;;  %v294_v52 = vrot.slane %v292_v27, 5  ;;  %v298_v53 = vrot.slane %v296_v44, 4  ;;  %v302_v56 = vshll.u32 %v10352_v51, 16  ;;  %v9995_v19 = vld [vmem:[#allocation7] ss:$16 sps:$4 sm:$0xff]   ;;  %s10180_s2 = smov [#allocation13]  }
  0x66   :  { %v271_v34 = vsel %vm10330_vm0, %v266_v38, %v270_v22  ;;  %v285_v54 = vrot.slane %v283_v46, 4  ;;  %v288_v55 = vrot.slane %v286_v48, 5  ;;  %v8985_v22 = vcombine.high %v812_v18, %v812_v18  ;;  %v10007_v30 = vld [vmem:[#allocation7 + $0x184] ss:$16 sps:$4 sm:$0xff]   ;;  %v10010_v32 = vld [vmem:[#allocation7 + $0x18c] ss:$16 sps:$4 sm:$0xff]  }
  0x67   :  { %v8906_v49 = vcombine.low %v271_v34, %v281_v39  ;;  %v299_v58 = vor.u32 %v298_v53, %v294_v52  ;;  %v304_v61 = vrot.slane %v302_v56, 5  ;;  %v10005_v33 = vld [vmem:[#allocation7 + $0x180] ss:$16 sps:$4 sm:$0xff]   ;;  %v10017_v36 = vld [vmem:[#allocation7 + $0x16c] ss:$16 sps:$4 sm:$0xff]   ;;  %v8935_v37 = vcombine.low %v10344_v43, %v10340_v40  ;;  %v1747_v18 = vld [vmem:[#allocation10 + $0xa40] sm:$0xff] }
  0x68   :  { %v289_v60 = vor.u32 %v288_v55, %v285_v54  ;;  %v782_v38 = vrot.slane %v10310_v11, 5  ;;  %v10012_v39 = vld [vmem:[#allocation7 + $0x160] ss:$16 sps:$4 sm:$0xff]   ;;  %v10023_v27 = vld [vmem:[#allocation7 + $0x14c] ss:$16 sps:$4 sm:$0xff]   ;;  %v785_v34 = vrot.slane %v10318_v17, 5 }
  0x69   :  { %8929 = vmatmul.mubr.msk.bf16.vlgmr.msra.gmra.mxu0 %vm421_vm4, %v8906_v49  ;;  %8932 = vmatmul.mubr.msk.bf16.vlgmr.msra.gmra.mxu1 %vm421_vm4, %v8906_v49  ;;  %v300_v2 = vrot.slane %v299_v58, 4  ;;  %v771_v44 = vld [vmem:[#allocation2] sm:$0xe]  ;;  %v10021_v43 = vld [vmem:[#allocation7 + $0x148] ss:$16 sps:$4 sm:$0xff]   ;;  %v789_v55 = vrot.slane %v10340_v40, 5 }
  0x6a   :  { %672 = vmatpush1.bf16.msra.mxu0 %v654_v41  ;;  %725 = vmatpush1.bf16.msra.mxu1 %v660_v42  ;;  %v290_v3 = vrot.slane %v289_v60, 4  ;;  %v10015_v41 = vld [vmem:[#allocation7 + $0x168] ss:$16 sps:$4 sm:$0xff]   ;;  %v10020_v42 = vld [vmem:[#allocation7 + $0x144] ss:$16 sps:$4 sm:$0xff]   ;;  %v784_v46 = vrot.slane %v782_v38, 4 }
  0x6b   :  { %673 = vmatprep.subr.bf16.mxu0 %v9979_v45  ;;  %726 = vmatprep.subr.bf16.mxu1 %v9982_v50  ;;  %v305_v4 = vsel %vm10330_vm0, %v300_v2, %v304_v61  ;;  %v10018_v11 = vld [vmem:[#allocation7 + $0x140] ss:$16 sps:$4 sm:$0xff]   ;;  %v8962_v45 = vrot.slane %v771_v44, 9  ;;  %v10026_v48 = vld [vmem:[#allocation7 + $0x124] ss:$16 sps:$4 sm:$0xff]   ;;  %v11493_v50 = vmov 0 }
  0x6c   :  { %483 = vmatprep.mubr.bf16.mxu0 %v11462_v0  ;;  %536 = vmatprep.mubr.bf16.mxu1 %v11462_v0  ;;  %v295_v7 = vsel %vm10330_vm0, %v290_v3, %v294_v52  ;;  %v10029_v49 = vld [vmem:[#allocation7 + $0x12c] ss:$16 sps:$4 sm:$0xff]   ;;  %v11494_v50 = vsel %vm10384_vm9, 4294967295, %v11493_v50  ;;  %v10024_v17 = vld [vmem:[#allocation7 + $0x120] ss:$16 sps:$4 sm:$0xff]   ;;  %v786_v54 = vsel %vm10384_vm9, %v784_v46, %v785_v34  ;;  %v792_v60 = vrot.slane %v10352_v51, 5 }
  0x6d   :  { %v8907_v8 = vcombine.low %v295_v7, %v305_v4  ;;  %11495 = vst [vmem:[#allocation18_spill] sm:$0xff] %v11494_v50  ;;  %v10027_v52 = vld [vmem:[#allocation7 + $0x128] ss:$16 sps:$4 sm:$0xff]   ;;  %v783_v53 = vsel %vm10384_vm9, %v8962_v45, %v782_v38  ;;  %v772_v56 = vld [vmem:[#allocation2 + $0xc] sm:$0xe]  ;;  %vm114_vm13 = vcmask 1044484  }
  0x6e   :  { %674 = vmatpush1.bf16.msra.mxu0 %v9977_v57  ;;  %727 = vmatpush1.bf16.msra.mxu1 %v9980_v59  ;;  %v8964_v57 = vcombine.low %v783_v53, %v786_v54  ;;  %v8963_v58 = vrot.slane %v772_v56, 9  ;;  %v791_v59 = vrot.slane %v789_v55, 4  ;;  %v1763_v51 = vld [vmem:[#allocation10 + $0xac0] sm:$0xff]  ;;  %vm115_vm14 = vsmask.f32 4352  ;;  %s8892_s4 = sshll.u32 %s10180_s2, 4  ;;  %s8893_s4 = int_to_ptr.vmem [resolvable:$true] %s8892_s4 }
  0x6f   :  { %675 = vmatprep.subr.bf16.mxu0 %v9985_v62  ;;  %728 = vmatprep.subr.bf16.mxu1 %v9988_v63  ;;  %v1767_v63 = vld [vmem:[#allocation10 + $0xae0] sm:$0xff]  ;;  %vm139_vm6 = vsmask.f32 7954  ;;  %s10139_s21 = scalar_lea.vmem %s8893_s4, 4096  ;;  %p10144_p12 = scmp.lt.s32.totalorder %s8893_s4, %s8893_s4 }
  0x70   :  { %v790_v40 = vsel %vm10384_vm9, %v8963_v58, %v789_v55  ;;  %v793_v61 = vsel %vm10384_vm9, %v791_v59, %v792_v60  ;;  %v1891_v2 = vld [vmem:[#allocation10 + $0xec0] sm:$0xff]  ;;  %v9067_v3 = vcombine.high %v1763_v51, %v1767_v63  ;;  %p10140_p11 = scmp.ne.s32.totalorder %s8893_s4, %s10139_s21  ;;  %p10145_p13 = scmp.lt.s32.totalorder %s10139_s21, %s10139_s21 }
  0x71   :  { %8930 = vmatmul.mubr.msk.bf16.gmra.mxu0 %vm421_vm4, %v8907_v8  ;;  %8933 = vmatmul.mubr.msk.bf16.gmra.mxu1 %vm421_vm4, %v8907_v8  ;;  %v8965_v62 = vcombine.low %v790_v40, %v793_v61  ;;  %v1895_v4 = vld [vmem:[#allocation10 + $0xee0] sm:$0xff] }
  0x72   :  { %676 = vmatpush1.bf16.msra.mxu0 %v9983_v5  ;;  %729 = vmatpush1.bf16.msra.mxu1 %v9986_v6  ;;  %v9066_v5 = vcombine.low %v1763_v51, %v1767_v63  ;;  %v9194_v6 = vcombine.low %v1891_v2, %v1895_v4  ;;  %v9195_v7 = vcombine.high %v1891_v2, %v1895_v4  ;;  %v1755_v8 = vld [vmem:[#allocation10 + $0xa80] sm:$0xff]  ;;  %p10146_p0 = por %p10145_p13, %p10144_p12 }
  0x73   :  { %677 = vmatprep.subr.bf16.mxu0 %v9991_v9  ;;  %730 = vmatprep.subr.bf16.mxu1 %v9994_v10  ;;  %v1759_v9 = vld [vmem:[#allocation10 + $0xaa0] sm:$0xff] }
  0x74   :  { %697 = vmatprep.mubr.bf16.mxu0 %v11462_v0  ;;  %750 = vmatprep.mubr.bf16.mxu1 %v11462_v0  ;;  %v1883_v10 = vld [vmem:[#allocation10 + $0xe80] sm:$0xff]  ;;  %p10147_p1 = pnand %p10146_p0, %p10140_p11 }
  0x75   :  { %v1735_v38 = vld [vmem:[#allocation10 + $0x9e0] sm:$0xff] }
  0x76   :  { %678 = vmatpush1.bf16.msra.mxu0 %v9989_v12  ;;  %731 = vmatpush1.bf16.msra.mxu1 %v9992_v13  ;;  %v9059_v12 = vcombine.high %v1755_v8, %v1759_v9  ;;  %v1887_v13 = vld [vmem:[#allocation10 + $0xea0] sm:$0xff] }
  0x77   :  { %679 = vmatprep.subr.bf16.mxu0 %v9997_v14  ;;  %732 = vmatprep.subr.bf16.mxu1 %v10000_v15  ;;  %v9058_v14 = vcombine.low %v1755_v8, %v1759_v9  ;;  %v9186_v15 = vcombine.low %v1883_v10, %v1887_v13  ;;  %v9187_v1 = vcombine.high %v1883_v10, %v1887_v13  ;;  %v1851_v45 = vld [vmem:[#allocation10 + $0xd80] sm:$0xff] }
  0x78   :  { %v1715_v53 = vld [vmem:[#allocation10 + $0x940] sm:$0xff] }
  0x79   :  { %v1719_v54 = vld [vmem:[#allocation10 + $0x960] sm:$0xff] }
  0x7a   :  { %680 = vmatpush1.bf16.msra.mxu0 %v9995_v19  ;;  %733 = vmatpush1.bf16.msra.mxu1 %v9998_v20  ;;  %v1751_v19 = vld [vmem:[#allocation10 + $0xa60] sm:$0xff]  ;;  %v9019_v56 = vcombine.high %v1715_v53, %v1719_v54  ;;  %v9018_v58 = vcombine.low %v1715_v53, %v1719_v54 }
  0x7b   :  { %8986 = vmatprep.subr.msk.bf16.mxu0 %vm428_vm2, %v8983_v21  ;;  %8989 = vmatprep.subr.msk.bf16.mxu1 %vm428_vm2, %v8985_v22  ;;  %v1875_v20 = vld [vmem:[#allocation10 + $0xe40] sm:$0xff]  ;;  %v9051_v21 = vcombine.high %v1747_v18, %v1751_v19  ;;  %v9050_v24 = vcombine.low %v1747_v18, %v1751_v19  ;;  %v145_v18 = vld [vmem:[#allocation3 + $0x30] sm:$0x11]  ;;  %v121_v19 = vld [vmem:[#allocation3 + $0x8] sm:$0x11] }
  0x7c   :  { %v1879_v22 = vld [vmem:[#allocation10 + $0xe60] sm:$0xff] }
  0x7d   :  { %8957 = vmatmul.mubr.msk.bf16.vlgmr.msra.gmra.mxu0 %vm421_vm4, %v8934_v26  ;;  %8960 = vmatmul.mubr.msk.bf16.vlgmr.msra.gmra.mxu1 %vm421_vm4, %v8934_v26  ;;  %v9178_v25 = vcombine.low %v1875_v20, %v1879_v22  ;;  %v9179_v26 = vcombine.high %v1875_v20, %v1879_v22  ;;  %v1843_v55 = vld [vmem:[#allocation10 + $0xd40] sm:$0xff]  ;;  %v155_v22 = vld [vmem:[#allocation3 + $0x6c] sm:$0x11] }
  0x7e   :  { %934 = vmatpush1.bf16.msra.mxu0 %v916_v28  ;;  %987 = vmatpush1.bf16.msra.mxu1 %v922_v29  ;;  %v1739_v28 = vld [vmem:[#allocation10 + $0xa00] sm:$0xff] }
  0x7f   :  { %935 = vmatprep.subr.bf16.mxu0 %v10007_v30  ;;  %988 = vmatprep.subr.bf16.mxu1 %v10010_v32  ;;  %v1743_v29 = vld [vmem:[#allocation10 + $0xa20] sm:$0xff] }
  0x80   :  { %707 = vmatprep.mubr.bf16.mxu0 %v11462_v0  ;;  %760 = vmatprep.mubr.bf16.mxu1 %v11462_v0  ;;  %v1867_v30 = vld [vmem:[#allocation10 + $0xe00] sm:$0xff]  ;;  %v9043_v32 = vcombine.high %v1739_v28, %v1743_v29 }
  0x81   :  { %v1707_v40 = vld [vmem:[#allocation10 + $0x900] sm:$0xff] }
  0x82   :  { %936 = vmatpush1.bf16.msra.mxu0 %v10005_v33  ;;  %989 = vmatpush1.bf16.msra.mxu1 %v10008_v16  ;;  %v1871_v33 = vld [vmem:[#allocation10 + $0xe20] sm:$0xff]  ;;  %v9042_v16 = vcombine.low %v1739_v28, %v1743_v29 }
  0x83   :  { %937 = vmatprep.subr.bf16.mxu0 %v10014_v35  ;;  %990 = vmatprep.subr.bf16.mxu1 %v10017_v36  ;;  %v9170_v35 = vcombine.low %v1867_v30, %v1871_v33  ;;  %v9171_v36 = vcombine.high %v1867_v30, %v1871_v33  ;;  %v1711_v61 = vld [vmem:[#allocation10 + $0x920] sm:$0xff] }
  0x84   :  { %v9011_v51 = vcombine.high %v1707_v40, %v1711_v61  ;;  %v1839_v63 = vld [vmem:[#allocation10 + $0xd20] sm:$0xff]  ;;  %v9010_v2 = vcombine.low %v1707_v40, %v1711_v61 }
  0x85   :  { %8958 = vmatmul.mubr.msk.bf16.gmra.mxu0 %vm421_vm4, %v8935_v37  ;;  %8961 = vmatmul.mubr.msk.bf16.gmra.mxu1 %vm421_vm4, %v8935_v37  ;;  %v1731_v37 = vld [vmem:[#allocation10 + $0x9c0] sm:$0xff] }
  0x86   :  { %938 = vmatpush1.bf16.msra.mxu0 %v10012_v39  ;;  %991 = vmatpush1.bf16.msra.mxu1 %v10015_v41  ;;  %v1859_v39 = vld [vmem:[#allocation10 + $0xdc0] sm:$0xff]  ;;  %v9035_v41 = vcombine.high %v1731_v37, %v1735_v38 }
  0x87   :  { %939 = vmatprep.subr.bf16.mxu0 %v10020_v42  ;;  %992 = vmatprep.subr.bf16.mxu1 %v10023_v27  ;;  %v1863_v42 = vld [vmem:[#allocation10 + $0xde0] sm:$0xff]  ;;  %v9034_v27 = vcombine.low %v1731_v37, %v1735_v38 }
  0x88   :  { %959 = vmatprep.mubr.bf16.mxu0 %v11462_v0  ;;  %1012 = vmatprep.mubr.bf16.mxu1 %v11462_v0  ;;  %v9162_v44 = vcombine.low %v1859_v39, %v1863_v42  ;;  %v9163_v34 = vcombine.high %v1859_v39, %v1863_v42  ;;  %v1959_v9 = vld [vmem:[#allocation10 + $0x10e0] sm:$0xff] }
  0x89   :  { %v1819_v30 = vld [vmem:[#allocation10 + $0xc80] sm:$0xff] }
  0x8a   :  { %940 = vmatpush1.bf16.msra.mxu0 %v10018_v11  ;;  %993 = vmatpush1.bf16.msra.mxu1 %v10021_v43  ;;  %v1723_v11 = vld [vmem:[#allocation10 + $0x980] sm:$0xff] }
  0x8b   :  { %941 = vmatprep.subr.bf16.mxu0 %v10026_v48  ;;  %994 = vmatprep.subr.bf16.mxu1 %v10029_v49  ;;  %v1727_v43 = vld [vmem:[#allocation10 + $0x9a0] sm:$0xff] }
  0x8c   :  { %v9027_v46 = vcombine.high %v1723_v11, %v1727_v43  ;;  %v1855_v48 = vld [vmem:[#allocation10 + $0xda0] sm:$0xff]  ;;  %v9026_v49 = vcombine.low %v1723_v11, %v1727_v43 }
  0x8d   :  { %v1947_v33 = vld [vmem:[#allocation10 + $0x1080] sm:$0xff] }
  0x8e   :  { %942 = vmatpush1.bf16.msra.mxu0 %v10024_v17  ;;  %995 = vmatpush1.bf16.msra.mxu1 %v10027_v52  ;;  %v9154_v17 = vcombine.low %v1851_v45, %v1855_v48  ;;  %v9155_v52 = vcombine.high %v1851_v45, %v1855_v48  ;;  %v129_v39 = vld [vmem:[#allocation3 + $0x3c] sm:$0x11] }
  0x8f   :  { %3480 = vmatprep.subr.bf16.mxu0 %v9067_v3  ;;  %3533 = vmatprep.subr.bf16.mxu1 %v9195_v7  ;;  %v1955_v7 = vld [vmem:[#allocation10 + $0x10c0] sm:$0xff] }
  0x90   :  { %v9258_v13 = vcombine.low %v1955_v7, %v1959_v9  ;;  %v1811_v42 = vld [vmem:[#allocation10 + $0xc40] sm:$0xff] }
  0x91   :  { %8987 = vmatmul.mubr.msk.bf16.vlgmr.msra.gmra.mxu0 %vm421_vm4, %v8964_v57  ;;  %8990 = vmatmul.mubr.msk.bf16.vlgmr.msra.gmra.mxu1 %vm421_vm4, %v8964_v57  ;;  %v1847_v57 = vld [vmem:[#allocation10 + $0xd60] sm:$0xff] }
  0x92   :  { %969 = vmatprep.mubr.bf16.mxu0 %v11462_v0  ;;  %1022 = vmatprep.mubr.bf16.mxu1 %v11462_v0  ;;  %v9146_v59 = vcombine.low %v1843_v55, %v1847_v57  ;;  %v9147_v60 = vcombine.high %v1843_v55, %v1847_v57  ;;  %v1943_v45 = vld [vmem:[#allocation10 + $0x1060] sm:$0xff] }
  0x93   :  { %3481 = vmatpush1.bf16.msra.mxu0 %v9066_v5  ;;  %3534 = vmatpush1.bf16.msra.mxu1 %v9194_v6  ;;  %v1827_v5 = vld [vmem:[#allocation10 + $0xcc0] sm:$0xff] }
  0x94   :  { %3482 = vmatprep.subr.bf16.mxu0 %v9059_v12  ;;  %3535 = vmatprep.subr.bf16.mxu1 %v9187_v1  ;;  %v1831_v6 = vld [vmem:[#allocation10 + $0xce0] sm:$0xff] }
  0x95   :  { %v9131_v8 = vcombine.high %v1827_v5, %v1831_v6  ;;  %v9130_v10 = vcombine.low %v1827_v5, %v1831_v6  ;;  %v118_v12 = vld [vmem:[#allocation3] sm:$0x11] }
  0x96   :  { %v1931_v53 = vld [vmem:[#allocation10 + $0x1000] sm:$0xff] }
  0x97   :  { %3483 = vmatpush1.bf16.msra.mxu0 %v9058_v14  ;;  %3536 = vmatpush1.bf16.msra.mxu1 %v9186_v15  ;;  %v9259_v14 = vcombine.high %v1955_v7, %v1959_v9  ;;  %v142_v15 = vld [vmem:[#allocation3 + $0x28] sm:$0x11]  ;;  %v1935_v54 = vld [vmem:[#allocation10 + $0x1020] sm:$0xff] }
  0x98   :  { %3484 = vmatprep.subr.bf16.mxu0 %v9051_v21  ;;  %3537 = vmatprep.subr.bf16.mxu1 %v9179_v26  ;;  %v152_v21 = vld [vmem:[#allocation3 + $0x64] sm:$0x11]  ;;  %v9234_v57 = vcombine.low %v1931_v53, %v1935_v54  ;;  %v1923_v40 = vld [vmem:[#allocation10 + $0xfc0] sm:$0xff] }
  0x99   :  { %8988 = vmatmul.mubr.msk.bf16.gmra.mxu0 %vm421_vm4, %v8965_v62  ;;  %8991 = vmatmul.mubr.msk.bf16.gmra.mxu1 %vm421_vm4, %v8965_v62  ;;  %v1835_v62 = vld [vmem:[#allocation10 + $0xd00] sm:$0xff]  ;;  %vm116_vm4 = vmand %vm114_vm13, %vm115_vm14 }
  0x9a   :  { %v9138_v3 = vcombine.low %v1835_v62, %v1839_v63  ;;  %v9139_v4 = vcombine.high %v1835_v62, %v1839_v63  ;;  %vm10409_vm7 = vmor %vm116_vm4, %vm113_vm15  ;;  %v1927_v62 = vld [vmem:[#allocation10 + $0xfe0] sm:$0xff] }
  0x9b   :  { %3485 = vmatpush1.bf16.msra.mxu0 %v9050_v24  ;;  %3538 = vmatpush1.bf16.msra.mxu1 %v9178_v25  ;;  %v119_v20 = vsel %vm10409_vm7, 0, %v118_v12  ;;  %v122_v24 = vsel %vm10409_vm7, 0, %v121_v19  ;;  %vm140_vm14 = vmand %vm114_vm13, %vm139_vm6  ;;  %v9226_v63 = vcombine.low %v1923_v40, %v1927_v62  ;;  %v1915_v5 = vld [vmem:[#allocation10 + $0xf80] sm:$0xff] }
  0x9c   :  { %3486 = vmatprep.subr.bf16.mxu0 %v9043_v32  ;;  %3539 = vmatprep.subr.bf16.mxu1 %v9171_v36  ;;  %120 = vst [vmem:[#allocation3] sm:$0x11] %v119_v20  ;;  %123 = vst [vmem:[#allocation3 + $0x8] sm:$0x11] %v122_v24  ;;  %v1823_v32 = vld [vmem:[#allocation10 + $0xca0] sm:$0xff] }
  0x9d   :  { %vm141_vm15 = vmor %vm140_vm14, %vm138_vm3  ;;  %v9122_v36 = vcombine.low %v1819_v30, %v1823_v32  ;;  %v1919_v7 = vld [vmem:[#allocation10 + $0xfa0] sm:$0xff] }
  0x9e   :  { %v143_v25 = vsel %vm141_vm15, 0, %v142_v15  ;;  %v146_v26 = vsel %vm141_vm15, 0, %v145_v18  ;;  %v153_v28 = vsel %vm141_vm15, 0, %v152_v21  ;;  %v156_v29 = vsel %vm141_vm15, 0, %v155_v22  ;;  %v1779_v12 = vld [vmem:[#allocation10 + $0xb40] sm:$0xff] }
  0x9f   :  { %3487 = vmatpush1.bf16.msra.mxu0 %v9042_v16  ;;  %3540 = vmatpush1.bf16.msra.mxu1 %v9170_v35  ;;  %144 = vst [vmem:[#allocation3 + $0x28] sm:$0x11] %v143_v25  ;;  %147 = vst [vmem:[#allocation3 + $0x30] sm:$0x11] %v146_v26  ;;  %v9123_v16 = vcombine.high %v1819_v30, %v1823_v32  ;;  %v1951_v35 = vld [vmem:[#allocation10 + $0x10a0] sm:$0xff]  ;;  %v9218_v9 = vcombine.low %v1915_v5, %v1919_v7 }
  0xa0   :  { %3488 = vmatprep.subr.bf16.mxu0 %v9035_v41  ;;  %3541 = vmatprep.subr.bf16.mxu1 %v9163_v34  ;;  %154 = vst [vmem:[#allocation3 + $0x64] sm:$0x11] %v153_v28  ;;  %157 = vst [vmem:[#allocation3 + $0x6c] sm:$0x11] %v156_v29  ;;  %v9250_v37 = vcombine.low %v1947_v33, %v1951_v35  ;;  %v9251_v38 = vcombine.high %v1947_v33, %v1951_v35  ;;  %v130_v41 = vsel %vm10409_vm7, 0, %v129_v39  ;;  %v1911_v18 = vld [vmem:[#allocation10 + $0xf60] sm:$0xff] }
  0xa1   :  { %131 = vst [vmem:[#allocation3 + $0x3c] sm:$0x11] %v130_v41  ;;  %v132_v34 = vld [vmem:[#allocation3 + $0x44] sm:$0x11]  ;;  %v1771_v22 = vld [vmem:[#allocation10 + $0xb00] sm:$0xff] }
  0xa2   :  { %v1775_v24 = vld [vmem:[#allocation10 + $0xb20] sm:$0xff]  ;;  %v10429_v35 = vld [vmem:[#allocation10 + $0xac8] sm:$0xff] }
  0xa3   :  { %3489 = vmatpush1.bf16.msra.mxu0 %v9034_v27  ;;  %3542 = vmatpush1.bf16.msra.mxu1 %v9162_v44  ;;  %v1815_v27 = vld [vmem:[#allocation10 + $0xc60] sm:$0xff]  ;;  %v9074_v26 = vcombine.low %v1771_v22, %v1775_v24  ;;  %v9075_v28 = vcombine.high %v1771_v22, %v1775_v24  ;;  %11498 = vst [vmem:[#allocation19_spill] sm:$0xff] %v10429_v35  ;;  %v1049_v24 = vld [vmem:[#allocation9] sm:$0xf] }
  0xa4   :  { %3490 = vmatprep.subr.bf16.mxu0 %v9027_v46  ;;  %3543 = vmatprep.subr.bf16.mxu1 %v9155_v52  ;;  %v1939_v44 = vld [vmem:[#allocation10 + $0x1040] sm:$0xff]  ;;  %v9114_v11 = vcombine.low %v1811_v42, %v1815_v27  ;;  %v9115_v43 = vcombine.high %v1811_v42, %v1815_v27  ;;  %v133_v46 = vsel %vm10409_vm7, 0, %v132_v34  ;;  %v149_v42 = vld [vmem:[#allocation3 + $0x38] sm:$0x1] }
  0xa5   :  { %v9242_v48 = vcombine.low %v1939_v44, %v1943_v45  ;;  %134 = vst [vmem:[#allocation3 + $0x44] sm:$0x11] %v133_v46  ;;  %v1807_v52 = vld [vmem:[#allocation10 + $0xc20] sm:$0xff]  ;;  %v150_v27 = vsel %vm148_vm11, 0, %v149_v42 }
  0xa6   :  { %v1899_v25 = vld [vmem:[#allocation10 + $0xf00] sm:$0xff]  ;;  %151 = vst [vmem:[#allocation3 + $0x38] sm:$0x1] %v150_v27 }
  0xa7   :  { %3491 = vmatpush1.bf16.msra.mxu0 %v9026_v49  ;;  %3544 = vmatpush1.bf16.msra.mxu1 %v9154_v17  ;;  %v9243_v49 = vcombine.high %v1939_v44, %v1943_v45  ;;  %v1803_v17 = vld [vmem:[#allocation10 + $0xc00] sm:$0xff]  ;;  %165 = vst.msk [vmem:[#allocation3 + $0x38] sm:$0x1] %vm124_vm8, %v11462_v0  ;;  %v135_v44 = vld [vmem:[#allocation3 + $0x4c] sm:$0x1] }
  0xa8   :  { %3492 = vmatprep.subr.bf16.mxu0 %v9019_v56  ;;  %3545 = vmatprep.subr.bf16.mxu1 %v9147_v60  ;;  %v9106_v55 = vcombine.low %v1803_v17, %v1807_v52  ;;  %v9107_v56 = vcombine.high %v1803_v17, %v1807_v52  ;;  %v1799_v60 = vld [vmem:[#allocation10 + $0xbe0] sm:$0xff]  ;;  %v136_v34 = vsel %vm10257_vm10, 0, %v135_v44 }
  0xa9   :  { %v1903_v29 = vld [vmem:[#allocation10 + $0xf20] sm:$0xff]  ;;  %137 = vst [vmem:[#allocation3 + $0x4c] sm:$0x1] %v136_v34 }
  0xaa   :  { %v9202_v30 = vcombine.low %v1899_v25, %v1903_v29  ;;  %v9203_v32 = vcombine.high %v1899_v25, %v1903_v29  ;;  %v10425_v33 = vld [vmem:[#allocation10 + $0x11c0] sm:$0xff]  ;;  %166 = vst.msk [vmem:[#allocation3 + $0x4c] sm:$0xf] %vm161_vm1, %v11462_v0  ;;  %vm1225_vm1 = vcmask 1047556  }
  0xab   :  { %3493 = vmatpush1.bf16.msra.mxu0 %v9018_v58  ;;  %3546 = vmatpush1.bf16.msra.mxu1 %v9146_v59  ;;  %v9235_v58 = vcombine.high %v1931_v53, %v1935_v54  ;;  %v1795_v59 = vld [vmem:[#allocation10 + $0xbc0] sm:$0xff]  ;;  %vm1226_vm10 = vmand %vm1225_vm1, %vm139_vm6 }
  0xac   :  { %3494 = vmatprep.subr.bf16.mxu0 %v9011_v51  ;;  %3547 = vmatprep.subr.bf16.mxu1 %v9139_v4  ;;  %v9099_v61 = vcombine.high %v1795_v59, %v1799_v60  ;;  %v9098_v51 = vcombine.low %v1795_v59, %v1799_v60  ;;  %v1791_v4 = vld [vmem:[#allocation10 + $0xba0] sm:$0xff] }
  0xad   :  { %v10509_v42 = vld [vmem:[#allocation10 + $0x1140] sm:$0xff] }
  0xae   :  { %v10511_v27 = vld [vmem:[#allocation10 + $0x1160] sm:$0xff]  ;;  %v10537_v39 = vld [vmem:[#allocation3 + $0x38] sm:$0x1] }
  0xaf   :  { %3495 = vmatpush1.bf16.msra.mxu0 %v9010_v2  ;;  %3548 = vmatpush1.bf16.msra.mxu1 %v9138_v3  ;;  %v9227_v2 = vcombine.high %v1923_v40, %v1927_v62  ;;  %v1787_v3 = vld [vmem:[#allocation10 + $0xb80] sm:$0xff] }
  0xb0   :  { %3496 = vmatprep.subr.bf16.mxu0 %v9131_v8  ;;  %3549 = vmatprep.subr.bf16.mxu1 %v9259_v14  ;;  %v9091_v6 = vcombine.high %v1787_v3, %v1791_v4  ;;  %v9090_v8 = vcombine.low %v1787_v3, %v1791_v4  ;;  %v1907_v14 = vld [vmem:[#allocation10 + $0xf40] sm:$0xff]  ;;  %v1051_v4 = vlaneseq }
  0xb1   :  { %v9210_v20 = vcombine.low %v1907_v14, %v1911_v18  ;;  %v9211_v21 = vcombine.high %v1907_v14, %v1911_v18 }
  0xb3   :  { %3497 = vmatpush2.bf16.msra.mxu0 %v9130_v10  ;;  %3550 = vmatpush2.bf16.msra.mxu1 %v9258_v13  ;;  %v9219_v10 = vcombine.high %v1915_v5, %v1919_v7  ;;  %v1783_v13 = vld [vmem:[#allocation10 + $0xb60] sm:$0xff]  ;;  %v1258_v5 = vld [vmem:[#allocation3 + $0x10] sm:$0xf] }
  0xb4   :  { %3498 = vmatprep.subr.bf16.mxu0 %v9123_v16  ;;  %3551 = vmatprep.subr.bf16.mxu1 %v9251_v38  ;;  %v9083_v15 = vcombine.high %v1779_v12, %v1783_v13  ;;  %v9082_v19 = vcombine.low %v1779_v12, %v1783_v13  ;;  %v10427_v16 = vld [vmem:[#allocation10 + $0x11e0] sm:$0xff]  ;;  %v10435_v38 = vld [vmem:[#allocation10 + $0xae8] sm:$0xff]  ;;  %v1591_v12 = vshrl.u32 %v1258_v5, 16  ;;  %v1594_v13 = vshll.u32 %v1258_v5, 16 }
  0xb5   :  { %11499 = vst [vmem:[#allocation20_spill] sm:$0xff] %v10435_v38  ;;  %v9069_v41 = vcombine.high %v10429_v35, %v10435_v38 }
  0xb6   :  { %v1596_v22 = vrot.slane %v1594_v13, 5 }
  0xb7   :  { %3499 = vmatpush2.bf16.msra.mxu0 %v9122_v36  ;;  %3552 = vmatpush2.bf16.msra.mxu1 %v9250_v37  ;;  %v9291_v37 = vcombine.high %v10425_v33, %v10427_v16  ;;  %v10539_v36 = vld [vmem:[#allocation3 + $0x60] sm:$0xf] }
  0xb8   :  { %3500 = vmatprep.subr.bf16.mxu0 %v9115_v43  ;;  %3553 = vmatprep.subr.bf16.mxu1 %v9243_v49 }
  0xbb   :  { %3501 = vmatpush2.bf16.msra.mxu0 %v9114_v11  ;;  %3554 = vmatpush2.bf16.msra.mxu1 %v9242_v48  ;;  %v158_v11 = vld [vmem:[#allocation3 + $0x74] sm:$0x1] }
  0xbc   :  { %3502 = vmatprep.subr.bf16.mxu0 %v9107_v56  ;;  %3555 = vmatprep.subr.bf16.mxu1 %v9235_v58  ;;  %v159_v43 = vsel %vm148_vm11, 0, %v158_v11 }
  0xbd   :  { %160 = vst [vmem:[#allocation3 + $0x74] sm:$0x1] %v159_v43  ;;  %v10521_v43 = vld [vmem:[#allocation10 + $0x1100] sm:$0xff] }
  0xbe   :  { %168 = vst.msk [vmem:[#allocation3 + $0x74] sm:$0x1] %vm124_vm8, %v11462_v0  ;;  %vm10599_vm8 = vmand %vm428_vm2, %vm96_vm5  ;;  %vm3473_vm5 = vcmask 523264  }
  0xbf   :  { %3503 = vmatpush2.bf16.msra.mxu0 %v9106_v55  ;;  %3556 = vmatpush2.bf16.msra.mxu1 %v9234_v57  ;;  %vm10609_vm2 = vmor %vm1226_vm10, %vm10599_vm8 }
  0xc0   :  { %3504 = vmatprep.subr.bf16.mxu0 %v9099_v61  ;;  %3557 = vmatprep.subr.bf16.mxu1 %v9227_v2 }
  0xc3   :  { %3505 = vmatpush2.bf16.msra.mxu0 %v9098_v51  ;;  %3558 = vmatpush2.bf16.msra.mxu1 %v9226_v63 }
  0xc4   :  { %3506 = vmatprep.subr.bf16.mxu0 %v9091_v6  ;;  %3559 = vmatprep.subr.bf16.mxu1 %v9219_v10  ;;  %v10491_v10 = vshrl.u32 %v1051_v4, 7  ;;  %v10523_v4 = vld [vmem:[#allocation10 + $0x1120] sm:$0xff] }
  0xc6   :  { %11500 = vst [vmem:[#allocation21_spill] sm:$0xff] %v10491_v10  ;;  %v11464_v18 = vsub.s32 0, %v10491_v10  ;;  %v11466_v25 = vsub.s32 1, %v10491_v10 }
  0xc7   :  { %3507 = vmatpush2.bf16.msra.mxu0 %v9090_v8  ;;  %3560 = vmatpush2.bf16.msra.mxu1 %v9218_v9 }
  0xc8   :  { %3508 = vmatprep.subr.bf16.mxu0 %v9083_v15  ;;  %3561 = vmatprep.subr.bf16.mxu1 %v9211_v21  ;;  %v1593_v21 = vrot.slane %v1591_v12, 4  ;;  %v10515_v34 = vrot.slane %v1049_v24, %v11464_v18  ;;  %v10527_v13 = vrot.slane %v1049_v24, %v11466_v25 }
  0xca   :  { %v1597_v5 = vor.u32 %v1596_v22, %v1593_v21 }
  0xcb   :  { %3509 = vmatpush2.bf16.msra.mxu0 %v9082_v19  ;;  %3562 = vmatpush2.bf16.msra.mxu1 %v9210_v20  ;;  %v11465_v19 = vsub.s32 2, %v10491_v10  ;;  %v1261_v20 = vld [vmem:[#allocation3 + $0x24] sm:$0xf] }
  0xcc   :  { %3510 = vmatprep.subr.bf16.mxu0 %v9075_v28  ;;  %3563 = vmatprep.subr.bf16.mxu1 %v9203_v32  ;;  %v10503_v32 = vld [vmem:[#allocation10 + $0x11a0] sm:$0xff]  ;;  %v1600_v44 = vshll.u32 %v1261_v20, 16  ;;  %v1624_v12 = vshrl.u32 %v1261_v20, 16  ;;  %v10555_v35 = vrot.slane %v1597_v5, 4 }
  0xcd   :  { %v10519_v11 = vrot.slane %v1049_v24, %v11465_v19 }
  0xce   :  { %v10553_v50 = vrot.slane %v1600_v44, 5  ;;  %11501 = vst [vmem:[#allocation22_spill] sm:$0xff] %v10555_v35  ;;  %v10557_v25 = vrot.slane %v1624_v12, 4 }
  0xcf   :  { %3511 = vmatpush2.bf16.msra.mxu0 %v9074_v26  ;;  %3564 = vmatpush2.bf16.msra.mxu1 %v9202_v30  ;;  %v11467_v26 = vsub.s32 3, %v10491_v10  ;;  %v10501_v30 = vld [vmem:[#allocation10 + $0x1180] sm:$0xff] }
  0xd0   :  { %3594 = vmatprep.subr.bf16.mxu0 %v9291_v37  ;;  %3639 = vmatprep.subr.bf16.mxu1 %v9069_v41  ;;  %v10505_v37 = vld [vmem:[#allocation10 + $0xa88] sm:$0xff] }
  0xd1   :  { %v10507_v41 = vld [vmem:[#allocation10 + $0xaa8] sm:$0xff]  ;;  %v10531_v0 = vrot.slane %v1049_v24, %v11467_v26 }
 0x129   :  { %v10451_v45 = vpop.f32.mrf.mxu0  ;;  %v10453_v46 = vpop.f32.mrf.mxu1 }
 0x12b   :  { %v10455_v48 = vpop.f32.mrf.mxu0  ;;  %v10457_v49 = vpop.f32.mrf.mxu1 }
 0x12d   :  { %v10459_v23 = vpop.f32.mrf.mxu0  ;;  %v10461_v17 = vpop.f32.mrf.mxu1 }
 0x12f   :  { %v10463_v52 = vpop.f32.mrf.mxu0  ;;  %v10465_v53 = vpop.f32.mrf.mxu1 }
 0x131   :  { %v10467_v54 = vpop.f32.mrf.mxu0  ;;  %v10469_v55 = vpop.f32.mrf.mxu1 }
 0x133   :  { %v10471_v56 = vpop.f32.mrf.mxu0  ;;  %v10473_v57 = vpop.f32.mrf.mxu1 }
 0x135   :  { %v10475_v58 = vpop.f32.mrf.mxu0  ;;  %v10477_v59 = vpop.f32.mrf.mxu1 }
 0x137   :  { %v10479_v60 = vpop.f32.mrf.mxu0  ;;  %v10481_v40 = vpop.f32.mrf.mxu1 }
 0x13d   :  { %v699_v61 = vpop.f32.mrf.mxu0  ;;  %v752_v62 = vpop.f32.mrf.mxu1 }
 0x13e   :  { %v700_v18 = vadd.f32 %v699_v61, %v10451_v45  ;;  %v753_v19 = vadd.f32 %v752_v62, %v10453_v46 }
 0x13f   :  { %v701_v51 = vpop.f32.mrf.mxu0  ;;  %v754_v63 = vpop.f32.mrf.mxu1 }
 0x140   :  { %v702_v45 = vadd.f32 %v701_v51, %v10455_v48  ;;  %v755_v46 = vadd.f32 %v754_v63, %v10457_v49 }
 0x141   :  { %v10483_v2 = vpop.f32.mrf.mxu0  ;;  %v10485_v3 = vpop.f32.mrf.mxu1 }
 0x142   :  { %v704_v44 = vadd.f32 %v10483_v2, %v10459_v23  ;;  %v757_v10 = vadd.f32 %v10485_v3, %v10461_v17 }
 0x143   :  { %v705_v6 = vpop.f32.mrf.mxu0  ;;  %v758_v7 = vpop.f32.mrf.mxu1 }
 0x144   :  { %v706_v5 = vadd.f32 %v705_v6, %v10463_v52  ;;  %v759_v12 = vadd.f32 %v758_v7, %v10465_v53 }
 0x145   :  { %v10487_v8 = vpop.f32.mrf.mxu0  ;;  %v10489_v9 = vpop.f32.mrf.mxu1 }
 0x146   :  { %v763_v23 = vadd.f32 %v10489_v9, %v10469_v55 }
 0x147   :  { %v10493_v14 = vpop.f32.mrf.mxu0  ;;  %v10495_v15 = vpop.f32.mrf.mxu1 }
 0x148   :  { %v712_v17 = vadd.f32 %v10493_v14, %v10471_v56  ;;  %v765_v52 = vadd.f32 %v10495_v15, %v10473_v57 }
 0x149   :  { %v713_v28 = vpop.f32.mrf.mxu0  ;;  %v766_v29 = vpop.f32.mrf.mxu1 }
 0x14a   :  { %v10580_v2 = vadd.f32 %v713_v28, %v10475_v58 }
 0x14b   :  { %v715_v21 = vpop.f32.mrf.mxu0  ;;  %v768_v20 = vpop.f32.mrf.mxu1 }
 0x14c   :  { %v10588_v58 = vadd.f32 %v715_v21, %v10479_v60 }
 0x151   :  { %v961_v38 = vpop.f32.mrf.mxu0  ;;  %v1014_v22 = vpop.f32.mrf.mxu1 }
 0x152   :  { %v1033_v61 = vadd.f32 %v961_v38, %v700_v18  ;;  %v1035_v62 = vadd.f32 %v1014_v22, %v753_v19  ;;  %v710_v38 = vadd.f32 %v10487_v8, %v10467_v54 }
 0x153   :  { %v963_v35 = vpop.f32.mrf.mxu0  ;;  %v1016_v24 = vpop.f32.mrf.mxu1 }
 0x154   :  { %v1071_v26 = vadd.f32 %v10515_v34, %v1033_v61  ;;  %v1073_v48 = vadd.f32 %v10519_v11, %v1035_v62  ;;  %v1034_v51 = vadd.f32 %v963_v35, %v702_v45  ;;  %v1036_v49 = vadd.f32 %v1016_v24, %v755_v46 }
 0x155   :  { %v965_v53 = vpop.f32.mrf.mxu0  ;;  %v1018_v63 = vpop.f32.mrf.mxu1  ;;  %v10583_v35 = vadd.f32 %v766_v29, %v10477_v59  ;;  %v10591_v59 = vadd.f32 %v768_v20, %v10481_v40 }
 0x156   :  { %v1072_v3 = vadd.f32 %v10527_v13, %v1034_v51  ;;  %v1074_v54 = vadd.f32 %v10531_v0, %v1036_v49  ;;  %v1087_v6 = vmax.f32 %v1071_v26, 0.0  ;;  %v1089_v55 = vmax.f32 %v1073_v48, 0.0 }
 0x157   :  { %v1037_v7 = vadd.f32 %v965_v53, %v704_v44  ;;  %v1039_v8 = vadd.f32 %v1018_v63, %v757_v10  ;;  %v967_v56 = vpop.f32.mrf.mxu0  ;;  %v1020_v9 = vpop.f32.mrf.mxu1 }
 0x158   :  { %v1088_v14 = vmax.f32 %v1072_v3, 0.0  ;;  %v1090_v57 = vmax.f32 %v1074_v54, 0.0  ;;  %v1038_v15 = vadd.f32 %v967_v56, %v706_v5  ;;  %v1040_v18 = vadd.f32 %v1020_v9, %v759_v12  ;;  %v1231_v56 = vld [vmem:[#allocation3 + $0x8] sm:$0xff] }
 0x159   :  { %v1075_v19 = vadd.f32 %v10515_v34, %v1037_v7  ;;  %v1077_v28 = vadd.f32 %v10519_v11, %v1039_v8  ;;  %v971_v26 = vpop.f32.mrf.mxu0  ;;  %v1024_v29 = vpop.f32.mrf.mxu1  ;;  %v1228_v8 = vld [vmem:[#allocation3] sm:$0xff] }
 0x15a   :  { %v9924_v22 = vpack.c.bf16 %v1088_v14, %v1087_v6  ;;  %v9925_v10 = vpack.c.bf16 %v1090_v57, %v1089_v55  ;;  %v1076_v24 = vadd.f32 %v10527_v13, %v1038_v15  ;;  %v1078_v45 = vadd.f32 %v10531_v0, %v1040_v18 }
 0x15b   :  { %v1091_v40 = vmax.f32 %v1075_v19, 0.0  ;;  %v1093_v21 = vmax.f32 %v1077_v28, 0.0  ;;  %v1041_v20 = vadd.f32 %v971_v26, %v710_v38  ;;  %v1043_v46 = vadd.f32 %v1024_v29, %v763_v23  ;;  %v973_v61 = vpop.f32.mrf.mxu0  ;;  %v1026_v62 = vpop.f32.mrf.mxu1 }
 0x15c   :  { %v1144_v44 = vshrl.u32 %v9924_v22, 16  ;;  %v1147_v5 = vshll.u32 %v9924_v22, 16  ;;  %v1151_v12 = vshrl.u32 %v9925_v10, 16  ;;  %v1154_v48 = vshll.u32 %v9925_v10, 16 }
 0x15d   :  { %v1092_v51 = vmax.f32 %v1076_v24, 0.0  ;;  %v1094_v49 = vmax.f32 %v1078_v45, 0.0  ;;  %v1079_v53 = vadd.f32 %v10515_v34, %v1041_v20  ;;  %v1081_v63 = vadd.f32 %v10519_v11, %v1043_v46  ;;  %v975_v3 = vpop.f32.mrf.mxu0  ;;  %v1028_v54 = vpop.f32.mrf.mxu1 }
 0x15e   :  { %v1146_v6 = vrot.slane %v1144_v44, 7  ;;  %v1153_v38 = vrot.slane %v1151_v12, 7  ;;  %v1042_v23 = vadd.f32 %v973_v61, %v712_v17  ;;  %v1044_v55 = vadd.f32 %v1026_v62, %v765_v52  ;;  %v1236_v44 = vld [vmem:[#allocation3 + $0x28] sm:$0x11] }
 0x15f   :  { %v9926_v9 = vpack.c.bf16 %v1092_v51, %v1091_v40  ;;  %v9927_v14 = vpack.c.bf16 %v1094_v49, %v1093_v21  ;;  %v1095_v57 = vmax.f32 %v1079_v53, 0.0  ;;  %v1097_v15 = vmax.f32 %v1081_v63, 0.0  ;;  %v977_v10 = vpop.f32.mrf.mxu0  ;;  %v1030_v24 = vpop.f32.mrf.mxu1 }
 0x160   :  { %v1149_v18 = vor.u32 %v1147_v5, %v1146_v6  ;;  %v1157_v19 = vrot.slane %v1146_v6, 4  ;;  %v1156_v28 = vor.u32 %v1154_v48, %v1153_v38  ;;  %v1166_v26 = vrot.slane %v1153_v38, 4  ;;  %v1239_v5 = vld [vmem:[#allocation3 + $0x30] sm:$0x11] }
 0x161   :  { %v1159_v29 = vshrl.u32 %v9926_v9, 16  ;;  %v1162_v22 = vshll.u32 %v9926_v9, 16  ;;  %v1168_v17 = vshrl.u32 %v9927_v14, 16  ;;  %v1171_v52 = vshll.u32 %v9927_v14, 16 }
 0x162   :  { %v10615_v45 = vsel %vm10609_vm2, %v1149_v18, %v1228_v8  ;;  %v10619_v60 = vsel %vm10609_vm2, %v1156_v28, %v1231_v56  ;;  %v1080_v40 = vadd.f32 %v10527_v13, %v1042_v23  ;;  %v1082_v21 = vadd.f32 %v10531_v0, %v1044_v55 }
 0x163   :  { %1230 = vst [vmem:[#allocation3] sm:$0xff] %v10615_v45  ;;  %1233 = vst [vmem:[#allocation3 + $0x8] sm:$0xff] %v10619_v60  ;;  %v1161_v20 = vrot.slane %v1159_v29, 7  ;;  %v1170_v46 = vrot.slane %v1168_v17, 7  ;;  %v1045_v61 = vadd.f32 %v975_v3, %v10580_v2  ;;  %v1047_v62 = vadd.f32 %v1028_v54, %v10583_v35  ;;  %v1242_v29 = vld [vmem:[#allocation3 + $0x3c] sm:$0xff] }
 0x164   :  { %v1096_v12 = vmax.f32 %v1080_v40, 0.0  ;;  %v1098_v48 = vmax.f32 %v1082_v21, 0.0  ;;  %v1046_v51 = vadd.f32 %v977_v10, %v10588_v58  ;;  %v1048_v49 = vadd.f32 %v1030_v24, %v10591_v59 }
 0x165   :  { %v1164_v53 = vor.u32 %v1162_v22, %v1161_v20  ;;  %v1175_v63 = vrot.slane %v1161_v20, 4  ;;  %v1173_v6 = vor.u32 %v1171_v52, %v1170_v46  ;;  %v1176_v38 = vrot.slane %v1170_v46, 4  ;;  %v1245_v22 = vld [vmem:[#allocation3 + $0x44] sm:$0xff] }
 0x166   :  { %v9928_v23 = vpack.c.bf16 %v1096_v12, %v1095_v57  ;;  %v9929_v55 = vpack.c.bf16 %v1098_v48, %v1097_v15  ;;  %v1083_v8 = vadd.f32 %v10515_v34, %v1045_v61  ;;  %v1085_v2 = vadd.f32 %v10519_v11, %v1047_v62 }
 0x167   :  { %v10633_v35 = vsel %vm10283_vm12, %v1157_v19, %v1164_v53  ;;  %v1237_v3 = vsel %vm10409_vm7, %v1175_v63, %v1236_v44  ;;  %v10639_v58 = vsel %vm10283_vm12, %v1166_v26, %v1173_v6  ;;  %v1240_v59 = vsel %vm10409_vm7, %v1176_v38, %v1239_v5 }
 0x168   :  { %1238 = vst [vmem:[#allocation3 + $0x28] sm:$0x11] %v1237_v3  ;;  %1241 = vst [vmem:[#allocation3 + $0x30] sm:$0x11] %v1240_v59  ;;  %v1178_v54 = vshrl.u32 %v9928_v23, 16  ;;  %v1181_v34 = vshll.u32 %v9928_v23, 16  ;;  %v1084_v57 = vadd.f32 %v10527_v13, %v1046_v51  ;;  %v1086_v15 = vadd.f32 %v10531_v0, %v1048_v49 }
 0x169   :  { %v1185_v56 = vshrl.u32 %v9929_v55, 16  ;;  %v1188_v11 = vshll.u32 %v9929_v55, 16  ;;  %v1099_v9 = vmax.f32 %v1083_v8, 0.0  ;;  %v1101_v14 = vmax.f32 %v1085_v2, 0.0  ;;  %v1250_v2 = vld [vmem:[#allocation3 + $0x64] sm:$0x11] }
 0x16a   :  { %v1180_v18 = vrot.slane %v1178_v54, 7  ;;  %v1563_v28 = vshrl.u32 %v10615_v45, 16  ;;  %v1566_v26 = vshll.u32 %v10615_v45, 16  ;;  %v1100_v17 = vmax.f32 %v1084_v57, 0.0 }
 0x16b   :  { %v1187_v19 = vrot.slane %v1185_v56, 7  ;;  %v1102_v52 = vmax.f32 %v1086_v15, 0.0  ;;  %v1572_v10 = vshll.u32 %v10633_v35, 16  ;;  %v1604_v24 = vshrl.u32 %v10633_v35, 16 }
 0x16c   :  { %v1183_v40 = vor.u32 %v1181_v34, %v1180_v18  ;;  %v1191_v21 = vrot.slane %v1180_v18, 4  ;;  %v9930_v46 = vpack.c.bf16 %v1100_v17, %v1099_v9  ;;  %v1565_v61 = vrot.slane %v1563_v28, 4  ;;  %v1253_v34 = vld [vmem:[#allocation3 + $0x6c] sm:$0x11] }
 0x16d   :  { %v1190_v20 = vor.u32 %v1188_v11, %v1187_v19  ;;  %v1200_v13 = vrot.slane %v1187_v19, 4  ;;  %v9931_v0 = vpack.c.bf16 %v1102_v52, %v1101_v14  ;;  %v1568_v62 = vrot.slane %v1566_v26, 5 }
 0x16e   :  { %v10651_v44 = vsel %vm10609_vm2, %v1183_v40, %v1242_v29  ;;  %v1574_v12 = vrot.slane %v1572_v10, 5  ;;  %v1606_v48 = vrot.slane %v1604_v24, 4  ;;  %v1193_v51 = vshrl.u32 %v9930_v46, 16 }
 0x16f   :  { %v10655_v5 = vsel %vm10609_vm2, %v1190_v20, %v1245_v22  ;;  %1244 = vst [vmem:[#allocation3 + $0x3c] sm:$0xff] %v10651_v44  ;;  %v1196_v49 = vshll.u32 %v9930_v46, 16  ;;  %v1202_v53 = vshrl.u32 %v9931_v0, 16  ;;  %v1205_v63 = vshll.u32 %v9931_v0, 16  ;;  %v10659_v6 = vld [vmem:[#allocation3 + $0x28] sm:$0x11] }
 0x170   :  { %1247 = vst [vmem:[#allocation3 + $0x44] sm:$0xff] %v10655_v5  ;;  %v1569_v38 = vor.u32 %v1568_v62, %v1565_v61  ;;  %v1607_v23 = vor.u32 %v1606_v48, %v1574_v12  ;;  %v1610_v55 = vshll.u32 %v10659_v6, 16  ;;  %v1577_v7 = vshrl.u32 %v10619_v60, 16  ;;  %v10669_v29 = vld [vmem:[#allocation3 + $0x30] sm:$0x11] }
 0x171   :  { %v1195_v8 = vrot.slane %v1193_v51, 7  ;;  %v1204_v3 = vrot.slane %v1202_v53, 7  ;;  %v1580_v59 = vshll.u32 %v10619_v60, 16  ;;  %v1586_v54 = vshll.u32 %v10639_v58, 16  ;;  %v1264_v20 = vld [vmem:[#allocation3 + $0x4c] sm:$0xf] }
 0x172   :  { %v1570_v56 = vrot.slane %v1569_v38, 4  ;;  %v1608_v11 = vrot.slane %v1607_v23, 4  ;;  %v1612_v9 = vrot.slane %v1610_v55, 5  ;;  %v1579_v14 = vrot.slane %v1577_v7, 4 }
 0x173   :  { %v1198_v57 = vor.u32 %v1196_v49, %v1195_v8  ;;  %v1209_v15 = vrot.slane %v1195_v8, 4  ;;  %v1207_v18 = vor.u32 %v1205_v63, %v1204_v3  ;;  %v1210_v19 = vrot.slane %v1204_v3, 4 }
 0x174   :  { %v1575_v28 = vsel %vm10330_vm0, %v1570_v56, %v1574_v12  ;;  %v1613_v26 = vsel %vm10330_vm0, %v1608_v11, %v1612_v9  ;;  %v1582_v22 = vrot.slane %v1580_v59, 5  ;;  %v1588_v17 = vrot.slane %v1586_v54, 5 }
 0x175   :  { %v10673_v52 = vsel %vm10283_vm12, %v1191_v21, %v1198_v57  ;;  %v1251_v10 = vsel %vm10409_vm7, %v1209_v15, %v1250_v2  ;;  %v10679_v24 = vsel %vm10283_vm12, %v1200_v13, %v1207_v18  ;;  %v1254_v40 = vsel %vm10409_vm7, %v1210_v19, %v1253_v34 }
 0x176   :  { %1252 = vst [vmem:[#allocation3 + $0x64] sm:$0x11] %v1251_v10  ;;  %1255 = vst [vmem:[#allocation3 + $0x6c] sm:$0x11] %v1254_v40  ;;  %v10683_v46 = vcombine.low %v1575_v28, %v1613_v26  ;;  %v10685_v0 = vcombine.high %v1575_v28, %v1613_v26  ;;  %v1583_v61 = vor.u32 %v1582_v22, %v1579_v14  ;;  %v1614_v21 = vshrl.u32 %v10639_v58, 16 }
 0x177   :  { %v1620_v62 = vshll.u32 %v10669_v29, 16  ;;  %v1635_v12 = vshrl.u32 %v10651_v44, 16  ;;  %v1638_v47 = vshll.u32 %v10651_v44, 16  ;;  %v1644_v13 = vshll.u32 %v10673_v52, 16 }
 0x178   :  { %3512 = vmatprep.mubr.bf16.mxu0 %v10685_v0  ;;  %v1616_v1 = vrot.slane %v1614_v21, 4  ;;  %v1676_v48 = vshrl.u32 %v10673_v52, 16  ;;  %v1649_v51 = vshrl.u32 %v10655_v5, 16  ;;  %v1663_v49 = vshrl.u32 %v1264_v20, 16 }
 0x179   :  { %3513 = vmatmul.mubr.bf16.vlgmr.msra.gmra.mxu0 %v10683_v46  ;;  %v1637_v53 = vrot.slane %v1635_v12, 4  ;;  %v1640_v63 = vrot.slane %v1638_v47, 5  ;;  %v1646_v38 = vrot.slane %v1644_v13, 5  ;;  %v1666_v23 = vshll.u32 %v1264_v20, 16 }
 0x17a   :  { %v1584_v55 = vrot.slane %v1583_v61, 4  ;;  %v1617_v7 = vor.u32 %v1616_v1, %v1588_v17  ;;  %v1622_v8 = vrot.slane %v1620_v62, 5  ;;  %v11506_v2 = vcombine.low %v10425_v33, %v10427_v16 }
 0x17b   :  { %v1678_v3 = vrot.slane %v1676_v48, 4  ;;  %v11507_v59 = vcombine.high %v10501_v30, %v10503_v32  ;;  %v1641_v54 = vor.u32 %v1640_v63, %v1637_v53  ;;  %v1651_v34 = vrot.slane %v1649_v51, 4  ;;  %v1748_v51 = vld [vmem:[#allocation10 + $0xa48] sm:$0xff] }
 0x17c   :  { %3595 = vmatpush1.bf16.msra.mxu0 %v11506_v2  ;;  %v1652_v56 = vshll.u32 %v10655_v5, 16  ;;  %v1658_v11 = vshll.u32 %v10679_v24, 16  ;;  %v1618_v9 = vrot.slane %v1617_v7, 4  ;;  %v1686_v57 = vshrl.u32 %v10679_v24, 16  ;;  %v1752_v53 = vld [vmem:[#allocation10 + $0xa68] sm:$0xff] }
 0x17d   :  { %3596 = vmatprep.subr.bf16.mxu0 %v11507_v59  ;;  %v1679_v14 = vor.u32 %v1678_v3, %v1646_v38  ;;  %v1696_v15 = vshrl.u32 %v10539_v36, 16  ;;  %v10706_v18 = vld [vmem:[#allocation3 + $0x64] sm:$0x11]  ;;  %v1642_v33 = vrot.slane %v1641_v54, 4  ;;  %v10708_v16 = vld [vmem:[#allocation3 + $0x6c] sm:$0x11]  ;;  %v9267_v28 = vcombine.high %v10521_v43, %v10523_v4 }
 0x17e   :  { %v1654_v19 = vrot.slane %v1652_v56, 5  ;;  %v1627_v26 = vor.u32 %v10557_v25, %v10553_v50  ;;  %v1589_v22 = vsel %vm10330_vm0, %v1584_v55, %v1588_v17  ;;  %v1623_v10 = vsel %vm10330_vm0, %v1618_v9, %v1622_v8  ;;  %v10743_v54 = vld [vmem:[#allocation10 + $0xec8] sm:$0xff] }
 0x17f   :  { %v11508_v40 = vcombine.low %v10501_v30, %v10503_v32  ;;  %v1682_v20 = vshll.u32 %v10706_v18, 16  ;;  %v1660_v61 = vrot.slane %v1658_v11, 5  ;;  %v10722_v21 = vcombine.low %v1589_v22, %v1623_v10 }
 0x180   :  { %v10724_v62 = vcombine.high %v1589_v22, %v1623_v10  ;;  %v1655_v12 = vor.u32 %v1654_v19, %v1651_v34  ;;  %v11509_v25 = vcombine.high %v10509_v42, %v10511_v27  ;;  %v11510_v17 = vshll.u32 %v10539_v36, 16  ;;  %v1561_v34 = vld [vmem:[#allocation3 + $0x74] sm:$0x1]  ;;  %v1740_v22 = vld [vmem:[#allocation10 + $0xa08] sm:$0xff] }
 0x181   :  { %3597 = vmatpush1.bf16.msra.mxu0 %v11508_v40  ;;  %v1680_v13 = vrot.slane %v1679_v14, 4  ;;  %v1684_v1 = vrot.slane %v1682_v20, 5  ;;  %v1688_v30 = vrot.slane %v1686_v57, 4  ;;  %v1692_v32 = vshll.u32 %v10708_v16, 16  ;;  %v1744_v10 = vld [vmem:[#allocation10 + $0xa28] sm:$0xff] }
 0x182   :  { %3598 = vmatprep.subr.bf16.mxu0 %v11509_v25  ;;  %v10731_v47 = vrot.slane %v11510_v17, 5  ;;  %3565 = vmatprep.mubr.bf16.mxu1 %v10724_v62  ;;  %v1647_v48 = vsel %vm10330_vm0, %v1642_v33, %v1646_v38  ;;  %v1665_v63 = vrot.slane %v1663_v49, 4  ;;  %v1668_v55 = vrot.slane %v1666_v23, 5  ;;  %v10745_v38 = vld [vmem:[#allocation10 + $0xee8] sm:$0xff]  ;;  %v11512_v49 = vld [vmem:[#allocation19_spill] sm:$0xff]  ;;  %v11513_v23 = vld [vmem:[#allocation20_spill] sm:$0xff] }
 0x183   :  { %v1698_v7 = vrot.slane %v1696_v15, 4  ;;  %3566 = vmatmul.mubr.bf16.vlgmr.msra.gmra.mxu1 %v10722_v21  ;;  %v1685_v36 = vsel %vm10330_vm0, %v1680_v13, %v1684_v1  ;;  %v1656_v8 = vrot.slane %v1655_v12, 4  ;;  %v1689_v2 = vor.u32 %v1688_v30, %v1660_v61 }
 0x184   :  { %v1694_v3 = vrot.slane %v1692_v32, 5  ;;  %v11511_v59 = vcombine.low %v10509_v42, %v10511_v27  ;;  %v11514_v56 = vcombine.low %v11512_v49, %v11513_v23  ;;  %v10750_v11 = vcombine.high %v1647_v48, %v1685_v36  ;;  %v10796_v49 = vld [vmem:[#allocation10 + $0x968] sm:$0xff] }
 0x185   :  { %v10752_v9 = vcombine.low %v1647_v48, %v1685_v36  ;;  %v1628_v14 = vrot.slane %v1627_v26, 4  ;;  %v11515_v57 = vshll.u32 %v10537_v39, 16  ;;  %v11516_v42 = vcombine.high %v10505_v37, %v10507_v41  ;;  %v1876_v23 = vld [vmem:[#allocation10 + $0xe48] sm:$0xff] }
 0x186   :  { %3599 = vmatpush1.bf16.msra.mxu0 %v11511_v59  ;;  %3640 = vmatpush1.bf16.msra.mxu1 %v11514_v56  ;;  %v1690_v27 = vrot.slane %v1689_v2, 4  ;;  %v9053_v33 = vcombine.high %v1748_v51, %v1752_v53  ;;  %v9052_v19 = vcombine.low %v1748_v51, %v1752_v53  ;;  %v9197_v40 = vcombine.high %v10743_v54, %v10745_v38  ;;  %v1732_v51 = vld [vmem:[#allocation10 + $0x9c8] sm:$0xff] }
 0x187   :  { %3600 = vmatprep.subr.bf16.mxu0 %v9267_v28  ;;  %v1632_v15 = vrot.slane %v11515_v57, 5  ;;  %3641 = vmatprep.subr.bf16.mxu1 %v11516_v42  ;;  %v11517_v28 = vld [vmem:[#allocation22_spill] sm:$0xff]  ;;  %v1702_v26 = vshll.u32 %v1561_v34, 16  ;;  %v1661_v20 = vsel %vm10330_vm0, %v1656_v8, %v1660_v61  ;;  %v1669_v25 = vor.u32 %v1668_v55, %v1665_v63 }
 0x188   :  { %3522 = vmatprep.mubr.bf16.mxu0 %v10750_v11  ;;  %v1603_v39 = vsel %vm10330_vm0, %v11517_v28, %v10553_v50  ;;  %v1695_v12 = vsel %vm10330_vm0, %v1690_v27, %v1694_v3  ;;  %v1699_v17 = vor.u32 %v1698_v7, %v10731_v47  ;;  %v11518_v13 = vcombine.low %v10505_v37, %v10507_v41  ;;  %v1736_v37 = vld [vmem:[#allocation10 + $0x9e8] sm:$0xff] }
 0x189   :  { %3523 = vmatmul.mubr.bf16.gmra.mxu0 %v10752_v9  ;;  %v10775_v1 = vcombine.high %v1661_v20, %v1695_v12  ;;  %v10777_v30 = vcombine.low %v1661_v20, %v1695_v12  ;;  %v11519_v50 = vcombine.low %v10521_v43, %v10523_v4  ;;  %v1633_v61 = vsel %vm10330_vm0, %v1628_v14, %v1632_v15  ;;  %v1884_v41 = vld [vmem:[#allocation10 + $0xe88] sm:$0xff] }
 0x18a   :  { %3642 = vmatpush1.bf16.msra.mxu1 %v11518_v13  ;;  %v9045_v32 = vcombine.high %v1740_v22, %v1744_v10  ;;  %v11520_v48 = vmov 0   ;;  %v1888_v53 = vld [vmem:[#allocation10 + $0xea8] sm:$0xff]  ;;  %v10787_v63 = vcombine.low %v1603_v39, %v1633_v61  ;;  %v1670_v43 = vrot.slane %v1669_v25, 4 }
 0x18b   :  { %3601 = vmatpush1.bf16.msra.mxu0 %v11519_v50  ;;  %3643 = vmatprep.subr.bf16.mxu1 %v9053_v33  ;;  %v1700_v4 = vrot.slane %v1699_v17, 4  ;;  %v1704_v55 = vrot.slane %v1702_v26, 5  ;;  %v9044_v7 = vcombine.low %v1740_v22, %v1744_v10  ;;  %v9196_v36 = vcombine.low %v10743_v54, %v10745_v38  ;;  %v10792_v8 = vld [vmem:[#allocation10 + $0x988] sm:$0xff] }
 0x18c   :  { %3618 = vmatprep.mubr.bf16.mxu0 %v11520_v48  ;;  %3575 = vmatprep.mubr.bf16.mxu1 %v10775_v1  ;;  %v1728_v2 = vld [vmem:[#allocation10 + $0x9a8] sm:$0xff]  ;;  %v9037_v3 = vcombine.high %v1732_v51, %v1736_v37  ;;  %v9189_v59 = vcombine.high %v1884_v41, %v1888_v53  ;;  %v9036_v14 = vcombine.low %v1732_v51, %v1736_v37  ;;  %v6268_v17 = vrot.slane %v10633_v35, 5  ;;  %v6251_v37 = vld [vmem:[#allocation3 + $0x3c] sm:$0xee] }
 0x18d   :  { %3692 = vmatprep.subr.bf16.mxu0 %v9197_v40  ;;  %3576 = vmatmul.mubr.bf16.gmra.mxu1 %v10777_v30  ;;  %v10794_v34 = vld [vmem:[#allocation10 + $0x948] sm:$0xff]  ;;  %v9028_v57 = vcombine.low %v10792_v8, %v1728_v2  ;;  %v1675_v54 = vsel %vm10330_vm0, %v1670_v43, %v10731_v47  ;;  %v1705_v38 = vsel %vm10330_vm0, %v1700_v4, %v1704_v55  ;;  %v6272_v13 = vrot.slane %v10639_v58, 5 }
 0x18e   :  { %3644 = vmatpush1.bf16.msra.mxu1 %v9052_v19  ;;  %3671 = vmatprep.mubr.bf16.mxu1 %v10685_v0  ;;  %v1880_v56 = vld [vmem:[#allocation10 + $0xe68] sm:$0xff]  ;;  %v9029_v27 = vcombine.high %v10792_v8, %v1728_v2  ;;  %v9188_v33 = vcombine.low %v1884_v41, %v1888_v53  ;;  %v9020_v19 = vcombine.low %v10794_v34, %v10796_v49  ;;  %v6279_v53 = vrot.slane %v10659_v6, 5 }
 0x18f   :  { %3645 = vmatprep.subr.bf16.mxu1 %v9045_v32  ;;  %v10806_v15 = vld [vmem:[#allocation10 + $0x908] sm:$0xff]  ;;  %v9021_v47 = vcombine.high %v10794_v34, %v10796_v49  ;;  %v9180_v31 = vcombine.low %v1876_v23, %v1880_v56  ;;  %v9181_v10 = vcombine.high %v1876_v23, %v1880_v56  ;;  %v10816_v39 = vcombine.low %v1675_v54, %v1705_v38 }
 0x190   :  { %v10808_v42 = vld [vmem:[#allocation10 + $0x928] sm:$0xff]  ;;  %v10828_v50 = vcombine.high %v10615_v45, %v10633_v35  ;;  %v10832_v61 = vcombine.high %v10619_v60, %v10639_v58  ;;  %v10836_v32 = vcombine.low %v10615_v45, %v10633_v35  ;;  %v10840_v41 = vcombine.low %v10619_v60, %v10639_v58 }
 0x191   :  { %9298 = vmatmul.mubr.msk.bf16.vlgmr.msra.gmra.mxu0 %vm3473_vm5, %v10787_v63  ;;  %v6248_v22 = vld [vmem:[#allocation3] sm:$0xee]  ;;  %v6249_v28 = vld [vmem:[#allocation3 + $0x8] sm:$0xee]  ;;  %v9013_v26 = vcombine.high %v10806_v15, %v10808_v42  ;;  %v6282_v4 = vrot.slane %v10669_v29, 5  ;;  %v10848_v35 = vcombine.high %v10651_v44, %v10673_v52  ;;  %v6281_v8 = vrot.slane %v6272_v13, 4 }
 0x192   :  { %3646 = vmatpush1.bf16.msra.mxu1 %v9044_v7  ;;  %3693 = vmatpush1.bf16.msra.mxu0 %v9196_v36  ;;  %v1868_v40 = vld [vmem:[#allocation10 + $0xe08] sm:$0xff]  ;;  %v9612_v51 = vrot.slane %v6248_v22, 9  ;;  %v9613_v43 = vrot.slane %v6249_v28, 9  ;;  %v6278_v36 = vrot.slane %v6268_v17, 4  ;;  %v9615_v60 = vrot.slane %v6251_v37, 9 }
 0x193   :  { %3647 = vmatprep.subr.bf16.mxu1 %v9037_v3  ;;  %3694 = vmatprep.subr.bf16.mxu0 %v9189_v59  ;;  %v1872_v20 = vld [vmem:[#allocation10 + $0xe28] sm:$0xff]  ;;  %v10854_v58 = vcombine.high %v10655_v5, %v10679_v24  ;;  %v10858_v6 = vcombine.low %v10651_v44, %v10673_v52  ;;  %v10862_v29 = vcombine.low %v10655_v5, %v10679_v24  ;;  %v6289_v44 = vrot.slane %v10673_v52, 5 }
 0x194   :  { %3628 = vmatprep.mubr.bf16.mxu0 %v11520_v48  ;;  %v10820_v12 = vld [vmem:[#allocation10 + $0xdc8] sm:$0xff]  ;;  %v9172_v55 = vcombine.low %v1868_v40, %v1872_v20  ;;  %v9173_v7 = vcombine.high %v1868_v40, %v1872_v20  ;;  %v6269_v3 = vsel %vm10384_vm9, %v9612_v51, %v6268_v17  ;;  %v6280_v59 = vsel %vm10384_vm9, %v6278_v36, %v6279_v53 }
 0x195   :  { %v10822_v25 = vld [vmem:[#allocation10 + $0xde8] sm:$0xff]  ;;  %v6273_v23 = vsel %vm10384_vm9, %v9613_v43, %v6272_v13  ;;  %v6283_v56 = vsel %vm10384_vm9, %v6281_v8, %v6282_v4  ;;  %v10874_v54 = vcombine.low %v6269_v3, %v6280_v59  ;;  %v6299_v52 = vrot.slane %v6289_v44, 4 }
 0x196   :  { %3648 = vmatpush1.bf16.msra.mxu1 %v9036_v14  ;;  %3695 = vmatpush1.bf16.msra.mxu0 %v9188_v33  ;;  %v9165_v45 = vcombine.high %v10820_v12, %v10822_v25  ;;  %v6252_v14 = vld [vmem:[#allocation3 + $0x44] sm:$0xee]  ;;  %v10878_v38 = vcombine.low %v6273_v23, %v6283_v56  ;;  %v6303_v28 = vrot.slane %v10708_v16, 5  ;;  %v9012_v20 = vcombine.low %v10806_v15, %v10808_v42 }
 0x197   :  { %3649 = vmatprep.subr.bf16.mxu1 %v9029_v27  ;;  %3696 = vmatprep.subr.bf16.mxu0 %v9181_v10  ;;  %v1828_v5 = vld [vmem:[#allocation10 + $0xcc8] sm:$0xff]  ;;  %11522 = vst [vmem:[#allocation19_spill] sm:$0xff] %v10874_v54  ;;  %v6300_v27 = vrot.slane %v10706_v18, 5  ;;  %v10881_v10 = vcombine.high %v6273_v23, %v6283_v56  ;;  %v9616_v40 = vrot.slane %v6252_v14, 9  ;;  %v9164_v18 = vcombine.low %v10820_v12, %v10822_v25 }
 0x198   :  { %11523 = vst [vmem:[#allocation20_spill] sm:$0xff] %v10878_v38  ;;  %v1832_v33 = vld [vmem:[#allocation10 + $0xce8] sm:$0xff]  ;;  %v6290_v16 = vsel %vm10384_vm9, %v9615_v60, %v6289_v44 }
 0x199   :  { %9299 = vmatmul.mubr.msk.bf16.gmra.mxu0 %vm3473_vm5, %v10816_v39  ;;  %v1852_v22 = vld [vmem:[#allocation10 + $0xd88] sm:$0xff]  ;;  %v6301_v17 = vsel %vm10384_vm9, %v6299_v52, %v6300_v27  ;;  %v9133_v13 = vcombine.high %v1828_v5, %v1832_v33  ;;  %v9132_v42 = vcombine.low %v1828_v5, %v1832_v33 }
 0x19a   :  { %3650 = vmatpush1.bf16.msra.mxu1 %v9028_v57  ;;  %3697 = vmatpush1.bf16.msra.mxu0 %v9180_v31  ;;  %v10876_v57 = vcombine.high %v6269_v3, %v6280_v59  ;;  %v1856_v31 = vld [vmem:[#allocation10 + $0xda8] sm:$0xff]  ;;  %v10896_v15 = vcombine.high %v6290_v16, %v6301_v17  ;;  %v10902_v25 = vcombine.low %v6290_v16, %v6301_v17 }
 0x19b   :  { %3651 = vmatprep.subr.bf16.mxu1 %v9021_v47  ;;  %3724 = vmatprep.mubr.bf16.mxu0 %v10724_v62  ;;  %v6293_v47 = vrot.slane %v10679_v24, 5  ;;  %v1820_v24 = vld [vmem:[#allocation10 + $0xc88] sm:$0xff]  ;;  %v9157_v51 = vcombine.high %v1852_v22, %v1856_v31  ;;  %v9156_v53 = vcombine.low %v1852_v22, %v1856_v31 }
 0x19c   :  { %3698 = vmatprep.subr.bf16.mxu0 %v9173_v7  ;;  %v1824_v49 = vld [vmem:[#allocation10 + $0xca8] sm:$0xff]  ;;  %11524 = vst [vmem:[#allocation22_spill] sm:$0xff] %v10896_v15  ;;  %11525 = vst [vmem:[#allocation23_spill] sm:$0xff] %v10902_v25 }
 0x19d   :  { %v6302_v34 = vrot.slane %v6293_v47, 4  ;;  %v1848_v37 = vld [vmem:[#allocation10 + $0xd68] sm:$0xff]  ;;  %v6294_v12 = vsel %vm10384_vm9, %v9616_v40, %v6293_v47  ;;  %v9124_v3 = vcombine.low %v1820_v24, %v1824_v49 }
 0x19e   :  { %3652 = vmatpush1.bf16.msra.mxu1 %v9020_v19  ;;  %3699 = vmatpush1.bf16.msra.mxu0 %v9172_v55  ;;  %v1844_v19 = vld [vmem:[#allocation10 + $0xd48] sm:$0xff]  ;;  %v9125_v55 = vcombine.high %v1820_v24, %v1824_v49 }
 0x19f   :  { %3653 = vmatprep.subr.bf16.mxu1 %v9013_v26  ;;  %3700 = vmatprep.subr.bf16.mxu0 %v9165_v45  ;;  %v6304_v26 = vsel %vm10384_vm9, %v6302_v34, %v6303_v28  ;;  %v1812_v7 = vld [vmem:[#allocation10 + $0xc48] sm:$0xff]  ;;  %v9149_v45 = vcombine.high %v1844_v19, %v1848_v37  ;;  %v9148_v59 = vcombine.low %v1844_v19, %v1848_v37 }
 0x1a0   :  { %v10904_v43 = vcombine.high %v6294_v12, %v6304_v26  ;;  %v10906_v4 = vcombine.low %v6294_v12, %v6304_v26  ;;  %v1816_v36 = vld [vmem:[#allocation10 + $0xc68] sm:$0xff] }
 0x1a1   :  { %v1836_v8 = vld [vmem:[#allocation10 + $0xd08] sm:$0xff]  ;;  %v9117_v23 = vcombine.high %v1812_v7, %v1816_v36  ;;  %v9116_v33 = vcombine.low %v1812_v7, %v1816_v36 }
 0x1a2   :  { %3654 = vmatpush1.bf16.msra.mxu1 %v9012_v20  ;;  %3701 = vmatpush1.bf16.msra.mxu0 %v9164_v18  ;;  %11526 = vst [vmem:[#allocation24_spill] sm:$0xff] %v10904_v43  ;;  %11527 = vst [vmem:[#allocation25_spill] sm:$0xff] %v10906_v4  ;;  %v1840_v60 = vld [vmem:[#allocation10 + $0xd28] sm:$0xff]  ;;  %v1544_v4 = vld [vmem:[#allocation10 + $0x8a0] sm:$0xff] }
 0x1a3   :  { %3655 = vmatprep.subr.bf16.mxu1 %v9133_v13  ;;  %3702 = vmatprep.subr.bf16.mxu0 %v9157_v51  ;;  %v1804_v56 = vld [vmem:[#allocation10 + $0xc08] sm:$0xff]  ;;  %v9141_v44 = vcombine.high %v1836_v8, %v1840_v60  ;;  %v9140_v22 = vcombine.low %v1836_v8, %v1840_v60 }
 0x1a4   :  { %v1808_v14 = vld [vmem:[#allocation10 + $0xc28] sm:$0xff] }
 0x1a5   :  { %v1956_v5 = vld [vmem:[#allocation10 + $0x10c8] sm:$0xff]  ;;  %v9109_v31 = vcombine.high %v1804_v56, %v1808_v14  ;;  %v9108_v18 = vcombine.low %v1804_v56, %v1808_v14 }
 0x1a6   :  { %3656 = vmatpush2.bf16.msra.mxu1 %v9132_v42  ;;  %3703 = vmatpush1.bf16.msra.mxu0 %v9156_v53  ;;  %v1960_v27 = vld [vmem:[#allocation10 + $0x10e8] sm:$0xff] }
 0x1a7   :  { %3657 = vmatprep.subr.bf16.mxu1 %v9125_v55  ;;  %3704 = vmatprep.subr.bf16.mxu0 %v9149_v45  ;;  %v1796_v52 = vld [vmem:[#allocation10 + $0xbc8] sm:$0xff]  ;;  %v9261_v40 = vcombine.high %v1956_v5, %v1960_v27  ;;  %v9260_v17 = vcombine.low %v1956_v5, %v1960_v27 }
 0x1a8   :  { %v1800_v47 = vld [vmem:[#allocation10 + $0xbe8] sm:$0xff] }
 0x1a9   :  { %v1948_v28 = vld [vmem:[#allocation10 + $0x1088] sm:$0xff]  ;;  %v9101_v13 = vcombine.high %v1796_v52, %v1800_v47  ;;  %v9100_v19 = vcombine.low %v1796_v52, %v1800_v47 }
 0x1aa   :  { %3658 = vmatpush2.bf16.msra.mxu1 %v9124_v3  ;;  %3705 = vmatpush1.bf16.msra.mxu0 %v9148_v59  ;;  %v1952_v20 = vld [vmem:[#allocation10 + $0x10a8] sm:$0xff] }
 0x1ab   :  { %3659 = vmatprep.subr.bf16.mxu1 %v9117_v23  ;;  %3706 = vmatprep.subr.bf16.mxu0 %v9141_v44  ;;  %v1788_v24 = vld [vmem:[#allocation10 + $0xb88] sm:$0xff]  ;;  %v9253_v51 = vcombine.high %v1948_v28, %v1952_v20  ;;  %v9252_v37 = vcombine.low %v1948_v28, %v1952_v20 }
 0x1ac   :  { %v1792_v16 = vld [vmem:[#allocation10 + $0xba8] sm:$0xff] }
 0x1ad   :  { %v1940_v34 = vld [vmem:[#allocation10 + $0x1048] sm:$0xff]  ;;  %v9093_v42 = vcombine.high %v1788_v24, %v1792_v16  ;;  %v9092_v45 = vcombine.low %v1788_v24, %v1792_v16 }
 0x1ae   :  { %3660 = vmatpush2.bf16.msra.mxu1 %v9116_v33  ;;  %3707 = vmatpush1.bf16.msra.mxu0 %v9140_v22  ;;  %v1944_v49 = vld [vmem:[#allocation10 + $0x1068] sm:$0xff] }
 0x1af   :  { %3661 = vmatprep.subr.bf16.mxu1 %v9109_v31  ;;  %3708 = vmatprep.subr.bf16.mxu0 %v9261_v40  ;;  %v1780_v12 = vld [vmem:[#allocation10 + $0xb48] sm:$0xff]  ;;  %v9245_v26 = vcombine.high %v1940_v34, %v1944_v49  ;;  %v9244_v36 = vcombine.low %v1940_v34, %v1944_v49 }
 0x1b0   :  { %v1784_v53 = vld [vmem:[#allocation10 + $0xb68] sm:$0xff] }
 0x1b1   :  { %v1932_v55 = vld [vmem:[#allocation10 + $0x1008] sm:$0xff]  ;;  %v9085_v8 = vcombine.high %v1780_v12, %v1784_v53  ;;  %v9084_v44 = vcombine.low %v1780_v12, %v1784_v53 }
 0x1b2   :  { %3662 = vmatpush2.bf16.msra.mxu1 %v9108_v18  ;;  %3709 = vmatpush2.bf16.msra.mxu0 %v9260_v17  ;;  %v1936_v7 = vld [vmem:[#allocation10 + $0x1028] sm:$0xff] }
 0x1b3   :  { %3663 = vmatprep.subr.bf16.mxu1 %v9101_v13  ;;  %3710 = vmatprep.subr.bf16.mxu0 %v9253_v51  ;;  %v1772_v60 = vld [vmem:[#allocation10 + $0xb08] sm:$0xff]  ;;  %v9237_v3 = vcombine.high %v1932_v55, %v1936_v7  ;;  %v9236_v14 = vcombine.low %v1932_v55, %v1936_v7 }
 0x1b4   :  { %v1776_v59 = vld [vmem:[#allocation10 + $0xb28] sm:$0xff] }
 0x1b5   :  { %v1924_v23 = vld [vmem:[#allocation10 + $0xfc8] sm:$0xff]  ;;  %v9077_v5 = vcombine.high %v1772_v60, %v1776_v59  ;;  %v9076_v40 = vcombine.low %v1772_v60, %v1776_v59  ;;  %v1769_v60 = vld [vmem:[#allocation10 + $0xaf0] sm:$0xff] }
 0x1b6   :  { %3664 = vmatpush2.bf16.msra.mxu1 %v9100_v19  ;;  %3711 = vmatpush2.bf16.msra.mxu0 %v9252_v37  ;;  %v1928_v56 = vld [vmem:[#allocation10 + $0xfe8] sm:$0xff] }
 0x1b7   :  { %3665 = vmatprep.subr.bf16.mxu1 %v9093_v42  ;;  %3712 = vmatprep.subr.bf16.mxu0 %v9245_v26  ;;  %v9229_v27 = vcombine.high %v1924_v23, %v1928_v56  ;;  %v1988_v33 = vld [vmem:[#allocation10 + $0x11c8] sm:$0xff]  ;;  %v9228_v47 = vcombine.low %v1924_v23, %v1928_v56 }
 0x1b8   :  { %v1992_v22 = vld [vmem:[#allocation10 + $0x11e8] sm:$0xff] }
 0x1b9   :  { %v1916_v31 = vld [vmem:[#allocation10 + $0xf88] sm:$0xff]  ;;  %v9293_v28 = vcombine.high %v1988_v33, %v1992_v22  ;;  %v9292_v51 = vcombine.low %v1988_v33, %v1992_v22  ;;  %v1761_v33 = vld [vmem:[#allocation10 + $0xab0] sm:$0xff] }
 0x1ba   :  { %3666 = vmatpush2.bf16.msra.mxu1 %v9092_v45  ;;  %3713 = vmatpush2.bf16.msra.mxu0 %v9244_v36  ;;  %v1920_v52 = vld [vmem:[#allocation10 + $0xfa8] sm:$0xff] }
 0x1bb   :  { %3667 = vmatprep.subr.bf16.mxu1 %v9085_v8  ;;  %3714 = vmatprep.subr.bf16.mxu0 %v9237_v3  ;;  %v9221_v20 = vcombine.high %v1916_v31, %v1920_v52  ;;  %v1980_v18 = vld [vmem:[#allocation10 + $0x1188] sm:$0xff]  ;;  %v9220_v16 = vcombine.low %v1916_v31, %v1920_v52  ;;  %v1765_v8 = vld [vmem:[#allocation10 + $0xad0] sm:$0xff] }
 0x1bc   :  { %v1984_v17 = vld [vmem:[#allocation10 + $0x11a8] sm:$0xff]  ;;  %v9071_v56 = vcombine.high %v1765_v8, %v1769_v60  ;;  %v9070_v31 = vcombine.low %v1765_v8, %v1769_v60  ;;  %v1885_v52 = vld [vmem:[#allocation10 + $0xe90] sm:$0xff] }
 0x1bd   :  { %v1908_v13 = vld [vmem:[#allocation10 + $0xf48] sm:$0xff]  ;;  %v9285_v34 = vcombine.high %v1980_v18, %v1984_v17  ;;  %v9284_v26 = vcombine.low %v1980_v18, %v1984_v17  ;;  %v1753_v18 = vld [vmem:[#allocation10 + $0xa70] sm:$0xff] }
 0x1be   :  { %3668 = vmatpush2.bf16.msra.mxu1 %v9084_v44  ;;  %3715 = vmatpush2.bf16.msra.mxu0 %v9236_v14  ;;  %v1912_v24 = vld [vmem:[#allocation10 + $0xf68] sm:$0xff]  ;;  %v1893_v44 = vld [vmem:[#allocation10 + $0xed0] sm:$0xff] }
 0x1bf   :  { %3669 = vmatprep.subr.bf16.mxu1 %v9077_v5  ;;  %3716 = vmatprep.subr.bf16.mxu0 %v9229_v27  ;;  %v9213_v49 = vcombine.high %v1908_v13, %v1912_v24  ;;  %v1972_v19 = vld [vmem:[#allocation10 + $0x1148] sm:$0xff]  ;;  %v9212_v53 = vcombine.low %v1908_v13, %v1912_v24  ;;  %v1897_v14 = vld [vmem:[#allocation10 + $0xef0] sm:$0xff] }
 0x1c0   :  { %v1976_v37 = vld [vmem:[#allocation10 + $0x1168] sm:$0xff]  ;;  %v1757_v27 = vld [vmem:[#allocation10 + $0xa90] sm:$0xff]  ;;  %v9199_v22 = vcombine.high %v1893_v44, %v1897_v14 }
 0x1c1   :  { %v1900_v42 = vld [vmem:[#allocation10 + $0xf08] sm:$0xff]  ;;  %v9277_v55 = vcombine.high %v1972_v19, %v1976_v37  ;;  %v9276_v3 = vcombine.low %v1972_v19, %v1976_v37  ;;  %v9062_v13 = vcombine.low %v1757_v27, %v1761_v33  ;;  %v1877_v24 = vld [vmem:[#allocation10 + $0xe50] sm:$0xff] }
 0x1c2   :  { %3670 = vmatpush2.bf16.msra.mxu1 %v9076_v40  ;;  %3717 = vmatpush2.bf16.msra.mxu0 %v9228_v47  ;;  %v1904_v12 = vld [vmem:[#allocation10 + $0xf28] sm:$0xff]  ;;  %v1889_v40 = vld [vmem:[#allocation10 + $0xeb0] sm:$0xff]  ;;  %v9063_v47 = vcombine.high %v1757_v27, %v1761_v33 }
 0x1c3   :  { %3753 = vmatprep.subr.bf16.mxu1 %v9293_v28  ;;  %3718 = vmatprep.subr.bf16.mxu0 %v9221_v20  ;;  %v9205_v7 = vcombine.high %v1900_v42, %v1904_v12  ;;  %v1964_v45 = vld [vmem:[#allocation10 + $0x1108] sm:$0xff]  ;;  %v9204_v59 = vcombine.low %v1900_v42, %v1904_v12  ;;  %v9198_v28 = vcombine.low %v1893_v44, %v1897_v14  ;;  %v1749_v20 = vld [vmem:[#allocation10 + $0xa50] sm:$0xff] }
 0x1c4   :  { %v1968_v36 = vld [vmem:[#allocation10 + $0x1128] sm:$0xff]  ;;  %v9191_v17 = vcombine.high %v1885_v52, %v1889_v40  ;;  %v1745_v19 = vld [vmem:[#allocation10 + $0xa30] sm:$0xff]  ;;  %v9054_v42 = vcombine.low %v1749_v20, %v1753_v18 }
 0x1c5   :  { %3672 = vmatmul.mubr.bf16.vlgmr.msra.gmra.mxu1 %v10683_v46  ;;  %v9269_v23 = vcombine.high %v1964_v45, %v1968_v36  ;;  %v9268_v5 = vcombine.low %v1964_v45, %v1968_v36  ;;  %v1869_v12 = vld [vmem:[#allocation10 + $0xe10] sm:$0xff] }
 0x1c6   :  { %3681 = vmatprep.mubr.bf16.mxu1 %v10750_v11  ;;  %3754 = vmatpush1.bf16.msra.mxu1 %v9292_v51  ;;  %v1881_v51 = vld [vmem:[#allocation10 + $0xe70] sm:$0xff] }
 0x1c7   :  { %3755 = vmatprep.subr.bf16.mxu1 %v9285_v34  ;;  %3719 = vmatpush2.bf16.msra.mxu0 %v9220_v16  ;;  %v9055_v16 = vcombine.high %v1749_v20, %v1753_v18  ;;  %v9190_v34 = vcombine.low %v1885_v52, %v1889_v40  ;;  %v9183_v37 = vcombine.high %v1877_v24, %v1881_v51  ;;  %v1737_v45 = vld [vmem:[#allocation10 + $0x9f0] sm:$0xff] }
 0x1c8   :  { %3720 = vmatprep.subr.bf16.mxu0 %v9213_v49  ;;  %v1741_v49 = vld [vmem:[#allocation10 + $0xa10] sm:$0xff] }
 0x1c9   :  { %v9046_v8 = vcombine.low %v1741_v49, %v1745_v19  ;;  %v1861_v60 = vld [vmem:[#allocation10 + $0xdd0] sm:$0xff] }
 0x1ca   :  { %3756 = vmatpush1.bf16.msra.mxu1 %v9284_v26  ;;  %v1873_v26 = vld [vmem:[#allocation10 + $0xe30] sm:$0xff] }
 0x1cb   :  { %3757 = vmatprep.subr.bf16.mxu1 %v9277_v55  ;;  %3721 = vmatpush2.bf16.msra.mxu0 %v9212_v53  ;;  %v9047_v53 = vcombine.high %v1741_v49, %v1745_v19  ;;  %v9182_v55 = vcombine.low %v1877_v24, %v1881_v51  ;;  %v9175_v36 = vcombine.high %v1869_v12, %v1873_v26  ;;  %v1729_v44 = vld [vmem:[#allocation10 + $0x9b0] sm:$0xff] }
 0x1cc   :  { %3722 = vmatprep.subr.bf16.mxu0 %v9205_v7  ;;  %v1733_v7 = vld [vmem:[#allocation10 + $0x9d0] sm:$0xff] }
 0x1cd   :  { %3682 = vmatmul.mubr.bf16.gmra.mxu1 %v10752_v9  ;;  %v1853_v27 = vld [vmem:[#allocation10 + $0xd90] sm:$0xff] }
 0x1ce   :  { %3758 = vmatpush1.bf16.msra.mxu1 %v9276_v3  ;;  %3777 = vmatprep.mubr.bf16.mxu1 %v11520_v48  ;;  %v1865_v3 = vld [vmem:[#allocation10 + $0xdf0] sm:$0xff] }
 0x1cf   :  { %3759 = vmatprep.subr.bf16.mxu1 %v9269_v23  ;;  %3723 = vmatpush2.bf16.msra.mxu0 %v9204_v59  ;;  %v9039_v59 = vcombine.high %v1733_v7, %v1737_v45  ;;  %v9174_v23 = vcombine.low %v1869_v12, %v1873_v26  ;;  %v9167_v14 = vcombine.high %v1861_v60, %v1865_v3  ;;  %v1857_v33 = vld [vmem:[#allocation10 + $0xdb0] sm:$0xff] }
 0x1d0   :  { %3798 = vmatprep.subr.bf16.mxu0 %v9071_v56  ;;  %v1725_v56 = vld [vmem:[#allocation10 + $0x990] sm:$0xff] }
 0x1d1   :  { %v1717_v52 = vld [vmem:[#allocation10 + $0x950] sm:$0xff] }
 0x1d2   :  { %3760 = vmatpush1.bf16.msra.mxu1 %v9268_v5  ;;  %3725 = vmatmul.mubr.bf16.vlgmr.msra.gmra.mxu0 %v10722_v21  ;;  %v9038_v5 = vcombine.low %v1733_v7, %v1737_v45  ;;  %v1721_v40 = vld [vmem:[#allocation10 + $0x970] sm:$0xff] }
 0x1d3   :  { %3851 = vmatprep.subr.bf16.mxu1 %v9199_v22  ;;  %3734 = vmatprep.mubr.bf16.mxu0 %v10775_v1  ;;  %v9031_v22 = vcombine.high %v1725_v56, %v1729_v44  ;;  %v1845_v20 = vld [vmem:[#allocation10 + $0xd50] sm:$0xff] }
 0x1d4   :  { %3799 = vmatpush1.bf16.msra.mxu0 %v9070_v31  ;;  %v9166_v31 = vcombine.low %v1861_v60, %v1865_v3  ;;  %v1849_v18 = vld [vmem:[#allocation10 + $0xd70] sm:$0xff] }
 0x1d5   :  { %9300 = vmatmul.mubr.msk.bf16.vlgmr.msra.gmra.mxu1 %vm3473_vm5, %v10787_v63  ;;  %3800 = vmatprep.subr.bf16.mxu0 %v9063_v47  ;;  %v9159_v47 = vcombine.high %v1853_v27, %v1857_v33  ;;  %v1709_v24 = vld [vmem:[#allocation10 + $0x910] sm:$0xff] }
 0x1d6   :  { %3852 = vmatpush1.bf16.msra.mxu1 %v9198_v28  ;;  %3787 = vmatprep.mubr.bf16.mxu1 %v11520_v48  ;;  %v9030_v28 = vcombine.low %v1725_v56, %v1729_v44  ;;  %v1713_v51 = vld [vmem:[#allocation10 + $0x930] sm:$0xff] }
 0x1d7   :  { %3853 = vmatprep.subr.bf16.mxu1 %v9191_v17  ;;  %v9023_v17 = vcombine.high %v1717_v52, %v1721_v40  ;;  %v1837_v49 = vld [vmem:[#allocation10 + $0xd10] sm:$0xff] }
 0x1d8   :  { %3801 = vmatpush1.bf16.msra.mxu0 %v9062_v13  ;;  %v9158_v13 = vcombine.low %v1853_v27, %v1857_v33  ;;  %v1841_v19 = vld [vmem:[#allocation10 + $0xd30] sm:$0xff] }
 0x1d9   :  { %3802 = vmatprep.subr.bf16.mxu0 %v9055_v16  ;;  %v9151_v16 = vcombine.high %v1845_v20, %v1849_v18  ;;  %v1829_v12 = vld [vmem:[#allocation10 + $0xcd0] sm:$0xff] }
 0x1da   :  { %3854 = vmatpush1.bf16.msra.mxu1 %v9190_v34  ;;  %3735 = vmatmul.mubr.bf16.gmra.mxu0 %v10777_v30  ;;  %v9022_v34 = vcombine.low %v1717_v52, %v1721_v40  ;;  %v1833_v26 = vld [vmem:[#allocation10 + $0xcf0] sm:$0xff] }
 0x1db   :  { %3855 = vmatprep.subr.bf16.mxu1 %v9183_v37  ;;  %3830 = vmatprep.mubr.bf16.mxu0 %v10685_v0  ;;  %v9015_v37 = vcombine.high %v1709_v24, %v1713_v51  ;;  %v1957_v7 = vld [vmem:[#allocation10 + $0x10d0] sm:$0xff] }
 0x1dc   :  { %3803 = vmatpush1.bf16.msra.mxu0 %v9054_v42  ;;  %v9150_v42 = vcombine.low %v1845_v20, %v1849_v18  ;;  %v1961_v45 = vld [vmem:[#allocation10 + $0x10f0] sm:$0xff] }
 0x1dd   :  { %9301 = vmatmul.mubr.msk.bf16.gmra.mxu1 %vm3473_vm5, %v10816_v39  ;;  %3804 = vmatprep.subr.bf16.mxu0 %v9047_v53  ;;  %v9143_v53 = vcombine.high %v1837_v49, %v1841_v19  ;;  %v1821_v60 = vld [vmem:[#allocation10 + $0xc90] sm:$0xff] }
 0x1de   :  { %3856 = vmatpush1.bf16.msra.mxu1 %v9182_v55  ;;  %3883 = vmatprep.mubr.bf16.mxu1 %v10724_v62  ;;  %v9014_v55 = vcombine.low %v1709_v24, %v1713_v51  ;;  %v1825_v3 = vld [vmem:[#allocation10 + $0xcb0] sm:$0xff] }
 0x1df   :  { %3857 = vmatprep.subr.bf16.mxu1 %v9175_v36  ;;  %v9135_v36 = vcombine.high %v1829_v12, %v1833_v26  ;;  %v1949_v56 = vld [vmem:[#allocation10 + $0x1090] sm:$0xff] }
 0x1e0   :  { %3805 = vmatpush1.bf16.msra.mxu0 %v9046_v8  ;;  %v9142_v8 = vcombine.low %v1837_v49, %v1841_v19  ;;  %v1953_v44 = vld [vmem:[#allocation10 + $0x10b0] sm:$0xff] }
 0x1e1   :  { %3806 = vmatprep.subr.bf16.mxu0 %v9039_v59  ;;  %v9263_v59 = vcombine.high %v1957_v7, %v1961_v45  ;;  %v1813_v27 = vld [vmem:[#allocation10 + $0xc50] sm:$0xff] }
 0x1e2   :  { %3858 = vmatpush1.bf16.msra.mxu1 %v9174_v23  ;;  %v9134_v23 = vcombine.low %v1829_v12, %v1833_v26  ;;  %v1817_v33 = vld [vmem:[#allocation10 + $0xc70] sm:$0xff] }
 0x1e3   :  { %3859 = vmatprep.subr.bf16.mxu1 %v9167_v14  ;;  %v9127_v14 = vcombine.high %v1821_v60, %v1825_v3  ;;  %v1941_v52 = vld [vmem:[#allocation10 + $0x1050] sm:$0xff] }
 0x1e4   :  { %3807 = vmatpush1.bf16.msra.mxu0 %v9038_v5  ;;  %v9262_v5 = vcombine.low %v1957_v7, %v1961_v45  ;;  %v1945_v40 = vld [vmem:[#allocation10 + $0x1070] sm:$0xff] }
 0x1e5   :  { %3808 = vmatprep.subr.bf16.mxu0 %v9031_v22  ;;  %v9255_v22 = vcombine.high %v1949_v56, %v1953_v44  ;;  %v1805_v20 = vld [vmem:[#allocation10 + $0xc10] sm:$0xff] }
 0x1e6   :  { %3860 = vmatpush1.bf16.msra.mxu1 %v9166_v31  ;;  %v9126_v31 = vcombine.low %v1821_v60, %v1825_v3  ;;  %v1809_v18 = vld [vmem:[#allocation10 + $0xc30] sm:$0xff] }
 0x1e7   :  { %3861 = vmatprep.subr.bf16.mxu1 %v9159_v47  ;;  %v9119_v47 = vcombine.high %v1813_v27, %v1817_v33  ;;  %v1933_v24 = vld [vmem:[#allocation10 + $0x1010] sm:$0xff] }
 0x1e8   :  { %3809 = vmatpush1.bf16.msra.mxu0 %v9030_v28  ;;  %v9254_v28 = vcombine.low %v1949_v56, %v1953_v44  ;;  %v1937_v51 = vld [vmem:[#allocation10 + $0x1030] sm:$0xff] }
 0x1e9   :  { %3810 = vmatprep.subr.bf16.mxu0 %v9023_v17  ;;  %v9247_v17 = vcombine.high %v1941_v52, %v1945_v40  ;;  %v1797_v49 = vld [vmem:[#allocation10 + $0xbd0] sm:$0xff] }
 0x1ea   :  { %3862 = vmatpush1.bf16.msra.mxu1 %v9158_v13  ;;  %v9118_v13 = vcombine.low %v1813_v27, %v1817_v33  ;;  %v1801_v19 = vld [vmem:[#allocation10 + $0xbf0] sm:$0xff] }
 0x1eb   :  { %3863 = vmatprep.subr.bf16.mxu1 %v9151_v16  ;;  %v9111_v16 = vcombine.high %v1805_v20, %v1809_v18  ;;  %v1925_v12 = vld [vmem:[#allocation10 + $0xfd0] sm:$0xff] }
 0x1ec   :  { %3811 = vmatpush1.bf16.msra.mxu0 %v9022_v34  ;;  %v9246_v34 = vcombine.low %v1941_v52, %v1945_v40  ;;  %v1929_v26 = vld [vmem:[#allocation10 + $0xff0] sm:$0xff] }
 0x1ed   :  { %3812 = vmatprep.subr.bf16.mxu0 %v9015_v37  ;;  %v9239_v37 = vcombine.high %v1933_v24, %v1937_v51  ;;  %v1789_v7 = vld [vmem:[#allocation10 + $0xb90] sm:$0xff] }
 0x1ee   :  { %3864 = vmatpush1.bf16.msra.mxu1 %v9150_v42  ;;  %v9110_v42 = vcombine.low %v1805_v20, %v1809_v18  ;;  %v1793_v45 = vld [vmem:[#allocation10 + $0xbb0] sm:$0xff] }
 0x1ef   :  { %3865 = vmatprep.subr.bf16.mxu1 %v9143_v53  ;;  %v9103_v53 = vcombine.high %v1797_v49, %v1801_v19  ;;  %v1917_v60 = vld [vmem:[#allocation10 + $0xf90] sm:$0xff] }
 0x1f0   :  { %3813 = vmatpush1.bf16.msra.mxu0 %v9014_v55  ;;  %v9238_v55 = vcombine.low %v1933_v24, %v1937_v51  ;;  %v1921_v3 = vld [vmem:[#allocation10 + $0xfb0] sm:$0xff] }
 0x1f1   :  { %3814 = vmatprep.subr.bf16.mxu0 %v9135_v36  ;;  %v9231_v36 = vcombine.high %v1925_v12, %v1929_v26  ;;  %v1781_v56 = vld [vmem:[#allocation10 + $0xb50] sm:$0xff] }
 0x1f2   :  { %3866 = vmatpush1.bf16.msra.mxu1 %v9142_v8  ;;  %v9102_v8 = vcombine.low %v1797_v49, %v1801_v19  ;;  %v1785_v44 = vld [vmem:[#allocation10 + $0xb70] sm:$0xff]  ;;  %v1766_v49 = vld [vmem:[#allocation10 + $0xad8] sm:$0xff] }
 0x1f3   :  { %3867 = vmatprep.subr.bf16.mxu1 %v9263_v59  ;;  %v9095_v59 = vcombine.high %v1789_v7, %v1793_v45  ;;  %v1909_v27 = vld [vmem:[#allocation10 + $0xf50] sm:$0xff]  ;;  %v1770_v19 = vld [vmem:[#allocation10 + $0xaf8] sm:$0xff] }
 0x1f4   :  { %3815 = vmatpush2.bf16.msra.mxu0 %v9134_v23  ;;  %v9230_v23 = vcombine.low %v1925_v12, %v1929_v26  ;;  %v1913_v33 = vld [vmem:[#allocation10 + $0xf70] sm:$0xff] }
 0x1f5   :  { %3816 = vmatprep.subr.bf16.mxu0 %v9127_v14  ;;  %v9223_v14 = vcombine.high %v1917_v60, %v1921_v3  ;;  %v1773_v52 = vld [vmem:[#allocation10 + $0xb10] sm:$0xff] }
 0x1f6   :  { %3868 = vmatpush2.bf16.msra.mxu1 %v9262_v5  ;;  %v9094_v5 = vcombine.low %v1789_v7, %v1793_v45  ;;  %v1777_v40 = vld [vmem:[#allocation10 + $0xb30] sm:$0xff]  ;;  %v1758_v7 = vld [vmem:[#allocation10 + $0xa98] sm:$0xff] }
 0x1f7   :  { %3869 = vmatprep.subr.bf16.mxu1 %v9255_v22  ;;  %v9087_v22 = vcombine.high %v1781_v56, %v1785_v44  ;;  %v1901_v20 = vld [vmem:[#allocation10 + $0xf10] sm:$0xff]  ;;  %v1762_v45 = vld [vmem:[#allocation10 + $0xab8] sm:$0xff] }
 0x1f8   :  { %3817 = vmatpush2.bf16.msra.mxu0 %v9126_v31  ;;  %v9222_v31 = vcombine.low %v1917_v60, %v1921_v3  ;;  %v1905_v18 = vld [vmem:[#allocation10 + $0xf30] sm:$0xff] }
 0x1f9   :  { %3818 = vmatprep.subr.bf16.mxu0 %v9119_v47  ;;  %v9215_v47 = vcombine.high %v1909_v27, %v1913_v33  ;;  %v1989_v24 = vld [vmem:[#allocation10 + $0x11d0] sm:$0xff] }
 0x1fa   :  { %3870 = vmatpush2.bf16.msra.mxu1 %v9254_v28  ;;  %v9086_v28 = vcombine.low %v1781_v56, %v1785_v44  ;;  %v1993_v51 = vld [vmem:[#allocation10 + $0x11f0] sm:$0xff]  ;;  %v1750_v56 = vld [vmem:[#allocation10 + $0xa58] sm:$0xff] }
 0x1fb   :  { %3871 = vmatprep.subr.bf16.mxu1 %v9247_v17  ;;  %v9079_v17 = vcombine.high %v1773_v52, %v1777_v40  ;;  %v1981_v12 = vld [vmem:[#allocation10 + $0x1190] sm:$0xff]  ;;  %v1754_v44 = vld [vmem:[#allocation10 + $0xa78] sm:$0xff] }
 0x1fc   :  { %3819 = vmatpush2.bf16.msra.mxu0 %v9118_v13  ;;  %v9214_v13 = vcombine.low %v1909_v27, %v1913_v33  ;;  %v1985_v26 = vld [vmem:[#allocation10 + $0x11b0] sm:$0xff] }
 0x1fd   :  { %3820 = vmatprep.subr.bf16.mxu0 %v9111_v16  ;;  %v9207_v16 = vcombine.high %v1901_v20, %v1905_v18  ;;  %v1973_v60 = vld [vmem:[#allocation10 + $0x1150] sm:$0xff] }
 0x1fe   :  { %3872 = vmatpush2.bf16.msra.mxu1 %v9246_v34  ;;  %v9078_v34 = vcombine.low %v1773_v52, %v1777_v40  ;;  %v1977_v3 = vld [vmem:[#allocation10 + $0x1170] sm:$0xff]  ;;  %v1742_v52 = vld [vmem:[#allocation10 + $0xa18] sm:$0xff] }
 0x1ff   :  { %3873 = vmatprep.subr.bf16.mxu1 %v9239_v37  ;;  %v9295_v37 = vcombine.high %v1989_v24, %v1993_v51  ;;  %v1965_v27 = vld [vmem:[#allocation10 + $0x1110] sm:$0xff]  ;;  %v1746_v40 = vld [vmem:[#allocation10 + $0xa38] sm:$0xff] }
 0x200   :  { %3821 = vmatpush2.bf16.msra.mxu0 %v9110_v42  ;;  %v9206_v42 = vcombine.low %v1901_v20, %v1905_v18  ;;  %v1969_v33 = vld [vmem:[#allocation10 + $0x1130] sm:$0xff]  ;;  %v1894_v20 = vld [vmem:[#allocation10 + $0xed8] sm:$0xff] }
 0x201   :  { %3822 = vmatprep.subr.bf16.mxu0 %v9103_v53  ;;  %v9073_v53 = vcombine.high %v1766_v49, %v1770_v19  ;;  %v1898_v18 = vld [vmem:[#allocation10 + $0xef8] sm:$0xff] }
 0x202   :  { %3874 = vmatpush2.bf16.msra.mxu1 %v9238_v55  ;;  %v9294_v55 = vcombine.low %v1989_v24, %v1993_v51  ;;  %v1734_v24 = vld [vmem:[#allocation10 + $0x9d8] sm:$0xff] }
 0x203   :  { %3875 = vmatprep.subr.bf16.mxu1 %v9231_v36  ;;  %v9287_v36 = vcombine.high %v1981_v12, %v1985_v26  ;;  %v1738_v51 = vld [vmem:[#allocation10 + $0x9f8] sm:$0xff] }
 0x204   :  { %3823 = vmatpush2.bf16.msra.mxu0 %v9102_v8  ;;  %v9072_v8 = vcombine.low %v1766_v49, %v1770_v19  ;;  %v1886_v49 = vld [vmem:[#allocation10 + $0xe98] sm:$0xff] }
 0x205   :  { %3824 = vmatprep.subr.bf16.mxu0 %v9095_v59  ;;  %v9065_v59 = vcombine.high %v1758_v7, %v1762_v45  ;;  %v1890_v19 = vld [vmem:[#allocation10 + $0xeb8] sm:$0xff] }
 0x206   :  { %3876 = vmatpush2.bf16.msra.mxu1 %v9230_v23  ;;  %v9286_v23 = vcombine.low %v1981_v12, %v1985_v26  ;;  %v1726_v12 = vld [vmem:[#allocation10 + $0x998] sm:$0xff] }
 0x207   :  { %3877 = vmatprep.subr.bf16.mxu1 %v9223_v14  ;;  %v9279_v14 = vcombine.high %v1973_v60, %v1977_v3  ;;  %v1730_v26 = vld [vmem:[#allocation10 + $0x9b8] sm:$0xff] }
 0x208   :  { %3825 = vmatpush2.bf16.msra.mxu0 %v9094_v5  ;;  %v9064_v5 = vcombine.low %v1758_v7, %v1762_v45  ;;  %v1878_v7 = vld [vmem:[#allocation10 + $0xe58] sm:$0xff] }
 0x209   :  { %3826 = vmatprep.subr.bf16.mxu0 %v9087_v22  ;;  %v9057_v22 = vcombine.high %v1750_v56, %v1754_v44  ;;  %v1882_v45 = vld [vmem:[#allocation10 + $0xe78] sm:$0xff] }
 0x20a   :  { %3878 = vmatpush2.bf16.msra.mxu1 %v9222_v31  ;;  %v9278_v31 = vcombine.low %v1973_v60, %v1977_v3  ;;  %v1722_v60 = vld [vmem:[#allocation10 + $0x978] sm:$0xff]  ;;  %v9185_v3 = vcombine.high %v1878_v7, %v1882_v45 }
 0x20b   :  { %3879 = vmatprep.subr.bf16.mxu1 %v9215_v47  ;;  %v9271_v47 = vcombine.high %v1965_v27, %v1969_v33 }
 0x20c   :  { %3827 = vmatpush2.bf16.msra.mxu0 %v9086_v28  ;;  %v9056_v28 = vcombine.low %v1750_v56, %v1754_v44  ;;  %v1874_v56 = vld [vmem:[#allocation10 + $0xe38] sm:$0xff] }
 0x20d   :  { %3828 = vmatprep.subr.bf16.mxu0 %v9079_v17  ;;  %v9049_v17 = vcombine.high %v1742_v52, %v1746_v40 }
 0x20e   :  { %3880 = vmatpush2.bf16.msra.mxu1 %v9214_v13  ;;  %v9270_v13 = vcombine.low %v1965_v27, %v1969_v33  ;;  %v1714_v27 = vld [vmem:[#allocation10 + $0x938] sm:$0xff] }
 0x20f   :  { %3881 = vmatprep.subr.bf16.mxu1 %v9207_v16  ;;  %v9201_v16 = vcombine.high %v1894_v20, %v1898_v18 }
 0x210   :  { %3829 = vmatpush2.bf16.msra.mxu0 %v9078_v34  ;;  %v9048_v34 = vcombine.low %v1742_v52, %v1746_v40  ;;  %v1866_v52 = vld [vmem:[#allocation10 + $0xdf8] sm:$0xff] }
 0x211   :  { %3912 = vmatprep.subr.bf16.mxu0 %v9295_v37  ;;  %v9041_v37 = vcombine.high %v1734_v24, %v1738_v51 }
 0x212   :  { %3882 = vmatpush2.bf16.msra.mxu1 %v9206_v42  ;;  %v9200_v42 = vcombine.low %v1894_v20, %v1898_v18  ;;  %v1834_v20 = vld [vmem:[#allocation10 + $0xcf8] sm:$0xff] }
 0x213   :  { %3831 = vmatmul.mubr.bf16.vlgmr.msra.gmra.mxu0 %v10683_v46  ;;  %3957 = vmatprep.subr.bf16.mxu1 %v9073_v53  ;;  %v9193_v53 = vcombine.high %v1886_v49, %v1890_v19 }
 0x214   :  { %3840 = vmatprep.mubr.bf16.mxu0 %v10750_v11  ;;  %3913 = vmatpush1.bf16.msra.mxu0 %v9294_v55  ;;  %v9040_v55 = vcombine.low %v1734_v24, %v1738_v51  ;;  %v1858_v24 = vld [vmem:[#allocation10 + $0xdb8] sm:$0xff] }
 0x215   :  { %3884 = vmatmul.mubr.bf16.vlgmr.msra.gmra.mxu1 %v10722_v21  ;;  %3914 = vmatprep.subr.bf16.mxu0 %v9287_v36  ;;  %v9192_v36 = vcombine.low %v1886_v49, %v1890_v19  ;;  %v1826_v49 = vld [vmem:[#allocation10 + $0xcb8] sm:$0xff] }
 0x216   :  { %3893 = vmatprep.mubr.bf16.mxu1 %v10775_v1  ;;  %3958 = vmatpush1.bf16.msra.mxu1 %v9072_v8  ;;  %v1718_v8 = vld [vmem:[#allocation10 + $0x958] sm:$0xff] }
 0x217   :  { %3959 = vmatprep.subr.bf16.mxu1 %v9065_v59  ;;  %v9032_v59 = vcombine.low %v1726_v12, %v1730_v26  ;;  %v9025_v44 = vcombine.high %v1718_v8, %v1722_v60 }
 0x218   :  { %3915 = vmatpush1.bf16.msra.mxu0 %v9286_v23  ;;  %v1870_v23 = vld [vmem:[#allocation10 + $0xe18] sm:$0xff] }
 0x219   :  { %3916 = vmatprep.subr.bf16.mxu0 %v9279_v14  ;;  %v9184_v14 = vcombine.low %v1878_v7, %v1882_v45  ;;  %v9177_v33 = vcombine.high %v1870_v23, %v1874_v56 }
 0x21a   :  { %3960 = vmatpush1.bf16.msra.mxu1 %v9064_v5  ;;  %v1710_v5 = vld [vmem:[#allocation10 + $0x918] sm:$0xff] }
 0x21b   :  { %3841 = vmatmul.mubr.bf16.gmra.mxu0 %v10752_v9  ;;  %3961 = vmatprep.subr.bf16.mxu1 %v9057_v22  ;;  %v9024_v22 = vcombine.low %v1718_v8, %v1722_v60  ;;  %v9017_v40 = vcombine.high %v1710_v5, %v1714_v27 }
 0x21c   :  { %3917 = vmatpush1.bf16.msra.mxu0 %v9278_v31  ;;  %3936 = vmatprep.mubr.bf16.mxu0 %v11520_v48  ;;  %v1862_v31 = vld [vmem:[#allocation10 + $0xdd8] sm:$0xff] }
 0x21d   :  { %3894 = vmatmul.mubr.bf16.gmra.mxu1 %v10777_v30  ;;  %3918 = vmatprep.subr.bf16.mxu0 %v9271_v47  ;;  %v9176_v47 = vcombine.low %v1870_v23, %v1874_v56  ;;  %v9169_v18 = vcombine.high %v1862_v31, %v1866_v52 }
 0x21e   :  { %3962 = vmatpush1.bf16.msra.mxu1 %v9056_v28  ;;  %3989 = vmatprep.mubr.bf16.mxu1 %v10685_v0  ;;  %v9033_v0 = vcombine.high %v1726_v12, %v1730_v26  ;;  %v1830_v28 = vld [vmem:[#allocation10 + $0xcd8] sm:$0xff] }
 0x21f   :  { %3963 = vmatprep.subr.bf16.mxu1 %v9049_v17  ;;  %v9016_v17 = vcombine.low %v1710_v5, %v1714_v27  ;;  %v9137_v51 = vcombine.high %v1830_v28, %v1834_v20 }
 0x220   :  { %3919 = vmatpush1.bf16.msra.mxu0 %v9270_v13  ;;  %v1854_v13 = vld [vmem:[#allocation10 + $0xd98] sm:$0xff] }
 0x221   :  { %4010 = vmatprep.subr.bf16.mxu0 %v9201_v16  ;;  %v9168_v16 = vcombine.low %v1862_v31, %v1866_v52  ;;  %v9161_v19 = vcombine.high %v1854_v13, %v1858_v24  ;;  %v9160_v26 = vcombine.low %v1854_v13, %v1858_v24  ;;  %v1790_v13 = vld [vmem:[#allocation10 + $0xb98] sm:$0xff] }
 0x222   :  { %3964 = vmatpush1.bf16.msra.mxu1 %v9048_v34  ;;  %v1822_v34 = vld [vmem:[#allocation10 + $0xc98] sm:$0xff] }
 0x223   :  { %9302 = vmatmul.mubr.msk.bf16.vlgmr.msra.gmra.mxu0 %vm3473_vm5, %v10787_v63  ;;  %3965 = vmatprep.subr.bf16.mxu1 %v9041_v37  ;;  %v9136_v37 = vcombine.low %v1830_v28, %v1834_v20  ;;  %v9129_v12 = vcombine.high %v1822_v34, %v1826_v49  ;;  %v9128_v45 = vcombine.low %v1822_v34, %v1826_v49  ;;  %v1950_v28 = vld [vmem:[#allocation10 + $0x1098] sm:$0xff] }
 0x224   :  { %4011 = vmatpush1.bf16.msra.mxu0 %v9200_v42  ;;  %3946 = vmatprep.mubr.bf16.mxu0 %v11520_v48  ;;  %v1850_v42 = vld [vmem:[#allocation10 + $0xd78] sm:$0xff] }
 0x225   :  { %4012 = vmatprep.subr.bf16.mxu0 %v9193_v53  ;;  %v1814_v53 = vld [vmem:[#allocation10 + $0xc58] sm:$0xff] }
 0x226   :  { %3966 = vmatpush1.bf16.msra.mxu1 %v9040_v55  ;;  %v1818_v55 = vld [vmem:[#allocation10 + $0xc78] sm:$0xff] }
 0x227   :  { %3967 = vmatprep.subr.bf16.mxu1 %v9033_v0  ;;  %v1838_v0 = vld [vmem:[#allocation10 + $0xd18] sm:$0xff]  ;;  %v9121_v8 = vcombine.high %v1814_v53, %v1818_v55  ;;  %v9120_v56 = vcombine.low %v1814_v53, %v1818_v55 }
 0x228   :  { %4013 = vmatpush1.bf16.msra.mxu0 %v9192_v36  ;;  %v1842_v36 = vld [vmem:[#allocation10 + $0xd38] sm:$0xff] }
 0x229   :  { %4014 = vmatprep.subr.bf16.mxu0 %v9185_v3  ;;  %v1806_v3 = vld [vmem:[#allocation10 + $0xc18] sm:$0xff]  ;;  %v9145_v23 = vcombine.high %v1838_v0, %v1842_v36  ;;  %v9144_v27 = vcombine.low %v1838_v0, %v1842_v36 }
 0x22a   :  { %3968 = vmatpush1.bf16.msra.mxu1 %v9032_v59  ;;  %v1810_v59 = vld [vmem:[#allocation10 + $0xc38] sm:$0xff] }
 0x22b   :  { %9303 = vmatmul.mubr.msk.bf16.gmra.mxu0 %vm3473_vm5, %v10816_v39  ;;  %3969 = vmatprep.subr.bf16.mxu1 %v9025_v44  ;;  %v1958_v44 = vld [vmem:[#allocation10 + $0x10d8] sm:$0xff]  ;;  %v9113_v5 = vcombine.high %v1806_v3, %v1810_v59 }
 0x22c   :  { %4015 = vmatpush1.bf16.msra.mxu0 %v9184_v14  ;;  %4042 = vmatprep.mubr.bf16.mxu0 %v10724_v62  ;;  %v1846_v62 = vld [vmem:[#allocation10 + $0xd58] sm:$0xff] }
 0x22d   :  { %4016 = vmatprep.subr.bf16.mxu0 %v9177_v33  ;;  %v9153_v7 = vcombine.high %v1846_v62, %v1850_v42  ;;  %v9152_v60 = vcombine.low %v1846_v62, %v1850_v42  ;;  %v1962_v14 = vld [vmem:[#allocation10 + $0x10f8] sm:$0xff] }
 0x22e   :  { %3970 = vmatpush1.bf16.msra.mxu1 %v9024_v22  ;;  %v1798_v33 = vld [vmem:[#allocation10 + $0xbd8] sm:$0xff]  ;;  %v9265_v52 = vcombine.high %v1958_v44, %v1962_v14 }
 0x22f   :  { %3971 = vmatprep.subr.bf16.mxu1 %v9017_v40  ;;  %v1802_v22 = vld [vmem:[#allocation10 + $0xbf8] sm:$0xff]  ;;  %v9112_v40 = vcombine.low %v1806_v3, %v1810_v59 }
 0x230   :  { %4017 = vmatpush1.bf16.msra.mxu0 %v9176_v47  ;;  %v1954_v20 = vld [vmem:[#allocation10 + $0x10b8] sm:$0xff]  ;;  %v9104_v34 = vcombine.low %v1798_v33, %v1802_v22 }
 0x231   :  { %4018 = vmatprep.subr.bf16.mxu0 %v9169_v18  ;;  %v9105_v18 = vcombine.high %v1798_v33, %v1802_v22  ;;  %v1794_v24 = vld [vmem:[#allocation10 + $0xbb8] sm:$0xff]  ;;  %v9256_v62 = vcombine.low %v1950_v28, %v1954_v20 }
 0x232   :  { %3972 = vmatpush1.bf16.msra.mxu1 %v9016_v17  ;;  %v9264_v17 = vcombine.low %v1958_v44, %v1962_v14  ;;  %v1942_v49 = vld [vmem:[#allocation10 + $0x1058] sm:$0xff] }
 0x233   :  { %3973 = vmatprep.subr.bf16.mxu1 %v9137_v51  ;;  %v9257_v51 = vcombine.high %v1950_v28, %v1954_v20  ;;  %v1782_v42 = vld [vmem:[#allocation10 + $0xb58] sm:$0xff] }
 0x234   :  { %4019 = vmatpush1.bf16.msra.mxu0 %v9168_v16  ;;  %v1934_v0 = vld [vmem:[#allocation10 + $0x1018] sm:$0xff] }
 0x235   :  { %4020 = vmatprep.subr.bf16.mxu0 %v9161_v19  ;;  %v1946_v19 = vld [vmem:[#allocation10 + $0x1078] sm:$0xff] }
 0x236   :  { %3974 = vmatpush2.bf16.msra.mxu1 %v9136_v37  ;;  %v9097_v37 = vcombine.high %v1790_v13, %v1794_v24  ;;  %v9249_v55 = vcombine.high %v1942_v49, %v1946_v19  ;;  %v1938_v36 = vld [vmem:[#allocation10 + $0x1038] sm:$0xff]  ;;  %v9248_v59 = vcombine.low %v1942_v49, %v1946_v19 }
 0x237   :  { %3975 = vmatprep.subr.bf16.mxu1 %v9129_v12  ;;  %v1786_v12 = vld [vmem:[#allocation10 + $0xb78] sm:$0xff] }
 0x238   :  { %4021 = vmatpush1.bf16.msra.mxu0 %v9160_v26  ;;  %v9088_v33 = vcombine.low %v1782_v42, %v1786_v12  ;;  %v1926_v22 = vld [vmem:[#allocation10 + $0xfd8] sm:$0xff] }
 0x239   :  { %4022 = vmatprep.subr.bf16.mxu0 %v9153_v7  ;;  %v3514_v31 = vpop.f32.mrf.mxu0  ;;  %v1990_v20 = vld [vmem:[#allocation10 + $0x11d8] sm:$0xff] }
 0x23a   :  { %3976 = vmatpush2.bf16.msra.mxu1 %v9128_v45  ;;  %v9096_v45 = vcombine.low %v1790_v13, %v1794_v24  ;;  %v1922_v49 = vld [vmem:[#allocation10 + $0xfb8] sm:$0xff] }
 0x23b   :  { %3977 = vmatprep.subr.bf16.mxu1 %v9121_v8  ;;  %v3516_v47 = vpop.f32.mrf.mxu0 }
 0x23c   :  { %4023 = vmatpush1.bf16.msra.mxu0 %v9152_v60  ;;  %v9089_v60 = vcombine.high %v1782_v42, %v1786_v12 }
 0x23d   :  { %4024 = vmatprep.subr.bf16.mxu0 %v9145_v23  ;;  %v3518_v16 = vpop.f32.mrf.mxu0  ;;  %v1774_v23 = vld [vmem:[#allocation10 + $0xb18] sm:$0xff] }
 0x23e   :  { %3978 = vmatpush2.bf16.msra.mxu1 %v9120_v56  ;;  %v1778_v56 = vld [vmem:[#allocation10 + $0xb38] sm:$0xff] }
 0x23f   :  { %3979 = vmatprep.subr.bf16.mxu1 %v9113_v5  ;;  %v10936_v53 = vpop.f32.mrf.mxu0  ;;  %v9241_v5 = vcombine.high %v1934_v0, %v1938_v36  ;;  %v9081_v28 = vcombine.high %v1774_v23, %v1778_v56 }
 0x240   :  { %4025 = vmatpush1.bf16.msra.mxu0 %v9144_v27 }
 0x241   :  { %4026 = vmatprep.subr.bf16.mxu0 %v9265_v52 }
 0x242   :  { %3980 = vmatpush2.bf16.msra.mxu1 %v9112_v40 }
 0x243   :  { %3981 = vmatprep.subr.bf16.mxu1 %v9105_v18  ;;  %v3567_v26 = vpop.f32.mrf.mxu1  ;;  %v1994_v18 = vld [vmem:[#allocation10 + $0x11f8] sm:$0xff] }
 0x244   :  { %4027 = vmatpush2.bf16.msra.mxu0 %v9264_v17  ;;  %v3568_v7 = vadd.f32 %v3567_v26, %v3514_v31  ;;  %v1930_v31 = vld [vmem:[#allocation10 + $0xff8] sm:$0xff] }
 0x245   :  { %4028 = vmatprep.subr.bf16.mxu0 %v9257_v51  ;;  %v3569_v8 = vpop.f32.mrf.mxu1  ;;  %v9233_v24 = vcombine.high %v1926_v22, %v1930_v31  ;;  %v9232_v12 = vcombine.low %v1926_v22, %v1930_v31  ;;  %v1982_v26 = vld [vmem:[#allocation10 + $0x1198] sm:$0xff] }
 0x246   :  { %3982 = vmatpush2.bf16.msra.mxu1 %v9104_v34  ;;  %v3570_v3 = vadd.f32 %v3569_v8, %v3516_v47  ;;  %v9240_v47 = vcombine.low %v1934_v0, %v1938_v36  ;;  %v1918_v34 = vld [vmem:[#allocation10 + $0xf98] sm:$0xff] }
 0x247   :  { %3983 = vmatprep.subr.bf16.mxu1 %v9097_v37  ;;  %v3571_v44 = vpop.f32.mrf.mxu1  ;;  %v9225_v36 = vcombine.high %v1918_v34, %v1922_v49  ;;  %v1974_v22 = vld [vmem:[#allocation10 + $0x1158] sm:$0xff] }
 0x248   :  { %4029 = vmatpush2.bf16.msra.mxu0 %v9256_v62  ;;  %v3572_v27 = vadd.f32 %v3571_v44, %v3518_v16  ;;  %v9080_v16 = vcombine.low %v1774_v23, %v1778_v56  ;;  %v9297_v62 = vcombine.high %v1990_v20, %v1994_v18  ;;  %v1910_v23 = vld [vmem:[#allocation10 + $0xf58] sm:$0xff] }
 0x249   :  { %4030 = vmatprep.subr.bf16.mxu0 %v9249_v55  ;;  %v3524_v14 = vpop.f32.mrf.mxu0  ;;  %v10938_v52 = vpop.f32.mrf.mxu1  ;;  %v1986_v55 = vld [vmem:[#allocation10 + $0x11b8] sm:$0xff] }
 0x24a   :  { %3984 = vmatpush2.bf16.msra.mxu1 %v9096_v45  ;;  %v1914_v56 = vld [vmem:[#allocation10 + $0xf78] sm:$0xff] }
 0x24b   :  { %3985 = vmatprep.subr.bf16.mxu1 %v9089_v60  ;;  %v3526_v40 = vpop.f32.mrf.mxu0  ;;  %v9296_v60 = vcombine.low %v1990_v20, %v1994_v18  ;;  %v1978_v31 = vld [vmem:[#allocation10 + $0x1178] sm:$0xff] }
 0x24c   :  { %4031 = vmatpush2.bf16.msra.mxu0 %v9248_v59  ;;  %v1902_v20 = vld [vmem:[#allocation10 + $0xf18] sm:$0xff] }
 0x24d   :  { %v3577_v17 = vpop.f32.mrf.mxu1  ;;  %4032 = vmatprep.subr.bf16.mxu0 %v9241_v5  ;;  %v3528_v13 = vpop.f32.mrf.mxu0  ;;  %v1906_v18 = vld [vmem:[#allocation10 + $0xf38] sm:$0xff] }
 0x24e   :  { %v3578_v51 = vadd.f32 %v3577_v17, %v3524_v14  ;;  %3986 = vmatpush2.bf16.msra.mxu1 %v9088_v33  ;;  %v9289_v14 = vcombine.high %v1982_v26, %v1986_v55  ;;  %v9224_v33 = vcombine.low %v1918_v34, %v1922_v49  ;;  %v9209_v34 = vcombine.high %v1902_v20, %v1906_v18 }
 0x24f   :  { %v3579_v19 = vpop.f32.mrf.mxu1  ;;  %3987 = vmatprep.subr.bf16.mxu1 %v9081_v28  ;;  %v10940_v37 = vpop.f32.mrf.mxu0  ;;  %v9217_v28 = vcombine.high %v1910_v23, %v1914_v56  ;;  %v9280_v49 = vcombine.low %v1974_v22, %v1978_v31 }
 0x250   :  { %v3580_v42 = vadd.f32 %v3579_v19, %v3526_v40  ;;  %4033 = vmatpush2.bf16.msra.mxu0 %v9240_v47  ;;  %v1324_v19 = vld [vmem:[#allocation10 + $0x1c0] sm:$0xff] }
 0x251   :  { %v3581_v45 = vpop.f32.mrf.mxu1  ;;  %4034 = vmatprep.subr.bf16.mxu0 %v9233_v24  ;;  %v3620_v0 = vpop.f32.mrf.mxu0  ;;  %v1966_v24 = vld [vmem:[#allocation10 + $0x1118] sm:$0xff] }
 0x252   :  { %v3582_v8 = vadd.f32 %v3581_v45, %v3528_v13  ;;  %3988 = vmatpush2.bf16.msra.mxu1 %v9080_v16  ;;  %v10942_v59 = vadd.f32 %v3620_v0, %v3568_v7  ;;  %v9288_v7 = vcombine.low %v1982_v26, %v1986_v55  ;;  %v9216_v13 = vcombine.low %v1910_v23, %v1914_v56  ;;  %v1970_v16 = vld [vmem:[#allocation10 + $0x1138] sm:$0xff]  ;;  %v1452_v45 = vld [vmem:[#allocation10 + $0x5c0] sm:$0xff] }
 0x253   :  { %4071 = vmatprep.subr.bf16.mxu1 %v9297_v62  ;;  %v3622_v44 = vpop.f32.mrf.mxu0  ;;  %v9208_v55 = vcombine.low %v1902_v20, %v1906_v18  ;;  %v1456_v0 = vld [vmem:[#allocation10 + $0x5e0] sm:$0xff]  ;;  %v9272_v23 = vcombine.low %v1966_v24, %v1970_v16 }
 0x254   :  { %4035 = vmatpush2.bf16.msra.mxu0 %v9232_v12  ;;  %v10944_v5 = vadd.f32 %v3622_v44, %v3570_v3  ;;  %v9281_v3 = vcombine.high %v1974_v22, %v1978_v31  ;;  %v9273_v12 = vcombine.high %v1966_v24, %v1970_v16  ;;  %v1316_v56 = vld [vmem:[#allocation10 + $0x180] sm:$0xff] }
 0x255   :  { %3990 = vmatmul.mubr.bf16.vlgmr.msra.gmra.mxu1 %v10683_v46  ;;  %4036 = vmatprep.subr.bf16.mxu0 %v9225_v36  ;;  %v3624_v40 = vpop.f32.mrf.mxu0  ;;  %v1320_v44 = vld [vmem:[#allocation10 + $0x1a0] sm:$0xff] }
 0x256   :  { %3999 = vmatprep.mubr.bf16.mxu1 %v10750_v11  ;;  %4072 = vmatpush1.bf16.msra.mxu1 %v9296_v60  ;;  %v10948_v47 = vadd.f32 %v3624_v40, %v3572_v27  ;;  %v1328_v27 = vld [vmem:[#allocation10 + $0x1e0] sm:$0xff]  ;;  %v9365_v31 = vcombine.high %v1316_v56, %v1320_v44 }
 0x257   :  { %4073 = vmatprep.subr.bf16.mxu1 %v9289_v14  ;;  %v10950_v17 = vpop.f32.mrf.mxu0  ;;  %v9373_v60 = vcombine.high %v1324_v19, %v1328_v27  ;;  %v9501_v14 = vcombine.high %v1452_v45, %v1456_v0  ;;  %v1448_v22 = vld [vmem:[#allocation10 + $0x5a0] sm:$0xff] }
 0x258   :  { %4037 = vmatpush2.bf16.msra.mxu0 %v9224_v33  ;;  %v1444_v33 = vld [vmem:[#allocation10 + $0x580] sm:$0xff] }
 0x259   :  { %4038 = vmatprep.subr.bf16.mxu0 %v9217_v28  ;;  %v3630_v46 = vpop.f32.mrf.mxu0  ;;  %v1308_v40 = vld [vmem:[#allocation10 + $0x140] sm:$0xff] }
 0x25a   :  { %4074 = vmatpush1.bf16.msra.mxu1 %v9288_v7  ;;  %v10952_v11 = vadd.f32 %v3630_v46, %v3578_v51  ;;  %v1312_v28 = vld [vmem:[#allocation10 + $0x160] sm:$0xff]  ;;  %v9364_v7 = vcombine.low %v1316_v56, %v1320_v44 }
 0x25b   :  { %4075 = vmatprep.subr.bf16.mxu1 %v9281_v3  ;;  %v3632_v62 = vpop.f32.mrf.mxu0  ;;  %v1436_v20 = vld [vmem:[#allocation10 + $0x540] sm:$0xff]  ;;  %v9357_v3 = vcombine.high %v1308_v40, %v1312_v28  ;;  %v9356_v46 = vcombine.low %v1308_v40, %v1312_v28 }
 0x25c   :  { %4039 = vmatpush2.bf16.msra.mxu0 %v9216_v13  ;;  %v10954_v26 = vadd.f32 %v3632_v62, %v3580_v42  ;;  %v9372_v42 = vcombine.low %v1324_v19, %v1328_v27  ;;  %v1440_v18 = vld [vmem:[#allocation10 + $0x560] sm:$0xff]  ;;  %v9492_v13 = vcombine.low %v1444_v33, %v1448_v22 }
 0x25d   :  { %4000 = vmatmul.mubr.bf16.gmra.mxu1 %v10752_v9  ;;  %4040 = vmatprep.subr.bf16.mxu0 %v9209_v34  ;;  %v3634_v36 = vpop.f32.mrf.mxu0  ;;  %v9500_v9 = vcombine.low %v1452_v45, %v1456_v0  ;;  %v1300_v24 = vld [vmem:[#allocation10 + $0x100] sm:$0xff]  ;;  %v9484_v19 = vcombine.low %v1436_v20, %v1440_v18 }
 0x25e   :  { %4076 = vmatpush1.bf16.msra.mxu1 %v9280_v49  ;;  %v10957_v51 = vadd.f32 %v3634_v36, %v3582_v8  ;;  %4095 = vmatprep.mubr.bf16.mxu1 %v11520_v48  ;;  %v9493_v8 = vcombine.high %v1444_v33, %v1448_v22  ;;  %v1304_v16 = vld [vmem:[#allocation10 + $0x120] sm:$0xff] }
 0x25f   :  { %4077 = vmatprep.subr.bf16.mxu1 %v9273_v12  ;;  %v1432_v34 = vld [vmem:[#allocation10 + $0x520] sm:$0xff]  ;;  %v9349_v49 = vcombine.high %v1300_v24, %v1304_v16  ;;  %v9348_v12 = vcombine.low %v1300_v24, %v1304_v16 }
 0x260   :  { %4041 = vmatpush2.bf16.msra.mxu0 %v9208_v55  ;;  %v1292_v27 = vld [vmem:[#allocation10 + $0xc0] sm:$0xff] }
 0x261   :  { %5612 = vmatprep.subr.bf16.mxu0 %v9373_v60  ;;  %v1420_v55 = vld [vmem:[#allocation10 + $0x4c0] sm:$0xff] }
 0x262   :  { %4078 = vmatpush1.bf16.msra.mxu1 %v9272_v23  ;;  %v1424_v45 = vld [vmem:[#allocation10 + $0x4e0] sm:$0xff] }
 0x263   :  { %4043 = vmatmul.mubr.bf16.vlgmr.msra.gmra.mxu0 %v10722_v21  ;;  %5665 = vmatprep.subr.bf16.mxu1 %v9501_v14  ;;  %v9485_v21 = vcombine.high %v1436_v20, %v1440_v18  ;;  %v1284_v60 = vld [vmem:[#allocation10 + $0x80] sm:$0xff]  ;;  %v9468_v33 = vcombine.low %v1420_v55, %v1424_v45 }
 0x264   :  { %4052 = vmatprep.mubr.bf16.mxu0 %v10775_v1  ;;  %5613 = vmatpush1.bf16.msra.mxu0 %v9372_v42  ;;  %v1428_v1 = vld [vmem:[#allocation10 + $0x500] sm:$0xff] }
 0x265   :  { %9304 = vmatmul.mubr.msk.bf16.vlgmr.msra.gmra.mxu1 %vm3473_vm5, %v10787_v63  ;;  %5614 = vmatprep.subr.bf16.mxu0 %v9365_v31  ;;  %v1296_v63 = vld [vmem:[#allocation10 + $0xe0] sm:$0xff]  ;;  %v9477_v62 = vcombine.high %v1428_v1, %v1432_v34  ;;  %v9476_v36 = vcombine.low %v1428_v1, %v1432_v34 }
 0x266   :  { %5666 = vmatpush1.bf16.msra.mxu1 %v9500_v9  ;;  %4105 = vmatprep.mubr.bf16.mxu1 %v11520_v48  ;;  %v9341_v0 = vcombine.high %v1292_v27, %v1296_v63  ;;  %v1288_v23 = vld [vmem:[#allocation10 + $0xa0] sm:$0xff]  ;;  %v9340_v56 = vcombine.low %v1292_v27, %v1296_v63 }
 0x267   :  { %5667 = vmatprep.subr.bf16.mxu1 %v9493_v8  ;;  %v1412_v44 = vld [vmem:[#allocation10 + $0x480] sm:$0xff]  ;;  %v9333_v42 = vcombine.high %v1284_v60, %v1288_v23  ;;  %v9332_v9 = vcombine.low %v1284_v60, %v1288_v23 }
 0x268   :  { %5615 = vmatpush1.bf16.msra.mxu0 %v9364_v7  ;;  %v1416_v14 = vld [vmem:[#allocation10 + $0x4a0] sm:$0xff] }
 0x269   :  { %5616 = vmatprep.subr.bf16.mxu0 %v9357_v3  ;;  %v1276_v22 = vld [vmem:[#allocation10 + $0x40] sm:$0xff]  ;;  %v9461_v31 = vcombine.high %v1412_v44, %v1416_v14  ;;  %v9460_v7 = vcombine.low %v1412_v44, %v1416_v14 }
 0x26a   :  { %5668 = vmatpush1.bf16.msra.mxu1 %v9492_v13  ;;  %v1404_v40 = vld [vmem:[#allocation10 + $0x440] sm:$0xff] }
 0x26b   :  { %4053 = vmatmul.mubr.bf16.gmra.mxu0 %v10777_v30  ;;  %5669 = vmatprep.subr.bf16.mxu1 %v9485_v21  ;;  %v9469_v30 = vcombine.high %v1420_v55, %v1424_v45  ;;  %v1408_v28 = vld [vmem:[#allocation10 + $0x460] sm:$0xff] }
 0x26c   :  { %5617 = vmatpush1.bf16.msra.mxu0 %v9356_v46  ;;  %5644 = vmatprep.mubr.bf16.mxu0 %v10828_v50  ;;  %v1268_v20 = vld [vmem:[#allocation10] sm:$0xff]  ;;  %v9453_v3 = vcombine.high %v1404_v40, %v1408_v28  ;;  %v9452_v46 = vcombine.low %v1404_v40, %v1408_v28 }
 0x26d   :  { %9305 = vmatmul.mubr.msk.bf16.gmra.mxu1 %vm3473_vm5, %v10816_v39  ;;  %5618 = vmatprep.subr.bf16.mxu0 %v9349_v49  ;;  %v1280_v39 = vld [vmem:[#allocation10 + $0x60] sm:$0xff] }
 0x26e   :  { %5670 = vmatpush1.bf16.msra.mxu1 %v9484_v19  ;;  %5697 = vmatprep.mubr.bf16.mxu1 %v10832_v61  ;;  %v9325_v8 = vcombine.high %v1276_v22, %v1280_v39  ;;  %v1272_v18 = vld [vmem:[#allocation10 + $0x20] sm:$0xff]  ;;  %v9324_v13 = vcombine.low %v1276_v22, %v1280_v39 }
 0x26f   :  { %5671 = vmatprep.subr.bf16.mxu1 %v9477_v62  ;;  %v1396_v24 = vld [vmem:[#allocation10 + $0x400] sm:$0xff]  ;;  %v9317_v21 = vcombine.high %v1268_v20, %v1272_v18  ;;  %v9316_v19 = vcombine.low %v1268_v20, %v1272_v18 }
 0x270   :  { %5619 = vmatpush1.bf16.msra.mxu0 %v9348_v12  ;;  %v1400_v16 = vld [vmem:[#allocation10 + $0x420] sm:$0xff] }
 0x271   :  { %5620 = vmatprep.subr.bf16.mxu0 %v9341_v0  ;;  %v1388_v1 = vld [vmem:[#allocation10 + $0x3c0] sm:$0xff]  ;;  %v9445_v49 = vcombine.high %v1396_v24, %v1400_v16  ;;  %v9444_v12 = vcombine.low %v1396_v24, %v1400_v16 }
 0x272   :  { %5672 = vmatpush1.bf16.msra.mxu1 %v9476_v36  ;;  %v1392_v34 = vld [vmem:[#allocation10 + $0x3e0] sm:$0xff] }
 0x273   :  { %5673 = vmatprep.subr.bf16.mxu1 %v9469_v30  ;;  %v1516_v27 = vld [vmem:[#allocation10 + $0x7c0] sm:$0xff]  ;;  %v9437_v62 = vcombine.high %v1388_v1, %v1392_v34  ;;  %v9436_v36 = vcombine.low %v1388_v1, %v1392_v34 }
 0x274   :  { %5621 = vmatpush1.bf16.msra.mxu0 %v9340_v56  ;;  %v1520_v63 = vld [vmem:[#allocation10 + $0x7e0] sm:$0xff] }
 0x275   :  { %5622 = vmatprep.subr.bf16.mxu0 %v9333_v42  ;;  %v1380_v55 = vld [vmem:[#allocation10 + $0x380] sm:$0xff]  ;;  %v9565_v0 = vcombine.high %v1516_v27, %v1520_v63  ;;  %v9564_v56 = vcombine.low %v1516_v27, %v1520_v63  ;;  %v10970_v42 = vpop.f32.mrf.mxu1 }
 0x276   :  { %5674 = vmatpush1.bf16.msra.mxu1 %v9468_v33  ;;  %v1384_v45 = vld [vmem:[#allocation10 + $0x3a0] sm:$0xff] }
 0x277   :  { %5675 = vmatprep.subr.bf16.mxu1 %v9461_v31  ;;  %v1508_v60 = vld [vmem:[#allocation10 + $0x780] sm:$0xff]  ;;  %v9429_v30 = vcombine.high %v1380_v55, %v1384_v45  ;;  %v9428_v22 = vcombine.low %v1380_v55, %v1384_v45 }
 0x278   :  { %5623 = vmatpush1.bf16.msra.mxu0 %v9332_v9  ;;  %v1512_v23 = vld [vmem:[#allocation10 + $0x7a0] sm:$0xff] }
 0x279   :  { %5624 = vmatprep.subr.bf16.mxu0 %v9325_v8  ;;  %v1372_v44 = vld [vmem:[#allocation10 + $0x340] sm:$0xff]  ;;  %v9557_v33 = vcombine.high %v1508_v60, %v1512_v23  ;;  %v9556_v28 = vcombine.low %v1508_v60, %v1512_v23 }
 0x27a   :  { %5676 = vmatpush1.bf16.msra.mxu1 %v9460_v7  ;;  %v1376_v14 = vld [vmem:[#allocation10 + $0x360] sm:$0xff] }
 0x27b   :  { %5677 = vmatprep.subr.bf16.mxu1 %v9453_v3  ;;  %v1500_v39 = vld [vmem:[#allocation10 + $0x740] sm:$0xff]  ;;  %v9421_v40 = vcombine.high %v1372_v44, %v1376_v14  ;;  %v9420_v3 = vcombine.low %v1372_v44, %v1376_v14 }
 0x27c   :  { %5625 = vmatpush1.bf16.msra.mxu0 %v9324_v13  ;;  %v1504_v31 = vld [vmem:[#allocation10 + $0x760] sm:$0xff] }
 0x27d   :  { %5626 = vmatprep.subr.bf16.mxu0 %v9317_v21  ;;  %v1364_v8 = vld [vmem:[#allocation10 + $0x300] sm:$0xff]  ;;  %v9549_v18 = vcombine.high %v1500_v39, %v1504_v31 }
 0x27e   :  { %5678 = vmatpush1.bf16.msra.mxu1 %v9452_v46  ;;  %v1368_v7 = vld [vmem:[#allocation10 + $0x320] sm:$0xff]  ;;  %v9548_v46 = vcombine.low %v1500_v39, %v1504_v31 }
 0x27f   :  { %5679 = vmatprep.subr.bf16.mxu1 %v9445_v49  ;;  %v1492_v13 = vld [vmem:[#allocation10 + $0x700] sm:$0xff]  ;;  %v9413_v21 = vcombine.high %v1364_v8, %v1368_v7  ;;  %v9412_v27 = vcombine.low %v1364_v8, %v1368_v7 }
 0x280   :  { %5627 = vmatpush1.bf16.msra.mxu0 %v9316_v19  ;;  %v1496_v24 = vld [vmem:[#allocation10 + $0x720] sm:$0xff] }
 0x281   :  { %5628 = vmatprep.subr.bf16.mxu0 %v9437_v62  ;;  %v1356_v1 = vld [vmem:[#allocation10 + $0x2c0] sm:$0xff]  ;;  %v9541_v19 = vcombine.high %v1492_v13, %v1496_v24  ;;  %v9540_v45 = vcombine.low %v1492_v13, %v1496_v24 }
 0x282   :  { %5680 = vmatpush1.bf16.msra.mxu1 %v9444_v12  ;;  %v1360_v34 = vld [vmem:[#allocation10 + $0x2e0] sm:$0xff] }
 0x283   :  { %5681 = vmatprep.subr.bf16.mxu1 %v9565_v0  ;;  %v1484_v63 = vld [vmem:[#allocation10 + $0x6c0] sm:$0xff]  ;;  %v9405_v55 = vcombine.high %v1356_v1, %v1360_v34 }
 0x284   :  { %5629 = vmatpush2.bf16.msra.mxu0 %v9436_v36  ;;  %v1488_v62 = vld [vmem:[#allocation10 + $0x6e0] sm:$0xff] }
 0x285   :  { %v3673_v9 = vpop.f32.mrf.mxu1  ;;  %5630 = vmatprep.subr.bf16.mxu0 %v9429_v30  ;;  %v1348_v0 = vld [vmem:[#allocation10 + $0x280] sm:$0xff]  ;;  %v9533_v23 = vcombine.high %v1484_v63, %v1488_v62  ;;  %v10976_v30 = vpop.f32.mrf.mxu0  ;;  %v9532_v31 = vcombine.low %v1484_v63, %v1488_v62 }
 0x286   :  { %5682 = vmatpush2.bf16.msra.mxu1 %v9564_v56  ;;  %v1352_v36 = vld [vmem:[#allocation10 + $0x2a0] sm:$0xff]  ;;  %v9404_v56 = vcombine.low %v1356_v1, %v1360_v34 }
 0x287   :  { %v3675_v20 = vpop.f32.mrf.mxu1  ;;  %5683 = vmatprep.subr.bf16.mxu1 %v9557_v33  ;;  %v1476_v44 = vld [vmem:[#allocation10 + $0x680] sm:$0xff]  ;;  %v9396_v13 = vcombine.low %v1348_v0, %v1352_v36 }
 0x288   :  { %5631 = vmatpush2.bf16.msra.mxu0 %v9428_v22  ;;  %v1480_v14 = vld [vmem:[#allocation10 + $0x6a0] sm:$0xff]  ;;  %v9397_v22 = vcombine.high %v1348_v0, %v1352_v36 }
 0x289   :  { %v3677_v16 = vpop.f32.mrf.mxu1  ;;  %5632 = vmatprep.subr.bf16.mxu0 %v9421_v40  ;;  %v1340_v40 = vld [vmem:[#allocation10 + $0x240] sm:$0xff]  ;;  %v9524_v63 = vcombine.low %v1476_v44, %v1480_v14 }
 0x28a   :  { %5684 = vmatpush2.bf16.msra.mxu1 %v9556_v28  ;;  %v1344_v28 = vld [vmem:[#allocation10 + $0x260] sm:$0xff] }
 0x28b   :  { %v10972_v49 = vpop.f32.mrf.mxu1  ;;  %5685 = vmatprep.subr.bf16.mxu1 %v9549_v18  ;;  %v9525_v18 = vcombine.high %v1476_v44, %v1480_v14  ;;  %v1468_v24 = vld [vmem:[#allocation10 + $0x640] sm:$0xff]  ;;  %v9389_v34 = vcombine.high %v1340_v40, %v1344_v28  ;;  %v9388_v36 = vcombine.low %v1340_v40, %v1344_v28  ;;  %v1325_v28 = vld [vmem:[#allocation10 + $0x1c8] sm:$0xff] }
 0x28c   :  { %11528 = vst [vmem:[#allocation26_spill] sm:$0xff] %v10972_v49  ;;  %5633 = vmatpush2.bf16.msra.mxu0 %v9420_v3  ;;  %v1332_v62 = vld [vmem:[#allocation10 + $0x200] sm:$0xff] }
 0x28d   :  { %v3683_v12 = vpop.f32.mrf.mxu1  ;;  %5634 = vmatprep.subr.bf16.mxu0 %v9413_v21  ;;  %v1472_v21 = vld [vmem:[#allocation10 + $0x660] sm:$0xff] }
 0x28e   :  { %5686 = vmatpush2.bf16.msra.mxu1 %v9548_v46  ;;  %v9516_v14 = vcombine.low %v1468_v24, %v1472_v21 }
 0x28f   :  { %v10974_v60 = vpop.f32.mrf.mxu1  ;;  %5687 = vmatprep.subr.bf16.mxu1 %v9541_v19 }
 0x290   :  { %5635 = vmatpush2.bf16.msra.mxu0 %v9412_v27 }
 0x291   :  { %v10978_v33 = vpop.f32.mrf.mxu1  ;;  %5636 = vmatprep.subr.bf16.mxu0 %v9405_v55  ;;  %v1336_v55 = vld [vmem:[#allocation10 + $0x220] sm:$0xff] }
 0x292   :  { %5688 = vmatpush2.bf16.msra.mxu1 %v9540_v45  ;;  %v3726_v39 = vpop.f32.mrf.mxu0  ;;  %v9380_v40 = vcombine.low %v1332_v62, %v1336_v55 }
 0x293   :  { %v10980_v8 = vpop.f32.mrf.mxu1  ;;  %v3727_v7 = vadd.f32 %v3726_v39, %v3673_v9  ;;  %5689 = vmatprep.subr.bf16.mxu1 %v9533_v23  ;;  %v9517_v23 = vcombine.high %v1468_v24, %v1472_v21 }
 0x294   :  { %11529 = vst [vmem:[#allocation27_spill] sm:$0xff] %v10980_v8  ;;  %5637 = vmatpush2.bf16.msra.mxu0 %v9404_v56  ;;  %v3728_v3 = vpop.f32.mrf.mxu0 }
 0x295   :  { %v3779_v46 = vpop.f32.mrf.mxu1  ;;  %v3729_v1 = vadd.f32 %v3728_v3, %v3675_v20  ;;  %5638 = vmatprep.subr.bf16.mxu0 %v9397_v22  ;;  %v1460_v20 = vld [vmem:[#allocation10 + $0x600] sm:$0xff] }
 0x296   :  { %v10982_v19 = vadd.f32 %v3779_v46, %v3727_v7  ;;  %5690 = vmatpush2.bf16.msra.mxu1 %v9532_v31  ;;  %v3730_v27 = vpop.f32.mrf.mxu0  ;;  %v1464_v22 = vld [vmem:[#allocation10 + $0x620] sm:$0xff]  ;;  %v9381_v7 = vcombine.high %v1332_v62, %v1336_v55 }
 0x297   :  { %v3781_v45 = vpop.f32.mrf.mxu1  ;;  %v3731_v9 = vadd.f32 %v3730_v27, %v3677_v16  ;;  %5691 = vmatprep.subr.bf16.mxu1 %v9525_v18  ;;  %v1548_v3 = vld [vmem:[#allocation10 + $0x8c0] sm:$0xff]  ;;  %v1329_v27 = vld [vmem:[#allocation10 + $0x1e8] sm:$0xff]  ;;  %v9508_v21 = vcombine.low %v1460_v20, %v1464_v22 }
 0x298   :  { %v10984_v56 = vadd.f32 %v3781_v45, %v3729_v1  ;;  %5639 = vmatpush2.bf16.msra.mxu0 %v9396_v13  ;;  %v10986_v0 = vpop.f32.mrf.mxu0  ;;  %v1552_v16 = vld [vmem:[#allocation10 + $0x8e0] sm:$0xff]  ;;  %v9509_v13 = vcombine.high %v1460_v20, %v1464_v22  ;;  %v9374_v20 = vcombine.low %v1325_v28, %v1329_v27 }
 0x299   :  { %11530 = vst [vmem:[#allocation28_spill] sm:$0xff] %v10986_v0  ;;  %v3783_v39 = vpop.f32.mrf.mxu1  ;;  %5640 = vmatprep.subr.bf16.mxu0 %v9389_v34  ;;  %v9596_v55 = vcombine.low %v1548_v3, %v1552_v16  ;;  %v1532_v22 = vld [vmem:[#allocation10 + $0x840] sm:$0xff] }
 0x29a   :  { %v10988_v31 = vadd.f32 %v3783_v39, %v3731_v9  ;;  %5692 = vmatpush2.bf16.msra.mxu1 %v9524_v63  ;;  %v3736_v44 = vpop.f32.mrf.mxu0  ;;  %v9597_v9 = vcombine.high %v1548_v3, %v1552_v16  ;;  %v1540_v39 = vld [vmem:[#allocation10 + $0x880] sm:$0xff]  ;;  %v1309_v3 = vld [vmem:[#allocation10 + $0x148] sm:$0xff] }
 0x29b   :  { %v10990_v18 = vpop.f32.mrf.mxu1  ;;  %v3737_v46 = vadd.f32 %v3736_v44, %v3683_v12  ;;  %5693 = vmatprep.subr.bf16.mxu1 %v9517_v23  ;;  %v1321_v44 = vld [vmem:[#allocation10 + $0x1a8] sm:$0xff] }
 0x29c   :  { %11531 = vst [vmem:[#allocation29_spill] sm:$0xff] %v10990_v18  ;;  %5641 = vmatpush2.bf16.msra.mxu0 %v9388_v36  ;;  %v3738_v1 = vpop.f32.mrf.mxu0  ;;  %v9375_v36 = vcombine.high %v1325_v28, %v1329_v27  ;;  %v1313_v16 = vld [vmem:[#allocation10 + $0x168] sm:$0xff]  ;;  %v1524_v27 = vld [vmem:[#allocation10 + $0x800] sm:$0xff] }
 0x29d   :  { %v3739_v34 = vadd.f32 %v3738_v1, %v10974_v60  ;;  %v3789_v45 = vpop.f32.mrf.mxu1  ;;  %5642 = vmatprep.subr.bf16.mxu0 %v9381_v7  ;;  %v1317_v60 = vld [vmem:[#allocation10 + $0x188] sm:$0xff]  ;;  %v1536_v1 = vld [vmem:[#allocation10 + $0x860] sm:$0xff] }
 0x29e   :  { %5694 = vmatpush2.bf16.msra.mxu1 %v9516_v14  ;;  %v10993_v63 = vadd.f32 %v3789_v45, %v3737_v46  ;;  %v3740_v24 = vpop.f32.mrf.mxu0  ;;  %v9589_v14 = vcombine.high %v1540_v39, %v1544_v4  ;;  %v9366_v28 = vcombine.low %v1317_v60, %v1321_v44  ;;  %v9359_v45 = vcombine.high %v1309_v3, %v1313_v16 }
 0x29f   :  { %v3741_v12 = vadd.f32 %v3740_v24, %v10978_v33  ;;  %v3791_v23 = vpop.f32.mrf.mxu1  ;;  %5695 = vmatprep.subr.bf16.mxu1 %v9509_v13  ;;  %v9367_v33 = vcombine.high %v1317_v60, %v1321_v44  ;;  %v9588_v13 = vcombine.low %v1540_v39, %v1544_v4  ;;  %v1301_v24 = vld [vmem:[#allocation10 + $0x108] sm:$0xff]  ;;  %v9358_v39 = vcombine.low %v1309_v3, %v1313_v16 }
 0x2a0   :  { %v10996_v62 = vadd.f32 %v3791_v23, %v3739_v34  ;;  %5643 = vmatpush2.bf16.msra.mxu0 %v9380_v40  ;;  %v9581_v40 = vcombine.high %v1532_v22, %v1536_v1  ;;  %v1528_v34 = vld [vmem:[#allocation10 + $0x820] sm:$0xff]  ;;  %v1457_v23 = vld [vmem:[#allocation10 + $0x5e8] sm:$0xff] }
 0x2a1   :  { %v3793_v7 = vpop.f32.mrf.mxu1  ;;  %5726 = vmatprep.subr.bf16.mxu0 %v9597_v9  ;;  %v9580_v9 = vcombine.low %v1532_v22, %v1536_v1  ;;  %v9573_v4 = vcombine.high %v1524_v27, %v1528_v34  ;;  %v1293_v60 = vld [vmem:[#allocation10 + $0xc8] sm:$0xff]  ;;  %v10031_v1 = vld [vmem:[#allocation3 + $0x10] sm:$0xf] }
 0x2a2   :  { %11532 = vst [vmem:[#allocation30_spill] sm:$0xff] %v10996_v62  ;;  %5696 = vmatpush2.bf16.msra.mxu1 %v9508_v21  ;;  %v10998_v46 = vadd.f32 %v3793_v7, %v3741_v12  ;;  %v1305_v21 = vld [vmem:[#allocation10 + $0x128] sm:$0xff] }
 0x2a3   :  { %5645 = vmatmul.mubr.bf16.vlgmr.msra.gmra.mxu0 %v10836_v32  ;;  %5771 = vmatprep.subr.bf16.mxu1 %v9375_v36  ;;  %v1453_v12 = vld [vmem:[#allocation10 + $0x5c8] sm:$0xff]  ;;  %v9351_v36 = vcombine.high %v1301_v24, %v1305_v21 }
 0x2a4   :  { %11533 = vst [vmem:[#allocation31_spill] sm:$0xff] %v10998_v46  ;;  %5654 = vmatprep.mubr.bf16.mxu0 %v10848_v35  ;;  %5727 = vmatpush1.bf16.msra.mxu0 %v9596_v55  ;;  %v9572_v55 = vcombine.low %v1524_v27, %v1528_v34  ;;  %v1297_v44 = vld [vmem:[#allocation10 + $0xe8] sm:$0xff]  ;;  %v9503_v7 = vcombine.high %v1453_v12, %v1457_v23  ;;  %v1338_v46 = vld [vmem:[#allocation10 + $0x230] sm:$0xff] }
 0x2a5   :  { %5698 = vmatmul.mubr.bf16.vlgmr.msra.gmra.mxu1 %v10840_v41  ;;  %5728 = vmatprep.subr.bf16.mxu0 %v9589_v14  ;;  %v9350_v14 = vcombine.low %v1301_v24, %v1305_v21  ;;  %v1449_v22 = vld [vmem:[#allocation10 + $0x5a8] sm:$0xff]  ;;  %v9343_v3 = vcombine.high %v1293_v60, %v1297_v44  ;;  %v9502_v16 = vcombine.low %v1453_v12, %v1457_v23 }
 0x2a6   :  { %5707 = vmatprep.mubr.bf16.mxu1 %v10854_v58  ;;  %5772 = vmatpush1.bf16.msra.mxu1 %v9374_v20  ;;  %v1445_v20 = vld [vmem:[#allocation10 + $0x588] sm:$0xff]  ;;  %v9342_v34 = vcombine.low %v1293_v60, %v1297_v44  ;;  %v10033_v60 = vld [vmem:[#allocation3 + $0x60] sm:$0xf]  ;;  %v10034_v44 = vld [vmem:[#allocation3 + $0x4c] sm:$0xf] }
 0x2a7   :  { %5773 = vmatprep.subr.bf16.mxu1 %v9367_v33  ;;  %v10032_v33 = vld [vmem:[#allocation3 + $0x24] sm:$0xf]  ;;  %v9495_v27 = vcombine.high %v1445_v20, %v1449_v22  ;;  %v9494_v21 = vcombine.low %v1445_v20, %v1449_v22 }
 0x2a8   :  { %5729 = vmatpush1.bf16.msra.mxu0 %v9588_v13  ;;  %v11008_v13 = vcombine.low %v10031_v1, %v10032_v33  ;;  %v1269_v33 = vld [vmem:[#allocation10 + $0x8] sm:$0xff] }
 0x2a9   :  { %5730 = vmatprep.subr.bf16.mxu0 %v9581_v40  ;;  %v1285_v40 = vld [vmem:[#allocation10 + $0x88] sm:$0xff] }
 0x2aa   :  { %5774 = vmatpush1.bf16.msra.mxu1 %v9366_v28  ;;  %v1289_v28 = vld [vmem:[#allocation10 + $0xa8] sm:$0xff] }
 0x2ab   :  { %5655 = vmatmul.mubr.bf16.gmra.mxu0 %v10858_v6  ;;  %5775 = vmatprep.subr.bf16.mxu1 %v9359_v45  ;;  %v1437_v45 = vld [vmem:[#allocation10 + $0x548] sm:$0xff]  ;;  %v9335_v24 = vcombine.high %v1285_v40, %v1289_v28  ;;  %v9334_v23 = vcombine.low %v1285_v40, %v1289_v28 }
 0x2ac   :  { %5731 = vmatpush1.bf16.msra.mxu0 %v9580_v9  ;;  %5750 = vmatprep.mubr.bf16.mxu0 %v11520_v48  ;;  %v1441_v9 = vld [vmem:[#allocation10 + $0x568] sm:$0xff] }
 0x2ad   :  { %5708 = vmatmul.mubr.bf16.gmra.mxu1 %v10862_v29  ;;  %5732 = vmatprep.subr.bf16.mxu0 %v9573_v4  ;;  %v1277_v4 = vld [vmem:[#allocation10 + $0x48] sm:$0xff]  ;;  %v9487_v12 = vcombine.high %v1437_v45, %v1441_v9  ;;  %v9486_v1 = vcombine.low %v1437_v45, %v1441_v9 }
 0x2ae   :  { %5776 = vmatpush1.bf16.msra.mxu1 %v9358_v39  ;;  %5803 = vmatprep.mubr.bf16.mxu1 %v10828_v50  ;;  %v1281_v39 = vld [vmem:[#allocation10 + $0x68] sm:$0xff] }
 0x2af   :  { %5777 = vmatprep.subr.bf16.mxu1 %v9351_v36  ;;  %v1429_v36 = vld [vmem:[#allocation10 + $0x508] sm:$0xff] }
 0x2b0   :  { %5733 = vmatpush1.bf16.msra.mxu0 %v9572_v55  ;;  %v1433_v55 = vld [vmem:[#allocation10 + $0x528] sm:$0xff] }
 0x2b1   :  { %5824 = vmatprep.subr.bf16.mxu0 %v9503_v7  ;;  %v11013_v7 = vcombine.low %v10034_v44, %v10033_v60  ;;  %v1273_v20 = vld [vmem:[#allocation10 + $0x28] sm:$0xff]  ;;  %v9479_v22 = vcombine.high %v1429_v36, %v1433_v55  ;;  %v9478_v28 = vcombine.low %v1429_v36, %v1433_v55 }
 0x2b2   :  { %5778 = vmatpush1.bf16.msra.mxu1 %v9350_v14  ;;  %v9327_v14 = vcombine.high %v1277_v4, %v1281_v39  ;;  %v9319_v40 = vcombine.high %v1269_v33, %v1273_v20  ;;  %v9318_v9 = vcombine.low %v1269_v33, %v1273_v20  ;;  %v1385_v60 = vld [vmem:[#allocation10 + $0x3a8] sm:$0xff] }
 0x2b3   :  { %9604 = vmatmul.mubr.msk.bf16.vlgmr.msra.gmra.mxu0 %vm3473_vm5, %v11008_v13  ;;  %5779 = vmatprep.subr.bf16.mxu1 %v9343_v3  ;;  %v9326_v3 = vcombine.low %v1277_v4, %v1281_v39  ;;  %v1409_v36 = vld [vmem:[#allocation10 + $0x468] sm:$0xff] }
 0x2b4   :  { %5825 = vmatpush1.bf16.msra.mxu0 %v9502_v16  ;;  %5760 = vmatprep.mubr.bf16.mxu0 %v11520_v48  ;;  %v1421_v16 = vld [vmem:[#allocation10 + $0x4c8] sm:$0xff] }
 0x2b5   :  { %5826 = vmatprep.subr.bf16.mxu0 %v9495_v27  ;;  %v1425_v27 = vld [vmem:[#allocation10 + $0x4e8] sm:$0xff] }
 0x2b6   :  { %5780 = vmatpush1.bf16.msra.mxu1 %v9342_v34  ;;  %v1389_v34 = vld [vmem:[#allocation10 + $0x3c8] sm:$0xff]  ;;  %v9471_v45 = vcombine.high %v1421_v16, %v1425_v27  ;;  %v9470_v39 = vcombine.low %v1421_v16, %v1425_v27 }
 0x2b7   :  { %5781 = vmatprep.subr.bf16.mxu1 %v9335_v24  ;;  %v1393_v24 = vld [vmem:[#allocation10 + $0x3e8] sm:$0xff] }
 0x2b8   :  { %5827 = vmatpush1.bf16.msra.mxu0 %v9494_v21  ;;  %v1413_v21 = vld [vmem:[#allocation10 + $0x488] sm:$0xff]  ;;  %v9439_v4 = vcombine.high %v1389_v34, %v1393_v24 }
 0x2b9   :  { %5828 = vmatprep.subr.bf16.mxu0 %v9487_v12  ;;  %v1417_v12 = vld [vmem:[#allocation10 + $0x4a8] sm:$0xff] }
 0x2ba   :  { %5782 = vmatpush1.bf16.msra.mxu1 %v9334_v23  ;;  %v1381_v23 = vld [vmem:[#allocation10 + $0x388] sm:$0xff]  ;;  %v9463_v44 = vcombine.high %v1413_v21, %v1417_v12 }
 0x2bb   :  { %9605 = vmatmul.mubr.msk.bf16.gmra.mxu0 %vm3473_vm5, %v11013_v7  ;;  %5783 = vmatprep.subr.bf16.mxu1 %v9327_v14  ;;  %v9438_v14 = vcombine.low %v1389_v34, %v1393_v24  ;;  %v9431_v55 = vcombine.high %v1381_v23, %v1385_v60  ;;  %v1377_v33 = vld [vmem:[#allocation10 + $0x368] sm:$0xff] }
 0x2bc   :  { %5829 = vmatpush1.bf16.msra.mxu0 %v9486_v1  ;;  %5856 = vmatprep.mubr.bf16.mxu0 %v10832_v61  ;;  %v1405_v1 = vld [vmem:[#allocation10 + $0x448] sm:$0xff] }
 0x2bd   :  { %5830 = vmatprep.subr.bf16.mxu0 %v9479_v22  ;;  %v9462_v22 = vcombine.low %v1413_v21, %v1417_v12  ;;  %v9455_v20 = vcombine.high %v1405_v1, %v1409_v36  ;;  %v1401_v16 = vld [vmem:[#allocation10 + $0x428] sm:$0xff] }
 0x2be   :  { %5784 = vmatpush1.bf16.msra.mxu1 %v9326_v3  ;;  %v1373_v3 = vld [vmem:[#allocation10 + $0x348] sm:$0xff] }
 0x2bf   :  { %5785 = vmatprep.subr.bf16.mxu1 %v9319_v40  ;;  %v9430_v40 = vcombine.low %v1381_v23, %v1385_v60  ;;  %v9423_v27 = vcombine.high %v1373_v3, %v1377_v33  ;;  %v1369_v34 = vld [vmem:[#allocation10 + $0x328] sm:$0xff] }
 0x2c0   :  { %5831 = vmatpush1.bf16.msra.mxu0 %v9478_v28  ;;  %v1397_v28 = vld [vmem:[#allocation10 + $0x408] sm:$0xff] }
 0x2c1   :  { %5832 = vmatprep.subr.bf16.mxu0 %v9471_v45  ;;  %v9454_v45 = vcombine.low %v1405_v1, %v1409_v36  ;;  %v9447_v24 = vcombine.high %v1397_v28, %v1401_v16  ;;  %v1521_v21 = vld [vmem:[#allocation10 + $0x7e8] sm:$0xff] }
 0x2c2   :  { %5786 = vmatpush1.bf16.msra.mxu1 %v9318_v9  ;;  %v1365_v9 = vld [vmem:[#allocation10 + $0x308] sm:$0xff] }
 0x2c3   :  { %5787 = vmatprep.subr.bf16.mxu1 %v9439_v4  ;;  %v9422_v4 = vcombine.low %v1373_v3, %v1377_v33  ;;  %v9415_v12 = vcombine.high %v1365_v9, %v1369_v34  ;;  %v1361_v23 = vld [vmem:[#allocation10 + $0x2e8] sm:$0xff]  ;;  %v11018_v33 = vpop.f32.mrf.mxu0 }
 0x2c4   :  { %5833 = vmatpush1.bf16.msra.mxu0 %v9470_v39  ;;  %v1517_v39 = vld [vmem:[#allocation10 + $0x7c8] sm:$0xff]  ;;  %11534 = vst [vmem:[#allocation32_spill] sm:$0xff] %v11018_v33 }
 0x2c5   :  { %5834 = vmatprep.subr.bf16.mxu0 %v9463_v44  ;;  %v9446_v44 = vcombine.low %v1397_v28, %v1401_v16  ;;  %v9567_v60 = vcombine.high %v1517_v39, %v1521_v21  ;;  %v1513_v1 = vld [vmem:[#allocation10 + $0x7a8] sm:$0xff] }
 0x2c6   :  { %5788 = vmatpush2.bf16.msra.mxu1 %v9438_v14  ;;  %v1357_v14 = vld [vmem:[#allocation10 + $0x2c8] sm:$0xff] }
 0x2c7   :  { %5789 = vmatprep.subr.bf16.mxu1 %v9431_v55  ;;  %v9414_v55 = vcombine.low %v1365_v9, %v1369_v34  ;;  %v9407_v36 = vcombine.high %v1357_v14, %v1361_v23  ;;  %v1353_v3 = vld [vmem:[#allocation10 + $0x2a8] sm:$0xff]  ;;  %v9406_v28 = vcombine.low %v1357_v14, %v1361_v23 }
 0x2c8   :  { %5835 = vmatpush1.bf16.msra.mxu0 %v9462_v22  ;;  %v1509_v22 = vld [vmem:[#allocation10 + $0x788] sm:$0xff] }
 0x2c9   :  { %5836 = vmatprep.subr.bf16.mxu0 %v9455_v20  ;;  %v9566_v20 = vcombine.low %v1517_v39, %v1521_v21  ;;  %v1501_v16 = vld [vmem:[#allocation10 + $0x748] sm:$0xff]  ;;  %v9558_v34 = vcombine.low %v1509_v22, %v1513_v1 }
 0x2ca   :  { %5790 = vmatpush2.bf16.msra.mxu1 %v9430_v40  ;;  %v1349_v40 = vld [vmem:[#allocation10 + $0x288] sm:$0xff] }
 0x2cb   :  { %5791 = vmatprep.subr.bf16.mxu1 %v9423_v27  ;;  %v9559_v27 = vcombine.high %v1509_v22, %v1513_v1  ;;  %v9399_v9 = vcombine.high %v1349_v40, %v1353_v3  ;;  %v1497_v14 = vld [vmem:[#allocation10 + $0x728] sm:$0xff] }
 0x2cc   :  { %5837 = vmatpush1.bf16.msra.mxu0 %v9454_v45  ;;  %v1505_v45 = vld [vmem:[#allocation10 + $0x768] sm:$0xff] }
 0x2cd   :  { %5838 = vmatprep.subr.bf16.mxu0 %v9447_v24  ;;  %v11020_v24 = vpop.f32.mrf.mxu1  ;;  %v9551_v2 = vcombine.high %v1501_v16, %v1505_v45  ;;  %v1333_v22 = vld [vmem:[#allocation10 + $0x208] sm:$0xff] }
 0x2ce   :  { %5792 = vmatpush2.bf16.msra.mxu1 %v9422_v4  ;;  %11535 = vst [vmem:[#allocation33_spill] sm:$0xff] %v11020_v24  ;;  %v1337_v1 = vld [vmem:[#allocation10 + $0x228] sm:$0xff] }
 0x2cf   :  { %5793 = vmatprep.subr.bf16.mxu1 %v9415_v12  ;;  %v1341_v12 = vld [vmem:[#allocation10 + $0x248] sm:$0xff] }
 0x2d0   :  { %5839 = vmatpush1.bf16.msra.mxu0 %v9446_v44  ;;  %v1345_v44 = vld [vmem:[#allocation10 + $0x268] sm:$0xff] }
 0x2d1   :  { %5840 = vmatprep.subr.bf16.mxu0 %v9567_v60  ;;  %v9398_v60 = vcombine.low %v1349_v40, %v1353_v3  ;;  %v9391_v38 = vcombine.high %v1341_v12, %v1345_v44  ;;  %v9390_v40 = vcombine.low %v1341_v12, %v1345_v44  ;;  %v1485_v3 = vld [vmem:[#allocation10 + $0x6c8] sm:$0xff] }
 0x2d2   :  { %5794 = vmatpush2.bf16.msra.mxu1 %v9414_v55  ;;  %v1493_v55 = vld [vmem:[#allocation10 + $0x708] sm:$0xff] }
 0x2d3   :  { %v3832_v4 = vpop.f32.mrf.mxu0  ;;  %5795 = vmatprep.subr.bf16.mxu1 %v9407_v36  ;;  %v9550_v36 = vcombine.low %v1501_v16, %v1505_v45  ;;  %v1549_v16 = vld [vmem:[#allocation10 + $0x8c8] sm:$0xff] }
 0x2d4   :  { %5841 = vmatpush2.bf16.msra.mxu0 %v9566_v20  ;;  %v1553_v45 = vld [vmem:[#allocation10 + $0x8e8] sm:$0xff] }
 0x2d5   :  { %v3885_v39 = vpop.f32.mrf.mxu1  ;;  %v3834_v21 = vpop.f32.mrf.mxu0  ;;  %5842 = vmatprep.subr.bf16.mxu0 %v9559_v27  ;;  %v9543_v27 = vcombine.high %v1493_v55, %v1497_v14  ;;  %v1481_v12 = vld [vmem:[#allocation10 + $0x6a8] sm:$0xff] }
 0x2d6   :  { %v3886_v25 = vadd.f32 %v3885_v39, %v3832_v4  ;;  %5796 = vmatpush2.bf16.msra.mxu1 %v9406_v28  ;;  %v1489_v28 = vld [vmem:[#allocation10 + $0x6e8] sm:$0xff] }
 0x2d7   :  { %v3887_v23 = vpop.f32.mrf.mxu1  ;;  %v3836_v43 = vpop.f32.mrf.mxu0  ;;  %5797 = vmatprep.subr.bf16.mxu1 %v9399_v9 }
 0x2d8   :  { %v11022_v15 = vadd.f32 %v3887_v23, %v3834_v21  ;;  %5843 = vmatpush2.bf16.msra.mxu0 %v9558_v34  ;;  %v9383_v21 = vcombine.high %v1333_v22, %v1337_v1  ;;  %v9542_v34 = vcombine.low %v1493_v55, %v1497_v14  ;;  %v1545_v55 = vld [vmem:[#allocation10 + $0x8a8] sm:$0xff] }
 0x2d9   :  { %v3889_v20 = vpop.f32.mrf.mxu1  ;;  %v11024_v54 = vpop.f32.mrf.mxu0  ;;  %5844 = vmatprep.subr.bf16.mxu0 %v9551_v2 }
 0x2da   :  { %11536 = vst [vmem:[#allocation34_spill] sm:$0xff] %v11024_v54  ;;  %v3890_v4 = vadd.f32 %v3889_v20, %v3836_v43  ;;  %5798 = vmatpush2.bf16.msra.mxu1 %v9398_v60  ;;  %v9535_v54 = vcombine.high %v1485_v3, %v1489_v28  ;;  %v9382_v43 = vcombine.low %v1333_v22, %v1337_v1  ;;  %v1477_v60 = vld [vmem:[#allocation10 + $0x688] sm:$0xff] }
 0x2db   :  { %v11026_v39 = vpop.f32.mrf.mxu1  ;;  %v3842_v9 = vpop.f32.mrf.mxu0  ;;  %5799 = vmatprep.subr.bf16.mxu1 %v9391_v38  ;;  %v9534_v38 = vcombine.low %v1485_v3, %v1489_v28  ;;  %v1469_v22 = vld [vmem:[#allocation10 + $0x648] sm:$0xff] }
 0x2dc   :  { %11537 = vst [vmem:[#allocation35_spill] sm:$0xff] %v11026_v39  ;;  %5845 = vmatpush2.bf16.msra.mxu0 %v9550_v36  ;;  %v9599_v39 = vcombine.high %v1549_v16, %v1553_v45  ;;  %v1541_v36 = vld [vmem:[#allocation10 + $0x888] sm:$0xff] }
 0x2dd   :  { %v3895_v23 = vpop.f32.mrf.mxu1  ;;  %v3844_v24 = vpop.f32.mrf.mxu0  ;;  %5846 = vmatprep.subr.bf16.mxu0 %v9543_v27  ;;  %v9527_v27 = vcombine.high %v1477_v60, %v1481_v12  ;;  %v1473_v1 = vld [vmem:[#allocation10 + $0x668] sm:$0xff] }
 0x2de   :  { %v3896_v2 = vadd.f32 %v3895_v23, %v3842_v9  ;;  %5800 = vmatpush2.bf16.msra.mxu1 %v9390_v40  ;;  %v9598_v40 = vcombine.low %v1549_v16, %v1553_v45  ;;  %v9591_v23 = vcombine.high %v1541_v36, %v1545_v55  ;;  %v1533_v3 = vld [vmem:[#allocation10 + $0x848] sm:$0xff]  ;;  %v9590_v45 = vcombine.low %v1541_v36, %v1545_v55 }
 0x2df   :  { %v3897_v44 = vpop.f32.mrf.mxu1  ;;  %v3846_v20 = vpop.f32.mrf.mxu0  ;;  %5801 = vmatprep.subr.bf16.mxu1 %v9383_v21  ;;  %v1537_v28 = vld [vmem:[#allocation10 + $0x868] sm:$0xff] }
 0x2e0   :  { %v3898_v33 = vadd.f32 %v3897_v44, %v3844_v24  ;;  %5847 = vmatpush2.bf16.msra.mxu0 %v9542_v34  ;;  %v9526_v24 = vcombine.low %v1477_v60, %v1481_v12  ;;  %v9583_v44 = vcombine.high %v1533_v3, %v1537_v28  ;;  %v9518_v12 = vcombine.low %v1469_v22, %v1473_v1 }
 0x2e1   :  { %v3899_v14 = vpop.f32.mrf.mxu1  ;;  %v11028_v8 = vpop.f32.mrf.mxu0  ;;  %5848 = vmatprep.subr.bf16.mxu0 %v9535_v54  ;;  %v9519_v54 = vcombine.high %v1469_v22, %v1473_v1 }
 0x2e2   :  { %11538 = vst [vmem:[#allocation36_spill] sm:$0xff] %v11028_v8  ;;  %v3900_v18 = vadd.f32 %v3899_v14, %v3846_v20  ;;  %5802 = vmatpush2.bf16.msra.mxu1 %v9382_v43  ;;  %v1465_v43 = vld [vmem:[#allocation10 + $0x628] sm:$0xff] }
 0x2e3   :  { %v3938_v9 = vpop.f32.mrf.mxu0  ;;  %5885 = vmatprep.subr.bf16.mxu1 %v9599_v39  ;;  %v1461_v39 = vld [vmem:[#allocation10 + $0x608] sm:$0xff] }
 0x2e4   :  { %v11030_v21 = vadd.f32 %v3938_v9, %v3886_v25  ;;  %5849 = vmatpush2.bf16.msra.mxu0 %v9534_v38  ;;  %v1525_v20 = vld [vmem:[#allocation10 + $0x808] sm:$0xff]  ;;  %v1330_v9 = vld [vmem:[#allocation10 + $0x1f0] sm:$0xff] }
 0x2e5   :  { %5804 = vmatmul.mubr.bf16.vlgmr.msra.gmra.mxu1 %v10836_v32  ;;  %v3940_v34 = vpop.f32.mrf.mxu0  ;;  %5850 = vmatprep.subr.bf16.mxu0 %v9527_v27  ;;  %v1529_v38 = vld [vmem:[#allocation10 + $0x828] sm:$0xff]  ;;  %v9511_v27 = vcombine.high %v1461_v39, %v1465_v43 }
 0x2e6   :  { %11539 = vst [vmem:[#allocation37_spill] sm:$0xff] %v11030_v21  ;;  %5813 = vmatprep.mubr.bf16.mxu1 %v10848_v35  ;;  %5886 = vmatpush1.bf16.msra.mxu1 %v9598_v40  ;;  %v11035_v16 = vadd.f32 %v3940_v34, %v11022_v15  ;;  %v9582_v40 = vcombine.low %v1533_v3, %v1537_v28  ;;  %v1326_v15 = vld [vmem:[#allocation10 + $0x1d0] sm:$0xff] }
 0x2e7   :  { %v3942_v25 = vpop.f32.mrf.mxu0  ;;  %5887 = vmatprep.subr.bf16.mxu1 %v9591_v23  ;;  %v9575_v55 = vcombine.high %v1525_v20, %v1529_v38  ;;  %v1454_v23 = vld [vmem:[#allocation10 + $0x5d0] sm:$0xff]  ;;  %v9377_v1 = vcombine.high %v1326_v15, %v1330_v9  ;;  %v9574_v3 = vcombine.low %v1525_v20, %v1529_v38 }
 0x2e8   :  { %11540 = vst [vmem:[#allocation38_spill] sm:$0xff] %v11035_v16  ;;  %v11037_v60 = vadd.f32 %v3942_v25, %v3890_v4  ;;  %5851 = vmatpush2.bf16.msra.mxu0 %v9526_v24  ;;  %v9510_v4 = vcombine.low %v1461_v39, %v1465_v43  ;;  %v1458_v24 = vld [vmem:[#allocation10 + $0x5f0] sm:$0xff]  ;;  %v9376_v39 = vcombine.low %v1326_v15, %v1330_v9 }
 0x2e9   :  { %v11039_v14 = vpop.f32.mrf.mxu0  ;;  %5852 = vmatprep.subr.bf16.mxu0 %v9519_v54  ;;  %v1318_v28 = vld [vmem:[#allocation10 + $0x190] sm:$0xff] }
 0x2ea   :  { %11541 = vst [vmem:[#allocation39_spill] sm:$0xff] %v11037_v60  ;;  %11542 = vst [vmem:[#allocation40_spill] sm:$0xff] %v11039_v14  ;;  %5888 = vmatpush1.bf16.msra.mxu1 %v9590_v45  ;;  %v1322_v45 = vld [vmem:[#allocation10 + $0x1b0] sm:$0xff] }
 0x2eb   :  { %v3948_v36 = vpop.f32.mrf.mxu0  ;;  %5889 = vmatprep.subr.bf16.mxu1 %v9583_v44  ;;  %v1446_v43 = vld [vmem:[#allocation10 + $0x590] sm:$0xff]  ;;  %v9368_v38 = vcombine.low %v1318_v28, %v1322_v45 }
 0x2ec   :  { %v11041_v34 = vadd.f32 %v3948_v36, %v3896_v2  ;;  %5853 = vmatpush2.bf16.msra.mxu0 %v9518_v12  ;;  %v9505_v2 = vcombine.high %v1454_v23, %v1458_v24  ;;  %v1450_v12 = vld [vmem:[#allocation10 + $0x5b0] sm:$0xff] }
 0x2ed   :  { %5814 = vmatmul.mubr.bf16.gmra.mxu1 %v10858_v6  ;;  %v3950_v22 = vpop.f32.mrf.mxu0  ;;  %5854 = vmatprep.subr.bf16.mxu0 %v9511_v27  ;;  %v9369_v27 = vcombine.high %v1318_v28, %v1322_v45  ;;  %v1314_v36 = vld [vmem:[#allocation10 + $0x170] sm:$0xff]  ;;  %v9497_v20 = vcombine.high %v1446_v43, %v1450_v12  ;;  %v9496_v9 = vcombine.low %v1446_v43, %v1450_v12 }
 0x2ee   :  { %11543 = vst [vmem:[#allocation41_spill] sm:$0xff] %v11041_v34  ;;  %5890 = vmatpush1.bf16.msra.mxu1 %v9582_v40  ;;  %v11044_v54 = vadd.f32 %v3950_v22, %v3898_v33  ;;  %5909 = vmatprep.mubr.bf16.mxu1 %v11520_v48  ;;  %v9504_v40 = vcombine.low %v1454_v23, %v1458_v24  ;;  %v1310_v33 = vld [vmem:[#allocation10 + $0x150] sm:$0xff] }
 0x2ef   :  { %v3952_v25 = vpop.f32.mrf.mxu0  ;;  %5891 = vmatprep.subr.bf16.mxu1 %v9575_v55  ;;  %v1442_v55 = vld [vmem:[#allocation10 + $0x570] sm:$0xff]  ;;  %v9361_v15 = vcombine.high %v1310_v33, %v1314_v36  ;;  %v9360_v22 = vcombine.low %v1310_v33, %v1314_v36 }
 0x2f0   :  { %11544 = vst [vmem:[#allocation42_spill] sm:$0xff] %v11044_v54  ;;  %v11047_v44 = vadd.f32 %v3952_v25, %v3900_v18  ;;  %5855 = vmatpush2.bf16.msra.mxu0 %v9510_v4  ;;  %v1438_v18 = vld [vmem:[#allocation10 + $0x550] sm:$0xff] }
 0x2f1   :  { %5930 = vmatprep.subr.bf16.mxu0 %v9377_v1  ;;  %v1302_v4 = vld [vmem:[#allocation10 + $0x110] sm:$0xff]  ;;  %v9489_v24 = vcombine.high %v1438_v18, %v1442_v55  ;;  %v9488_v45 = vcombine.low %v1438_v18, %v1442_v55 }
 0x2f2   :  { %11545 = vst [vmem:[#allocation43_spill] sm:$0xff] %v11047_v44  ;;  %5892 = vmatpush1.bf16.msra.mxu1 %v9574_v3  ;;  %v1306_v23 = vld [vmem:[#allocation10 + $0x130] sm:$0xff] }
 0x2f3   :  { %5857 = vmatmul.mubr.bf16.vlgmr.msra.gmra.mxu0 %v10840_v41  ;;  %5983 = vmatprep.subr.bf16.mxu1 %v9505_v2  ;;  %v1430_v1 = vld [vmem:[#allocation10 + $0x510] sm:$0xff]  ;;  %v9353_v28 = vcombine.high %v1302_v4, %v1306_v23  ;;  %v9352_v43 = vcombine.low %v1302_v4, %v1306_v23 }
 0x2f4   :  { %5866 = vmatprep.mubr.bf16.mxu0 %v10854_v58  ;;  %5931 = vmatpush1.bf16.msra.mxu0 %v9376_v39  ;;  %v1434_v3 = vld [vmem:[#allocation10 + $0x530] sm:$0xff] }
 0x2f5   :  { %9606 = vmatmul.mubr.msk.bf16.vlgmr.msra.gmra.mxu1 %vm3473_vm5, %v11008_v13  ;;  %5932 = vmatprep.subr.bf16.mxu0 %v9369_v27  ;;  %v1294_v25 = vld [vmem:[#allocation10 + $0xd0] sm:$0xff]  ;;  %v9481_v39 = vcombine.high %v1430_v1, %v1434_v3  ;;  %v9480_v33 = vcombine.low %v1430_v1, %v1434_v3 }
 0x2f6   :  { %5984 = vmatpush1.bf16.msra.mxu1 %v9504_v40  ;;  %5919 = vmatprep.mubr.bf16.mxu1 %v11520_v48  ;;  %v1298_v2 = vld [vmem:[#allocation10 + $0xf0] sm:$0xff] }
 0x2f7   :  { %5985 = vmatprep.subr.bf16.mxu1 %v9497_v20  ;;  %v1422_v12 = vld [vmem:[#allocation10 + $0x4d0] sm:$0xff]  ;;  %v9345_v40 = vcombine.high %v1294_v25, %v1298_v2  ;;  %v9344_v18 = vcombine.low %v1294_v25, %v1298_v2 }
 0x2f8   :  { %5933 = vmatpush1.bf16.msra.mxu0 %v9368_v38  ;;  %v1426_v27 = vld [vmem:[#allocation10 + $0x4f0] sm:$0xff] }
 0x2f9   :  { %5934 = vmatprep.subr.bf16.mxu0 %v9361_v15  ;;  %v1286_v36 = vld [vmem:[#allocation10 + $0x90] sm:$0xff]  ;;  %v9473_v38 = vcombine.high %v1422_v12, %v1426_v27  ;;  %v9472_v4 = vcombine.low %v1422_v12, %v1426_v27 }
 0x2fa   :  { %5986 = vmatpush1.bf16.msra.mxu1 %v9496_v9  ;;  %v1290_v20 = vld [vmem:[#allocation10 + $0xb0] sm:$0xff] }
 0x2fb   :  { %5867 = vmatmul.mubr.bf16.gmra.mxu0 %v10862_v29  ;;  %5987 = vmatprep.subr.bf16.mxu1 %v9489_v24  ;;  %v1414_v55 = vld [vmem:[#allocation10 + $0x490] sm:$0xff]  ;;  %v9337_v9 = vcombine.high %v1286_v36, %v1290_v20 }
 0x2fc   :  { %5935 = vmatpush1.bf16.msra.mxu0 %v9360_v22  ;;  %5962 = vmatprep.mubr.bf16.mxu0 %v10828_v50  ;;  %v1418_v15 = vld [vmem:[#allocation10 + $0x4b0] sm:$0xff] }
 0x2fd   :  { %9607 = vmatmul.mubr.msk.bf16.gmra.mxu1 %vm3473_vm5, %v11013_v7  ;;  %5936 = vmatprep.subr.bf16.mxu0 %v9353_v28  ;;  %v1278_v23 = vld [vmem:[#allocation10 + $0x50] sm:$0xff]  ;;  %v9465_v22 = vcombine.high %v1414_v55, %v1418_v15  ;;  %v9336_v28 = vcombine.low %v1286_v36, %v1290_v20 }
 0x2fe   :  { %5988 = vmatpush1.bf16.msra.mxu1 %v9488_v45  ;;  %6015 = vmatprep.mubr.bf16.mxu1 %v10832_v61  ;;  %v1282_v24 = vld [vmem:[#allocation10 + $0x70] sm:$0xff] }
 0x2ff   :  { %5989 = vmatprep.subr.bf16.mxu1 %v9481_v39  ;;  %v1406_v45 = vld [vmem:[#allocation10 + $0x450] sm:$0xff]  ;;  %v9329_v3 = vcombine.high %v1278_v23, %v1282_v24  ;;  %v9464_v39 = vcombine.low %v1414_v55, %v1418_v15 }
 0x300   :  { %5937 = vmatpush1.bf16.msra.mxu0 %v9352_v43  ;;  %v1410_v1 = vld [vmem:[#allocation10 + $0x470] sm:$0xff] }
 0x301   :  { %5938 = vmatprep.subr.bf16.mxu0 %v9345_v40  ;;  %v1270_v43 = vld [vmem:[#allocation10 + $0x10] sm:$0xff]  ;;  %v9457_v2 = vcombine.high %v1406_v45, %v1410_v1  ;;  %v9328_v40 = vcombine.low %v1278_v23, %v1282_v24 }
 0x302   :  { %5990 = vmatpush1.bf16.msra.mxu1 %v9480_v33  ;;  %v1274_v25 = vld [vmem:[#allocation10 + $0x30] sm:$0xff] }
 0x303   :  { %5991 = vmatprep.subr.bf16.mxu1 %v9473_v38  ;;  %v1398_v33 = vld [vmem:[#allocation10 + $0x410] sm:$0xff]  ;;  %v9321_v27 = vcombine.high %v1270_v43, %v1274_v25  ;;  %v9456_v38 = vcombine.low %v1406_v45, %v1410_v1 }
 0x304   :  { %5939 = vmatpush1.bf16.msra.mxu0 %v9344_v18  ;;  %v1402_v12 = vld [vmem:[#allocation10 + $0x430] sm:$0xff] }
 0x305   :  { %5940 = vmatprep.subr.bf16.mxu0 %v9337_v9  ;;  %v1390_v18 = vld [vmem:[#allocation10 + $0x3d0] sm:$0xff]  ;;  %v9449_v20 = vcombine.high %v1398_v33, %v1402_v12  ;;  %v9320_v9 = vcombine.low %v1270_v43, %v1274_v25  ;;  %v11059_v25 = vpop.f32.mrf.mxu1 }
 0x306   :  { %5992 = vmatpush1.bf16.msra.mxu1 %v9472_v4  ;;  %v1394_v36 = vld [vmem:[#allocation10 + $0x3f0] sm:$0xff]  ;;  %11546 = vst [vmem:[#allocation44_spill] sm:$0xff] %v11059_v25 }
 0x307   :  { %5993 = vmatprep.subr.bf16.mxu1 %v9465_v22  ;;  %v1518_v4 = vld [vmem:[#allocation10 + $0x7d0] sm:$0xff]  ;;  %v9441_v15 = vcombine.high %v1390_v18, %v1394_v36  ;;  %v9448_v22 = vcombine.low %v1398_v33, %v1402_v12 }
 0x308   :  { %5941 = vmatpush1.bf16.msra.mxu0 %v9336_v28  ;;  %v1522_v55 = vld [vmem:[#allocation10 + $0x7f0] sm:$0xff] }
 0x309   :  { %5942 = vmatprep.subr.bf16.mxu0 %v9329_v3  ;;  %v1382_v28 = vld [vmem:[#allocation10 + $0x390] sm:$0xff]  ;;  %v9569_v24 = vcombine.high %v1518_v4, %v1522_v55  ;;  %v9440_v3 = vcombine.low %v1390_v18, %v1394_v36 }
 0x30a   :  { %5994 = vmatpush1.bf16.msra.mxu1 %v9464_v39  ;;  %v1386_v23 = vld [vmem:[#allocation10 + $0x3b0] sm:$0xff] }
 0x30b   :  { %5995 = vmatprep.subr.bf16.mxu1 %v9457_v2  ;;  %v1510_v39 = vld [vmem:[#allocation10 + $0x790] sm:$0xff]  ;;  %v9433_v1 = vcombine.high %v1382_v28, %v1386_v23  ;;  %v9568_v2 = vcombine.low %v1518_v4, %v1522_v55  ;;  %v9432_v33 = vcombine.low %v1382_v28, %v1386_v23 }
 0x30c   :  { %5943 = vmatpush1.bf16.msra.mxu0 %v9328_v40  ;;  %v1514_v45 = vld [vmem:[#allocation10 + $0x7b0] sm:$0xff] }
 0x30d   :  { %5944 = vmatprep.subr.bf16.mxu0 %v9321_v27  ;;  %v1374_v40 = vld [vmem:[#allocation10 + $0x350] sm:$0xff]  ;;  %v9561_v27 = vcombine.high %v1510_v39, %v1514_v45  ;;  %v9560_v18 = vcombine.low %v1510_v39, %v1514_v45 }
 0x30e   :  { %5996 = vmatpush1.bf16.msra.mxu1 %v9456_v38  ;;  %v1378_v43 = vld [vmem:[#allocation10 + $0x370] sm:$0xff] }
 0x30f   :  { %5997 = vmatprep.subr.bf16.mxu1 %v9449_v20  ;;  %v1502_v12 = vld [vmem:[#allocation10 + $0x750] sm:$0xff]  ;;  %v9424_v55 = vcombine.low %v1374_v40, %v1378_v43 }
 0x310   :  { %5945 = vmatpush1.bf16.msra.mxu0 %v9320_v9  ;;  %v1506_v38 = vld [vmem:[#allocation10 + $0x770] sm:$0xff]  ;;  %v9425_v9 = vcombine.high %v1374_v40, %v1378_v43 }
 0x311   :  { %5946 = vmatprep.subr.bf16.mxu0 %v9441_v15  ;;  %v1366_v36 = vld [vmem:[#allocation10 + $0x310] sm:$0xff]  ;;  %v9553_v4 = vcombine.high %v1502_v12, %v1506_v38  ;;  %v9552_v28 = vcombine.low %v1502_v12, %v1506_v38 }
 0x312   :  { %5998 = vmatpush1.bf16.msra.mxu1 %v9448_v22  ;;  %v1370_v15 = vld [vmem:[#allocation10 + $0x330] sm:$0xff] }
 0x313   :  { %5999 = vmatprep.subr.bf16.mxu1 %v9569_v24  ;;  %v1494_v22 = vld [vmem:[#allocation10 + $0x710] sm:$0xff]  ;;  %v9416_v45 = vcombine.low %v1366_v36, %v1370_v15 }
 0x314   :  { %5947 = vmatpush2.bf16.msra.mxu0 %v9440_v3  ;;  %v1498_v54 = vld [vmem:[#allocation10 + $0x730] sm:$0xff]  ;;  %v9417_v3 = vcombine.high %v1366_v36, %v1370_v15 }
 0x315   :  { %v3991_v20 = vpop.f32.mrf.mxu1  ;;  %5948 = vmatprep.subr.bf16.mxu0 %v9433_v1  ;;  %v1358_v23 = vld [vmem:[#allocation10 + $0x2d0] sm:$0xff]  ;;  %v9545_v39 = vcombine.high %v1494_v22, %v1498_v54  ;;  %v9544_v43 = vcombine.low %v1494_v22, %v1498_v54 }
 0x316   :  { %6000 = vmatpush2.bf16.msra.mxu1 %v9568_v2  ;;  %v1362_v25 = vld [vmem:[#allocation10 + $0x2f0] sm:$0xff] }
 0x317   :  { %v3993_v44 = vpop.f32.mrf.mxu1  ;;  %6001 = vmatprep.subr.bf16.mxu1 %v9561_v27  ;;  %v1486_v2 = vld [vmem:[#allocation10 + $0x6d0] sm:$0xff]  ;;  %v9409_v40 = vcombine.high %v1358_v23, %v1362_v25  ;;  %v9408_v38 = vcombine.low %v1358_v23, %v1362_v25 }
 0x318   :  { %5949 = vmatpush2.bf16.msra.mxu0 %v9432_v33  ;;  %v1490_v27 = vld [vmem:[#allocation10 + $0x6f0] sm:$0xff] }
 0x319   :  { %v3995_v24 = vpop.f32.mrf.mxu1  ;;  %5950 = vmatprep.subr.bf16.mxu0 %v9425_v9  ;;  %v1350_v33 = vld [vmem:[#allocation10 + $0x290] sm:$0xff]  ;;  %v9537_v12 = vcombine.high %v1486_v2, %v1490_v27 }
 0x31a   :  { %6002 = vmatpush2.bf16.msra.mxu1 %v9560_v18  ;;  %v1354_v9 = vld [vmem:[#allocation10 + $0x2b0] sm:$0xff] }
 0x31b   :  { %v11061_v1 = vpop.f32.mrf.mxu1  ;;  %6003 = vmatprep.subr.bf16.mxu1 %v9553_v4  ;;  %v1478_v4 = vld [vmem:[#allocation10 + $0x690] sm:$0xff]  ;;  %v9401_v15 = vcombine.high %v1350_v33, %v1354_v9  ;;  %v9400_v25 = vcombine.low %v1350_v33, %v1354_v9 }
 0x31c   :  { %5951 = vmatpush2.bf16.msra.mxu0 %v9424_v55  ;;  %v1482_v34 = vld [vmem:[#allocation10 + $0x6b0] sm:$0xff]  ;;  %v11067_v55 = vpop.f32.mrf.mxu0 }
 0x31d   :  { %v11063_v8 = vpop.f32.mrf.mxu1  ;;  %5952 = vmatprep.subr.bf16.mxu0 %v9417_v3  ;;  %11547 = vst [vmem:[#allocation45_spill] sm:$0xff] %v11067_v55  ;;  %v9536_v3 = vcombine.low %v1486_v2, %v1490_v27  ;;  %v1346_v54 = vld [vmem:[#allocation10 + $0x270] sm:$0xff]  ;;  %v9528_v27 = vcombine.low %v1478_v4, %v1482_v34 }
 0x31e   :  { %6004 = vmatpush2.bf16.msra.mxu1 %v9552_v28  ;;  %v1342_v28 = vld [vmem:[#allocation10 + $0x250] sm:$0xff] }
 0x31f   :  { %v11065_v18 = vpop.f32.mrf.mxu1  ;;  %6005 = vmatprep.subr.bf16.mxu1 %v9545_v39  ;;  %v9529_v39 = vcombine.high %v1478_v4, %v1482_v34  ;;  %v1470_v23 = vld [vmem:[#allocation10 + $0x650] sm:$0xff]  ;;  %v9393_v21 = vcombine.high %v1342_v28, %v1346_v54  ;;  %v9392_v33 = vcombine.low %v1342_v28, %v1346_v54 }
 0x320   :  { %5953 = vmatpush2.bf16.msra.mxu0 %v9416_v45  ;;  %v1474_v45 = vld [vmem:[#allocation10 + $0x670] sm:$0xff] }
 0x321   :  { %v11069_v36 = vpop.f32.mrf.mxu1  ;;  %5954 = vmatprep.subr.bf16.mxu0 %v9409_v40  ;;  %v1462_v9 = vld [vmem:[#allocation10 + $0x610] sm:$0xff] }
 0x322   :  { %6006 = vmatpush2.bf16.msra.mxu1 %v9544_v43  ;;  %v1334_v43 = vld [vmem:[#allocation10 + $0x210] sm:$0xff] }
 0x323   :  { %v11071_v22 = vpop.f32.mrf.mxu1  ;;  %v4044_v60 = vpop.f32.mrf.mxu0  ;;  %6007 = vmatprep.subr.bf16.mxu1 %v9537_v12  ;;  %v9521_v12 = vcombine.high %v1470_v23, %v1474_v45  ;;  %v1550_v4 = vld [vmem:[#allocation10 + $0x8d0] sm:$0xff]  ;;  %v9384_v54 = vcombine.low %v1334_v43, %v1338_v46 }
 0x324   :  { %v4045_v14 = vadd.f32 %v4044_v60, %v3991_v20  ;;  %5955 = vmatpush2.bf16.msra.mxu0 %v9408_v38  ;;  %v1466_v38 = vld [vmem:[#allocation10 + $0x630] sm:$0xff] }
 0x325   :  { %v4097_v16 = vpop.f32.mrf.mxu1  ;;  %v4046_v55 = vpop.f32.mrf.mxu0  ;;  %5956 = vmatprep.subr.bf16.mxu0 %v9401_v15 }
 0x326   :  { %v11073_v40 = vadd.f32 %v4097_v16, %v4045_v14  ;;  %6008 = vmatpush2.bf16.msra.mxu1 %v9536_v3  ;;  %v4047_v2 = vadd.f32 %v4046_v55, %v3993_v44  ;;  %v9385_v16 = vcombine.high %v1334_v43, %v1338_v46  ;;  %v9520_v44 = vcombine.low %v1470_v23, %v1474_v45  ;;  %v1554_v55 = vld [vmem:[#allocation10 + $0x8f0] sm:$0xff] }
 0x327   :  { %v4099_v0 = vpop.f32.mrf.mxu1  ;;  %v4048_v49 = vpop.f32.mrf.mxu0  ;;  %6009 = vmatprep.subr.bf16.mxu1 %v9529_v39  ;;  %v1331_v39 = vld [vmem:[#allocation10 + $0x1f8] sm:$0xff]  ;;  %v9512_v23 = vcombine.low %v1462_v9, %v1466_v38  ;;  %v1542_v45 = vld [vmem:[#allocation10 + $0x890] sm:$0xff] }
 0x328   :  { %v11075_v60 = vadd.f32 %v4099_v0, %v4047_v2  ;;  %v4049_v20 = vadd.f32 %v4048_v49, %v3995_v24  ;;  %5957 = vmatpush2.bf16.msra.mxu0 %v9400_v25  ;;  %v9513_v49 = vcombine.high %v1462_v9, %v1466_v38 }
 0x329   :  { %v4101_v15 = vpop.f32.mrf.mxu1  ;;  %v4050_v62 = vpop.f32.mrf.mxu0  ;;  %5958 = vmatprep.subr.bf16.mxu0 %v9393_v21  ;;  %v1327_v21 = vld [vmem:[#allocation10 + $0x1d8] sm:$0xff] }
 0x32a   :  { %v11077_v14 = vadd.f32 %v4101_v15, %v4049_v20  ;;  %6010 = vmatpush2.bf16.msra.mxu1 %v9528_v27  ;;  %v4051_v34 = vadd.f32 %v4050_v62, %v11061_v1  ;;  %v9601_v27 = vcombine.high %v1550_v4, %v1554_v55 }
 0x32b   :  { %v4103_v3 = vpop.f32.mrf.mxu1  ;;  %v4054_v0 = vpop.f32.mrf.mxu0  ;;  %6011 = vmatprep.subr.bf16.mxu1 %v9521_v12  ;;  %v1546_v12 = vld [vmem:[#allocation10 + $0x8b0] sm:$0xff] }
 0x32c   :  { %v11080_v24 = vadd.f32 %v4103_v3, %v4051_v34  ;;  %v4055_v28 = vadd.f32 %v4054_v0, %v11063_v8  ;;  %5959 = vmatpush2.bf16.msra.mxu0 %v9392_v33  ;;  %v9379_v8 = vcombine.high %v1327_v21, %v1331_v39  ;;  %v9600_v33 = vcombine.low %v1550_v4, %v1554_v55  ;;  %v1323_v34 = vld [vmem:[#allocation10 + $0x1b8] sm:$0xff] }
 0x32d   :  { %v4056_v25 = vpop.f32.mrf.mxu0  ;;  %v4107_v2 = vpop.f32.mrf.mxu1  ;;  %5960 = vmatprep.subr.bf16.mxu0 %v9385_v16  ;;  %v1319_v16 = vld [vmem:[#allocation10 + $0x198] sm:$0xff]  ;;  %v9378_v0 = vcombine.low %v1327_v21, %v1331_v39  ;;  %v9592_v55 = vcombine.low %v1542_v45, %v1546_v12  ;;  %v1526_v39 = vld [vmem:[#allocation10 + $0x810] sm:$0xff] }
 0x32e   :  { %6012 = vmatpush2.bf16.msra.mxu1 %v9520_v44  ;;  %v4057_v62 = vadd.f32 %v4056_v25, %v11065_v18  ;;  %v11084_v1 = vadd.f32 %v4107_v2, %v4055_v28  ;;  %v9593_v18 = vcombine.high %v1542_v45, %v1546_v12  ;;  %v1538_v28 = vld [vmem:[#allocation10 + $0x870] sm:$0xff]  ;;  %v1315_v2 = vld [vmem:[#allocation10 + $0x178] sm:$0xff]  ;;  %v9370_v21 = vcombine.low %v1319_v16, %v1323_v34 }
 0x32f   :  { %v4058_v20 = vpop.f32.mrf.mxu0  ;;  %v4109_v15 = vpop.f32.mrf.mxu1  ;;  %6013 = vmatprep.subr.bf16.mxu1 %v9513_v49  ;;  %v1534_v49 = vld [vmem:[#allocation10 + $0x850] sm:$0xff] }
 0x330   :  { %v4059_v46 = vadd.f32 %v4058_v20, %v11069_v36  ;;  %v11087_v43 = vadd.f32 %v4109_v15, %v4057_v62  ;;  %5961 = vmatpush2.bf16.msra.mxu0 %v9384_v54  ;;  %v9371_v36 = vcombine.high %v1319_v16, %v1323_v34  ;;  %v1311_v54 = vld [vmem:[#allocation10 + $0x158] sm:$0xff] }
 0x331   :  { %v4060_v44 = vpop.f32.mrf.mxu0  ;;  %v4111_v3 = vpop.f32.mrf.mxu1  ;;  %6044 = vmatprep.subr.bf16.mxu0 %v9601_v27  ;;  %v1530_v27 = vld [vmem:[#allocation10 + $0x830] sm:$0xff]  ;;  %v9363_v62 = vcombine.high %v1311_v54, %v1315_v2  ;;  %v1303_v20 = vld [vmem:[#allocation10 + $0x118] sm:$0xff]  ;;  %v9362_v12 = vcombine.low %v1311_v54, %v1315_v2 }
 0x332   :  { %6014 = vmatpush2.bf16.msra.mxu1 %v9512_v23  ;;  %v4061_v9 = vadd.f32 %v4060_v44, %v11071_v22  ;;  %v11090_v38 = vadd.f32 %v4111_v3, %v4059_v46  ;;  %v9585_v22 = vcombine.high %v1534_v49, %v1538_v28  ;;  %v9584_v23 = vcombine.low %v1534_v49, %v1538_v28  ;;  %v1307_v15 = vld [vmem:[#allocation10 + $0x138] sm:$0xff] }
 0x333   :  { %v4113_v25 = vpop.f32.mrf.mxu1  ;;  %5963 = vmatmul.mubr.bf16.vlgmr.msra.gmra.mxu0 %v10836_v32  ;;  %6089 = vmatprep.subr.bf16.mxu1 %v9379_v8  ;;  %v9577_v45 = vcombine.high %v1526_v39, %v1530_v27  ;;  %v1455_v8 = vld [vmem:[#allocation10 + $0x5d8] sm:$0xff]  ;;  %v9576_v16 = vcombine.low %v1526_v39, %v1530_v27 }
 0x334   :  { %v11093_v4 = vadd.f32 %v4113_v25, %v4061_v9  ;;  %5972 = vmatprep.mubr.bf16.mxu0 %v10848_v35  ;;  %6045 = vmatpush1.bf16.msra.mxu0 %v9600_v33  ;;  %v1459_v46 = vld [vmem:[#allocation10 + $0x5f8] sm:$0xff]  ;;  %v9355_v33 = vcombine.high %v1303_v20, %v1307_v15 }
 0x335   :  { %6016 = vmatmul.mubr.bf16.vlgmr.msra.gmra.mxu1 %v10840_v41  ;;  %6046 = vmatprep.subr.bf16.mxu0 %v9593_v18  ;;  %v1295_v34 = vld [vmem:[#allocation10 + $0xd8] sm:$0xff]  ;;  %v9507_v3 = vcombine.high %v1455_v8, %v1459_v46  ;;  %v9354_v18 = vcombine.low %v1303_v20, %v1307_v15  ;;  %v9506_v28 = vcombine.low %v1455_v8, %v1459_v46 }
 0x336   :  { %6025 = vmatprep.mubr.bf16.mxu1 %v10854_v58  ;;  %6090 = vmatpush1.bf16.msra.mxu1 %v9378_v0  ;;  %v1299_v44 = vld [vmem:[#allocation10 + $0xf8] sm:$0xff] }
 0x337   :  { %6091 = vmatprep.subr.bf16.mxu1 %v9371_v36  ;;  %v1447_v9 = vld [vmem:[#allocation10 + $0x598] sm:$0xff]  ;;  %v9347_v49 = vcombine.high %v1295_v34, %v1299_v44  ;;  %v9346_v54 = vcombine.low %v1295_v34, %v1299_v44 }
 0x338   :  { %6047 = vmatpush1.bf16.msra.mxu0 %v9592_v55  ;;  %v1451_v0 = vld [vmem:[#allocation10 + $0x5b8] sm:$0xff] }
 0x339   :  { %6048 = vmatprep.subr.bf16.mxu0 %v9585_v22  ;;  %v1287_v25 = vld [vmem:[#allocation10 + $0x98] sm:$0xff]  ;;  %v9499_v55 = vcombine.high %v1447_v9, %v1451_v0 }
 0x33a   :  { %6092 = vmatpush1.bf16.msra.mxu1 %v9370_v21  ;;  %v1291_v36 = vld [vmem:[#allocation10 + $0xb8] sm:$0xff]  ;;  %v9498_v21 = vcombine.low %v1447_v9, %v1451_v0 }
 0x33b   :  { %5973 = vmatmul.mubr.bf16.gmra.mxu0 %v10858_v6  ;;  %6093 = vmatprep.subr.bf16.mxu1 %v9363_v62  ;;  %v1439_v2 = vld [vmem:[#allocation10 + $0x558] sm:$0xff] }
 0x33c   :  { %6049 = vmatpush1.bf16.msra.mxu0 %v9584_v23  ;;  %6068 = vmatprep.mubr.bf16.mxu0 %v11520_v48  ;;  %v1443_v22 = vld [vmem:[#allocation10 + $0x578] sm:$0xff]  ;;  %v9338_v23 = vcombine.low %v1287_v25, %v1291_v36 }
 0x33d   :  { %6026 = vmatmul.mubr.bf16.gmra.mxu1 %v10862_v29  ;;  %6050 = vmatprep.subr.bf16.mxu0 %v9577_v45  ;;  %v1279_v39 = vld [vmem:[#allocation10 + $0x58] sm:$0xff]  ;;  %v9491_v62 = vcombine.high %v1439_v2, %v1443_v22 }
 0x33e   :  { %6094 = vmatpush1.bf16.msra.mxu1 %v9362_v12  ;;  %6121 = vmatprep.mubr.bf16.mxu1 %v10828_v50  ;;  %v9339_v50 = vcombine.high %v1287_v25, %v1291_v36  ;;  %v1283_v27 = vld [vmem:[#allocation10 + $0x78] sm:$0xff]  ;;  %v9490_v12 = vcombine.low %v1439_v2, %v1443_v22 }
 0x33f   :  { %6095 = vmatprep.subr.bf16.mxu1 %v9355_v33  ;;  %v1431_v20 = vld [vmem:[#allocation10 + $0x518] sm:$0xff]  ;;  %v9331_v45 = vcombine.high %v1279_v39, %v1283_v27 }
 0x340   :  { %6051 = vmatpush1.bf16.msra.mxu0 %v9576_v16  ;;  %v1435_v15 = vld [vmem:[#allocation10 + $0x538] sm:$0xff]  ;;  %v9330_v16 = vcombine.low %v1279_v39, %v1283_v27 }
 0x341   :  { %6142 = vmatprep.subr.bf16.mxu0 %v9507_v3  ;;  %v1271_v8 = vld [vmem:[#allocation10 + $0x18] sm:$0xff]  ;;  %v9483_v33 = vcombine.high %v1431_v20, %v1435_v15 }
 0x342   :  { %6096 = vmatpush1.bf16.msra.mxu1 %v9354_v18  ;;  %v1275_v46 = vld [vmem:[#allocation10 + $0x38] sm:$0xff]  ;;  %v9482_v18 = vcombine.low %v1431_v20, %v1435_v15 }
 0x343   :  { %9608 = vmatmul.mubr.msk.bf16.vlgmr.msra.gmra.mxu0 %vm3473_vm5, %v11008_v13  ;;  %6097 = vmatprep.subr.bf16.mxu1 %v9347_v49  ;;  %v1423_v34 = vld [vmem:[#allocation10 + $0x4d8] sm:$0xff]  ;;  %v9323_v3 = vcombine.high %v1271_v8, %v1275_v46 }
 0x344   :  { %6143 = vmatpush1.bf16.msra.mxu0 %v9506_v28  ;;  %6078 = vmatprep.mubr.bf16.mxu0 %v11520_v48  ;;  %v1427_v44 = vld [vmem:[#allocation10 + $0x4f8] sm:$0xff]  ;;  %v9322_v28 = vcombine.low %v1271_v8, %v1275_v46 }
 0x345   :  { %6144 = vmatprep.subr.bf16.mxu0 %v9499_v55  ;;  %v1391_v9 = vld [vmem:[#allocation10 + $0x3d8] sm:$0xff]  ;;  %v9475_v49 = vcombine.high %v1423_v34, %v1427_v44 }
 0x346   :  { %6098 = vmatpush1.bf16.msra.mxu1 %v9346_v54  ;;  %v1395_v0 = vld [vmem:[#allocation10 + $0x3f8] sm:$0xff]  ;;  %v9474_v54 = vcombine.low %v1423_v34, %v1427_v44 }
 0x347   :  { %6099 = vmatprep.subr.bf16.mxu1 %v9339_v50  ;;  %v1415_v25 = vld [vmem:[#allocation10 + $0x498] sm:$0xff]  ;;  %v9443_v55 = vcombine.high %v1391_v9, %v1395_v0 }
 0x348   :  { %6145 = vmatpush1.bf16.msra.mxu0 %v9498_v21  ;;  %v1419_v36 = vld [vmem:[#allocation10 + $0x4b8] sm:$0xff]  ;;  %v9442_v21 = vcombine.low %v1391_v9, %v1395_v0 }
 0x349   :  { %6146 = vmatprep.subr.bf16.mxu0 %v9491_v62  ;;  %v1383_v2 = vld [vmem:[#allocation10 + $0x398] sm:$0xff]  ;;  %v9467_v50 = vcombine.high %v1415_v25, %v1419_v36  ;;  %v9466_v62 = vcombine.low %v1415_v25, %v1419_v36 }
 0x34a   :  { %6100 = vmatpush1.bf16.msra.mxu1 %v9338_v23  ;;  %v1387_v22 = vld [vmem:[#allocation10 + $0x3b8] sm:$0xff] }
 0x34b   :  { %9609 = vmatmul.mubr.msk.bf16.gmra.mxu0 %vm3473_vm5, %v11013_v7  ;;  %6101 = vmatprep.subr.bf16.mxu1 %v9331_v45  ;;  %v1411_v39 = vld [vmem:[#allocation10 + $0x478] sm:$0xff]  ;;  %v9435_v27 = vcombine.high %v1383_v2, %v1387_v22  ;;  %v9434_v45 = vcombine.low %v1383_v2, %v1387_v22 }
 0x34c   :  { %6147 = vmatpush1.bf16.msra.mxu0 %v9490_v12  ;;  %6174 = vmatprep.mubr.bf16.mxu0 %v10832_v61  ;;  %v1407_v61 = vld [vmem:[#allocation10 + $0x458] sm:$0xff] }
 0x34d   :  { %6148 = vmatprep.subr.bf16.mxu0 %v9483_v33  ;;  %v1375_v23 = vld [vmem:[#allocation10 + $0x358] sm:$0xff]  ;;  %v9459_v15 = vcombine.high %v1407_v61, %v1411_v39  ;;  %v9458_v33 = vcombine.low %v1407_v61, %v1411_v39 }
 0x34e   :  { %6102 = vmatpush1.bf16.msra.mxu1 %v9330_v16  ;;  %v1379_v20 = vld [vmem:[#allocation10 + $0x378] sm:$0xff] }
 0x34f   :  { %6103 = vmatprep.subr.bf16.mxu1 %v9323_v3  ;;  %v1399_v12 = vld [vmem:[#allocation10 + $0x418] sm:$0xff]  ;;  %v9427_v46 = vcombine.high %v1375_v23, %v1379_v20  ;;  %v9426_v3 = vcombine.low %v1375_v23, %v1379_v20 }
 0x350   :  { %6149 = vmatpush1.bf16.msra.mxu0 %v9482_v18  ;;  %v1403_v8 = vld [vmem:[#allocation10 + $0x438] sm:$0xff] }
 0x351   :  { %6150 = vmatprep.subr.bf16.mxu0 %v9475_v49  ;;  %v1367_v16 = vld [vmem:[#allocation10 + $0x318] sm:$0xff]  ;;  %v9451_v44 = vcombine.high %v1399_v12, %v1403_v8  ;;  %v9450_v49 = vcombine.low %v1399_v12, %v1403_v8 }
 0x352   :  { %6104 = vmatpush1.bf16.msra.mxu1 %v9322_v28  ;;  %v1371_v34 = vld [vmem:[#allocation10 + $0x338] sm:$0xff] }
 0x353   :  { %6105 = vmatprep.subr.bf16.mxu1 %v9443_v55  ;;  %v1519_v18 = vld [vmem:[#allocation10 + $0x7d8] sm:$0xff]  ;;  %v9419_v0 = vcombine.high %v1367_v16, %v1371_v34  ;;  %v9418_v55 = vcombine.low %v1367_v16, %v1371_v34 }
 0x354   :  { %6151 = vmatpush1.bf16.msra.mxu0 %v9474_v54  ;;  %v1523_v9 = vld [vmem:[#allocation10 + $0x7f8] sm:$0xff] }
 0x355   :  { %6152 = vmatprep.subr.bf16.mxu0 %v9467_v50  ;;  %v1359_v28 = vld [vmem:[#allocation10 + $0x2d8] sm:$0xff]  ;;  %v9571_v36 = vcombine.high %v1519_v18, %v1523_v9  ;;  %v9570_v50 = vcombine.low %v1519_v18, %v1523_v9 }
 0x356   :  { %6106 = vmatpush2.bf16.msra.mxu1 %v9442_v21  ;;  %v1363_v25 = vld [vmem:[#allocation10 + $0x2f8] sm:$0xff] }
 0x357   :  { %6107 = vmatprep.subr.bf16.mxu1 %v9435_v27  ;;  %v1511_v54 = vld [vmem:[#allocation10 + $0x798] sm:$0xff]  ;;  %v9411_v22 = vcombine.high %v1359_v28, %v1363_v25  ;;  %v9410_v27 = vcombine.low %v1359_v28, %v1363_v25 }
 0x358   :  { %6153 = vmatpush1.bf16.msra.mxu0 %v9466_v62  ;;  %v1515_v2 = vld [vmem:[#allocation10 + $0x7b8] sm:$0xff] }
 0x359   :  { %6154 = vmatprep.subr.bf16.mxu0 %v9459_v15  ;;  %v1351_v21 = vld [vmem:[#allocation10 + $0x298] sm:$0xff]  ;;  %v9563_v39 = vcombine.high %v1511_v54, %v1515_v2  ;;  %v9562_v12 = vcombine.low %v1511_v54, %v1515_v2 }
 0x35a   :  { %6108 = vmatpush2.bf16.msra.mxu1 %v9434_v45  ;;  %v1355_v61 = vld [vmem:[#allocation10 + $0x2b8] sm:$0xff] }
 0x35b   :  { %6109 = vmatprep.subr.bf16.mxu1 %v9427_v46  ;;  %v1503_v62 = vld [vmem:[#allocation10 + $0x758] sm:$0xff]  ;;  %v9403_v15 = vcombine.high %v1351_v21, %v1355_v61  ;;  %v9402_v9 = vcombine.low %v1351_v21, %v1355_v61 }
 0x35c   :  { %6155 = vmatpush1.bf16.msra.mxu0 %v9458_v33  ;;  %v1507_v23 = vld [vmem:[#allocation10 + $0x778] sm:$0xff] }
 0x35d   :  { %6156 = vmatprep.subr.bf16.mxu0 %v9451_v44  ;;  %v1343_v8 = vld [vmem:[#allocation10 + $0x258] sm:$0xff]  ;;  %v9555_v34 = vcombine.high %v1503_v62, %v1507_v23  ;;  %v3574_v44 = vadd.f32 %v10938_v52, %v10936_v53  ;;  %v9554_v53 = vcombine.low %v1503_v62, %v1507_v23 }
 0x35e   :  { %6110 = vmatpush2.bf16.msra.mxu1 %v9426_v3  ;;  %v1347_v46 = vld [vmem:[#allocation10 + $0x278] sm:$0xff] }
 0x35f   :  { %6111 = vmatprep.subr.bf16.mxu1 %v9419_v0  ;;  %v1495_v0 = vld [vmem:[#allocation10 + $0x718] sm:$0xff]  ;;  %v9395_v25 = vcombine.high %v1343_v8, %v1347_v46 }
 0x360   :  { %6157 = vmatpush1.bf16.msra.mxu0 %v9450_v49  ;;  %v1499_v49 = vld [vmem:[#allocation10 + $0x738] sm:$0xff] }
 0x361   :  { %6158 = vmatprep.subr.bf16.mxu0 %v9571_v36  ;;  %v3627_v36 = vadd.f32 %v10950_v17, %v3574_v44  ;;  %v1335_v52 = vld [vmem:[#allocation10 + $0x218] sm:$0xff]  ;;  %v9546_v23 = vcombine.low %v1495_v0, %v1499_v49 }
 0x362   :  { %6112 = vmatpush2.bf16.msra.mxu1 %v9418_v55  ;;  %v1339_v2 = vld [vmem:[#allocation10 + $0x238] sm:$0xff] }
 0x363   :  { %v5646_v20 = vpop.f32.mrf.mxu0  ;;  %6113 = vmatprep.subr.bf16.mxu1 %v9411_v22 }
 0x364   :  { %v5647_v45 = vadd.f32 %v5646_v20, %v10942_v59  ;;  %6159 = vmatpush2.bf16.msra.mxu0 %v9570_v50  ;;  %v1491_v20 = vld [vmem:[#allocation10 + $0x6f8] sm:$0xff] }
 0x365   :  { %v5699_v33 = vpop.f32.mrf.mxu1  ;;  %v5648_v16 = vpop.f32.mrf.mxu0  ;;  %6160 = vmatprep.subr.bf16.mxu0 %v9563_v39  ;;  %v9394_v39 = vcombine.low %v1343_v8, %v1347_v46  ;;  %v3584_v8 = vadd.f32 %v10970_v42, %v10940_v37  ;;  %v1543_v42 = vld [vmem:[#allocation10 + $0x898] sm:$0xff] }
 0x366   :  { %v11111_v3 = vadd.f32 %v5699_v33, %v5647_v45  ;;  %6114 = vmatpush2.bf16.msra.mxu1 %v9410_v27  ;;  %v5649_v18 = vadd.f32 %v5648_v16, %v10944_v5  ;;  %v9547_v5 = vcombine.high %v1495_v0, %v1499_v49  ;;  %v1487_v27 = vld [vmem:[#allocation10 + $0x6d8] sm:$0xff]  ;;  %v9387_v45 = vcombine.high %v1335_v52, %v1339_v2 }
 0x367   :  { %v5701_v59 = vpop.f32.mrf.mxu1  ;;  %v5650_v28 = vpop.f32.mrf.mxu0  ;;  %6115 = vmatprep.subr.bf16.mxu1 %v9403_v15  ;;  %v1555_v33 = vld [vmem:[#allocation10 + $0x8f8] sm:$0xff]  ;;  %v9539_v44 = vcombine.high %v1487_v27, %v1491_v20  ;;  %v3637_v49 = vadd.f32 %v10976_v30, %v3584_v8  ;;  %v9538_v37 = vcombine.low %v1487_v27, %v1491_v20 }
 0x368   :  { %v11115_v55 = vadd.f32 %v5701_v59, %v5649_v18  ;;  %v5651_v54 = vadd.f32 %v5650_v28, %v10948_v47  ;;  %6161 = vmatpush2.bf16.msra.mxu0 %v9562_v12  ;;  %v1551_v12 = vld [vmem:[#allocation10 + $0x8d8] sm:$0xff] }
 0x369   :  { %v5703_v22 = vpop.f32.mrf.mxu1  ;;  %v5652_v50 = vpop.f32.mrf.mxu0  ;;  %6162 = vmatprep.subr.bf16.mxu0 %v9555_v34  ;;  %v1479_v59 = vld [vmem:[#allocation10 + $0x698] sm:$0xff]  ;;  %v9603_v0 = vcombine.high %v1551_v12, %v1555_v33 }
 0x36a   :  { %v11118_v21 = vadd.f32 %v5703_v22, %v5651_v54  ;;  %6116 = vmatpush2.bf16.msra.mxu1 %v9402_v9  ;;  %v5653_v61 = vadd.f32 %v5652_v50, %v3627_v36  ;;  %v9386_v9 = vcombine.low %v1335_v52, %v1339_v2  ;;  %v1483_v28 = vld [vmem:[#allocation10 + $0x6b8] sm:$0xff] }
 0x36b   :  { %v5705_v17 = vpop.f32.mrf.mxu1  ;;  %v5656_v15 = vpop.f32.mrf.mxu0  ;;  %6117 = vmatprep.subr.bf16.mxu1 %v9395_v25  ;;  %v9530_v20 = vcombine.low %v1479_v59, %v1483_v28 }
 0x36c   :  { %v11120_v47 = vadd.f32 %v5705_v17, %v5653_v61  ;;  %v5657_v62 = vadd.f32 %v5656_v15, %v10952_v11  ;;  %6163 = vmatpush2.bf16.msra.mxu0 %v9554_v53  ;;  %v1547_v53 = vld [vmem:[#allocation10 + $0x8b8] sm:$0xff] }
 0x36d   :  { %v5709_v16 = vpop.f32.mrf.mxu1  ;;  %v5658_v34 = vpop.f32.mrf.mxu0  ;;  %6164 = vmatprep.subr.bf16.mxu0 %v9547_v5  ;;  %v9602_v5 = vcombine.low %v1551_v12, %v1555_v33  ;;  %v1471_v61 = vld [vmem:[#allocation10 + $0x658] sm:$0xff]  ;;  %v9595_v15 = vcombine.high %v1543_v42, %v1547_v53  ;;  %v9594_v33 = vcombine.low %v1543_v42, %v1547_v53  ;;  %v6493_v42 = vld [vmem:[#allocation10 + $0x17c0] sm:$0xff] }
 0x36e   :  { %v11125_v46 = vadd.f32 %v5709_v16, %v5657_v62  ;;  %6118 = vmatpush2.bf16.msra.mxu1 %v9394_v39  ;;  %v5659_v18 = vadd.f32 %v5658_v34, %v10954_v26  ;;  %v9531_v26 = vcombine.high %v1479_v59, %v1483_v28  ;;  %v1475_v39 = vld [vmem:[#allocation10 + $0x678] sm:$0xff]  ;;  %v6497_v53 = vld [vmem:[#allocation10 + $0x17e0] sm:$0xff] }
 0x36f   :  { %v5711_v11 = vpop.f32.mrf.mxu1  ;;  %v5660_v25 = vpop.f32.mrf.mxu0  ;;  %6119 = vmatprep.subr.bf16.mxu1 %v9387_v45  ;;  %v1535_v45 = vld [vmem:[#allocation10 + $0x858] sm:$0xff]  ;;  %v9523_v16 = vcombine.high %v1471_v61, %v1475_v39 }
 0x370   :  { %v11129_v36 = vadd.f32 %v5711_v11, %v5659_v18  ;;  %v5661_v54 = vadd.f32 %v5660_v25, %v10957_v51  ;;  %6165 = vmatpush2.bf16.msra.mxu0 %v9546_v23  ;;  %v1539_v62 = vld [vmem:[#allocation10 + $0x878] sm:$0xff]  ;;  %v6365_v25 = vld [vmem:[#allocation10 + $0x13c0] sm:$0xff] }
 0x371   :  { %v5713_v22 = vpop.f32.mrf.mxu1  ;;  %v5662_v50 = vpop.f32.mrf.mxu0  ;;  %6166 = vmatprep.subr.bf16.mxu0 %v9539_v44  ;;  %v1463_v34 = vld [vmem:[#allocation10 + $0x618] sm:$0xff]  ;;  %v9587_v8 = vcombine.high %v1535_v45, %v1539_v62  ;;  %v9586_v11 = vcombine.low %v1535_v45, %v1539_v62  ;;  %v9812_v45 = vcombine.low %v6493_v42, %v6497_v53  ;;  %v6349_v62 = vld [vmem:[#allocation10 + $0x1340] sm:$0xff] }
 0x372   :  { %v11132_v52 = vadd.f32 %v5713_v22, %v5661_v54  ;;  %6120 = vmatpush2.bf16.msra.mxu1 %v9386_v9  ;;  %v5663_v2 = vadd.f32 %v5662_v50, %v3637_v49  ;;  %v1467_v44 = vld [vmem:[#allocation10 + $0x638] sm:$0xff] }
 0x373   :  { %v5715_v30 = vpop.f32.mrf.mxu1  ;;  %v5752_v17 = vpop.f32.mrf.mxu0  ;;  %6203 = vmatprep.subr.bf16.mxu1 %v9603_v0  ;;  %v1527_v9 = vld [vmem:[#allocation10 + $0x818] sm:$0xff]  ;;  %v6369_v0 = vld [vmem:[#allocation10 + $0x13e0] sm:$0xff] }
 0x374   :  { %v5716_v51 = vadd.f32 %v5715_v30, %v5663_v2  ;;  %v11135_v27 = vadd.f32 %v5752_v17, %v11111_v3  ;;  %6167 = vmatpush2.bf16.msra.mxu0 %v9538_v37  ;;  %v1531_v59 = vld [vmem:[#allocation10 + $0x838] sm:$0xff]  ;;  %v9514_v37 = vcombine.low %v1463_v34, %v1467_v44  ;;  %v9685_v50 = vcombine.high %v6365_v25, %v6369_v0  ;;  %v6357_v2 = vld [vmem:[#allocation10 + $0x1380] sm:$0xff] }
 0x375   :  { %6122 = vmatmul.mubr.bf16.vlgmr.msra.gmra.mxu1 %v10836_v32  ;;  %v5754_v23 = vpop.f32.mrf.mxu0  ;;  %6168 = vmatprep.subr.bf16.mxu0 %v9531_v26  ;;  %v9522_v32 = vcombine.low %v1471_v61, %v1475_v39  ;;  %v9579_v54 = vcombine.high %v1527_v9, %v1531_v59  ;;  %v9578_v26 = vcombine.low %v1527_v9, %v1531_v59  ;;  %v6485_v30 = vld [vmem:[#allocation10 + $0x1780] sm:$0xff] }
 0x376   :  { %6131 = vmatprep.mubr.bf16.mxu1 %v10848_v35  ;;  %6204 = vmatpush1.bf16.msra.mxu1 %v9602_v5  ;;  %v11140_v12 = vadd.f32 %v5754_v23, %v11115_v55  ;;  %v9515_v35 = vcombine.high %v1463_v34, %v1467_v44  ;;  %v6361_v5 = vld [vmem:[#allocation10 + $0x13a0] sm:$0xff]  ;;  %v9813_v61 = vcombine.high %v6493_v42, %v6497_v53 }
 0x377   :  { %v5756_v3 = vpop.f32.mrf.mxu0  ;;  %6205 = vmatprep.subr.bf16.mxu1 %v9595_v15  ;;  %v6489_v17 = vld [vmem:[#allocation10 + $0x17a0] sm:$0xff] }
 0x378   :  { %v11143_v18 = vadd.f32 %v5756_v3, %v11118_v21  ;;  %6169 = vmatpush2.bf16.msra.mxu0 %v9530_v20  ;;  %v9677_v20 = vcombine.high %v6357_v2, %v6361_v5  ;;  %v6353_v23 = vld [vmem:[#allocation10 + $0x1360] sm:$0xff] }
 0x379   :  { %v5758_v28 = vpop.f32.mrf.mxu0  ;;  %6170 = vmatprep.subr.bf16.mxu0 %v9523_v16  ;;  %v9805_v16 = vcombine.high %v6485_v30, %v6489_v17  ;;  %v6481_v34 = vld [vmem:[#allocation10 + $0x1760] sm:$0xff]  ;;  %v9669_v44 = vcombine.high %v6349_v62, %v6353_v23 }
 0x37a   :  { %6206 = vmatpush1.bf16.msra.mxu1 %v9594_v33  ;;  %v11146_v55 = vadd.f32 %v5758_v28, %v11120_v47  ;;  %v6477_v33 = vld [vmem:[#allocation10 + $0x1740] sm:$0xff] }
 0x37b   :  { %v5762_v49 = vpop.f32.mrf.mxu0  ;;  %6207 = vmatprep.subr.bf16.mxu1 %v9587_v8  ;;  %v6341_v3 = vld [vmem:[#allocation10 + $0x1300] sm:$0xff]  ;;  %v9796_v28 = vcombine.low %v6477_v33, %v6481_v34 }
 0x37c   :  { %v11149_v21 = vadd.f32 %v5762_v49, %v11125_v46  ;;  %6171 = vmatpush2.bf16.msra.mxu0 %v9522_v32  ;;  %v6345_v8 = vld [vmem:[#allocation10 + $0x1320] sm:$0xff]  ;;  %v9668_v32 = vcombine.low %v6349_v62, %v6353_v23 }
 0x37d   :  { %6132 = vmatmul.mubr.bf16.gmra.mxu1 %v10858_v6  ;;  %v5764_v22 = vpop.f32.mrf.mxu0  ;;  %6172 = vmatprep.subr.bf16.mxu0 %v9515_v35  ;;  %v9684_v6 = vcombine.low %v6365_v25, %v6369_v0  ;;  %v6473_v9 = vld [vmem:[#allocation10 + $0x1720] sm:$0xff]  ;;  %v9661_v59 = vcombine.high %v6341_v3, %v6345_v8  ;;  %v9660_v25 = vcombine.low %v6341_v3, %v6345_v8 }
 0x37e   :  { %6208 = vmatpush1.bf16.msra.mxu1 %v9586_v11  ;;  %v11153_v47 = vadd.f32 %v5764_v22, %v11129_v36  ;;  %6227 = vmatprep.mubr.bf16.mxu1 %v11520_v48  ;;  %v6333_v35 = vld [vmem:[#allocation10 + $0x12c0] sm:$0xff] }
 0x37f   :  { %v5766_v46 = vpop.f32.mrf.mxu0  ;;  %6209 = vmatprep.subr.bf16.mxu1 %v9579_v54  ;;  %v6461_v0 = vld [vmem:[#allocation10 + $0x16c0] sm:$0xff] }
 0x380   :  { %v11157_v39 = vadd.f32 %v5766_v46, %v11132_v52  ;;  %6173 = vmatpush2.bf16.msra.mxu0 %v9514_v37  ;;  %v9676_v52 = vcombine.low %v6357_v2, %v6361_v5  ;;  %v6465_v49 = vld [vmem:[#allocation10 + $0x16e0] sm:$0xff] }
 0x381   :  { %v5768_v15 = vpop.f32.mrf.mxu0  ;;  %8081 = vmatprep.subr.bf16.mxu0 %v9685_v50  ;;  %v6325_v42 = vld [vmem:[#allocation10 + $0x1280] sm:$0xff]  ;;  %v9780_v5 = vcombine.low %v6461_v0, %v6465_v49 }
 0x382   :  { %6210 = vmatpush1.bf16.msra.mxu1 %v9578_v26  ;;  %v11159_v36 = vadd.f32 %v5768_v15, %v5716_v51  ;;  %v9804_v51 = vcombine.low %v6485_v30, %v6489_v17  ;;  %v6329_v53 = vld [vmem:[#allocation10 + $0x12a0] sm:$0xff] }
 0x383   :  { %6175 = vmatmul.mubr.bf16.vlgmr.msra.gmra.mxu0 %v10840_v41  ;;  %8134 = vmatprep.subr.bf16.mxu1 %v9813_v61  ;;  %v9797_v41 = vcombine.high %v6477_v33, %v6481_v34  ;;  %v6453_v50 = vld [vmem:[#allocation10 + $0x1680] sm:$0xff]  ;;  %v9645_v2 = vcombine.high %v6325_v42, %v6329_v53 }
 0x384   :  { %6184 = vmatprep.mubr.bf16.mxu0 %v10854_v58  ;;  %8082 = vmatpush1.bf16.msra.mxu0 %v9684_v6  ;;  %v6469_v58 = vld [vmem:[#allocation10 + $0x1700] sm:$0xff]  ;;  %v9644_v6 = vcombine.low %v6325_v42, %v6329_v53 }
 0x385   :  { %9610 = vmatmul.mubr.msk.bf16.vlgmr.msra.gmra.mxu1 %vm3473_vm5, %v11008_v13  ;;  %8083 = vmatprep.subr.bf16.mxu0 %v9677_v20  ;;  %v6337_v13 = vld [vmem:[#allocation10 + $0x12e0] sm:$0xff]  ;;  %v9789_v11 = vcombine.high %v6469_v58, %v6473_v9  ;;  %v9788_v37 = vcombine.low %v6469_v58, %v6473_v9 }
 0x386   :  { %8135 = vmatpush1.bf16.msra.mxu1 %v9812_v45  ;;  %6237 = vmatprep.mubr.bf16.mxu1 %v11520_v48  ;;  %v9653_v54 = vcombine.high %v6333_v35, %v6337_v13  ;;  %v9652_v22 = vcombine.low %v6333_v35, %v6337_v13  ;;  %v6457_v26 = vld [vmem:[#allocation10 + $0x16a0] sm:$0xff] }
 0x387   :  { %8136 = vmatprep.subr.bf16.mxu1 %v9805_v16  ;;  %v6317_v46 = vld [vmem:[#allocation10 + $0x1240] sm:$0xff]  ;;  %v9773_v61 = vcombine.high %v6453_v50, %v6457_v26  ;;  %v9772_v20 = vcombine.low %v6453_v50, %v6457_v26 }
 0x388   :  { %8084 = vmatpush1.bf16.msra.mxu0 %v9676_v52  ;;  %v6445_v30 = vld [vmem:[#allocation10 + $0x1640] sm:$0xff] }
 0x389   :  { %8085 = vmatprep.subr.bf16.mxu0 %v9669_v44  ;;  %v6449_v17 = vld [vmem:[#allocation10 + $0x1660] sm:$0xff] }
 0x38a   :  { %8137 = vmatpush1.bf16.msra.mxu1 %v9804_v51  ;;  %v6309_v45 = vld [vmem:[#allocation10 + $0x1200] sm:$0xff]  ;;  %v9765_v23 = vcombine.high %v6445_v30, %v6449_v17  ;;  %v9764_v44 = vcombine.low %v6445_v30, %v6449_v17 }
 0x38b   :  { %6185 = vmatmul.mubr.bf16.gmra.mxu0 %v10862_v29  ;;  %8138 = vmatprep.subr.bf16.mxu1 %v9797_v41  ;;  %v9781_v29 = vcombine.high %v6461_v0, %v6465_v49  ;;  %v6313_v62 = vld [vmem:[#allocation10 + $0x1220] sm:$0xff] }
 0x38c   :  { %8086 = vmatpush1.bf16.msra.mxu0 %v9668_v32  ;;  %8113 = vmatprep.mubr.bf16.mxu0 %v10876_v57  ;;  %v6437_v52 = vld [vmem:[#allocation10 + $0x1600] sm:$0xff]  ;;  %v9629_v34 = vcombine.high %v6309_v45, %v6313_v62  ;;  %v9628_v41 = vcombine.low %v6309_v45, %v6313_v62 }
 0x38d   :  { %9611 = vmatmul.mubr.msk.bf16.gmra.mxu1 %vm3473_vm5, %v11013_v7  ;;  %8087 = vmatprep.subr.bf16.mxu0 %v9661_v59  ;;  %v6321_v7 = vld [vmem:[#allocation10 + $0x1260] sm:$0xff] }
 0x38e   :  { %8139 = vmatpush1.bf16.msra.mxu1 %v9796_v28  ;;  %8166 = vmatprep.mubr.bf16.mxu1 %v10881_v10  ;;  %v9637_v15 = vcombine.high %v6317_v46, %v6321_v7  ;;  %v9636_v16 = vcombine.low %v6317_v46, %v6321_v7  ;;  %v6441_v33 = vld [vmem:[#allocation10 + $0x1620] sm:$0xff] }
 0x38f   :  { %8140 = vmatprep.subr.bf16.mxu1 %v9789_v11  ;;  %v6429_v51 = vld [vmem:[#allocation10 + $0x15c0] sm:$0xff]  ;;  %v9757_v8 = vcombine.high %v6437_v52, %v6441_v33  ;;  %v9756_v59 = vcombine.low %v6437_v52, %v6441_v33 }
 0x390   :  { %8088 = vmatpush1.bf16.msra.mxu0 %v9660_v25  ;;  %v6433_v3 = vld [vmem:[#allocation10 + $0x15e0] sm:$0xff] }
 0x391   :  { %8089 = vmatprep.subr.bf16.mxu0 %v9653_v54  ;;  %v6557_v32 = vld [vmem:[#allocation10 + $0x19c0] sm:$0xff]  ;;  %v9749_v9 = vcombine.high %v6429_v51, %v6433_v3  ;;  %v9748_v11 = vcombine.low %v6429_v51, %v6433_v3 }
 0x392   :  { %8141 = vmatpush1.bf16.msra.mxu1 %v9788_v37  ;;  %v6561_v58 = vld [vmem:[#allocation10 + $0x19e0] sm:$0xff] }
 0x393   :  { %8142 = vmatprep.subr.bf16.mxu1 %v9781_v29  ;;  %v6421_v28 = vld [vmem:[#allocation10 + $0x1580] sm:$0xff]  ;;  %v9877_v13 = vcombine.high %v6557_v32, %v6561_v58  ;;  %v9876_v54 = vcombine.low %v6557_v32, %v6561_v58 }
 0x394   :  { %8090 = vmatpush1.bf16.msra.mxu0 %v9652_v22  ;;  %v6425_v35 = vld [vmem:[#allocation10 + $0x15a0] sm:$0xff] }
 0x395   :  { %8091 = vmatprep.subr.bf16.mxu0 %v9645_v2  ;;  %v6549_v25 = vld [vmem:[#allocation10 + $0x1980] sm:$0xff]  ;;  %v9741_v49 = vcombine.high %v6421_v28, %v6425_v35  ;;  %v9740_v29 = vcombine.low %v6421_v28, %v6425_v35  ;;  %v11548_v35 = vld [vmem:[#allocation30_spill] sm:$0xff] }
 0x396   :  { %8143 = vmatpush1.bf16.msra.mxu1 %v9780_v5  ;;  %v6553_v0 = vld [vmem:[#allocation10 + $0x19a0] sm:$0xff] }
 0x397   :  { %8144 = vmatprep.subr.bf16.mxu1 %v9773_v61  ;;  %v6413_v37 = vld [vmem:[#allocation10 + $0x1540] sm:$0xff]  ;;  %v9869_v53 = vcombine.high %v6549_v25, %v6553_v0  ;;  %v9868_v46 = vcombine.low %v6549_v25, %v6553_v0 }
 0x398   :  { %8092 = vmatpush1.bf16.msra.mxu0 %v9644_v6  ;;  %v6417_v42 = vld [vmem:[#allocation10 + $0x1560] sm:$0xff] }
 0x399   :  { %8093 = vmatprep.subr.bf16.mxu0 %v9637_v15  ;;  %v6541_v22 = vld [vmem:[#allocation10 + $0x1940] sm:$0xff]  ;;  %v9733_v2 = vcombine.high %v6413_v37, %v6417_v42  ;;  %v9732_v15 = vcombine.low %v6413_v37, %v6417_v42  ;;  %v11549_v37 = vld [vmem:[#allocation26_spill] sm:$0xff] }
 0x39a   :  { %8145 = vmatpush1.bf16.msra.mxu1 %v9772_v20  ;;  %v6545_v50 = vld [vmem:[#allocation10 + $0x1960] sm:$0xff] }
 0x39b   :  { %8146 = vmatprep.subr.bf16.mxu1 %v9765_v23  ;;  %v6405_v7 = vld [vmem:[#allocation10 + $0x1500] sm:$0xff]  ;;  %v9861_v30 = vcombine.high %v6541_v22, %v6545_v50 }
 0x39c   :  { %8094 = vmatpush1.bf16.msra.mxu0 %v9636_v16  ;;  %v6409_v61 = vld [vmem:[#allocation10 + $0x1520] sm:$0xff] }
 0x39d   :  { %8095 = vmatprep.subr.bf16.mxu0 %v9629_v34  ;;  %v6533_v20 = vld [vmem:[#allocation10 + $0x1900] sm:$0xff]  ;;  %v9725_v23 = vcombine.high %v6405_v7, %v6409_v61  ;;  %v9724_v51 = vcombine.low %v6405_v7, %v6409_v61 }
 0x39e   :  { %8147 = vmatpush1.bf16.msra.mxu1 %v9764_v44  ;;  %v6537_v45 = vld [vmem:[#allocation10 + $0x1920] sm:$0xff] }
 0x39f   :  { %8148 = vmatprep.subr.bf16.mxu1 %v9757_v8  ;;  %v6397_v52 = vld [vmem:[#allocation10 + $0x14c0] sm:$0xff]  ;;  %v9853_v44 = vcombine.high %v6533_v20, %v6537_v45 }
 0x3a0   :  { %8096 = vmatpush1.bf16.msra.mxu0 %v9628_v41  ;;  %v6401_v33 = vld [vmem:[#allocation10 + $0x14e0] sm:$0xff] }
 0x3a1   :  { %8097 = vmatprep.subr.bf16.mxu0 %v9749_v9  ;;  %v6529_v3 = vld [vmem:[#allocation10 + $0x18e0] sm:$0xff]  ;;  %v9717_v41 = vcombine.high %v6397_v52, %v6401_v33 }
 0x3a2   :  { %8149 = vmatpush1.bf16.msra.mxu1 %v9756_v59  ;;  %v6389_v58 = vld [vmem:[#allocation10 + $0x1480] sm:$0xff] }
 0x3a3   :  { %8150 = vmatprep.subr.bf16.mxu1 %v9877_v13  ;;  %v6393_v9 = vld [vmem:[#allocation10 + $0x14a0] sm:$0xff] }
 0x3a4   :  { %8098 = vmatpush2.bf16.msra.mxu0 %v9748_v11  ;;  %v9716_v11 = vcombine.low %v6397_v52, %v6401_v33  ;;  %v6517_v25 = vld [vmem:[#allocation10 + $0x1880] sm:$0xff] }
 0x3a5   :  { %v5805_v26 = vpop.f32.mrf.mxu1  ;;  %8099 = vmatprep.subr.bf16.mxu0 %v9741_v49  ;;  %v6521_v0 = vld [vmem:[#allocation10 + $0x18a0] sm:$0xff] }
 0x3a6   :  { %v5806_v5 = vadd.f32 %v5805_v26, %v10982_v19  ;;  %8151 = vmatpush2.bf16.msra.mxu1 %v9876_v54  ;;  %v9860_v19 = vcombine.low %v6541_v22, %v6545_v50  ;;  %v9709_v54 = vcombine.high %v6389_v58, %v6393_v9  ;;  %v6381_v50 = vld [vmem:[#allocation10 + $0x1440] sm:$0xff]  ;;  %v9837_v7 = vcombine.high %v6517_v25, %v6521_v0 }
 0x3a7   :  { %v5807_v6 = vpop.f32.mrf.mxu1  ;;  %8152 = vmatprep.subr.bf16.mxu1 %v9869_v53  ;;  %v11551_v53 = vld [vmem:[#allocation31_spill] sm:$0xff]  ;;  %v6385_v26 = vld [vmem:[#allocation10 + $0x1460] sm:$0xff] }
 0x3a8   :  { %v5808_v17 = vadd.f32 %v5807_v6, %v10984_v56  ;;  %8100 = vmatpush2.bf16.msra.mxu0 %v9740_v29  ;;  %v6525_v56 = vld [vmem:[#allocation10 + $0x18c0] sm:$0xff]  ;;  %v9708_v6 = vcombine.low %v6389_v58, %v6393_v9  ;;  %v9700_v9 = vcombine.low %v6381_v50, %v6385_v26 }
 0x3a9   :  { %v5809_v62 = vpop.f32.mrf.mxu1  ;;  %8101 = vmatprep.subr.bf16.mxu0 %v9733_v2  ;;  %v9845_v28 = vcombine.high %v6525_v56, %v6529_v3  ;;  %v9844_v22 = vcombine.low %v6525_v56, %v6529_v3  ;;  %v6377_v56 = vld [vmem:[#allocation10 + $0x1420] sm:$0xff] }
 0x3aa   :  { %v11174_v16 = vadd.f32 %v5809_v62, %v10988_v31  ;;  %8153 = vmatpush2.bf16.msra.mxu1 %v9868_v46  ;;  %v9852_v31 = vcombine.low %v6533_v20, %v6537_v45  ;;  %v9701_v62 = vcombine.high %v6381_v50, %v6385_v26 }
 0x3ab   :  { %v5811_v34 = vpop.f32.mrf.mxu1  ;;  %8154 = vmatprep.subr.bf16.mxu1 %v9861_v30  ;;  %v6509_v30 = vld [vmem:[#allocation10 + $0x1840] sm:$0xff] }
 0x3ac   :  { %8102 = vmatpush2.bf16.msra.mxu0 %v9732_v15  ;;  %v6513_v15 = vld [vmem:[#allocation10 + $0x1860] sm:$0xff] }
 0x3ad   :  { %v5815_v8 = vpop.f32.mrf.mxu1  ;;  %8103 = vmatprep.subr.bf16.mxu0 %v9725_v23  ;;  %v11552_v23 = vld [vmem:[#allocation29_spill] sm:$0xff] }
 0x3ae   :  { %v11177_v32 = vadd.f32 %v5815_v8, %v10993_v63  ;;  %8155 = vmatpush2.bf16.msra.mxu1 %v9860_v19  ;;  %v11550_v63 = vld [vmem:[#allocation28_spill] sm:$0xff] }
 0x3af   :  { %v5817_v59 = vpop.f32.mrf.mxu1  ;;  %8156 = vmatprep.subr.bf16.mxu1 %v9853_v44  ;;  %v3733_v42 = vadd.f32 %v11550_v63, %v11549_v37  ;;  %v9836_v44 = vcombine.low %v6517_v25, %v6521_v0  ;;  %v11553_v25 = vld [vmem:[#allocation27_spill] sm:$0xff]  ;;  %v11554_v0 = vld [vmem:[#allocation32_spill] sm:$0xff]  ;;  %v6589_v63 = vld [vmem:[#allocation10 + $0x1ac0] sm:$0xff] }
 0x3b0   :  { %v11180_v13 = vadd.f32 %v5817_v59, %v11548_v35  ;;  %8104 = vmatpush2.bf16.msra.mxu0 %v9724_v51  ;;  %v6373_v51 = vld [vmem:[#allocation10 + $0x1400] sm:$0xff] }
 0x3b1   :  { %v5819_v49 = vpop.f32.mrf.mxu1  ;;  %8105 = vmatprep.subr.bf16.mxu0 %v9717_v41  ;;  %v3786_v19 = vadd.f32 %v11552_v23, %v3733_v42  ;;  %v6501_v59 = vld [vmem:[#allocation10 + $0x1800] sm:$0xff] }
 0x3b2   :  { %v11185_v29 = vadd.f32 %v5819_v49, %v11551_v53  ;;  %8157 = vmatpush2.bf16.msra.mxu1 %v9852_v31  ;;  %v3743_v49 = vadd.f32 %v11554_v0, %v11553_v25  ;;  %v6593_v42 = vld [vmem:[#allocation10 + $0x1ae0] sm:$0xff] }
 0x3b3   :  { %v11187_v2 = vpop.f32.mrf.mxu1  ;;  %v5858_v46 = vpop.f32.mrf.mxu0  ;;  %8158 = vmatprep.subr.bf16.mxu1 %v9845_v28  ;;  %v5812_v41 = vadd.f32 %v5811_v34, %v3786_v19  ;;  %v6505_v28 = vld [vmem:[#allocation10 + $0x1820] sm:$0xff]  ;;  %v9828_v34 = vcombine.low %v6509_v30, %v6513_v15 }
 0x3b4   :  { %v5859_v61 = vadd.f32 %v5858_v46, %v5806_v5  ;;  %8106 = vmatpush2.bf16.msra.mxu0 %v9716_v11  ;;  %v9829_v5 = vcombine.high %v6509_v30, %v6513_v15  ;;  %v9692_v46 = vcombine.low %v6373_v51, %v6377_v56  ;;  %v9820_v19 = vcombine.low %v6501_v59, %v6505_v28  ;;  %v6573_v25 = vld [vmem:[#allocation10 + $0x1a40] sm:$0xff] }
 0x3b5   :  { %v5911_v20 = vpop.f32.mrf.mxu1  ;;  %v5860_v45 = vpop.f32.mrf.mxu0  ;;  %8107 = vmatprep.subr.bf16.mxu0 %v9709_v54  ;;  %v6577_v0 = vld [vmem:[#allocation10 + $0x1a60] sm:$0xff] }
 0x3b6   :  { %v11190_v52 = vadd.f32 %v5911_v20, %v5859_v61  ;;  %8159 = vmatpush2.bf16.msra.mxu1 %v9844_v22  ;;  %v5861_v33 = vadd.f32 %v5860_v45, %v5808_v17  ;;  %v9693_v17 = vcombine.high %v6373_v51, %v6377_v56  ;;  %v9821_v22 = vcombine.high %v6501_v59, %v6505_v28  ;;  %v6370_v61 = vld [vmem:[#allocation10 + $0x13e8] sm:$0xff] }
 0x3b7   :  { %v5913_v3 = vpop.f32.mrf.mxu1  ;;  %v5862_v8 = vpop.f32.mrf.mxu0  ;;  %8160 = vmatprep.subr.bf16.mxu1 %v9837_v7  ;;  %v6366_v7 = vld [vmem:[#allocation10 + $0x13c8] sm:$0xff]  ;;  %v9909_v45 = vcombine.high %v6589_v63, %v6593_v42 }
 0x3b8   :  { %v11192_v31 = vadd.f32 %v5913_v3, %v5861_v33  ;;  %v5863_v58 = vadd.f32 %v5862_v8, %v11174_v16  ;;  %8108 = vmatpush2.bf16.msra.mxu0 %v9708_v6  ;;  %v6581_v33 = vld [vmem:[#allocation10 + $0x1a80] sm:$0xff]  ;;  %v9687_v51 = vcombine.high %v6366_v7, %v6370_v61 }
 0x3b9   :  { %v5915_v35 = vpop.f32.mrf.mxu1  ;;  %v5864_v11 = vpop.f32.mrf.mxu0  ;;  %8109 = vmatprep.subr.bf16.mxu0 %v9701_v62  ;;  %v11557_v62 = vld [vmem:[#allocation33_spill] sm:$0xff] }
 0x3ba   :  { %v11197_v54 = vadd.f32 %v5915_v35, %v5863_v58  ;;  %8161 = vmatpush2.bf16.msra.mxu1 %v9836_v44  ;;  %v5865_v37 = vadd.f32 %v5864_v11, %v5812_v41  ;;  %v3796_v30 = vadd.f32 %v11557_v62, %v3743_v49  ;;  %v6585_v44 = vld [vmem:[#allocation10 + $0x1aa0] sm:$0xff]  ;;  %v9908_v41 = vcombine.low %v6589_v63, %v6593_v42  ;;  %v6358_v58 = vld [vmem:[#allocation10 + $0x1388] sm:$0xff]  ;;  %v11561_v49 = vld [vmem:[#allocation19_spill] sm:$0xff] }
 0x3bb   :  { %v5917_v53 = vpop.f32.mrf.mxu1  ;;  %v5868_v16 = vpop.f32.mrf.mxu0  ;;  %8162 = vmatprep.subr.bf16.mxu1 %v9829_v5  ;;  %v9901_v59 = vcombine.high %v6581_v33, %v6585_v44  ;;  %v9900_v63 = vcombine.low %v6581_v33, %v6585_v44  ;;  %v6350_v42 = vld [vmem:[#allocation10 + $0x1348] sm:$0xff] }
 0x3bc   :  { %11555 = vst [vmem:[#allocation30_spill] sm:$0xff] %v11197_v54  ;;  %v11199_v50 = vadd.f32 %v5917_v53, %v5865_v37  ;;  %v5869_v26 = vadd.f32 %v5868_v16, %v11177_v32  ;;  %8110 = vmatpush2.bf16.msra.mxu0 %v9700_v9  ;;  %v5822_v56 = vadd.f32 %v11187_v2, %v3796_v30  ;;  %v6362_v9 = vld [vmem:[#allocation10 + $0x13a8] sm:$0xff]  ;;  %v10036_v30 = vld [vmem:[#allocation3 + $0x38] sm:$0x1] }
 0x3bd   :  { %v5870_v6 = vpop.f32.mrf.mxu0  ;;  %v5921_v20 = vpop.f32.mrf.mxu1  ;;  %8111 = vmatprep.subr.bf16.mxu0 %v9693_v17  ;;  %v9686_v17 = vcombine.low %v6366_v7, %v6370_v61  ;;  %v6354_v53 = vld [vmem:[#allocation10 + $0x1368] sm:$0xff]  ;;  %v6250_v7 = vld [vmem:[#allocation3 + $0x10] sm:$0xe]  ;;  %v11565_v61 = vld [vmem:[#allocation24_spill] sm:$0xff] }
 0x3be   :  { %11556 = vst [vmem:[#allocation26_spill] sm:$0xff] %v11199_v50  ;;  %8163 = vmatpush2.bf16.msra.mxu1 %v9828_v34  ;;  %v5871_v15 = vadd.f32 %v5870_v6, %v11180_v13  ;;  %v11204_v23 = vadd.f32 %v5921_v20, %v5869_v26  ;;  %v11563_v34 = vld [vmem:[#allocation22_spill] sm:$0xff]  ;;  %v11564_v26 = vld [vmem:[#allocation20_spill] sm:$0xff]  ;;  %v9678_v6 = vcombine.low %v6358_v58, %v6362_v9  ;;  %v6565_v20 = vld [vmem:[#allocation10 + $0x1a00] sm:$0xff] }
 0x3bf   :  { %v5872_v3 = vpop.f32.mrf.mxu0  ;;  %v5923_v32 = vpop.f32.mrf.mxu1  ;;  %8164 = vmatprep.subr.bf16.mxu1 %v9821_v22  ;;  %v10035_v16 = vld [vmem:[#allocation3 + $0x24] sm:$0xf]  ;;  %v9671_v62 = vcombine.high %v6350_v42, %v6354_v53 }
 0x3c0   :  { %11558 = vst [vmem:[#allocation28_spill] sm:$0xff] %v11204_v23  ;;  %v5873_v8 = vadd.f32 %v5872_v3, %v11185_v29  ;;  %v11208_v5 = vadd.f32 %v5923_v32, %v5871_v15  ;;  %8112 = vmatpush2.bf16.msra.mxu0 %v9692_v46  ;;  %v9679_v29 = vcombine.high %v6358_v58, %v6362_v9  ;;  %v6276_v22 = vrot.slane %v10035_v16, 5  ;;  %v6342_v33 = vld [vmem:[#allocation10 + $0x1308] sm:$0xff] }
 0x3c1   :  { %v5874_v13 = vpop.f32.mrf.mxu0  ;;  %v5925_v35 = vpop.f32.mrf.mxu1  ;;  %8195 = vmatprep.subr.bf16.mxu0 %v9909_v45  ;;  %v9893_v46 = vcombine.high %v6573_v25, %v6577_v0  ;;  %v6569_v45 = vld [vmem:[#allocation10 + $0x1a20] sm:$0xff]  ;;  %v6285_v15 = vrot.slane %v10036_v30, 5  ;;  %v6346_v44 = vld [vmem:[#allocation10 + $0x1328] sm:$0xff]  ;;  %v9614_v3 = vrot.slane %v6250_v7, 9 }
 0x3c2   :  { %11559 = vst [vmem:[#allocation31_spill] sm:$0xff] %v11208_v5  ;;  %8165 = vmatpush2.bf16.msra.mxu1 %v9820_v19  ;;  %v5875_v28 = vadd.f32 %v5874_v13, %v5822_v56  ;;  %v11210_v11 = vadd.f32 %v5925_v35, %v5873_v8  ;;  %v9892_v19 = vcombine.low %v6573_v25, %v6577_v0  ;;  %v6284_v32 = vrot.slane %v6276_v22, 4  ;;  %v6494_v8 = vld [vmem:[#allocation10 + $0x17c8] sm:$0xff]  ;;  %v11566_v13 = vld [vmem:[#allocation23_spill] sm:$0xff]  ;;  %v10037_v0 = vld [vmem:[#allocation3 + $0x60] sm:$0xf] }
 0x3c3   :  { %v5927_v2 = vpop.f32.mrf.mxu1  ;;  %8114 = vmatmul.mubr.bf16.vlgmr.msra.gmra.mxu0 %v11561_v49  ;;  %8240 = vmatprep.subr.bf16.mxu1 %v9687_v51  ;;  %v9885_v51 = vcombine.high %v6565_v20, %v6569_v45  ;;  %v9670_v56 = vcombine.low %v6350_v42, %v6354_v53  ;;  %v9663_v58 = vcombine.high %v6342_v33, %v6346_v44  ;;  %v6338_v25 = vld [vmem:[#allocation10 + $0x12e8] sm:$0xff]  ;;  %v6253_v42 = vld [vmem:[#allocation3 + $0x4c] sm:$0xe] }
 0x3c4   :  { %11560 = vst [vmem:[#allocation29_spill] sm:$0xff] %v11210_v11  ;;  %v11213_v37 = vadd.f32 %v5927_v2, %v5875_v28  ;;  %8123 = vmatprep.mubr.bf16.mxu0 %v11563_v34  ;;  %8196 = vmatpush1.bf16.msra.mxu0 %v9908_v41  ;;  %v6498_v41 = vld [vmem:[#allocation10 + $0x17e8] sm:$0xff]  ;;  %v9884_v9 = vcombine.low %v6565_v20, %v6569_v45  ;;  %v6297_v2 = vrot.slane %v10037_v0, 5 }
 0x3c5   :  { %8167 = vmatmul.mubr.bf16.vlgmr.msra.gmra.mxu1 %v11564_v26  ;;  %8197 = vmatprep.subr.bf16.mxu0 %v9901_v59  ;;  %v6277_v59 = vsel %vm10384_vm9, %v9614_v3, %v6276_v22  ;;  %v6286_v28 = vsel %vm10384_vm9, %v6284_v32, %v6285_v15  ;;  %v9662_v53 = vcombine.low %v6342_v33, %v6346_v44  ;;  %v6486_v16 = vld [vmem:[#allocation10 + $0x1788] sm:$0xff]  ;;  %v9617_v15 = vrot.slane %v6253_v42, 9 }
 0x3c6   :  { %11562 = vst [vmem:[#allocation27_spill] sm:$0xff] %v11213_v37  ;;  %8176 = vmatprep.mubr.bf16.mxu1 %v11565_v61  ;;  %8241 = vmatpush1.bf16.msra.mxu1 %v9686_v17  ;;  %v6334_v17 = vld [vmem:[#allocation10 + $0x12c8] sm:$0xff]  ;;  %v11226_v22 = vcombine.low %v6277_v59, %v6286_v28  ;;  %v9814_v45 = vcombine.low %v6494_v8, %v6498_v41 }
 0x3c7   :  { %8242 = vmatprep.subr.bf16.mxu1 %v9679_v29  ;;  %v11568_v29 = vld [vmem:[#allocation25_spill] sm:$0xff]  ;;  %v9655_v7 = vcombine.high %v6334_v17, %v6338_v25  ;;  %v6330_v30 = vld [vmem:[#allocation10 + $0x12a8] sm:$0xff]  ;;  %v9654_v32 = vcombine.low %v6334_v17, %v6338_v25 }
 0x3c8   :  { %8198 = vmatpush1.bf16.msra.mxu0 %v9900_v63  ;;  %v9815_v63 = vcombine.high %v6494_v8, %v6498_v41  ;;  %v6482_v33 = vld [vmem:[#allocation10 + $0x1768] sm:$0xff]  ;;  %v6298_v8 = vsel %vm10384_vm9, %v9617_v15, %v6297_v2 }
 0x3c9   :  { %8199 = vmatprep.subr.bf16.mxu0 %v9893_v46  ;;  %v6490_v46 = vld [vmem:[#allocation10 + $0x17a8] sm:$0xff] }
 0x3ca   :  { %8243 = vmatpush1.bf16.msra.mxu1 %v9678_v6  ;;  %v10038_v6 = vld [vmem:[#allocation3 + $0x74] sm:$0x1]  ;;  %v9807_v3 = vcombine.high %v6486_v16, %v6490_v46  ;;  %v6470_v17 = vld [vmem:[#allocation10 + $0x1708] sm:$0xff] }
 0x3cb   :  { %8124 = vmatmul.mubr.bf16.gmra.mxu0 %v11566_v13  ;;  %8244 = vmatprep.subr.bf16.mxu1 %v9671_v62  ;;  %v6306_v20 = vrot.slane %v10038_v6, 5  ;;  %v6326_v62 = vld [vmem:[#allocation10 + $0x1288] sm:$0xff] }
 0x3cc   :  { %8200 = vmatpush1.bf16.msra.mxu0 %v9892_v19  ;;  %8219 = vmatprep.mubr.bf16.mxu0 %v11520_v48  ;;  %v6305_v19 = vrot.slane %v6297_v2, 4  ;;  %v9647_v44 = vcombine.high %v6326_v62, %v6330_v30  ;;  %v9646_v28 = vcombine.low %v6326_v62, %v6330_v30  ;;  %v6474_v25 = vld [vmem:[#allocation10 + $0x1728] sm:$0xff] }
 0x3cd   :  { %8177 = vmatmul.mubr.bf16.gmra.mxu1 %v11568_v29  ;;  %8201 = vmatprep.subr.bf16.mxu0 %v9885_v51  ;;  %v6478_v51 = vld [vmem:[#allocation10 + $0x1748] sm:$0xff]  ;;  %v9791_v2 = vcombine.high %v6470_v17, %v6474_v25 }
 0x3ce   :  { %8245 = vmatpush1.bf16.msra.mxu1 %v9670_v56  ;;  %8272 = vmatprep.mubr.bf16.mxu1 %v10876_v57  ;;  %v9806_v56 = vcombine.low %v6486_v16, %v6490_v46  ;;  %v6307_v41 = vsel %vm10384_vm9, %v6305_v19, %v6306_v20  ;;  %v9799_v59 = vcombine.high %v6478_v51, %v6482_v33  ;;  %v6314_v16 = vld [vmem:[#allocation10 + $0x1228] sm:$0xff] }
 0x3cf   :  { %8246 = vmatprep.subr.bf16.mxu1 %v9663_v58  ;;  %v6318_v58 = vld [vmem:[#allocation10 + $0x1248] sm:$0xff]  ;;  %v11235_v0 = vcombine.low %v6298_v8, %v6307_v41  ;;  %v9798_v42 = vcombine.low %v6478_v51, %v6482_v33  ;;  %v9790_v20 = vcombine.low %v6470_v17, %v6474_v25 }
 0x3d0   :  { %8202 = vmatpush1.bf16.msra.mxu0 %v9884_v9  ;;  %v6322_v9 = vld [vmem:[#allocation10 + $0x1268] sm:$0xff] }
 0x3d1   :  { %8293 = vmatprep.subr.bf16.mxu0 %v9815_v63  ;;  %v9639_v63 = vcombine.high %v6318_v58, %v6322_v9  ;;  %v9638_v35 = vcombine.low %v6318_v58, %v6322_v9  ;;  %v6462_v46 = vld [vmem:[#allocation10 + $0x16c8] sm:$0xff] }
 0x3d2   :  { %8247 = vmatpush1.bf16.msra.mxu1 %v9662_v53  ;;  %v6310_v53 = vld [vmem:[#allocation10 + $0x1208] sm:$0xff] }
 0x3d3   :  { %9916 = vmatmul.mubr.msk.bf16.vlgmr.msra.gmra.mxu0 %vm3473_vm5, %v11226_v22  ;;  %8248 = vmatprep.subr.bf16.mxu1 %v9655_v7  ;;  %v6466_v7 = vld [vmem:[#allocation10 + $0x16e8] sm:$0xff]  ;;  %v9631_v6 = vcombine.high %v6310_v53, %v6314_v16  ;;  %v9630_v15 = vcombine.low %v6310_v53, %v6314_v16 }
 0x3d4   :  { %8294 = vmatpush1.bf16.msra.mxu0 %v9814_v45  ;;  %8229 = vmatprep.mubr.bf16.mxu0 %v11520_v48  ;;  %v6430_v45 = vld [vmem:[#allocation10 + $0x15c8] sm:$0xff]  ;;  %v9783_v30 = vcombine.high %v6462_v46, %v6466_v7  ;;  %v9782_v51 = vcombine.low %v6462_v46, %v6466_v7 }
 0x3d5   :  { %8295 = vmatprep.subr.bf16.mxu0 %v9807_v3  ;;  %v6434_v62 = vld [vmem:[#allocation10 + $0x15e8] sm:$0xff] }
 0x3d6   :  { %8249 = vmatpush1.bf16.msra.mxu1 %v9654_v32  ;;  %v6454_v19 = vld [vmem:[#allocation10 + $0x1688] sm:$0xff]  ;;  %v9751_v32 = vcombine.high %v6430_v45, %v6434_v62  ;;  %v9750_v8 = vcombine.low %v6430_v45, %v6434_v62 }
 0x3d7   :  { %8250 = vmatprep.subr.bf16.mxu1 %v9647_v44  ;;  %v6458_v3 = vld [vmem:[#allocation10 + $0x16a8] sm:$0xff] }
 0x3d8   :  { %8296 = vmatpush1.bf16.msra.mxu0 %v9806_v56  ;;  %v6422_v33 = vld [vmem:[#allocation10 + $0x1588] sm:$0xff]  ;;  %v9775_v56 = vcombine.high %v6454_v19, %v6458_v3 }
 0x3d9   :  { %8297 = vmatprep.subr.bf16.mxu0 %v9799_v59  ;;  %v6426_v44 = vld [vmem:[#allocation10 + $0x15a8] sm:$0xff]  ;;  %v9774_v59 = vcombine.low %v6454_v19, %v6458_v3 }
 0x3da   :  { %8251 = vmatpush1.bf16.msra.mxu1 %v9646_v28  ;;  %v6446_v41 = vld [vmem:[#allocation10 + $0x1648] sm:$0xff]  ;;  %v9743_v9 = vcombine.high %v6422_v33, %v6426_v44 }
 0x3db   :  { %9917 = vmatmul.mubr.msk.bf16.gmra.mxu0 %vm3473_vm5, %v11235_v0  ;;  %8252 = vmatprep.subr.bf16.mxu1 %v9639_v63  ;;  %v6450_v58 = vld [vmem:[#allocation10 + $0x1668] sm:$0xff]  ;;  %v9742_v63 = vcombine.low %v6422_v33, %v6426_v44 }
 0x3dc   :  { %8298 = vmatpush1.bf16.msra.mxu0 %v9798_v42  ;;  %8325 = vmatprep.mubr.bf16.mxu0 %v10881_v10  ;;  %v6414_v28 = vld [vmem:[#allocation10 + $0x1548] sm:$0xff]  ;;  %v9767_v25 = vcombine.high %v6446_v41, %v6450_v58 }
 0x3dd   :  { %8299 = vmatprep.subr.bf16.mxu0 %v9791_v2  ;;  %v6418_v17 = vld [vmem:[#allocation10 + $0x1568] sm:$0xff]  ;;  %v9766_v2 = vcombine.low %v6446_v41, %v6450_v58 }
 0x3de   :  { %8253 = vmatpush1.bf16.msra.mxu1 %v9638_v35  ;;  %v6438_v42 = vld [vmem:[#allocation10 + $0x1608] sm:$0xff]  ;;  %v9735_v16 = vcombine.high %v6414_v28, %v6418_v17 }
 0x3df   :  { %8254 = vmatprep.subr.bf16.mxu1 %v9631_v6  ;;  %v6442_v53 = vld [vmem:[#allocation10 + $0x1628] sm:$0xff]  ;;  %v9734_v6 = vcombine.low %v6414_v28, %v6418_v17 }
 0x3e0   :  { %8300 = vmatpush1.bf16.msra.mxu0 %v9790_v20  ;;  %v6406_v35 = vld [vmem:[#allocation10 + $0x1508] sm:$0xff]  ;;  %v9759_v7 = vcombine.high %v6438_v42, %v6442_v53 }
 0x3e1   :  { %8301 = vmatprep.subr.bf16.mxu0 %v9783_v30  ;;  %v6410_v46 = vld [vmem:[#allocation10 + $0x1528] sm:$0xff]  ;;  %v9758_v30 = vcombine.low %v6438_v42, %v6442_v53 }
 0x3e2   :  { %8255 = vmatpush1.bf16.msra.mxu1 %v9630_v15  ;;  %v6558_v20 = vld [vmem:[#allocation10 + $0x19c8] sm:$0xff]  ;;  %v9727_v62 = vcombine.high %v6406_v35, %v6410_v46 }
 0x3e3   :  { %8256 = vmatprep.subr.bf16.mxu1 %v9751_v32  ;;  %v6562_v45 = vld [vmem:[#allocation10 + $0x19e8] sm:$0xff]  ;;  %v9726_v32 = vcombine.low %v6406_v35, %v6410_v46 }
 0x3e4   :  { %8302 = vmatpush1.bf16.msra.mxu0 %v9782_v51  ;;  %v6398_v15 = vld [vmem:[#allocation10 + $0x14c8] sm:$0xff]  ;;  %v9879_v3 = vcombine.high %v6558_v20, %v6562_v45 }
 0x3e5   :  { %8303 = vmatprep.subr.bf16.mxu0 %v9775_v56  ;;  %v6402_v19 = vld [vmem:[#allocation10 + $0x14e8] sm:$0xff]  ;;  %v9878_v56 = vcombine.low %v6558_v20, %v6562_v45  ;;  %v11571_v20 = vld [vmem:[#allocation35_spill] sm:$0xff] }
 0x3e6   :  { %8257 = vmatpush2.bf16.msra.mxu1 %v9750_v8  ;;  %v6550_v51 = vld [vmem:[#allocation10 + $0x1988] sm:$0xff]  ;;  %v9719_v44 = vcombine.high %v6398_v15, %v6402_v19 }
 0x3e7   :  { %8258 = vmatprep.subr.bf16.mxu1 %v9743_v9  ;;  %v6554_v33 = vld [vmem:[#allocation10 + $0x19a8] sm:$0xff]  ;;  %v9718_v9 = vcombine.low %v6398_v15, %v6402_v19 }
 0x3e8   :  { %8304 = vmatpush1.bf16.msra.mxu0 %v9774_v59  ;;  %v6390_v8 = vld [vmem:[#allocation10 + $0x1488] sm:$0xff]  ;;  %v9871_v58 = vcombine.high %v6550_v51, %v6554_v33  ;;  %v9870_v53 = vcombine.low %v6550_v51, %v6554_v33  ;;  %v11573_v33 = vld [vmem:[#allocation40_spill] sm:$0xff] }
 0x3e9   :  { %8305 = vmatprep.subr.bf16.mxu0 %v9767_v25  ;;  %v6394_v41 = vld [vmem:[#allocation10 + $0x14a8] sm:$0xff] }
 0x3ea   :  { %8259 = vmatpush2.bf16.msra.mxu1 %v9742_v63  ;;  %v6542_v59 = vld [vmem:[#allocation10 + $0x1948] sm:$0xff]  ;;  %v9711_v25 = vcombine.high %v6390_v8, %v6394_v41  ;;  %v11569_v63 = vld [vmem:[#allocation37_spill] sm:$0xff]  ;;  %v9710_v19 = vcombine.low %v6390_v8, %v6394_v41 }
 0x3eb   :  { %8260 = vmatprep.subr.bf16.mxu1 %v9735_v16  ;;  %v6546_v28 = vld [vmem:[#allocation10 + $0x1968] sm:$0xff] }
 0x3ec   :  { %8306 = vmatpush1.bf16.msra.mxu0 %v9766_v2  ;;  %v6382_v16 = vld [vmem:[#allocation10 + $0x1448] sm:$0xff] }
 0x3ed   :  { %8307 = vmatprep.subr.bf16.mxu0 %v9759_v7  ;;  %v6386_v2 = vld [vmem:[#allocation10 + $0x1468] sm:$0xff]  ;;  %v9863_v7 = vcombine.high %v6542_v59, %v6546_v28 }
 0x3ee   :  { %8261 = vmatpush2.bf16.msra.mxu1 %v9734_v6  ;;  %v11570_v6 = vld [vmem:[#allocation34_spill] sm:$0xff]  ;;  %v9703_v51 = vcombine.high %v6382_v16, %v6386_v2 }
 0x3ef   :  { %8262 = vmatprep.subr.bf16.mxu1 %v9727_v62  ;;  %v3892_v45 = vadd.f32 %v11571_v20, %v11570_v6  ;;  %v9862_v6 = vcombine.low %v6542_v59, %v6546_v28  ;;  %v6530_v11 = vld [vmem:[#allocation10 + $0x18e8] sm:$0xff]  ;;  %v11575_v59 = vld [vmem:[#allocation41_spill] sm:$0xff] }
 0x3f0   :  { %8308 = vmatpush1.bf16.msra.mxu0 %v9758_v30  ;;  %v11572_v30 = vld [vmem:[#allocation38_spill] sm:$0xff] }
 0x3f1   :  { %8309 = vmatprep.subr.bf16.mxu0 %v9879_v3  ;;  %v6534_v3 = vld [vmem:[#allocation10 + $0x1908] sm:$0xff] }
 0x3f2   :  { %8263 = vmatpush2.bf16.msra.mxu1 %v9726_v32  ;;  %v6538_v32 = vld [vmem:[#allocation10 + $0x1928] sm:$0xff] }
 0x3f3   :  { %v5964_v17 = vpop.f32.mrf.mxu0  ;;  %8264 = vmatprep.subr.bf16.mxu1 %v9719_v44  ;;  %v9855_v8 = vcombine.high %v6534_v3, %v6538_v32  ;;  %v6522_v5 = vld [vmem:[#allocation10 + $0x18a8] sm:$0xff] }
 0x3f4   :  { %v5965_v42 = vadd.f32 %v5964_v17, %v11569_v63  ;;  %8310 = vmatpush2.bf16.msra.mxu0 %v9878_v56  ;;  %v3945_v17 = vadd.f32 %v11573_v33, %v3892_v45  ;;  %v6590_v33 = vld [vmem:[#allocation10 + $0x1ac8] sm:$0xff] }
 0x3f5   :  { %v6017_v35 = vpop.f32.mrf.mxu1  ;;  %v5966_v46 = vpop.f32.mrf.mxu0  ;;  %8311 = vmatprep.subr.bf16.mxu0 %v9871_v58  ;;  %v11574_v58 = vld [vmem:[#allocation39_spill] sm:$0xff]  ;;  %v6514_v54 = vld [vmem:[#allocation10 + $0x1868] sm:$0xff] }
 0x3f6   :  { %v11243_v62 = vadd.f32 %v6017_v35, %v5965_v42  ;;  %8265 = vmatpush2.bf16.msra.mxu1 %v9718_v9  ;;  %v5967_v15 = vadd.f32 %v5966_v46, %v11572_v30  ;;  %v6374_v42 = vld [vmem:[#allocation10 + $0x1408] sm:$0xff] }
 0x3f7   :  { %v6019_v44 = vpop.f32.mrf.mxu1  ;;  %v5968_v56 = vpop.f32.mrf.mxu0  ;;  %8266 = vmatprep.subr.bf16.mxu1 %v9711_v25  ;;  %v6378_v35 = vld [vmem:[#allocation10 + $0x1428] sm:$0xff]  ;;  %v9702_v25 = vcombine.low %v6382_v16, %v6386_v2  ;;  %v11577_v16 = vld [vmem:[#allocation44_spill] sm:$0xff] }
 0x3f8   :  { %v11247_v63 = vadd.f32 %v6019_v44, %v5967_v15  ;;  %v5969_v37 = vadd.f32 %v5968_v56, %v11574_v58  ;;  %8312 = vmatpush2.bf16.msra.mxu0 %v9870_v53  ;;  %v6526_v30 = vld [vmem:[#allocation10 + $0x18c8] sm:$0xff]  ;;  %v9695_v44 = vcombine.high %v6374_v42, %v6378_v35  ;;  %v9854_v53 = vcombine.low %v6534_v3, %v6538_v32  ;;  %v11579_v32 = vld [vmem:[#allocation45_spill] sm:$0xff] }
 0x3f9   :  { %v6021_v9 = vpop.f32.mrf.mxu1  ;;  %v5970_v20 = vpop.f32.mrf.mxu0  ;;  %8313 = vmatprep.subr.bf16.mxu0 %v9863_v7  ;;  %v6594_v7 = vld [vmem:[#allocation10 + $0x1ae8] sm:$0xff] }
 0x3fa   :  { %v11250_v41 = vadd.f32 %v6021_v9, %v5969_v37  ;;  %8267 = vmatpush2.bf16.msra.mxu1 %v9710_v19  ;;  %v5971_v46 = vadd.f32 %v5970_v20, %v3945_v17  ;;  %v9847_v19 = vcombine.high %v6526_v30, %v6530_v11  ;;  %v11576_v17 = vld [vmem:[#allocation36_spill] sm:$0xff]  ;;  %v9911_v3 = vcombine.high %v6590_v33, %v6594_v7 }
 0x3fb   :  { %v6023_v45 = vpop.f32.mrf.mxu1  ;;  %v5974_v15 = vpop.f32.mrf.mxu0  ;;  %8268 = vmatprep.subr.bf16.mxu1 %v9703_v51  ;;  %v3902_v2 = vadd.f32 %v11577_v16, %v11576_v17  ;;  %v11578_v51 = vld [vmem:[#allocation42_spill] sm:$0xff]  ;;  %v9846_v17 = vcombine.low %v6526_v30, %v6530_v11 }
 0x3fc   :  { %v11252_v56 = vadd.f32 %v6023_v45, %v5971_v46  ;;  %v5975_v28 = vadd.f32 %v5974_v15, %v11575_v59  ;;  %8314 = vmatpush2.bf16.msra.mxu0 %v9862_v6  ;;  %v9694_v46 = vcombine.low %v6374_v42, %v6378_v35  ;;  %v6518_v45 = vld [vmem:[#allocation10 + $0x1888] sm:$0xff] }
 0x3fd   :  { %v6027_v58 = vpop.f32.mrf.mxu1  ;;  %v5976_v37 = vpop.f32.mrf.mxu0  ;;  %8315 = vmatprep.subr.bf16.mxu0 %v9855_v8  ;;  %v3955_v59 = vadd.f32 %v11579_v32, %v3902_v2  ;;  %v11580_v8 = vld [vmem:[#allocation43_spill] sm:$0xff]  ;;  %v9839_v42 = vcombine.high %v6518_v45, %v6522_v5  ;;  %v9838_v30 = vcombine.low %v6518_v45, %v6522_v5  ;;  %v6506_v32 = vld [vmem:[#allocation10 + $0x1828] sm:$0xff] }
 0x3fe   :  { %v11257_v9 = vadd.f32 %v6027_v58, %v5975_v28  ;;  %8269 = vmatpush2.bf16.msra.mxu1 %v9702_v25  ;;  %v5977_v20 = vadd.f32 %v5976_v37, %v11578_v51  ;;  %v6582_v28 = vld [vmem:[#allocation10 + $0x1a88] sm:$0xff] }
 0x3ff   :  { %v6029_v15 = vpop.f32.mrf.mxu1  ;;  %v5978_v6 = vpop.f32.mrf.mxu0  ;;  %8270 = vmatprep.subr.bf16.mxu1 %v9695_v44  ;;  %v6586_v58 = vld [vmem:[#allocation10 + $0x1aa8] sm:$0xff]  ;;  %v9910_v44 = vcombine.low %v6590_v33, %v6594_v7 }
 0x400   :  { %v11261_v23 = vadd.f32 %v6029_v15, %v5977_v20  ;;  %v5979_v50 = vadd.f32 %v5978_v6, %v11580_v8  ;;  %8316 = vmatpush2.bf16.msra.mxu0 %v9854_v53  ;;  %v6510_v51 = vld [vmem:[#allocation10 + $0x1848] sm:$0xff]  ;;  %v9903_v15 = vcombine.high %v6582_v28, %v6586_v58  ;;  %v9902_v7 = vcombine.low %v6582_v28, %v6586_v58  ;;  %v6367_v58 = vld [vmem:[#allocation10 + $0x13d0] sm:$0xff] }
 0x401   :  { %v6031_v25 = vpop.f32.mrf.mxu1  ;;  %v5980_v16 = vpop.f32.mrf.mxu0  ;;  %8317 = vmatprep.subr.bf16.mxu0 %v9847_v19  ;;  %v6574_v53 = vld [vmem:[#allocation10 + $0x1a48] sm:$0xff]  ;;  %v9830_v45 = vcombine.low %v6510_v51, %v6514_v54 }
 0x402   :  { %v11264_v35 = vadd.f32 %v6031_v25, %v5979_v50  ;;  %8271 = vmatpush2.bf16.msra.mxu1 %v9694_v46  ;;  %v5981_v37 = vadd.f32 %v5980_v16, %v3955_v59  ;;  %v6578_v19 = vld [vmem:[#allocation10 + $0x1a68] sm:$0xff]  ;;  %v9831_v46 = vcombine.high %v6510_v51, %v6514_v54  ;;  %v6495_v51 = vld [vmem:[#allocation10 + $0x17d0] sm:$0xff] }
 0x403   :  { %v6033_v2 = vpop.f32.mrf.mxu1  ;;  %v6070_v20 = vpop.f32.mrf.mxu0  ;;  %8354 = vmatprep.subr.bf16.mxu1 %v9911_v3  ;;  %v6502_v3 = vld [vmem:[#allocation10 + $0x1808] sm:$0xff]  ;;  %v9895_v59 = vcombine.high %v6574_v53, %v6578_v19  ;;  %v9894_v28 = vcombine.low %v6574_v53, %v6578_v19  ;;  %v6359_v53 = vld [vmem:[#allocation10 + $0x1390] sm:$0xff] }
 0x404   :  { %v6034_v6 = vadd.f32 %v6033_v2, %v5981_v37  ;;  %v11267_v11 = vadd.f32 %v6070_v20, %v11243_v62  ;;  %8318 = vmatpush2.bf16.msra.mxu0 %v9846_v17  ;;  %v6566_v8 = vld [vmem:[#allocation10 + $0x1a08] sm:$0xff]  ;;  %v9823_v16 = vcombine.high %v6502_v3, %v6506_v32  ;;  %v9822_v54 = vcombine.low %v6502_v3, %v6506_v32  ;;  %v6499_v2 = vld [vmem:[#allocation10 + $0x17f0] sm:$0xff] }
 0x405   :  { %8273 = vmatmul.mubr.bf16.vlgmr.msra.gmra.mxu1 %v11561_v49  ;;  %v6072_v50 = vpop.f32.mrf.mxu0  ;;  %8319 = vmatprep.subr.bf16.mxu0 %v9839_v42  ;;  %v6570_v17 = vld [vmem:[#allocation10 + $0x1a28] sm:$0xff]  ;;  %v6371_v42 = vld [vmem:[#allocation10 + $0x13f0] sm:$0xff] }
 0x406   :  { %8282 = vmatprep.mubr.bf16.mxu1 %v11563_v34  ;;  %8355 = vmatpush1.bf16.msra.mxu1 %v9910_v44  ;;  %v11272_v33 = vadd.f32 %v6072_v50, %v11247_v63  ;;  %v9887_v44 = vcombine.high %v6566_v8, %v6570_v17  ;;  %v6363_v19 = vld [vmem:[#allocation10 + $0x13b0] sm:$0xff]  ;;  %v9817_v50 = vcombine.high %v6495_v51, %v6499_v2 }
 0x407   :  { %v6074_v62 = vpop.f32.mrf.mxu0  ;;  %8356 = vmatprep.subr.bf16.mxu1 %v9903_v15  ;;  %v9689_v15 = vcombine.high %v6367_v58, %v6371_v42  ;;  %v6487_v3 = vld [vmem:[#allocation10 + $0x1790] sm:$0xff] }
 0x408   :  { %v11275_v5 = vadd.f32 %v6074_v62, %v11250_v41  ;;  %8320 = vmatpush2.bf16.msra.mxu0 %v9838_v30  ;;  %v9886_v30 = vcombine.low %v6566_v8, %v6570_v17  ;;  %v6491_v32 = vld [vmem:[#allocation10 + $0x17b0] sm:$0xff] }
 0x409   :  { %v6076_v25 = vpop.f32.mrf.mxu0  ;;  %8321 = vmatprep.subr.bf16.mxu0 %v9831_v46  ;;  %v6351_v8 = vld [vmem:[#allocation10 + $0x1350] sm:$0xff] }
 0x40a   :  { %8357 = vmatpush1.bf16.msra.mxu1 %v9902_v7  ;;  %v11278_v63 = vadd.f32 %v6076_v25, %v11252_v56  ;;  %v9688_v7 = vcombine.low %v6367_v58, %v6371_v42  ;;  %v6355_v17 = vld [vmem:[#allocation10 + $0x1370] sm:$0xff]  ;;  %v9809_v25 = vcombine.high %v6487_v3, %v6491_v32 }
 0x40b   :  { %v6080_v37 = vpop.f32.mrf.mxu0  ;;  %8358 = vmatprep.subr.bf16.mxu1 %v9895_v59  ;;  %v9681_v59 = vcombine.high %v6359_v53, %v6363_v19  ;;  %v9673_v58 = vcombine.high %v6351_v8, %v6355_v17  ;;  %v6343_v42 = vld [vmem:[#allocation10 + $0x1310] sm:$0xff] }
 0x40c   :  { %v11281_v41 = vadd.f32 %v6080_v37, %v11257_v9  ;;  %8322 = vmatpush2.bf16.msra.mxu0 %v9830_v45  ;;  %v9816_v45 = vcombine.low %v6495_v51, %v6499_v2  ;;  %v6347_v37 = vld [vmem:[#allocation10 + $0x1330] sm:$0xff] }
 0x40d   :  { %8283 = vmatmul.mubr.bf16.gmra.mxu1 %v11566_v13  ;;  %v6082_v20 = vpop.f32.mrf.mxu0  ;;  %8323 = vmatprep.subr.bf16.mxu0 %v9823_v16  ;;  %v6479_v16 = vld [vmem:[#allocation10 + $0x1750] sm:$0xff] }
 0x40e   :  { %8359 = vmatpush1.bf16.msra.mxu1 %v9894_v28  ;;  %v11285_v56 = vadd.f32 %v6082_v20, %v11261_v23  ;;  %8378 = vmatprep.mubr.bf16.mxu1 %v11520_v48  ;;  %v6483_v28 = vld [vmem:[#allocation10 + $0x1770] sm:$0xff]  ;;  %v9665_v20 = vcombine.high %v6343_v42, %v6347_v37 }
 0x40f   :  { %v6084_v9 = vpop.f32.mrf.mxu0  ;;  %8360 = vmatprep.subr.bf16.mxu1 %v9887_v44  ;;  %v9801_v44 = vcombine.high %v6479_v16, %v6483_v28  ;;  %v6471_v51 = vld [vmem:[#allocation10 + $0x1710] sm:$0xff] }
 0x410   :  { %v11289_v46 = vadd.f32 %v6084_v9, %v11264_v35  ;;  %8324 = vmatpush2.bf16.msra.mxu0 %v9822_v54  ;;  %v9680_v35 = vcombine.low %v6359_v53, %v6363_v19  ;;  %v9672_v54 = vcombine.low %v6351_v8, %v6355_v17  ;;  %v6475_v2 = vld [vmem:[#allocation10 + $0x1730] sm:$0xff]  ;;  %v9664_v9 = vcombine.low %v6343_v42, %v6347_v37 }
 0x411   :  { %v6086_v62 = vpop.f32.mrf.mxu0  ;;  %8399 = vmatprep.subr.bf16.mxu0 %v9689_v15  ;;  %v9800_v15 = vcombine.low %v6479_v16, %v6483_v28  ;;  %v6339_v53 = vld [vmem:[#allocation10 + $0x12f0] sm:$0xff]  ;;  %v9793_v19 = vcombine.high %v6471_v51, %v6475_v2 }
 0x412   :  { %11581 = vst [vmem:[#allocation32_spill] sm:$0xff] %v11289_v46  ;;  %8361 = vmatpush1.bf16.msra.mxu1 %v9886_v30  ;;  %v11291_v23 = vadd.f32 %v6086_v62, %v6034_v6  ;;  %v9808_v6 = vcombine.low %v6487_v3, %v6491_v32  ;;  %v6335_v30 = vld [vmem:[#allocation10 + $0x12d0] sm:$0xff]  ;;  %v9792_v32 = vcombine.low %v6471_v51, %v6475_v2  ;;  %v6580_v46 = vld [vmem:[#allocation10 + $0x1a78] sm:$0xff] }
 0x413   :  { %8326 = vmatmul.mubr.bf16.vlgmr.msra.gmra.mxu0 %v11564_v26  ;;  %8452 = vmatprep.subr.bf16.mxu1 %v9817_v50  ;;  %v6463_v50 = vld [vmem:[#allocation10 + $0x16d0] sm:$0xff]  ;;  %v9657_v3 = vcombine.high %v6335_v30, %v6339_v53  ;;  %v9656_v8 = vcombine.low %v6335_v30, %v6339_v53 }
 0x414   :  { %11582 = vst [vmem:[#allocation33_spill] sm:$0xff] %v11291_v23  ;;  %8335 = vmatprep.mubr.bf16.mxu0 %v11565_v61  ;;  %8400 = vmatpush1.bf16.msra.mxu0 %v9688_v7  ;;  %v6467_v7 = vld [vmem:[#allocation10 + $0x16f0] sm:$0xff] }
 0x415   :  { %9918 = vmatmul.mubr.msk.bf16.vlgmr.msra.gmra.mxu1 %vm3473_vm5, %v11226_v22  ;;  %8401 = vmatprep.subr.bf16.mxu0 %v9681_v59  ;;  %v6327_v62 = vld [vmem:[#allocation10 + $0x1290] sm:$0xff]  ;;  %v9784_v16 = vcombine.low %v6463_v50, %v6467_v7 }
 0x416   :  { %8453 = vmatpush1.bf16.msra.mxu1 %v9816_v45  ;;  %8388 = vmatprep.mubr.bf16.mxu1 %v11520_v48  ;;  %v6331_v59 = vld [vmem:[#allocation10 + $0x12b0] sm:$0xff]  ;;  %v9785_v45 = vcombine.high %v6463_v50, %v6467_v7 }
 0x417   :  { %8454 = vmatprep.subr.bf16.mxu1 %v9809_v25  ;;  %v6455_v17 = vld [vmem:[#allocation10 + $0x1690] sm:$0xff]  ;;  %v9648_v42 = vcombine.low %v6327_v62, %v6331_v59 }
 0x418   :  { %8402 = vmatpush1.bf16.msra.mxu0 %v9680_v35  ;;  %v6459_v25 = vld [vmem:[#allocation10 + $0x16b0] sm:$0xff]  ;;  %v9649_v35 = vcombine.high %v6327_v62, %v6331_v59 }
 0x419   :  { %8403 = vmatprep.subr.bf16.mxu0 %v9673_v58  ;;  %v6319_v28 = vld [vmem:[#allocation10 + $0x1250] sm:$0xff]  ;;  %v9776_v51 = vcombine.low %v6455_v17, %v6459_v25 }
 0x41a   :  { %8455 = vmatpush1.bf16.msra.mxu1 %v9808_v6  ;;  %v6323_v58 = vld [vmem:[#allocation10 + $0x1270] sm:$0xff]  ;;  %v9777_v6 = vcombine.high %v6455_v17, %v6459_v25 }
 0x41b   :  { %8336 = vmatmul.mubr.bf16.gmra.mxu0 %v11568_v29  ;;  %8456 = vmatprep.subr.bf16.mxu1 %v9801_v44  ;;  %v6447_v37 = vld [vmem:[#allocation10 + $0x1650] sm:$0xff]  ;;  %v9640_v30 = vcombine.low %v6319_v28, %v6323_v58 }
 0x41c   :  { %8404 = vmatpush1.bf16.msra.mxu0 %v9672_v54  ;;  %8431 = vmatprep.mubr.bf16.mxu0 %v10876_v57  ;;  %v6451_v44 = vld [vmem:[#allocation10 + $0x1670] sm:$0xff]  ;;  %v9641_v54 = vcombine.high %v6319_v28, %v6323_v58 }
 0x41d   :  { %9919 = vmatmul.mubr.msk.bf16.gmra.mxu1 %vm3473_vm5, %v11235_v0  ;;  %8405 = vmatprep.subr.bf16.mxu0 %v9665_v20  ;;  %v6311_v2 = vld [vmem:[#allocation10 + $0x1210] sm:$0xff]  ;;  %v9768_v50 = vcombine.low %v6447_v37, %v6451_v44 }
 0x41e   :  { %8457 = vmatpush1.bf16.msra.mxu1 %v9800_v15  ;;  %8484 = vmatprep.mubr.bf16.mxu1 %v10881_v10  ;;  %v6315_v20 = vld [vmem:[#allocation10 + $0x1230] sm:$0xff]  ;;  %v9769_v15 = vcombine.high %v6447_v37, %v6451_v44 }
 0x41f   :  { %8458 = vmatprep.subr.bf16.mxu1 %v9793_v19  ;;  %v6439_v53 = vld [vmem:[#allocation10 + $0x1610] sm:$0xff]  ;;  %v9632_v62 = vcombine.low %v6311_v2, %v6315_v20 }
 0x420   :  { %8406 = vmatpush1.bf16.msra.mxu0 %v9664_v9  ;;  %v6443_v19 = vld [vmem:[#allocation10 + $0x1630] sm:$0xff]  ;;  %v9633_v9 = vcombine.high %v6311_v2, %v6315_v20 }
 0x421   :  { %8407 = vmatprep.subr.bf16.mxu0 %v9657_v3  ;;  %v6431_v7 = vld [vmem:[#allocation10 + $0x15d0] sm:$0xff]  ;;  %v9760_v17 = vcombine.low %v6439_v53, %v6443_v19 }
 0x422   :  { %8459 = vmatpush1.bf16.msra.mxu1 %v9792_v32  ;;  %v6435_v3 = vld [vmem:[#allocation10 + $0x15f0] sm:$0xff]  ;;  %v9761_v32 = vcombine.high %v6439_v53, %v6443_v19 }
 0x423   :  { %8460 = vmatprep.subr.bf16.mxu1 %v9785_v45  ;;  %v6559_v59 = vld [vmem:[#allocation10 + $0x19d0] sm:$0xff]  ;;  %v9752_v28 = vcombine.low %v6431_v7, %v6435_v3 }
 0x424   :  { %8408 = vmatpush1.bf16.msra.mxu0 %v9656_v8  ;;  %v6563_v45 = vld [vmem:[#allocation10 + $0x19f0] sm:$0xff]  ;;  %v9753_v8 = vcombine.high %v6431_v7, %v6435_v3 }
 0x425   :  { %8409 = vmatprep.subr.bf16.mxu0 %v9649_v35  ;;  %v6423_v25 = vld [vmem:[#allocation10 + $0x1590] sm:$0xff]  ;;  %v9880_v37 = vcombine.low %v6559_v59, %v6563_v45 }
 0x426   :  { %8461 = vmatpush1.bf16.msra.mxu1 %v9784_v16  ;;  %v6427_v35 = vld [vmem:[#allocation10 + $0x15b0] sm:$0xff]  ;;  %v9881_v16 = vcombine.high %v6559_v59, %v6563_v45 }
 0x427   :  { %8462 = vmatprep.subr.bf16.mxu1 %v9777_v6  ;;  %v6551_v58 = vld [vmem:[#allocation10 + $0x1990] sm:$0xff]  ;;  %v9744_v2 = vcombine.low %v6423_v25, %v6427_v35 }
 0x428   :  { %8410 = vmatpush1.bf16.msra.mxu0 %v9648_v42  ;;  %v6555_v6 = vld [vmem:[#allocation10 + $0x19b0] sm:$0xff]  ;;  %v9745_v42 = vcombine.high %v6423_v25, %v6427_v35 }
 0x429   :  { %8411 = vmatprep.subr.bf16.mxu0 %v9641_v54  ;;  %v6415_v44 = vld [vmem:[#allocation10 + $0x1550] sm:$0xff] }
 0x42a   :  { %8463 = vmatpush1.bf16.msra.mxu1 %v9776_v51  ;;  %v6419_v54 = vld [vmem:[#allocation10 + $0x1570] sm:$0xff]  ;;  %v9873_v51 = vcombine.high %v6551_v58, %v6555_v6 }
 0x42b   :  { %8464 = vmatprep.subr.bf16.mxu1 %v9769_v15  ;;  %v6543_v20 = vld [vmem:[#allocation10 + $0x1950] sm:$0xff]  ;;  %v9737_v53 = vcombine.high %v6415_v44, %v6419_v54  ;;  %v9736_v59 = vcombine.low %v6415_v44, %v6419_v54 }
 0x42c   :  { %8412 = vmatpush1.bf16.msra.mxu0 %v9640_v30  ;;  %v6547_v15 = vld [vmem:[#allocation10 + $0x1970] sm:$0xff] }
 0x42d   :  { %8413 = vmatprep.subr.bf16.mxu0 %v9633_v9  ;;  %v9872_v9 = vcombine.low %v6551_v58, %v6555_v6  ;;  %v6411_v7 = vld [vmem:[#allocation10 + $0x1530] sm:$0xff] }
 0x42e   :  { %8465 = vmatpush1.bf16.msra.mxu1 %v9768_v50  ;;  %v6407_v50 = vld [vmem:[#allocation10 + $0x1510] sm:$0xff] }
 0x42f   :  { %8466 = vmatprep.subr.bf16.mxu1 %v9761_v32  ;;  %v9865_v32 = vcombine.high %v6543_v20, %v6547_v15  ;;  %v6535_v45 = vld [vmem:[#allocation10 + $0x1910] sm:$0xff]  ;;  %v9729_v25 = vcombine.high %v6407_v50, %v6411_v7 }
 0x430   :  { %8414 = vmatpush1.bf16.msra.mxu0 %v9632_v62  ;;  %v6531_v44 = vld [vmem:[#allocation10 + $0x18f0] sm:$0xff] }
 0x431   :  { %8415 = vmatprep.subr.bf16.mxu0 %v9753_v8  ;;  %v6539_v8 = vld [vmem:[#allocation10 + $0x1930] sm:$0xff] }
 0x432   :  { %8467 = vmatpush1.bf16.msra.mxu1 %v9760_v17  ;;  %v9857_v6 = vcombine.high %v6535_v45, %v6539_v8 }
 0x433   :  { %8468 = vmatprep.subr.bf16.mxu1 %v9881_v16  ;;  %v6399_v16 = vld [vmem:[#allocation10 + $0x14d0] sm:$0xff] }
 0x434   :  { %8416 = vmatpush2.bf16.msra.mxu0 %v9752_v28  ;;  %v6403_v28 = vld [vmem:[#allocation10 + $0x14f0] sm:$0xff] }
 0x435   :  { %v6123_v30 = vpop.f32.mrf.mxu1  ;;  %8417 = vmatprep.subr.bf16.mxu0 %v9745_v42 }
 0x436   :  { %v6124_v19 = vadd.f32 %v6123_v30, %v11073_v40  ;;  %8469 = vmatpush2.bf16.msra.mxu1 %v9880_v37  ;;  %v9864_v40 = vcombine.low %v6543_v20, %v6547_v15  ;;  %v6527_v37 = vld [vmem:[#allocation10 + $0x18d0] sm:$0xff] }
 0x437   :  { %v6125_v3 = vpop.f32.mrf.mxu1  ;;  %8470 = vmatprep.subr.bf16.mxu1 %v9873_v51  ;;  %v9721_v51 = vcombine.high %v6399_v16, %v6403_v28  ;;  %v6391_v20 = vld [vmem:[#allocation10 + $0x1490] sm:$0xff] }
 0x438   :  { %v6126_v62 = vadd.f32 %v6125_v3, %v11075_v60  ;;  %8418 = vmatpush2.bf16.msra.mxu0 %v9744_v2  ;;  %v9728_v60 = vcombine.low %v6407_v50, %v6411_v7  ;;  %v6395_v15 = vld [vmem:[#allocation10 + $0x14b0] sm:$0xff] }
 0x439   :  { %v6127_v17 = vpop.f32.mrf.mxu1  ;;  %8419 = vmatprep.subr.bf16.mxu0 %v9737_v53  ;;  %v9849_v53 = vcombine.high %v6527_v37, %v6531_v44  ;;  %v6519_v50 = vld [vmem:[#allocation10 + $0x1890] sm:$0xff] }
 0x43a   :  { %v6128_v35 = vadd.f32 %v6127_v17, %v11077_v14  ;;  %8471 = vmatpush2.bf16.msra.mxu1 %v9872_v9  ;;  %v9856_v14 = vcombine.low %v6535_v45, %v6539_v8  ;;  %v9720_v9 = vcombine.low %v6399_v16, %v6403_v28  ;;  %v6523_v7 = vld [vmem:[#allocation10 + $0x18b0] sm:$0xff]  ;;  %v9712_v28 = vcombine.low %v6391_v20, %v6395_v15 }
 0x43b   :  { %v6129_v58 = vpop.f32.mrf.mxu1  ;;  %8472 = vmatprep.subr.bf16.mxu1 %v9865_v32  ;;  %v9713_v32 = vcombine.high %v6391_v20, %v6395_v15  ;;  %v6383_v45 = vld [vmem:[#allocation10 + $0x1450] sm:$0xff] }
 0x43c   :  { %v11307_v42 = vadd.f32 %v6129_v58, %v11080_v24  ;;  %8420 = vmatpush2.bf16.msra.mxu0 %v9736_v59  ;;  %v9848_v59 = vcombine.low %v6527_v37, %v6531_v44  ;;  %v6387_v8 = vld [vmem:[#allocation10 + $0x1470] sm:$0xff]  ;;  %v9840_v44 = vcombine.low %v6519_v50, %v6523_v7 }
 0x43d   :  { %v6133_v54 = vpop.f32.mrf.mxu1  ;;  %8421 = vmatprep.subr.bf16.mxu0 %v9729_v25  ;;  %v6511_v58 = vld [vmem:[#allocation10 + $0x1850] sm:$0xff]  ;;  %v9704_v15 = vcombine.low %v6383_v45, %v6387_v8 }
 0x43e   :  { %v11310_v2 = vadd.f32 %v6133_v54, %v11084_v1  ;;  %8473 = vmatpush2.bf16.msra.mxu1 %v9864_v40  ;;  %v9841_v40 = vcombine.high %v6519_v50, %v6523_v7  ;;  %v6591_v7 = vld [vmem:[#allocation10 + $0x1ad0] sm:$0xff] }
 0x43f   :  { %v6135_v30 = vpop.f32.mrf.mxu1  ;;  %8474 = vmatprep.subr.bf16.mxu1 %v9857_v6  ;;  %v6515_v6 = vld [vmem:[#allocation10 + $0x1870] sm:$0xff] }
 0x440   :  { %v11313_v24 = vadd.f32 %v6135_v30, %v11087_v43  ;;  %8422 = vmatpush2.bf16.msra.mxu0 %v9728_v60  ;;  %v6379_v30 = vld [vmem:[#allocation10 + $0x1430] sm:$0xff]  ;;  %v9832_v50 = vcombine.low %v6511_v58, %v6515_v6 }
 0x441   :  { %v6137_v3 = vpop.f32.mrf.mxu1  ;;  %8423 = vmatprep.subr.bf16.mxu0 %v9721_v51 }
 0x442   :  { %v11316_v1 = vadd.f32 %v6137_v3, %v11090_v38  ;;  %8475 = vmatpush2.bf16.msra.mxu1 %v9856_v14  ;;  %v9705_v38 = vcombine.high %v6383_v45, %v6387_v8  ;;  %v6375_v14 = vld [vmem:[#allocation10 + $0x1410] sm:$0xff] }
 0x443   :  { %v6139_v17 = vpop.f32.mrf.mxu1  ;;  %v6176_v25 = vpop.f32.mrf.mxu0  ;;  %8476 = vmatprep.subr.bf16.mxu1 %v9849_v53  ;;  %v9696_v8 = vcombine.low %v6375_v14, %v6379_v30 }
 0x444   :  { %v11319_v43 = vadd.f32 %v6139_v17, %v11093_v4  ;;  %v6177_v16 = vadd.f32 %v6176_v25, %v6124_v19  ;;  %8424 = vmatpush2.bf16.msra.mxu0 %v9720_v9  ;;  %v9833_v4 = vcombine.high %v6511_v58, %v6515_v6  ;;  %v6503_v9 = vld [vmem:[#allocation10 + $0x1810] sm:$0xff] }
 0x445   :  { %v6229_v60 = vpop.f32.mrf.mxu1  ;;  %v6178_v54 = vpop.f32.mrf.mxu0  ;;  %8425 = vmatprep.subr.bf16.mxu0 %v9713_v32  ;;  %v6507_v17 = vld [vmem:[#allocation10 + $0x1830] sm:$0xff] }
 0x446   :  { %v11321_v51 = vadd.f32 %v6229_v60, %v6177_v16  ;;  %8477 = vmatpush2.bf16.msra.mxu1 %v9848_v59  ;;  %v6179_v37 = vadd.f32 %v6178_v54, %v6126_v62  ;;  %v9697_v16 = vcombine.high %v6375_v14, %v6379_v30  ;;  %v9824_v6 = vcombine.low %v6503_v9, %v6507_v17 }
 0x447   :  { %v6231_v53 = vpop.f32.mrf.mxu1  ;;  %v6180_v3 = vpop.f32.mrf.mxu0  ;;  %8478 = vmatprep.subr.bf16.mxu1 %v9841_v40  ;;  %v6595_v40 = vld [vmem:[#allocation10 + $0x1af0] sm:$0xff] }
 0x448   :  { %11583 = vst [vmem:[#allocation19_spill] sm:$0xff] %v11321_v51  ;;  %v11323_v19 = vadd.f32 %v6231_v53, %v6179_v37  ;;  %v6181_v20 = vadd.f32 %v6180_v3, %v6128_v35  ;;  %8426 = vmatpush2.bf16.msra.mxu0 %v9712_v28  ;;  %v9825_v35 = vcombine.high %v6503_v9, %v6507_v17  ;;  %v6372_v37 = vld [vmem:[#allocation10 + $0x13f8] sm:$0xff] }
 0x449   :  { %v6233_v32 = vpop.f32.mrf.mxu1  ;;  %v6182_v25 = vpop.f32.mrf.mxu0  ;;  %8427 = vmatprep.subr.bf16.mxu0 %v9705_v38  ;;  %v6368_v38 = vld [vmem:[#allocation10 + $0x13d8] sm:$0xff] }
 0x44a   :  { %11584 = vst [vmem:[#allocation22_spill] sm:$0xff] %v11323_v19  ;;  %v11325_v59 = vadd.f32 %v6233_v32, %v6181_v20  ;;  %8479 = vmatpush2.bf16.msra.mxu1 %v9840_v44  ;;  %v6183_v62 = vadd.f32 %v6182_v25, %v11307_v42  ;;  %v9913_v44 = vcombine.high %v6591_v7, %v6595_v40  ;;  %v6587_v20 = vld [vmem:[#allocation10 + $0x1ab0] sm:$0xff] }
 0x44b   :  { %v6235_v60 = vpop.f32.mrf.mxu1  ;;  %v6186_v54 = vpop.f32.mrf.mxu0  ;;  %8480 = vmatprep.subr.bf16.mxu1 %v9833_v4  ;;  %v6583_v4 = vld [vmem:[#allocation10 + $0x1a90] sm:$0xff] }
 0x44c   :  { %11585 = vst [vmem:[#allocation20_spill] sm:$0xff] %v11325_v59  ;;  %v11328_v28 = vadd.f32 %v6235_v60, %v6183_v62  ;;  %v6187_v45 = vadd.f32 %v6186_v54, %v11310_v2  ;;  %8428 = vmatpush2.bf16.msra.mxu0 %v9704_v15  ;;  %v9691_v2 = vcombine.high %v6368_v38, %v6372_v37  ;;  %v6364_v62 = vld [vmem:[#allocation10 + $0x13b8] sm:$0xff] }
 0x44d   :  { %v6188_v53 = vpop.f32.mrf.mxu0  ;;  %v6239_v3 = vpop.f32.mrf.mxu1  ;;  %8429 = vmatprep.subr.bf16.mxu0 %v9697_v16  ;;  %v9912_v15 = vcombine.low %v6591_v7, %v6595_v40  ;;  %v6360_v16 = vld [vmem:[#allocation10 + $0x1398] sm:$0xff]  ;;  %v9690_v54 = vcombine.low %v6368_v38, %v6372_v37  ;;  %v9904_v40 = vcombine.low %v6583_v4, %v6587_v20  ;;  %v6567_v37 = vld [vmem:[#allocation10 + $0x1a10] sm:$0xff] }
 0x44e   :  { %11586 = vst [vmem:[#allocation24_spill] sm:$0xff] %v11328_v28  ;;  %8481 = vmatpush2.bf16.msra.mxu1 %v9832_v50  ;;  %v6189_v42 = vadd.f32 %v6188_v53, %v11313_v24  ;;  %v11332_v58 = vadd.f32 %v6239_v3, %v6187_v45  ;;  %v9905_v24 = vcombine.high %v6583_v4, %v6587_v20  ;;  %v6579_v45 = vld [vmem:[#allocation10 + $0x1a70] sm:$0xff]  ;;  %v6356_v3 = vld [vmem:[#allocation10 + $0x1378] sm:$0xff] }
 0x44f   :  { %v6190_v32 = vpop.f32.mrf.mxu0  ;;  %v6241_v25 = vpop.f32.mrf.mxu1  ;;  %8482 = vmatprep.subr.bf16.mxu1 %v9825_v35  ;;  %v6575_v35 = vld [vmem:[#allocation10 + $0x1a50] sm:$0xff]  ;;  %v9682_v38 = vcombine.low %v6360_v16, %v6364_v62 }
 0x450   :  { %11587 = vst [vmem:[#allocation23_spill] sm:$0xff] %v11332_v58  ;;  %v6191_v14 = vadd.f32 %v6190_v32, %v11316_v1  ;;  %v11335_v30 = vadd.f32 %v6241_v25, %v6189_v42  ;;  %8430 = vmatpush2.bf16.msra.mxu0 %v9696_v8  ;;  %v9683_v1 = vcombine.high %v6360_v16, %v6364_v62  ;;  %v6352_v8 = vld [vmem:[#allocation10 + $0x1358] sm:$0xff] }
 0x451   :  { %v6192_v50 = vpop.f32.mrf.mxu0  ;;  %v6243_v60 = vpop.f32.mrf.mxu1  ;;  %8513 = vmatprep.subr.bf16.mxu0 %v9913_v44  ;;  %v6571_v44 = vld [vmem:[#allocation10 + $0x1a30] sm:$0xff]  ;;  %v9675_v42 = vcombine.high %v6352_v8, %v6356_v3  ;;  %v6344_v32 = vld [vmem:[#allocation10 + $0x1318] sm:$0xff]  ;;  %v9674_v20 = vcombine.low %v6352_v8, %v6356_v3 }
 0x452   :  { %11588 = vst [vmem:[#allocation18_spill] sm:$0xff] %v11335_v30  ;;  %8483 = vmatpush2.bf16.msra.mxu1 %v9824_v6  ;;  %v6193_v9 = vadd.f32 %v6192_v50, %v11319_v43  ;;  %v11338_v17 = vadd.f32 %v6243_v60, %v6191_v14  ;;  %v9897_v43 = vcombine.high %v6575_v35, %v6579_v45  ;;  %v6348_v25 = vld [vmem:[#allocation10 + $0x1338] sm:$0xff] }
 0x453   :  { %v6245_v53 = vpop.f32.mrf.mxu1  ;;  %8432 = vmatmul.mubr.bf16.vlgmr.msra.gmra.mxu0 %v11561_v49  ;;  %8558 = vmatprep.subr.bf16.mxu1 %v9691_v2  ;;  %v9896_v6 = vcombine.low %v6575_v35, %v6579_v45  ;;  %v9889_v4 = vcombine.high %v6567_v37, %v6571_v44  ;;  %v6496_v2 = vld [vmem:[#allocation10 + $0x17d8] sm:$0xff]  ;;  %v9888_v16 = vcombine.low %v6567_v37, %v6571_v44 }
 0x454   :  { %11589 = vst [vmem:[#allocation25_spill] sm:$0xff] %v11338_v17  ;;  %v11341_v7 = vadd.f32 %v6245_v53, %v6193_v9  ;;  %8441 = vmatprep.mubr.bf16.mxu0 %v11563_v34  ;;  %8514 = vmatpush1.bf16.msra.mxu0 %v9912_v15  ;;  %v6500_v14 = vld [vmem:[#allocation10 + $0x17f8] sm:$0xff]  ;;  %v9667_v15 = vcombine.high %v6344_v32, %v6348_v25 }
 0x455   :  { %8485 = vmatmul.mubr.bf16.vlgmr.msra.gmra.mxu1 %v11564_v26  ;;  %8515 = vmatprep.subr.bf16.mxu0 %v9905_v24  ;;  %v6336_v62 = vld [vmem:[#allocation10 + $0x12d8] sm:$0xff]  ;;  %v9819_v60 = vcombine.high %v6496_v2, %v6500_v14  ;;  %v9666_v24 = vcombine.low %v6344_v32, %v6348_v25  ;;  %v9818_v45 = vcombine.low %v6496_v2, %v6500_v14 }
 0x456   :  { %11590 = vst [vmem:[#allocation37_spill] sm:$0xff] %v11341_v7  ;;  %8494 = vmatprep.mubr.bf16.mxu1 %v11565_v61  ;;  %8559 = vmatpush1.bf16.msra.mxu1 %v9690_v54  ;;  %v6340_v50 = vld [vmem:[#allocation10 + $0x12f8] sm:$0xff] }
 0x457   :  { %8560 = vmatprep.subr.bf16.mxu1 %v9683_v1  ;;  %v6488_v9 = vld [vmem:[#allocation10 + $0x1798] sm:$0xff]  ;;  %v9659_v35 = vcombine.high %v6336_v62, %v6340_v50  ;;  %v9658_v8 = vcombine.low %v6336_v62, %v6340_v50 }
 0x458   :  { %8516 = vmatpush1.bf16.msra.mxu0 %v9904_v40  ;;  %v6492_v54 = vld [vmem:[#allocation10 + $0x17b8] sm:$0xff] }
 0x459   :  { %8517 = vmatprep.subr.bf16.mxu0 %v9897_v43  ;;  %v6328_v53 = vld [vmem:[#allocation10 + $0x1298] sm:$0xff]  ;;  %v9811_v40 = vcombine.high %v6488_v9, %v6492_v54 }
 0x45a   :  { %8561 = vmatpush1.bf16.msra.mxu1 %v9682_v38  ;;  %v6332_v1 = vld [vmem:[#allocation10 + $0x12b8] sm:$0xff]  ;;  %v9810_v38 = vcombine.low %v6488_v9, %v6492_v54 }
 0x45b   :  { %8442 = vmatmul.mubr.bf16.gmra.mxu0 %v11566_v13  ;;  %8562 = vmatprep.subr.bf16.mxu1 %v9675_v42  ;;  %v6480_v3 = vld [vmem:[#allocation10 + $0x1758] sm:$0xff] }
 0x45c   :  { %8518 = vmatpush1.bf16.msra.mxu0 %v9896_v6  ;;  %8537 = vmatprep.mubr.bf16.mxu0 %v11520_v48  ;;  %v6484_v43 = vld [vmem:[#allocation10 + $0x1778] sm:$0xff]  ;;  %v9650_v6 = vcombine.low %v6328_v53, %v6332_v1 }
 0x45d   :  { %8495 = vmatmul.mubr.bf16.gmra.mxu1 %v11568_v29  ;;  %8519 = vmatprep.subr.bf16.mxu0 %v9889_v4  ;;  %v6320_v37 = vld [vmem:[#allocation10 + $0x1258] sm:$0xff]  ;;  %v9803_v42 = vcombine.high %v6480_v3, %v6484_v43 }
 0x45e   :  { %8563 = vmatpush1.bf16.msra.mxu1 %v9674_v20  ;;  %8590 = vmatprep.mubr.bf16.mxu1 %v10876_v57  ;;  %v9651_v57 = vcombine.high %v6328_v53, %v6332_v1  ;;  %v6324_v44 = vld [vmem:[#allocation10 + $0x1278] sm:$0xff]  ;;  %v9802_v20 = vcombine.low %v6480_v3, %v6484_v43 }
 0x45f   :  { %8564 = vmatprep.subr.bf16.mxu1 %v9667_v15  ;;  %v6472_v32 = vld [vmem:[#allocation10 + $0x1718] sm:$0xff]  ;;  %v9643_v4 = vcombine.high %v6320_v37, %v6324_v44 }
 0x460   :  { %8520 = vmatpush1.bf16.msra.mxu0 %v9888_v16  ;;  %v6476_v25 = vld [vmem:[#allocation10 + $0x1738] sm:$0xff]  ;;  %v9642_v16 = vcombine.low %v6320_v37, %v6324_v44 }
 0x461   :  { %8611 = vmatprep.subr.bf16.mxu0 %v9819_v60  ;;  %v6312_v2 = vld [vmem:[#allocation10 + $0x1218] sm:$0xff]  ;;  %v9795_v15 = vcombine.high %v6472_v32, %v6476_v25 }
 0x462   :  { %8565 = vmatpush1.bf16.msra.mxu1 %v9666_v24  ;;  %v6316_v14 = vld [vmem:[#allocation10 + $0x1238] sm:$0xff]  ;;  %v9794_v24 = vcombine.low %v6472_v32, %v6476_v25 }
 0x463   :  { %9920 = vmatmul.mubr.msk.bf16.vlgmr.msra.gmra.mxu0 %vm3473_vm5, %v11226_v22  ;;  %8566 = vmatprep.subr.bf16.mxu1 %v9659_v35  ;;  %v6464_v62 = vld [vmem:[#allocation10 + $0x16d8] sm:$0xff]  ;;  %v9635_v60 = vcombine.high %v6312_v2, %v6316_v14 }
 0x464   :  { %8612 = vmatpush1.bf16.msra.mxu0 %v9818_v45  ;;  %8547 = vmatprep.mubr.bf16.mxu0 %v11520_v48  ;;  %v6468_v50 = vld [vmem:[#allocation10 + $0x16f8] sm:$0xff]  ;;  %v9634_v45 = vcombine.low %v6312_v2, %v6316_v14 }
 0x465   :  { %8613 = vmatprep.subr.bf16.mxu0 %v9811_v40  ;;  %v6432_v9 = vld [vmem:[#allocation10 + $0x15d8] sm:$0xff]  ;;  %v9787_v35 = vcombine.high %v6464_v62, %v6468_v50 }
 0x466   :  { %8567 = vmatpush1.bf16.msra.mxu1 %v9658_v8  ;;  %v6436_v54 = vld [vmem:[#allocation10 + $0x15f8] sm:$0xff]  ;;  %v9786_v8 = vcombine.low %v6464_v62, %v6468_v50 }
 0x467   :  { %8568 = vmatprep.subr.bf16.mxu1 %v9651_v57  ;;  %v6456_v53 = vld [vmem:[#allocation10 + $0x1698] sm:$0xff]  ;;  %v9755_v40 = vcombine.high %v6432_v9, %v6436_v54 }
 0x468   :  { %8614 = vmatpush1.bf16.msra.mxu0 %v9810_v38  ;;  %v6460_v1 = vld [vmem:[#allocation10 + $0x16b8] sm:$0xff]  ;;  %v9754_v38 = vcombine.low %v6432_v9, %v6436_v54 }
 0x469   :  { %8615 = vmatprep.subr.bf16.mxu0 %v9803_v42  ;;  %v6424_v3 = vld [vmem:[#allocation10 + $0x1598] sm:$0xff]  ;;  %v9779_v57 = vcombine.high %v6456_v53, %v6460_v1  ;;  %v9778_v42 = vcombine.low %v6456_v53, %v6460_v1 }
 0x46a   :  { %8569 = vmatpush1.bf16.msra.mxu1 %v9650_v6  ;;  %v6428_v43 = vld [vmem:[#allocation10 + $0x15b8] sm:$0xff] }
 0x46b   :  { %9921 = vmatmul.mubr.msk.bf16.gmra.mxu0 %vm3473_vm5, %v11235_v0  ;;  %8570 = vmatprep.subr.bf16.mxu1 %v9643_v4  ;;  %v6452_v37 = vld [vmem:[#allocation10 + $0x1678] sm:$0xff]  ;;  %v9747_v44 = vcombine.high %v6424_v3, %v6428_v43  ;;  %v9746_v4 = vcombine.low %v6424_v3, %v6428_v43 }
 0x46c   :  { %8616 = vmatpush1.bf16.msra.mxu0 %v9802_v20  ;;  %8643 = vmatprep.mubr.bf16.mxu0 %v10881_v10  ;;  %v6448_v10 = vld [vmem:[#allocation10 + $0x1658] sm:$0xff] }
 0x46d   :  { %8617 = vmatprep.subr.bf16.mxu0 %v9795_v15  ;;  %v6416_v6 = vld [vmem:[#allocation10 + $0x1558] sm:$0xff]  ;;  %v9771_v25 = vcombine.high %v6448_v10, %v6452_v37  ;;  %v9770_v15 = vcombine.low %v6448_v10, %v6452_v37 }
 0x46e   :  { %8571 = vmatpush1.bf16.msra.mxu1 %v9642_v16  ;;  %v6420_v32 = vld [vmem:[#allocation10 + $0x1578] sm:$0xff] }
 0x46f   :  { %8572 = vmatprep.subr.bf16.mxu1 %v9635_v60  ;;  %v6440_v20 = vld [vmem:[#allocation10 + $0x1618] sm:$0xff]  ;;  %v9739_v14 = vcombine.high %v6416_v6, %v6420_v32  ;;  %v9738_v60 = vcombine.low %v6416_v6, %v6420_v32 }
 0x470   :  { %8618 = vmatpush1.bf16.msra.mxu0 %v9794_v24  ;;  %v6444_v2 = vld [vmem:[#allocation10 + $0x1638] sm:$0xff] }
 0x471   :  { %8619 = vmatprep.subr.bf16.mxu0 %v9787_v35  ;;  %v6408_v16 = vld [vmem:[#allocation10 + $0x1518] sm:$0xff]  ;;  %v9763_v50 = vcombine.high %v6440_v20, %v6444_v2  ;;  %v9762_v35 = vcombine.low %v6440_v20, %v6444_v2 }
 0x472   :  { %8573 = vmatpush1.bf16.msra.mxu1 %v9634_v45  ;;  %v6412_v62 = vld [vmem:[#allocation10 + $0x1538] sm:$0xff] }
 0x473   :  { %8574 = vmatprep.subr.bf16.mxu1 %v9755_v40  ;;  %v6560_v24 = vld [vmem:[#allocation10 + $0x19d8] sm:$0xff]  ;;  %v9731_v54 = vcombine.high %v6408_v16, %v6412_v62  ;;  %v9730_v40 = vcombine.low %v6408_v16, %v6412_v62 }
 0x474   :  { %8620 = vmatpush1.bf16.msra.mxu0 %v9786_v8  ;;  %v6564_v9 = vld [vmem:[#allocation10 + $0x19f8] sm:$0xff] }
 0x475   :  { %8621 = vmatprep.subr.bf16.mxu0 %v9779_v57  ;;  %v6400_v45 = vld [vmem:[#allocation10 + $0x14d8] sm:$0xff]  ;;  %v9883_v1 = vcombine.high %v6560_v24, %v6564_v9  ;;  %v9882_v57 = vcombine.low %v6560_v24, %v6564_v9 }
 0x476   :  { %8575 = vmatpush2.bf16.msra.mxu1 %v9754_v38  ;;  %v6404_v53 = vld [vmem:[#allocation10 + $0x14f8] sm:$0xff] }
 0x477   :  { %8576 = vmatprep.subr.bf16.mxu1 %v9747_v44  ;;  %v6552_v8 = vld [vmem:[#allocation10 + $0x1998] sm:$0xff]  ;;  %v9723_v43 = vcombine.high %v6400_v45, %v6404_v53  ;;  %v9722_v44 = vcombine.low %v6400_v45, %v6404_v53 }
 0x478   :  { %8622 = vmatpush1.bf16.msra.mxu0 %v9778_v42  ;;  %v6556_v3 = vld [vmem:[#allocation10 + $0x19b8] sm:$0xff] }
 0x479   :  { %8623 = vmatprep.subr.bf16.mxu0 %v9771_v25  ;;  %v6392_v38 = vld [vmem:[#allocation10 + $0x1498] sm:$0xff]  ;;  %v9875_v37 = vcombine.high %v6552_v8, %v6556_v3 }
 0x47a   :  { %8577 = vmatpush2.bf16.msra.mxu1 %v9746_v4  ;;  %v6396_v10 = vld [vmem:[#allocation10 + $0x14b8] sm:$0xff]  ;;  %v9874_v4 = vcombine.low %v6552_v8, %v6556_v3 }
 0x47b   :  { %8578 = vmatprep.subr.bf16.mxu1 %v9739_v14  ;;  %v6544_v42 = vld [vmem:[#allocation10 + $0x1958] sm:$0xff]  ;;  %v9715_v25 = vcombine.high %v6392_v38, %v6396_v10  ;;  %v9714_v62 = vcombine.low %v6392_v38, %v6396_v10 }
 0x47c   :  { %8624 = vmatpush1.bf16.msra.mxu0 %v9770_v15  ;;  %v6548_v6 = vld [vmem:[#allocation10 + $0x1978] sm:$0xff] }
 0x47d   :  { %8625 = vmatprep.subr.bf16.mxu0 %v9763_v50  ;;  %v6384_v20 = vld [vmem:[#allocation10 + $0x1458] sm:$0xff]  ;;  %v9867_v16 = vcombine.high %v6544_v42, %v6548_v6 }
 0x47e   :  { %8579 = vmatpush2.bf16.msra.mxu1 %v9738_v60  ;;  %v6388_v2 = vld [vmem:[#allocation10 + $0x1478] sm:$0xff] }
 0x47f   :  { %8580 = vmatprep.subr.bf16.mxu1 %v9731_v54  ;;  %v6536_v50 = vld [vmem:[#allocation10 + $0x1918] sm:$0xff]  ;;  %v9707_v54 = vcombine.high %v6384_v20, %v6388_v2  ;;  %v9706_v3 = vcombine.low %v6384_v20, %v6388_v2 }
 0x480   :  { %8626 = vmatpush1.bf16.msra.mxu0 %v9762_v35  ;;  %v6540_v60 = vld [vmem:[#allocation10 + $0x1938] sm:$0xff]  ;;  %v9866_v35 = vcombine.low %v6544_v42, %v6548_v6 }
 0x481   :  { %8627 = vmatprep.subr.bf16.mxu0 %v9883_v1  ;;  %v6376_v45 = vld [vmem:[#allocation10 + $0x1418] sm:$0xff]  ;;  %v9859_v8 = vcombine.high %v6536_v50, %v6540_v60 }
 0x482   :  { %8581 = vmatpush2.bf16.msra.mxu1 %v9730_v40  ;;  %v6380_v53 = vld [vmem:[#allocation10 + $0x1438] sm:$0xff] }
 0x483   :  { %v8115_v32 = vpop.f32.mrf.mxu0  ;;  %8582 = vmatprep.subr.bf16.mxu1 %v9723_v43  ;;  %v6528_v43 = vld [vmem:[#allocation10 + $0x18d8] sm:$0xff]  ;;  %v9699_v10 = vcombine.high %v6376_v45, %v6380_v53 }
 0x484   :  { %8628 = vmatpush2.bf16.msra.mxu0 %v9882_v57  ;;  %v6532_v57 = vld [vmem:[#allocation10 + $0x18f8] sm:$0xff] }
 0x485   :  { %v8168_v14 = vpop.f32.mrf.mxu1  ;;  %v8117_v15 = vpop.f32.mrf.mxu0  ;;  %8629 = vmatprep.subr.bf16.mxu0 %v9875_v37  ;;  %v6596_v42 = vld [vmem:[#allocation10 + $0x1af8] sm:$0xff] }
 0x486   :  { %8583 = vmatpush2.bf16.msra.mxu1 %v9722_v44  ;;  %v9858_v44 = vcombine.low %v6536_v50, %v6540_v60  ;;  %v6520_v7 = vld [vmem:[#allocation10 + $0x1898] sm:$0xff]  ;;  %v11368_v60 = vld [vmem:[#allocation12] sm:$0xff]  ;;  %v8169_v58 = vadd.f32 %v8168_v14, %v8115_v32 }
 0x487   :  { %v8170_v24 = vpop.f32.mrf.mxu1  ;;  %v11356_v9 = vpop.f32.mrf.mxu0  ;;  %8584 = vmatprep.subr.bf16.mxu1 %v9715_v25  ;;  %v6592_v25 = vld [vmem:[#allocation10 + $0x1ad8] sm:$0xff] }
 0x488   :  { %8630 = vmatpush2.bf16.msra.mxu0 %v9874_v4  ;;  %v9851_v4 = vcombine.high %v6528_v43, %v6532_v57  ;;  %v9915_v2 = vcombine.high %v6592_v25, %v6596_v42  ;;  %v6584_v30 = vld [vmem:[#allocation10 + $0x1a98] sm:$0xff]  ;;  %v8171_v59 = vadd.f32 %v8170_v24, %v8117_v15 }
 0x489   :  { %v8172_v1 = vpop.f32.mrf.mxu1  ;;  %v11358_v40 = vpop.f32.mrf.mxu0  ;;  %8631 = vmatprep.subr.bf16.mxu0 %v9867_v16  ;;  %v9698_v16 = vcombine.low %v6376_v45, %v6380_v53  ;;  %v9914_v45 = vcombine.low %v6592_v25, %v6596_v42  ;;  %v6512_v53 = vld [vmem:[#allocation10 + $0x1858] sm:$0xff] }
 0x48a   :  { %8585 = vmatpush2.bf16.msra.mxu1 %v9714_v62  ;;  %v6524_v62 = vld [vmem:[#allocation10 + $0x18b8] sm:$0xff] }
 0x48b   :  { %v11360_v38 = vpop.f32.mrf.mxu0  ;;  %8586 = vmatprep.subr.bf16.mxu1 %v9707_v54  ;;  %v8174_v37 = vpop.f32.mrf.mxu1  ;;  %v9850_v54 = vcombine.low %v6528_v43, %v6532_v57  ;;  %v11591_v43 = vld [vmem:[#allocation21_spill] sm:$0xff]  ;;  %v9842_v23 = vcombine.low %v6520_v7, %v6524_v62  ;;  %v6504_v42 = vld [vmem:[#allocation10 + $0x1818] sm:$0xff] }
 0x48c   :  { %8632 = vmatpush2.bf16.msra.mxu0 %v9866_v35  ;;  %v6588_v35 = vld [vmem:[#allocation10 + $0x1ab8] sm:$0xff]  ;;  %v11592_v57 = vsub.s32 0, %v11591_v43  ;;  %v11593_v14 = vsub.s32 1, %v11591_v43 }
 0x48d   :  { %v11362_v6 = vpop.f32.mrf.mxu0  ;;  %8633 = vmatprep.subr.bf16.mxu0 %v9859_v8  ;;  %v8178_v17 = vpop.f32.mrf.mxu1  ;;  %v9843_v8 = vcombine.high %v6520_v7, %v6524_v62  ;;  %v9906_v15 = vcombine.low %v6584_v30, %v6588_v35 }
 0x48e   :  { %8587 = vmatpush2.bf16.msra.mxu1 %v9706_v3  ;;  %v6516_v3 = vld [vmem:[#allocation10 + $0x1878] sm:$0xff]  ;;  %v11373_v51 = vrot.slane %v11368_v60, %v11592_v57  ;;  %v11379_v25 = vrot.slane %v11368_v60, %v11593_v14 }
 0x48f   :  { %v11364_v20 = vpop.f32.mrf.mxu0  ;;  %8588 = vmatprep.subr.bf16.mxu1 %v9699_v10  ;;  %v9907_v10 = vcombine.high %v6584_v30, %v6588_v35  ;;  %v8180_v19 = vpop.f32.mrf.mxu1  ;;  %v9834_v62 = vcombine.low %v6512_v53, %v6516_v3 }
 0x490   :  { %8634 = vmatpush2.bf16.msra.mxu0 %v9858_v44 }
 0x491   :  { %v11366_v50 = vpop.f32.mrf.mxu0  ;;  %8635 = vmatprep.subr.bf16.mxu0 %v9851_v4  ;;  %v6576_v4 = vld [vmem:[#allocation10 + $0x1a58] sm:$0xff]  ;;  %v8182_v57 = vpop.f32.mrf.mxu1 }
 0x492   :  { %8589 = vmatpush2.bf16.msra.mxu1 %v9698_v16  ;;  %v6508_v16 = vld [vmem:[#allocation10 + $0x1838] sm:$0xff]  ;;  %v8183_v14 = vadd.f32 %v8182_v57, %v11364_v20 }
 0x493   :  { %v8221_v28 = vpop.f32.mrf.mxu0  ;;  %8672 = vmatprep.subr.bf16.mxu1 %v9915_v2  ;;  %v9899_v2 = vcombine.high %v6576_v4, %v6580_v46 }
 0x494   :  { %v8222_v44 = vadd.f32 %v8221_v28, %v8169_v58  ;;  %8636 = vmatpush2.bf16.msra.mxu0 %v9850_v54  ;;  %v9835_v28 = vcombine.high %v6512_v53, %v6516_v3  ;;  %v8173_v58 = vadd.f32 %v8172_v1, %v11356_v9  ;;  %v8175_v54 = vadd.f32 %v8174_v37, %v11358_v40  ;;  %v6572_v1 = vld [vmem:[#allocation10 + $0x1a38] sm:$0xff] }
 0x495   :  { %8591 = vmatmul.mubr.bf16.vlgmr.msra.gmra.mxu1 %v11561_v49  ;;  %v8223_v32 = vpop.f32.mrf.mxu0  ;;  %8637 = vmatprep.subr.bf16.mxu0 %v9843_v8  ;;  %v9898_v8 = vcombine.low %v6576_v4, %v6580_v46  ;;  %v8181_v3 = vadd.f32 %v8180_v19, %v11362_v6 }
 0x496   :  { %v8717_v24 = vadd.f32 %v8222_v44, %v11135_v27  ;;  %8600 = vmatprep.mubr.bf16.mxu1 %v11563_v34  ;;  %8673 = vmatpush1.bf16.msra.mxu1 %v9914_v45  ;;  %v8224_v7 = vadd.f32 %v8223_v32, %v8171_v59  ;;  %v6568_v27 = vld [vmem:[#allocation10 + $0x1a18] sm:$0xff]  ;;  %v8179_v34 = vadd.f32 %v8178_v17, %v11360_v38  ;;  %v8184_v32 = vpop.f32.mrf.mxu1 }
 0x497   :  { %v8225_v49 = vpop.f32.mrf.mxu0  ;;  %8674 = vmatprep.subr.bf16.mxu1 %v9907_v10  ;;  %v9827_v45 = vcombine.high %v6504_v42, %v6508_v16  ;;  %v9891_v44 = vcombine.high %v6568_v27, %v6572_v1  ;;  %v9890_v19 = vcombine.low %v6568_v27, %v6572_v1 }
 0x498   :  { %v8791_v30 = vadd.f32 %v11373_v51, %v8717_v24  ;;  %v8718_v35 = vadd.f32 %v8224_v7, %v11140_v12  ;;  %v8226_v9 = vadd.f32 %v8225_v49, %v8173_v58  ;;  %8638 = vmatpush2.bf16.msra.mxu0 %v9842_v23  ;;  %v9826_v23 = vcombine.low %v6504_v42, %v6508_v16 }
 0x499   :  { %v8227_v59 = vpop.f32.mrf.mxu0  ;;  %8639 = vmatprep.subr.bf16.mxu0 %v9835_v28 }
 0x49a   :  { %v8823_v10 = vmax.f32 %v8791_v30, 0.0  ;;  %v8792_v53 = vadd.f32 %v11379_v25, %v8718_v35  ;;  %v8725_v40 = vadd.f32 %v8226_v9, %v11143_v18  ;;  %8675 = vmatpush1.bf16.msra.mxu1 %v9906_v15  ;;  %v8228_v37 = vadd.f32 %v8227_v59, %v8175_v54 }
 0x49b   :  { %v8231_v12 = vpop.f32.mrf.mxu0  ;;  %8676 = vmatprep.subr.bf16.mxu1 %v9899_v2 }
 0x49c   :  { %8855 = vst [vmem:[#allocation13] sm:$0xff] %v8823_v10  ;;  %v8824_v17 = vmax.f32 %v8792_v53, 0.0  ;;  %v8799_v38 = vadd.f32 %v11373_v51, %v8725_v40  ;;  %v8726_v46 = vadd.f32 %v8228_v37, %v11146_v55  ;;  %v8232_v4 = vadd.f32 %v8231_v12, %v8179_v34  ;;  %8640 = vmatpush2.bf16.msra.mxu0 %v9834_v62 }
 0x49d   :  { %8601 = vmatmul.mubr.bf16.gmra.mxu1 %v11566_v13  ;;  %v8233_v18 = vpop.f32.mrf.mxu0  ;;  %8641 = vmatprep.subr.bf16.mxu0 %v9827_v45  ;;  %v8185_v55 = vadd.f32 %v8184_v32, %v11366_v50  ;;  %v11595_v37 = vsub.s32 3, %v11591_v43 }
 0x49e   :  { %8856 = vst [vmem:[#allocation13 + $0x8] sm:$0xff] %v8824_v17  ;;  %v8831_v6 = vmax.f32 %v8799_v38, 0.0  ;;  %v8800_v15 = vadd.f32 %v11379_v25, %v8726_v46  ;;  %v8733_v28 = vadd.f32 %v8232_v4, %v11149_v21  ;;  %8677 = vmatpush1.bf16.msra.mxu1 %v9898_v8  ;;  %v8234_v58 = vadd.f32 %v8233_v18, %v8181_v3 }
 0x49f   :  { %8696 = vmatprep.mubr.bf16.mxu1 %v11520_v48  ;;  %v8235_v24 = vpop.f32.mrf.mxu0  ;;  %8678 = vmatprep.subr.bf16.mxu1 %v9891_v44  ;;  %v11594_v8 = vsub.s32 2, %v11591_v43  ;;  %v8766_v3 = vrot.slane %v11368_v60, %v11595_v37 }
 0x4a0   :  { %8863 = vst [vmem:[#allocation13 + $0x40] sm:$0xff] %v8831_v6  ;;  %v8832_v20 = vmax.f32 %v8800_v15, 0.0  ;;  %v8807_v13 = vadd.f32 %v11373_v51, %v8733_v28  ;;  %v8734_v7 = vadd.f32 %v8234_v58, %v11153_v47  ;;  %v8236_v42 = vadd.f32 %v8235_v24, %v8183_v14  ;;  %8642 = vmatpush2.bf16.msra.mxu0 %v9826_v23  ;;  %v11596_v6 = vld [vmem:[#allocation30_spill] sm:$0xff] }
 0x4a1   :  { %v8237_v16 = vpop.f32.mrf.mxu0 }
 0x4a2   :  { %8864 = vst [vmem:[#allocation13 + $0x48] sm:$0xff] %v8832_v20  ;;  %v8839_v49 = vmax.f32 %v8807_v13, 0.0  ;;  %v8808_v21 = vadd.f32 %v11379_v25, %v8734_v7  ;;  %v8741_v62 = vadd.f32 %v8236_v42, %v11157_v39  ;;  %8679 = vmatpush1.bf16.msra.mxu1 %v9890_v19  ;;  %v8238_v2 = vadd.f32 %v8237_v16, %v8185_v55  ;;  %v11597_v13 = vld [vmem:[#allocation26_spill] sm:$0xff] }
 0x4a3   :  { %8644 = vmatmul.mubr.bf16.vlgmr.msra.gmra.mxu0 %v11564_v26 }
 0x4a4   :  { %8871 = vst [vmem:[#allocation13 + $0x80] sm:$0xff] %v8839_v49  ;;  %v8840_v50 = vmax.f32 %v8808_v21, 0.0  ;;  %v8815_v54 = vadd.f32 %v11373_v51, %v8741_v62  ;;  %v8742_v57 = vadd.f32 %v8238_v2, %v11159_v36  ;;  %8653 = vmatprep.mubr.bf16.mxu0 %v11565_v61 }
 0x4a5   :  { %9922 = vmatmul.mubr.msk.bf16.vlgmr.msra.gmra.mxu1 %vm3473_vm5, %v11226_v22 }
 0x4a6   :  { %8872 = vst [vmem:[#allocation13 + $0x88] sm:$0xff] %v8840_v50  ;;  %v8847_v47 = vmax.f32 %v8815_v54, 0.0  ;;  %v8816_v30 = vadd.f32 %v11379_v25, %v8742_v57  ;;  %8706 = vmatprep.mubr.bf16.mxu1 %v11520_v48  ;;  %v11598_v54 = vld [vmem:[#allocation28_spill] sm:$0xff] }
 0x4a8   :  { %8879 = vst [vmem:[#allocation13 + $0xc0] sm:$0xff] %v8847_v47  ;;  %v8848_v39 = vmax.f32 %v8816_v30, 0.0 }
 0x4aa   :  { %8880 = vst [vmem:[#allocation13 + $0xc8] sm:$0xff] %v8848_v39 }
 0x4ab   :  { %8654 = vmatmul.mubr.bf16.gmra.mxu0 %v11568_v29  ;;  %v8762_v29 = vrot.slane %v11368_v60, %v11594_v8 }
 0x4ad   :  { %9923 = vmatmul.mubr.msk.bf16.gmra.mxu1 %vm3473_vm5, %v11235_v0 }
 0x4c5   :  { %v8274_v36 = vpop.f32.mrf.mxu1 }
 0x4c7   :  { %v8276_v26 = vpop.f32.mrf.mxu1 }
 0x4c9   :  { %v8278_v61 = vpop.f32.mrf.mxu1 }
 0x4cb   :  { %v8280_v51 = vpop.f32.mrf.mxu1 }
 0x4cd   :  { %v8284_v35 = vpop.f32.mrf.mxu1 }
 0x4cf   :  { %v8286_v22 = vpop.f32.mrf.mxu1 }
 0x4d1   :  { %v8288_v9 = vpop.f32.mrf.mxu1 }
 0x4d3   :  { %v8290_v27 = vpop.f32.mrf.mxu1  ;;  %v8327_v1 = vpop.f32.mrf.mxu0 }
 0x4d4   :  { %v8328_v25 = vadd.f32 %v8327_v1, %v8274_v36  ;;  %v11599_v36 = vld [vmem:[#allocation31_spill] sm:$0xff] }
 0x4d5   :  { %v8380_v34 = vpop.f32.mrf.mxu1  ;;  %v8329_v48 = vpop.f32.mrf.mxu0 }
 0x4d6   :  { %v8381_v59 = vadd.f32 %v8380_v34, %v8328_v25  ;;  %v8330_v45 = vadd.f32 %v8329_v48, %v8276_v26  ;;  %v11600_v25 = vld [vmem:[#allocation29_spill] sm:$0xff] }
 0x4d7   :  { %v8382_v10 = vpop.f32.mrf.mxu1  ;;  %v8331_v0 = vpop.f32.mrf.mxu0 }
 0x4d8   :  { %v8719_v53 = vadd.f32 %v8381_v59, %v11190_v52  ;;  %v8383_v40 = vadd.f32 %v8382_v10, %v8330_v45  ;;  %v8332_v12 = vadd.f32 %v8331_v0, %v8278_v61  ;;  %v11601_v45 = vld [vmem:[#allocation27_spill] sm:$0xff] }
 0x4d9   :  { %v8384_v23 = vpop.f32.mrf.mxu1  ;;  %v8333_v44 = vpop.f32.mrf.mxu0 }
 0x4da   :  { %v8793_v32 = vadd.f32 %v8762_v29, %v8719_v53  ;;  %v8720_v17 = vadd.f32 %v8383_v40, %v11192_v31  ;;  %v8385_v38 = vadd.f32 %v8384_v23, %v8332_v12  ;;  %v8334_v46 = vadd.f32 %v8333_v44, %v8280_v51 }
 0x4db   :  { %v8386_v4 = vpop.f32.mrf.mxu1  ;;  %v8337_v14 = vpop.f32.mrf.mxu0 }
 0x4dc   :  { %v8825_v18 = vmax.f32 %v8793_v32, 0.0  ;;  %v8794_v19 = vadd.f32 %v8766_v3, %v8720_v17  ;;  %v8727_v15 = vadd.f32 %v8385_v38, %v11596_v6  ;;  %v8387_v52 = vadd.f32 %v8386_v4, %v8334_v46 }
 0x4dd   :  { %v8338_v28 = vadd.f32 %v8337_v14, %v8284_v35  ;;  %v8339_v58 = vpop.f32.mrf.mxu0  ;;  %v8390_v55 = vpop.f32.mrf.mxu1 }
 0x4de   :  { %8857 = vst [vmem:[#allocation13 + $0x10] sm:$0xff] %v8825_v18  ;;  %v8826_v24 = vmax.f32 %v8794_v19, 0.0  ;;  %v8801_v20 = vadd.f32 %v8762_v29, %v8727_v15  ;;  %v8728_v7 = vadd.f32 %v8387_v52, %v11597_v13  ;;  %v8340_v42 = vadd.f32 %v8339_v58, %v8286_v22 }
 0x4df   :  { %v8391_v16 = vadd.f32 %v8390_v55, %v8338_v28  ;;  %v8341_v31 = vpop.f32.mrf.mxu0  ;;  %v8392_v49 = vpop.f32.mrf.mxu1  ;;  %v8769_v18 = vsub.s32 4, %v11591_v43 }
 0x4e0   :  { %8858 = vst [vmem:[#allocation13 + $0x18] sm:$0xff] %v8826_v24  ;;  %v8833_v21 = vmax.f32 %v8801_v20, 0.0  ;;  %v8802_v62 = vadd.f32 %v8766_v3, %v8728_v7  ;;  %v8342_v2 = vadd.f32 %v8341_v31, %v8288_v9  ;;  %v8393_v50 = vadd.f32 %v8392_v49, %v8340_v42 }
 0x4e1   :  { %v8735_v57 = vadd.f32 %v8391_v16, %v11598_v54  ;;  %v8343_v47 = vpop.f32.mrf.mxu0  ;;  %v8394_v30 = vpop.f32.mrf.mxu1  ;;  %v8770_v55 = vrot.slane %v11368_v60, %v8769_v18 }
 0x4e2   :  { %8865 = vst [vmem:[#allocation13 + $0x50] sm:$0xff] %v8833_v21  ;;  %v8834_v39 = vmax.f32 %v8802_v62, 0.0  ;;  %v8736_v26 = vadd.f32 %v8393_v50, %v11599_v36  ;;  %v8344_v61 = vadd.f32 %v8343_v47, %v8290_v27  ;;  %v8395_v51 = vadd.f32 %v8394_v30, %v8342_v2 }
 0x4e3   :  { %v8809_v35 = vadd.f32 %v8762_v29, %v8735_v57  ;;  %v8396_v22 = vpop.f32.mrf.mxu1 }
 0x4e4   :  { %8866 = vst [vmem:[#allocation13 + $0x58] sm:$0xff] %v8834_v39  ;;  %v8810_v1 = vadd.f32 %v8766_v3, %v8736_v26  ;;  %v8743_v34 = vadd.f32 %v8395_v51, %v11600_v25  ;;  %v8397_v48 = vadd.f32 %v8396_v22, %v8344_v61 }
 0x4e5   :  { %v8841_v59 = vmax.f32 %v8809_v35, 0.0 }
 0x4e6   :  { %v8842_v9 = vmax.f32 %v8810_v1, 0.0  ;;  %v8817_v8 = vadd.f32 %v8762_v29, %v8743_v34  ;;  %v8744_v10 = vadd.f32 %v8397_v48, %v11601_v45 }
 0x4e7   :  { %8873 = vst [vmem:[#allocation13 + $0x90] sm:$0xff] %v8841_v59 }
 0x4e8   :  { %8874 = vst [vmem:[#allocation13 + $0x98] sm:$0xff] %v8842_v9  ;;  %v8849_v0 = vmax.f32 %v8817_v8, 0.0  ;;  %v8818_v53 = vadd.f32 %v8766_v3, %v8744_v10  ;;  %v8773_v3 = vsub.s32 5, %v11591_v43 }
 0x4ea   :  { %8881 = vst [vmem:[#allocation13 + $0xd0] sm:$0xff] %v8849_v0  ;;  %v8850_v40 = vmax.f32 %v8818_v53, 0.0  ;;  %v8774_v42 = vrot.slane %v11368_v60, %v8773_v3  ;;  %v8777_v3 = vsub.s32 6, %v11591_v43 }
 0x4ec   :  { %8882 = vst [vmem:[#allocation13 + $0xd8] sm:$0xff] %v8850_v40 }
 0x513   :  { %v8433_v27 = vpop.f32.mrf.mxu0 }
 0x515   :  { %v8486_v37 = vpop.f32.mrf.mxu1  ;;  %v8435_v12 = vpop.f32.mrf.mxu0 }
 0x516   :  { %v8487_v6 = vadd.f32 %v8486_v37, %v8433_v27  ;;  %v11602_v27 = vld [vmem:[#allocation32_spill] sm:$0xff] }
 0x517   :  { %v8488_v23 = vpop.f32.mrf.mxu1  ;;  %v8437_v44 = vpop.f32.mrf.mxu0 }
 0x518   :  { %v8489_v52 = vadd.f32 %v8488_v23, %v8435_v12 }
 0x519   :  { %v8490_v32 = vpop.f32.mrf.mxu1  ;;  %v8439_v17 = vpop.f32.mrf.mxu0 }
 0x51a   :  { %v8491_v20 = vadd.f32 %v8490_v32, %v8437_v44 }
 0x51b   :  { %v8443_v38 = vpop.f32.mrf.mxu0  ;;  %v8492_v46 = vpop.f32.mrf.mxu1 }
 0x51c   :  { %v8493_v31 = vadd.f32 %v8492_v46, %v8439_v17 }
 0x51d   :  { %v8445_v4 = vpop.f32.mrf.mxu0  ;;  %v8496_v14 = vpop.f32.mrf.mxu1 }
 0x51e   :  { %v8497_v50 = vadd.f32 %v8496_v14, %v8443_v38 }
 0x51f   :  { %v8447_v29 = vpop.f32.mrf.mxu0  ;;  %v8498_v28 = vpop.f32.mrf.mxu1 }
 0x520   :  { %v8499_v36 = vadd.f32 %v8498_v28, %v8445_v4 }
 0x521   :  { %v8449_v19 = vpop.f32.mrf.mxu0  ;;  %v8500_v49 = vpop.f32.mrf.mxu1 }
 0x522   :  { %v8501_v1 = vadd.f32 %v8500_v49, %v8447_v29 }
 0x523   :  { %v8539_v15 = vpop.f32.mrf.mxu0 }
 0x524   :  { %v8540_v58 = vadd.f32 %v8539_v15, %v8487_v6 }
 0x525   :  { %v8541_v24 = vpop.f32.mrf.mxu0 }
 0x526   :  { %v8721_v13 = vadd.f32 %v8540_v58, %v11267_v11  ;;  %v8542_v7 = vadd.f32 %v8541_v24, %v8489_v52  ;;  %v8502_v11 = vpop.f32.mrf.mxu1  ;;  %v8781_v58 = vsub.s32 7, %v11591_v43 }
 0x527   :  { %v8543_v16 = vpop.f32.mrf.mxu0  ;;  %v8503_v9 = vadd.f32 %v8502_v11, %v8449_v19 }
 0x528   :  { %v8795_v21 = vadd.f32 %v8770_v55, %v8721_v13  ;;  %v8722_v62 = vadd.f32 %v8542_v7, %v11272_v33  ;;  %v8544_v2 = vadd.f32 %v8543_v16, %v8491_v20  ;;  %v8778_v13 = vrot.slane %v11368_v60, %v8777_v3  ;;  %v11611_v3 = vld [vmem:[#allocation37_spill] sm:$0xff] }
 0x529   :  { %v8545_v54 = vpop.f32.mrf.mxu0 }
 0x52a   :  { %v8827_v57 = vmax.f32 %v8795_v21, 0.0  ;;  %v8796_v47 = vadd.f32 %v8774_v42, %v8722_v62  ;;  %v8729_v30 = vadd.f32 %v8544_v2, %v11275_v5  ;;  %v8546_v39 = vadd.f32 %v8545_v54, %v8493_v31  ;;  %v11604_v31 = vld [vmem:[#allocation19_spill] sm:$0xff] }
 0x52b   :  { %v8549_v26 = vpop.f32.mrf.mxu0  ;;  %v8782_v62 = vrot.slane %v11368_v60, %v8781_v58 }
 0x52c   :  { %8859 = vst [vmem:[#allocation13 + $0x20] sm:$0xff] %v8827_v57  ;;  %v8828_v61 = vmax.f32 %v8796_v47, 0.0  ;;  %v8803_v51 = vadd.f32 %v8770_v55, %v8729_v30  ;;  %v8730_v35 = vadd.f32 %v8546_v39, %v11278_v63  ;;  %v8550_v22 = vadd.f32 %v8549_v26, %v8497_v50  ;;  %v11605_v47 = vld [vmem:[#allocation22_spill] sm:$0xff] }
 0x52d   :  { %v8551_v25 = vpop.f32.mrf.mxu0 }
 0x52e   :  { %8860 = vst [vmem:[#allocation13 + $0x28] sm:$0xff] %v8828_v61  ;;  %v8835_v33 = vmax.f32 %v8803_v51, 0.0  ;;  %v8804_v34 = vadd.f32 %v8774_v42, %v8730_v35  ;;  %v8737_v48 = vadd.f32 %v8550_v22, %v11281_v41  ;;  %v8552_v59 = vadd.f32 %v8551_v25, %v8499_v36  ;;  %v11603_v41 = vld [vmem:[#allocation33_spill] sm:$0xff]  ;;  %v11606_v51 = vld [vmem:[#allocation20_spill] sm:$0xff] }
 0x52f   :  { %v8553_v5 = vpop.f32.mrf.mxu0 }
 0x530   :  { %8867 = vst [vmem:[#allocation13 + $0x60] sm:$0xff] %v8835_v33  ;;  %v8836_v8 = vmax.f32 %v8804_v34, 0.0  ;;  %v8811_v45 = vadd.f32 %v8770_v55, %v8737_v48  ;;  %v8738_v10 = vadd.f32 %v8552_v59, %v11285_v56  ;;  %v8554_v0 = vadd.f32 %v8553_v5, %v8501_v1  ;;  %v11607_v48 = vld [vmem:[#allocation24_spill] sm:$0xff] }
 0x531   :  { %v8555_v53 = vpop.f32.mrf.mxu0 }
 0x532   :  { %8868 = vst [vmem:[#allocation13 + $0x68] sm:$0xff] %v8836_v8  ;;  %v8843_v63 = vmax.f32 %v8811_v45, 0.0  ;;  %v8812_v40 = vadd.f32 %v8774_v42, %v8738_v10  ;;  %v8745_v37 = vadd.f32 %v8554_v0, %v11602_v27  ;;  %v8556_v12 = vadd.f32 %v8555_v53, %v8503_v9 }
 0x534   :  { %8875 = vst [vmem:[#allocation13 + $0xa0] sm:$0xff] %v8843_v63  ;;  %v8844_v23 = vmax.f32 %v8812_v40, 0.0  ;;  %v8819_v44 = vadd.f32 %v8770_v55, %v8745_v37  ;;  %v8746_v32 = vadd.f32 %v8556_v12, %v11603_v41  ;;  %v11608_v40 = vld [vmem:[#allocation23_spill] sm:$0xff] }
 0x536   :  { %8876 = vst [vmem:[#allocation13 + $0xa8] sm:$0xff] %v8844_v23  ;;  %v8851_v17 = vmax.f32 %v8819_v44, 0.0  ;;  %v8820_v38 = vadd.f32 %v8774_v42, %v8746_v32  ;;  %v11609_v44 = vld [vmem:[#allocation18_spill] sm:$0xff] }
 0x538   :  { %8883 = vst [vmem:[#allocation13 + $0xe0] sm:$0xff] %v8851_v17  ;;  %v8852_v46 = vmax.f32 %v8820_v38, 0.0 }
 0x53a   :  { %8884 = vst [vmem:[#allocation13 + $0xe8] sm:$0xff] %v8852_v46 }
 0x555   :  { %v8592_v56 = vpop.f32.mrf.mxu1 }
 0x557   :  { %v8594_v4 = vpop.f32.mrf.mxu1 }
 0x559   :  { %v8596_v29 = vpop.f32.mrf.mxu1 }
 0x55b   :  { %v8598_v14 = vpop.f32.mrf.mxu1 }
 0x55d   :  { %v8602_v18 = vpop.f32.mrf.mxu1 }
 0x55f   :  { %v8604_v19 = vpop.f32.mrf.mxu1 }
 0x561   :  { %v8606_v6 = vpop.f32.mrf.mxu1 }
 0x563   :  { %v8608_v15 = vpop.f32.mrf.mxu1  ;;  %v8645_v52 = vpop.f32.mrf.mxu0 }
 0x564   :  { %v8646_v28 = vadd.f32 %v8645_v52, %v8592_v56 }
 0x565   :  { %v8698_v55 = vpop.f32.mrf.mxu1  ;;  %v8647_v24 = vpop.f32.mrf.mxu0 }
 0x566   :  { %v8699_v20 = vadd.f32 %v8698_v55, %v8646_v28  ;;  %v8648_v7 = vadd.f32 %v8647_v24, %v8594_v4  ;;  %v11610_v4 = vld [vmem:[#allocation25_spill] sm:$0xff] }
 0x567   :  { %v8700_v42 = vpop.f32.mrf.mxu1  ;;  %v8649_v16 = vpop.f32.mrf.mxu0 }
 0x568   :  { %v8723_v49 = vadd.f32 %v8699_v20, %v11604_v31  ;;  %v8701_v21 = vadd.f32 %v8700_v42, %v8648_v7  ;;  %v8650_v2 = vadd.f32 %v8649_v16, %v8596_v29 }
 0x569   :  { %v8702_v50 = vpop.f32.mrf.mxu1  ;;  %v8651_v54 = vpop.f32.mrf.mxu0 }
 0x56a   :  { %v8797_v57 = vadd.f32 %v8778_v13, %v8723_v49  ;;  %v8724_v30 = vadd.f32 %v8701_v21, %v11605_v47  ;;  %v8703_v43 = vadd.f32 %v8702_v50, %v8650_v2  ;;  %v8652_v39 = vadd.f32 %v8651_v54, %v8598_v14 }
 0x56b   :  { %v8704_v36 = vpop.f32.mrf.mxu1  ;;  %v8655_v26 = vpop.f32.mrf.mxu0 }
 0x56c   :  { %v8829_v11 = vmax.f32 %v8797_v57, 0.0  ;;  %v8798_v61 = vadd.f32 %v8782_v62, %v8724_v30  ;;  %v8731_v35 = vadd.f32 %v8703_v43, %v11606_v51  ;;  %v8705_v22 = vadd.f32 %v8704_v36, %v8652_v39 }
 0x56d   :  { %v8656_v1 = vadd.f32 %v8655_v26, %v8602_v18  ;;  %v8708_v25 = vpop.f32.mrf.mxu1  ;;  %v8657_v33 = vpop.f32.mrf.mxu0 }
 0x56e   :  { %8861 = vst [vmem:[#allocation13 + $0x30] sm:$0xff] %v8829_v11  ;;  %v8830_v60 = vmax.f32 %v8798_v61, 0.0  ;;  %v8805_v34 = vadd.f32 %v8778_v13, %v8731_v35  ;;  %v8732_v59 = vadd.f32 %v8705_v22, %v11607_v48  ;;  %v8658_v9 = vadd.f32 %v8657_v33, %v8604_v19 }
 0x56f   :  { %v8709_v5 = vadd.f32 %v8708_v25, %v8656_v1  ;;  %v8710_v8 = vpop.f32.mrf.mxu1  ;;  %v8659_v45 = vpop.f32.mrf.mxu0 }
 0x570   :  { %8862 = vst [vmem:[#allocation13 + $0x38] sm:$0xff] %v8830_v60  ;;  %v8837_v10 = vmax.f32 %v8805_v34, 0.0  ;;  %v8806_v0 = vadd.f32 %v8782_v62, %v8732_v59  ;;  %v8711_v53 = vadd.f32 %v8710_v8, %v8658_v9  ;;  %v8660_v63 = vadd.f32 %v8659_v45, %v8606_v6 }
 0x571   :  { %v8739_v27 = vadd.f32 %v8709_v5, %v11608_v40  ;;  %v8712_v37 = vpop.f32.mrf.mxu1  ;;  %v8661_v12 = vpop.f32.mrf.mxu0 }
 0x572   :  { %8869 = vst [vmem:[#allocation13 + $0x70] sm:$0xff] %v8837_v10  ;;  %v8838_v23 = vmax.f32 %v8806_v0, 0.0  ;;  %v8740_v41 = vadd.f32 %v8711_v53, %v11609_v44  ;;  %v8713_v32 = vadd.f32 %v8712_v37, %v8660_v63  ;;  %v8662_v17 = vadd.f32 %v8661_v12, %v8608_v15 }
 0x573   :  { %v8813_v38 = vadd.f32 %v8778_v13, %v8739_v27  ;;  %v8714_v46 = vpop.f32.mrf.mxu1 }
 0x574   :  { %8870 = vst [vmem:[#allocation13 + $0x78] sm:$0xff] %v8838_v23  ;;  %v8814_v56 = vadd.f32 %v8782_v62, %v8740_v41  ;;  %v8747_v29 = vadd.f32 %v8713_v32, %v11610_v4  ;;  %v8715_v14 = vadd.f32 %v8714_v46, %v8662_v17 }
 0x575   :  { %v8845_v18 = vmax.f32 %v8813_v38, 0.0 }
 0x576   :  { %v8846_v19 = vmax.f32 %v8814_v56, 0.0  ;;  %v8821_v6 = vadd.f32 %v8778_v13, %v8747_v29  ;;  %v8748_v52 = vadd.f32 %v8715_v14, %v11611_v3 }
 0x577   :  { %8877 = vst [vmem:[#allocation13 + $0xb0] sm:$0xff] %v8845_v18 }
 0x578   :  { %8878 = vst [vmem:[#allocation13 + $0xb8] sm:$0xff] %v8846_v19  ;;  %v8853_v28 = vmax.f32 %v8821_v6, 0.0  ;;  %v8822_v58 = vadd.f32 %v8782_v62, %v8748_v52 }
 0x57a   :  { %8885 = vst [vmem:[#allocation13 + $0xf0] sm:$0xff] %v8853_v28  ;;  %v8854_v15 = vmax.f32 %v8822_v58, 0.0 }
 0x57c   :  { %8886 = vst [vmem:[#allocation13 + $0xf8] sm:$0xff] %v8854_v15 }
 0x57d   :  { %10150 = shalt.err (!%p10147_p1)
}
 0x57e   :  { %s10181_s22 = smov 1024  }
 0x57f   :  { %8898 = dma.vmem_to_hbm [thread:$0]  %s8893_s4, 4096, %s11461_s5, [#allocation6], %s10181_s22, %s10181_s22, %s10174_s9  }
 0x580   :  { %10165 = dma.done.wait [#allocation6], 4096  }
 0x581   :  { %10166 = vsyncadd [#allocation6], 4294963200 }
 0x582   :  { %8902 = vsyncpa [#allocation5], 1 }
 0x583   :  { %8903 = vsyncpa [#allocation8], 1 }
 0x584   :  { %8904 = vsyncpa [#allocation11], 1 }
 0x585   :  { %8905 = vsyncpa [#allocation6], 1 }

</bundles_post_ra>
